<compile_context>
chip_gen: v5e
topology: v5e:2x2
jax: 0.10.0
libtpu: 0.0.40
codegen_flags: <defaults>
</compile_context>

<pallas_src>
import math
import functools

import jax
import jax.numpy as jnp
from jax.experimental import pallas as pl
from jax.experimental.pallas import tpu as pltpu


# ----------------------------------------------------------------------------
# In-kernel helpers (operate on VMEM-resident values / refs)
# ----------------------------------------------------------------------------
def _mm(x_f32, w, b_f32):
    """y = x @ w + b with w in bf16 (or f32), f32 accumulation."""
    y = jnp.dot(x_f32.astype(w.dtype), w, preferred_element_type=jnp.float32)
    return y + b_f32


def _ln(x, g, b, eps=1e-5):
    mu = jnp.mean(x, axis=-1, keepdims=True)
    xc = x - mu
    var = jnp.mean(xc * xc, axis=-1, keepdims=True)
    return xc * jax.lax.rsqrt(var + eps) * g + b


def _mha(attn_sc, q, k, v, B, Nq, Nk, H, dh, scale):
    """Multi-head attention on (B*Nq, E)/(B*Nk, E) slabs.

    Per-(batch, head) outputs are written into the VMEM scratch slab `attn_sc`
    (B*Nq, H*dh) instead of being concatenated (avoids lane-relayout concats).
    """
    for b in range(B):
        qb = q[b * Nq:(b + 1) * Nq, :]
        kb = k[b * Nk:(b + 1) * Nk, :]
        vb = v[b * Nk:(b + 1) * Nk, :]
        for h in range(H):
            c0 = h * dh
            qh = qb[:, c0:c0 + dh] * scale            # fold 1/sqrt(dh) into q
            kh = kb[:, c0:c0 + dh]
            vh = vb[:, c0:c0 + dh]
            s = jax.lax.dot_general(qh, kh, (((1,), (1,)), ((), ())),
                                    preferred_element_type=jnp.float32)  # (Nq,Nk)
            m = jnp.max(s, axis=-1, keepdims=True)
            p = jnp.exp(s - m)
            p = p * pl.reciprocal(jnp.sum(p, axis=-1, keepdims=True), approx=True)
            attn_sc[b * Nq:(b + 1) * Nq, c0:c0 + dh] = jnp.dot(
                p, vh, preferred_element_type=jnp.float32)
    return attn_sc[...]                               # (B*Nq, E) f32


# ----------------------------------------------------------------------------
# Fused kernel 1: embeddings + encoder stack + enc-norm + cross K/V projection
# grid = (n_enc,) over encoder layers; per-layer weights streamed by BlockSpec.
# ----------------------------------------------------------------------------
def _encoder_stack_kernel(
        xf_ref, xv_ref, wf_ref, bf_ref, wv_ref, bv_ref,
        wqkv_ref, bqkv_ref, wo_ref, bo_ref,
        w1_ref, b1_ref, w2_ref, b2_ref,
        ln1g_ref, ln1b_ref, ln2g_ref, ln2b_ref,
        encg_ref, encb_ref, wkv_ref, bkv_ref,
        tgt_ref, kv_ref,
        x_sc, attn_sc,
        *, B, N, H, dh, n_dec, eps=1e-5):
    l = pl.program_id(0)
    E = H * dh
    scale = 1.0 / math.sqrt(dh)

    # --- first step: both embeddings + ReLU; repeat x_fixed over the sequence
    @pl.when(l == 0)
    def _():
        wv = wv_ref[...]
        x_sc[...] = jnp.maximum(
            jnp.dot(xv_ref[...].astype(wv.dtype), wv,
                    preferred_element_type=jnp.float32) + bv_ref[...], 0.0)
        wf = wf_ref[...]
        xf = jnp.maximum(
            jnp.dot(xf_ref[...].astype(wf.dtype), wf,
                    preferred_element_type=jnp.float32) + bf_ref[...], 0.0)   # (B,E)
        for b in range(B):
            tgt_ref[b * N:(b + 1) * N, :] = jnp.broadcast_to(
                xf[b:b + 1, :], (N, E)).astype(tgt_ref.dtype)

    # --- encoder layer l (post-LN, as in nn.TransformerEncoderLayer) --------
    x = x_sc[...]
    qkv = _mm(x, wqkv_ref[...], bqkv_ref[...])                        # (BN, 3E)
    a = _mha(attn_sc, qkv[:, :E], qkv[:, E:2 * E], qkv[:, 2 * E:],
             B, N, N, H, dh, scale)
    a = _mm(a, wo_ref[...], bo_ref[...])
    x = _ln(x + a, ln1g_ref[...], ln1b_ref[...], eps)
    hid = jnp.maximum(_mm(x, w1_ref[...], b1_ref[...]), 0.0)
    x = _ln(x + _mm(hid, w2_ref[...], b2_ref[...]),
            ln2g_ref[...], ln2b_ref[...], eps)
    x_sc[...] = x

    # --- last step: encoder final LayerNorm fused with ALL decoder layers' --
    # --- cross-attention K/V projections, emitted per-layer in bf16.       --
    @pl.when(l == pl.num_programs(0) - 1)
    def _():
        mem = _ln(x, encg_ref[...], encb_ref[...], eps)
        for i in range(n_dec):
            kv_ref[i] = _mm(mem, wkv_ref[i], bkv_ref[i]).astype(kv_ref.dtype)


# ----------------------------------------------------------------------------
# Fused kernel 2: decoder stack + final LayerNorm + mean-pool + both heads
# grid = (n_dec,) over decoder layers; per-layer weights and the per-layer
# cross K/V slab streamed by BlockSpec along the same axis.
# ----------------------------------------------------------------------------
def _decoder_stack_kernel(
        tgt_ref, kv_ref,
        swqkv_ref, sbqkv_ref, swo_ref, sbo_ref,
        cwq_ref, cbq_ref, cwo_ref, cbo_ref,
        w1_ref, b1_ref, w2_ref, b2_ref,
        ln1g_ref, ln1b_ref, ln2g_ref, ln2b_ref, ln3g_ref, ln3b_ref,
        decg_ref, decb_ref,
        fcvw_ref, fcvb_ref, fcfw_ref, fcfb_ref,
        ovar_ref, ofix_ref,
        x_sc, attn_sc,
        *, B, N, H, dh, eps=1e-5):
    l = pl.program_id(0)
    E = H * dh
    scale = 1.0 / math.sqrt(dh)

    @pl.when(l == 0)
    def _():
        x_sc[...] = tgt_ref[...]

    x = x_sc[...]
    # self-attention (no tgt mask; matches nn.Transformer called without masks)
    qkv = _mm(x, swqkv_ref[...], sbqkv_ref[...])
    a = _mha(attn_sc, qkv[:, :E], qkv[:, E:2 * E], qkv[:, 2 * E:],
             B, N, N, H, dh, scale)
    a = _mm(a, swo_ref[...], sbo_ref[...])
    x = _ln(x + a, ln1g_ref[...], ln1b_ref[...], eps)
    # cross-attention (K/V of memory precomputed once per layer by kernel 1)
    q = _mm(x, cwq_ref[...], cbq_ref[...])
    kv = kv_ref[...].astype(jnp.float32)                              # (BN, 2E)
    a = _mha(attn_sc, q, kv[:, :E], kv[:, E:2 * E], B, N, N, H, dh, scale)
    a = _mm(a, cwo_ref[...], cbo_ref[...])
    x = _ln(x + a, ln2g_ref[...], ln2b_ref[...], eps)
    # FFN
    hid = jnp.maximum(_mm(x, w1_ref[...], b1_ref[...]), 0.0)
    x = _ln(x + _mm(hid, w2_ref[...], b2_ref[...]),
            ln3g_ref[...], ln3b_ref[...], eps)
    x_sc[...] = x

    # --- last step: final decoder LayerNorm + per-token head + pooled head --
    @pl.when(l == pl.num_programs(0) - 1)
    def _():
        y = _ln(x, decg_ref[...], decb_ref[...], eps)                 # (BN, E)
        # fc_out_variable (E -> 1): VPU multiply + lane reduce (no N=1 matmul)
        ovar_ref[...] = (jnp.sum(y * fcvw_ref[...], axis=-1, keepdims=True)
                         + fcvb_ref[...]).astype(ovar_ref.dtype)
        # AdaptiveAvgPool1d(1) == mean over the sequence, then fc_out_fixed
        rows = [jnp.mean(y[b * N:(b + 1) * N, :], axis=0, keepdims=True)
                for b in range(B)]
        agg = jnp.concatenate(rows, axis=0)                           # (B, E)
        ofix_ref[...] = (jnp.dot(agg, fcfw_ref[...],
                                 preferred_element_type=jnp.float32)
                         + fcfb_ref[...]).astype(ofix_ref.dtype)


# ----------------------------------------------------------------------------
# BlockSpec helpers
# ----------------------------------------------------------------------------
def _const_spec(shape):
    """Full-array block whose index never changes (DMA'd once per call)."""
    n = len(shape)
    return pl.BlockSpec(tuple(shape), lambda l, _n=n: (0,) * _n)


def _layer_spec(shape):
    """Stacked (L, ...) array: stream block l along the layer grid axis."""
    rest = tuple(shape[1:])
    n = len(rest)
    return pl.BlockSpec((None,) + rest, lambda l, _n=n: (l,) + (0,) * _n)


# ----------------------------------------------------------------------------
# Model forward (2 pallas_calls total)
# ----------------------------------------------------------------------------
def variable_input_nn_forward(params, x_fixed, x_variable, num_heads):
    B, N, V = x_variable.shape
    E = params["emb_fixed_w"].shape[1]
    dh = E // num_heads
    BN = B * N
    enc = params["enc"]
    dec = params["dec"]
    n_enc = enc["wqkv"].shape[0]
    n_dec = dec["swqkv"].shape[0]

    xv2 = x_variable.reshape(BN, V)

    # --- call 1: embeddings + encoder stack + enc-norm + cross K/V ----------
    enc_inputs = [
        x_fixed, xv2,
        params["emb_fixed_w"], params["emb_fixed_b"],
        params["emb_var_w"], params["emb_var_b"],
        enc["wqkv"], enc["bqkv"], enc["wo"], enc["bo"],
        enc["w1"], enc["b1"], enc["w2"], enc["b2"],
        enc["ln1_g"], enc["ln1_b"], enc["ln2_g"], enc["ln2_b"],
        params["enc_norm_g"], params["enc_norm_b"],
        dec["cwkv"], dec["cbkv"],
    ]
    enc_specs = ([_const_spec(x.shape) for x in enc_inputs[:6]]
                 + [_layer_spec(x.shape) for x in enc_inputs[6:18]]
                 + [_const_spec(x.shape) for x in enc_inputs[18:]])
    tgt, kv = pl.pallas_call(
        functools.partial(_encoder_stack_kernel, B=B, N=N, H=num_heads, dh=dh,
                          n_dec=n_dec),
        out_shape=(jax.ShapeDtypeStruct((BN, E), jnp.float32),
                   jax.ShapeDtypeStruct((n_dec, BN, 2 * E), jnp.bfloat16)),
        grid=(n_enc,),
        in_specs=enc_specs,
        out_specs=(_const_spec((BN, E)), _const_spec((n_dec, BN, 2 * E))),
        scratch_shapes=[pltpu.VMEM((BN, E), jnp.float32),   # carried activation
                        pltpu.VMEM((BN, E), jnp.float32)],  # attention slab
        compiler_params=pltpu.CompilerParams(dimension_semantics=("arbitrary",)),
    )(*enc_inputs)

    # --- call 2: decoder stack + final LayerNorm + both heads ---------------
    dec_inputs = [
        tgt, kv,
        dec["swqkv"], dec["sbqkv"], dec["swo"], dec["sbo"],
        dec["cwq"], dec["cbq"], dec["cwo"], dec["cbo"],
        dec["w1"], dec["b1"], dec["w2"], dec["b2"],
        dec["ln1_g"], dec["ln1_b"], dec["ln2_g"], dec["ln2_b"],
        dec["ln3_g"], dec["ln3_b"],
        params["dec_norm_g"], params["dec_norm_b"],
        params["fc_var_w"], params["fc_var_b"],
        params["fc_fix_w"], params["fc_fix_b"],
    ]
    dec_specs = ([_const_spec(tgt.shape), _layer_spec(kv.shape)]
                 + [_layer_spec(x.shape) for x in dec_inputs[2:20]]
                 + [_const_spec(x.shape) for x in dec_inputs[20:]])
    ovar, ofix = pl.pallas_call(
        functools.partial(_decoder_stack_kernel, B=B, N=N, H=num_heads, dh=dh),
        out_shape=(jax.ShapeDtypeStruct((BN, 1), jnp.float32),
                   jax.ShapeDtypeStruct((B, 6), jnp.float32)),
        grid=(n_dec,),
        in_specs=dec_specs,
        out_specs=(_const_spec((BN, 1)), _const_spec((B, 6))),
        scratch_shapes=[pltpu.VMEM((BN, E), jnp.float32),
                        pltpu.VMEM((BN, E), jnp.float32)],
        compiler_params=pltpu.CompilerParams(dimension_semantics=("arbitrary",)),
    )(*dec_inputs)

    return ovar.reshape(B, N), ofix


# ----------------------------------------------------------------------------
# Deterministic parameter init (PyTorch-Linear-style uniform fan_in init).
# Matmul weights are bf16 and stacked along a leading layer axis so a single
# pallas_call can stream them with a layer grid; biases / LN params are f32.
# ----------------------------------------------------------------------------
def _uni(key, shape, fan_in):
    s = 1.0 / math.sqrt(fan_in)
    return jax.random.uniform(key, shape, jnp.float32, -s, s)


def _linear(key, din, dout, w_dtype=jnp.bfloat16):
    kw, kb = jax.random.split(key)
    return _uni(kw, (din, dout), din).astype(w_dtype), _uni(kb, (1, dout), din)


def init_params(key, G, V, E, FF, n_enc, n_dec):
    ks = jax.random.split(key, 4 + n_enc + n_dec)

    emb_fw, emb_fb = _linear(ks[0], G, E)
    emb_vw, emb_vb = _linear(ks[1], V, E)

    kvw, kvb = jax.random.split(ks[2])
    fc_var_w = _uni(kvw, (1, E), E)                 # row vector, used on VPU
    fc_var_b = _uni(kvb, (1, 1), E)
    kfw, kfb = jax.random.split(ks[3])
    fc_fix_w = _uni(kfw, (E, 6), E)
    fc_fix_b = _uni(kfb, (1, 6), E)

    def enc_layer(k):
        kk = jax.random.split(k, 4)
        wqkv, bqkv = _linear(kk[0], E, 3 * E)
        wo, bo = _linear(kk[1], E, E)
        w1, b1 = _linear(kk[2], E, FF)
        w2, b2 = _linear(kk[3], FF, E)
        return dict(wqkv=wqkv, bqkv=bqkv, wo=wo, bo=bo, w1=w1, b1=b1, w2=w2, b2=b2)

    def dec_layer(k):
        kk = jax.random.split(k, 7)
        swqkv, sbqkv = _linear(kk[0], E, 3 * E)
        swo, sbo = _linear(kk[1], E, E)
        cwq, cbq = _linear(kk[2], E, E)
        cwkv, cbkv = _linear(kk[3], E, 2 * E)       # cross K|V packed per layer
        cwo, cbo = _linear(kk[4], E, E)
        w1, b1 = _linear(kk[5], E, FF)
        w2, b2 = _linear(kk[6], FF, E)
        return dict(swqkv=swqkv, sbqkv=sbqkv, swo=swo, sbo=sbo,
                    cwq=cwq, cbq=cbq, cwkv=cwkv, cbkv=cbkv, cwo=cwo, cbo=cbo,
                    w1=w1, b1=b1, w2=w2, b2=b2)

    enc_layers = [enc_layer(ks[4 + i]) for i in range(n_enc)]
    dec_layers = [dec_layer(ks[4 + n_enc + i]) for i in range(n_dec)]

    def stacked(layers):
        return {name: jnp.stack([lp[name] for lp in layers], axis=0)
                for name in layers[0]}

    def ln_pair(L, D):
        return jnp.ones((L, 1, D), jnp.float32), jnp.zeros((L, 1, D), jnp.float32)

    enc = stacked(enc_layers)
    enc["ln1_g"], enc["ln1_b"] = ln_pair(n_enc, E)
    enc["ln2_g"], enc["ln2_b"] = ln_pair(n_enc, E)

    dec = stacked(dec_layers)
    dec["ln1_g"], dec["ln1_b"] = ln_pair(n_dec, E)
    dec["ln2_g"], dec["ln2_b"] = ln_pair(n_dec, E)
    dec["ln3_g"], dec["ln3_b"] = ln_pair(n_dec, E)

    return dict(emb_fixed_w=emb_fw, emb_fixed_b=emb_fb,
                emb_var_w=emb_vw, emb_var_b=emb_vb,
                enc=enc, dec=dec,
                enc_norm_g=jnp.ones((1, E), jnp.float32),
                enc_norm_b=jnp.zeros((1, E), jnp.float32),
                dec_norm_g=jnp.ones((1, E), jnp.float32),
                dec_norm_b=jnp.zeros((1, E), jnp.float32),
                fc_var_w=fc_var_w, fc_var_b=fc_var_b,
                fc_fix_w=fc_fix_w, fc_fix_b=fc_fix_b)


# ----------------------------------------------------------------------------
if __name__ == "__main__":
    # Small, module-consistent sizes:
    #   game_encoding_size=64, embedding_size=128, vector_input_size=48,
    #   num_heads=4, num_transformer_layers=2
    #   (nn.Transformer defaults kept: 6 decoder layers, dim_feedforward=2048)
    B, N = 2, 8
    G, V, E, FF = 64, 48, 128, 2048
    NUM_HEADS, N_ENC, N_DEC = 4, 2, 6

    key = jax.random.PRNGKey(0)
    k_params, k_xf, k_xv = jax.random.split(key, 3)
    params = init_params(k_params, G, V, E, FF, N_ENC, N_DEC)

    x_fixed = jax.random.normal(k_xf, (B, G), jnp.float32)
    x_variable = jax.random.normal(k_xv, (B, N, V), jnp.float32)

    fwd = jax.jit(functools.partial(variable_input_nn_forward, num_heads=NUM_HEADS))
    out_var, out_fix = fwd(params, x_fixed, x_variable)
    jax.block_until_ready((out_var, out_fix))

    assert out_var.shape == (B, N), out_var.shape
    assert out_fix.shape == (B, 6), out_fix.shape
    assert bool(jnp.all(jnp.isfinite(out_var))) and bool(jnp.all(jnp.isfinite(out_fix)))
    print("KERNEL_OK")
</pallas_src>

<mosaic_0001>
module attributes {stable_mosaic.version = 11 : i64} {
  func.func @_decoder_stack_kernel(%arg0: i32, %arg1: memref<16x128xf32, #tpu.memory_space<vmem>>, %arg2: memref<1x16x256xbf16, #tpu.memory_space<vmem>>, %arg3: memref<1x128x384xbf16, #tpu.memory_space<vmem>>, %arg4: memref<1x1x384xf32, #tpu.memory_space<vmem>>, %arg5: memref<1x128x128xbf16, #tpu.memory_space<vmem>>, %arg6: memref<1x1x128xf32, #tpu.memory_space<vmem>>, %arg7: memref<1x128x128xbf16, #tpu.memory_space<vmem>>, %arg8: memref<1x1x128xf32, #tpu.memory_space<vmem>>, %arg9: memref<1x128x128xbf16, #tpu.memory_space<vmem>>, %arg10: memref<1x1x128xf32, #tpu.memory_space<vmem>>, %arg11: memref<1x128x2048xbf16, #tpu.memory_space<vmem>>, %arg12: memref<1x1x2048xf32, #tpu.memory_space<vmem>>, %arg13: memref<1x2048x128xbf16, #tpu.memory_space<vmem>>, %arg14: memref<1x1x128xf32, #tpu.memory_space<vmem>>, %arg15: memref<1x1x128xf32, #tpu.memory_space<vmem>>, %arg16: memref<1x1x128xf32, #tpu.memory_space<vmem>>, %arg17: memref<1x1x128xf32, #tpu.memory_space<vmem>>, %arg18: memref<1x1x128xf32, #tpu.memory_space<vmem>>, %arg19: memref<1x1x128xf32, #tpu.memory_space<vmem>>, %arg20: memref<1x1x128xf32, #tpu.memory_space<vmem>>, %arg21: memref<1x128xf32, #tpu.memory_space<vmem>>, %arg22: memref<1x128xf32, #tpu.memory_space<vmem>>, %arg23: memref<1x128xf32, #tpu.memory_space<vmem>>, %arg24: memref<1x1xf32, #tpu.memory_space<vmem>>, %arg25: memref<128x6xf32, #tpu.memory_space<vmem>>, %arg26: memref<1x6xf32, #tpu.memory_space<vmem>>, %arg27: memref<16x1xf32, #tpu.memory_space<vmem>>, %arg28: memref<2x6xf32, #tpu.memory_space<vmem>>, %arg29: memref<16x128xf32, #tpu.memory_space<vmem>>, %arg30: memref<16x128xf32, #tpu.memory_space<vmem>>) attributes {dimension_semantics = [#tpu.dimension_semantics<arbitrary>], iteration_bounds = array<i64: 6>, scalar_prefetch = 0 : i64, scratch_operands = 2 : i64, tpu.core_type = #tpu.core_type<tc>, window_params = [{pipeline_mode = #tpu.pipeline_mode<synchronous>, transform_indices = @transform_0, window_bounds = array<i64: 16, 128>}, {transform_indices = @transform_1, window_bounds = array<i64: 1, 16, 256>}, {transform_indices = @transform_2, window_bounds = array<i64: 1, 128, 384>}, {transform_indices = @transform_3, window_bounds = array<i64: 1, 1, 384>}, {transform_indices = @transform_4, window_bounds = array<i64: 1, 128, 128>}, {transform_indices = @transform_5, window_bounds = array<i64: 1, 1, 128>}, {transform_indices = @transform_6, window_bounds = array<i64: 1, 128, 128>}, {transform_indices = @transform_7, window_bounds = array<i64: 1, 1, 128>}, {transform_indices = @transform_8, window_bounds = array<i64: 1, 128, 128>}, {transform_indices = @transform_9, window_bounds = array<i64: 1, 1, 128>}, {transform_indices = @transform_10, window_bounds = array<i64: 1, 128, 2048>}, {transform_indices = @transform_11, window_bounds = array<i64: 1, 1, 2048>}, {transform_indices = @transform_12, window_bounds = array<i64: 1, 2048, 128>}, {transform_indices = @transform_13, window_bounds = array<i64: 1, 1, 128>}, {transform_indices = @transform_14, window_bounds = array<i64: 1, 1, 128>}, {transform_indices = @transform_15, window_bounds = array<i64: 1, 1, 128>}, {transform_indices = @transform_16, window_bounds = array<i64: 1, 1, 128>}, {transform_indices = @transform_17, window_bounds = array<i64: 1, 1, 128>}, {transform_indices = @transform_18, window_bounds = array<i64: 1, 1, 128>}, {transform_indices = @transform_19, window_bounds = array<i64: 1, 1, 128>}, {pipeline_mode = #tpu.pipeline_mode<synchronous>, transform_indices = @transform_20, window_bounds = array<i64: 1, 128>}, {pipeline_mode = #tpu.pipeline_mode<synchronous>, transform_indices = @transform_21, window_bounds = array<i64: 1, 128>}, {pipeline_mode = #tpu.pipeline_mode<synchronous>, transform_indices = @transform_22, window_bounds = array<i64: 1, 128>}, {pipeline_mode = #tpu.pipeline_mode<synchronous>, transform_indices = @transform_23, window_bounds = array<i64: 1, 1>}, {pipeline_mode = #tpu.pipeline_mode<synchronous>, transform_indices = @transform_24, window_bounds = array<i64: 128, 6>}, {pipeline_mode = #tpu.pipeline_mode<synchronous>, transform_indices = @transform_25, window_bounds = array<i64: 1, 6>}, {pipeline_mode = #tpu.pipeline_mode<synchronous>, transform_indices = @transform_26, window_bounds = array<i64: 16, 1>}, {pipeline_mode = #tpu.pipeline_mode<synchronous>, transform_indices = @transform_27, window_bounds = array<i64: 2, 6>}]} {
    %c0_i32 = arith.constant 0 : i32
    %0 = arith.cmpi eq, %arg0, %c0_i32 : i32
    %1 = arith.extui %0 : i1 to i32
    %c0_i32_0 = arith.constant 0 : i32
    %2 = arith.cmpi ne, %1, %c0_i32_0 : i32
    scf.if %2 {
      %c0_195 = arith.constant 0 : index
      %c0_196 = arith.constant 0 : index
      %443 = vector.load %arg1[%c0_195, %c0_196] : memref<16x128xf32, #tpu.memory_space<vmem>>, vector<16x128xf32>
      %c0_197 = arith.constant 0 : index
      %c0_198 = arith.constant 0 : index
      %444 = vector.load %arg29[%c0_197, %c0_198] : memref<16x128xf32, #tpu.memory_space<vmem>>, vector<16x128xf32>
      tpu.vector_store %arg29[%c0_197, %c0_198], %443 {strides = array<i32>} : memref<16x128xf32, #tpu.memory_space<vmem>>, vector<16x128xf32>,
    } else {
    }
    %c0 = arith.constant 0 : index
    %c0_1 = arith.constant 0 : index
    %3 = vector.load %arg29[%c0, %c0_1] : memref<16x128xf32, #tpu.memory_space<vmem>>, vector<16x128xf32>
    %c0_2 = arith.constant 0 : index
    %c0_3 = arith.constant 0 : index
    %c0_4 = arith.constant 0 : index
    %4 = vector.load %arg3[%c0_2, %c0_3, %c0_4] : memref<1x128x384xbf16, #tpu.memory_space<vmem>>, vector<1x128x384xbf16>
    %5 = vector.shape_cast %4 : vector<1x128x384xbf16> to vector<128x384xbf16>
    %c0_5 = arith.constant 0 : index
    %c0_6 = arith.constant 0 : index
    %c0_7 = arith.constant 0 : index
    %6 = vector.load %arg4[%c0_5, %c0_6, %c0_7] : memref<1x1x384xf32, #tpu.memory_space<vmem>>, vector<1x1x384xf32>
    %7 = vector.shape_cast %6 : vector<1x1x384xf32> to vector<1x384xf32>
    %8 = arith.truncf %3 : vector<16x128xf32> to vector<16x128xbf16>
    %cst = arith.constant dense<0.000000e+00> : vector<16x384xf32>
    %9 = tpu.matmul %8, %5, %cst {dimension_numbers = #tpu.dot_dimension_numbers<[1], [0], [0], [1], [0, 0, 1, 1], [], []>} : vector<16x128xbf16>, vector<128x384xbf16>, vector<16x384xf32> -> vector<16x384xf32>
    %10 = vector.broadcast %7 : vector<1x384xf32> to vector<16x384xf32>
    %11 = arith.addf %9, %10 : vector<16x384xf32>
    %12 = vector.extract_strided_slice %11 {offsets = [0, 0], sizes = [16, 128], strides = [1, 1]} : vector<16x384xf32> to vector<16x128xf32>
    %13 = vector.extract_strided_slice %11 {offsets = [0, 128], sizes = [16, 128], strides = [1, 1]} : vector<16x384xf32> to vector<16x128xf32>
    %14 = vector.extract_strided_slice %11 {offsets = [0, 256], sizes = [16, 128], strides = [1, 1]} : vector<16x384xf32> to vector<16x128xf32>
    %15 = vector.extract_strided_slice %12 {offsets = [0, 0], sizes = [8, 128], strides = [1, 1]} : vector<16x128xf32> to vector<8x128xf32>
    %16 = vector.extract_strided_slice %13 {offsets = [0, 0], sizes = [8, 128], strides = [1, 1]} : vector<16x128xf32> to vector<8x128xf32>
    %17 = vector.extract_strided_slice %14 {offsets = [0, 0], sizes = [8, 128], strides = [1, 1]} : vector<16x128xf32> to vector<8x128xf32>
    %18 = vector.extract_strided_slice %15 {offsets = [0, 0], sizes = [8, 32], strides = [1, 1]} : vector<8x128xf32> to vector<8x32xf32>
    %cst_8 = arith.constant 0.176776692 : f32
    %19 = vector.broadcast %cst_8 : f32 to vector<8x32xf32>
    %20 = arith.mulf %18, %19 : vector<8x32xf32>
    %21 = vector.extract_strided_slice %16 {offsets = [0, 0], sizes = [8, 32], strides = [1, 1]} : vector<8x128xf32> to vector<8x32xf32>
    %22 = vector.extract_strided_slice %17 {offsets = [0, 0], sizes = [8, 32], strides = [1, 1]} : vector<8x128xf32> to vector<8x32xf32>
    %cst_9 = arith.constant dense<0.000000e+00> : vector<8x8xf32>
    %23 = tpu.matmul %20, %21, %cst_9 {dimension_numbers = #tpu.dot_dimension_numbers<[1], [1], [0], [0], [0, 0, 1, 0], [], []>} : vector<8x32xf32>, vector<8x32xf32>, vector<8x8xf32> -> vector<8x8xf32>
    %cst_10 = arith.constant dense<0xFF800000> : vector<8xf32>
    %24 = vector.multi_reduction <maximumf>, %23, %cst_10 [1] : vector<8x8xf32> to vector<8xf32>
    %25 = vector.shape_cast %24 : vector<8xf32> to vector<8x1xf32>
    %26 = vector.broadcast %25 : vector<8x1xf32> to vector<8x8xf32>
    %27 = arith.subf %23, %26 : vector<8x8xf32>
    %28 = math.exp %27 : vector<8x8xf32>
    %cst_11 = arith.constant dense<0.000000e+00> : vector<8xf32>
    %29 = vector.multi_reduction <add>, %28, %cst_11 [1] : vector<8x8xf32> to vector<8xf32>
    %30 = vector.shape_cast %29 : vector<8xf32> to vector<8x1xf32>
    %31 = tpu.reciprocal %30 {approx = true} : vector<8x1xf32> -> vector<8x1xf32>
    %32 = vector.broadcast %31 : vector<8x1xf32> to vector<8x8xf32>
    %33 = arith.mulf %28, %32 : vector<8x8xf32>
    %cst_12 = arith.constant dense<0.000000e+00> : vector<8x32xf32>
    %34 = tpu.matmul %33, %22, %cst_12 {dimension_numbers = #tpu.dot_dimension_numbers<[1], [0], [0], [1], [0, 0, 1, 1], [], []>} : vector<8x8xf32>, vector<8x32xf32>, vector<8x32xf32> -> vector<8x32xf32>
    %c0_13 = arith.constant 0 : index
    %c0_14 = arith.constant 0 : index
    %35 = vector.load %arg30[%c0_13, %c0_14] : memref<16x128xf32, #tpu.memory_space<vmem>>, vector<8x32xf32>
    tpu.vector_store %arg30[%c0_13, %c0_14], %34 {strides = array<i32>} : memref<16x128xf32, #tpu.memory_space<vmem>>, vector<8x32xf32>,
    %36 = vector.extract_strided_slice %15 {offsets = [0, 32], sizes = [8, 32], strides = [1, 1]} : vector<8x128xf32> to vector<8x32xf32>
    %cst_15 = arith.constant 0.176776692 : f32
    %37 = vector.broadcast %cst_15 : f32 to vector<8x32xf32>
    %38 = arith.mulf %36, %37 : vector<8x32xf32>
    %39 = vector.extract_strided_slice %16 {offsets = [0, 32], sizes = [8, 32], strides = [1, 1]} : vector<8x128xf32> to vector<8x32xf32>
    %40 = vector.extract_strided_slice %17 {offsets = [0, 32], sizes = [8, 32], strides = [1, 1]} : vector<8x128xf32> to vector<8x32xf32>
    %cst_16 = arith.constant dense<0.000000e+00> : vector<8x8xf32>
    %41 = tpu.matmul %38, %39, %cst_16 {dimension_numbers = #tpu.dot_dimension_numbers<[1], [1], [0], [0], [0, 0, 1, 0], [], []>} : vector<8x32xf32>, vector<8x32xf32>, vector<8x8xf32> -> vector<8x8xf32>
    %cst_17 = arith.constant dense<0xFF800000> : vector<8xf32>
    %42 = vector.multi_reduction <maximumf>, %41, %cst_17 [1] : vector<8x8xf32> to vector<8xf32>
    %43 = vector.shape_cast %42 : vector<8xf32> to vector<8x1xf32>
    %44 = vector.broadcast %43 : vector<8x1xf32> to vector<8x8xf32>
    %45 = arith.subf %41, %44 : vector<8x8xf32>
    %46 = math.exp %45 : vector<8x8xf32>
    %cst_18 = arith.constant dense<0.000000e+00> : vector<8xf32>
    %47 = vector.multi_reduction <add>, %46, %cst_18 [1] : vector<8x8xf32> to vector<8xf32>
    %48 = vector.shape_cast %47 : vector<8xf32> to vector<8x1xf32>
    %49 = tpu.reciprocal %48 {approx = true} : vector<8x1xf32> -> vector<8x1xf32>
    %50 = vector.broadcast %49 : vector<8x1xf32> to vector<8x8xf32>
    %51 = arith.mulf %46, %50 : vector<8x8xf32>
    %cst_19 = arith.constant dense<0.000000e+00> : vector<8x32xf32>
    %52 = tpu.matmul %51, %40, %cst_19 {dimension_numbers = #tpu.dot_dimension_numbers<[1], [0], [0], [1], [0, 0, 1, 1], [], []>} : vector<8x8xf32>, vector<8x32xf32>, vector<8x32xf32> -> vector<8x32xf32>
    %c0_20 = arith.constant 0 : index
    %c32 = arith.constant 32 : index
    %53 = vector.load %arg30[%c0_20, %c32] : memref<16x128xf32, #tpu.memory_space<vmem>>, vector<8x32xf32>
    tpu.vector_store %arg30[%c0_20, %c32], %52 {strides = array<i32>} : memref<16x128xf32, #tpu.memory_space<vmem>>, vector<8x32xf32>,
    %54 = vector.extract_strided_slice %15 {offsets = [0, 64], sizes = [8, 32], strides = [1, 1]} : vector<8x128xf32> to vector<8x32xf32>
    %cst_21 = arith.constant 0.176776692 : f32
    %55 = vector.broadcast %cst_21 : f32 to vector<8x32xf32>
    %56 = arith.mulf %54, %55 : vector<8x32xf32>
    %57 = vector.extract_strided_slice %16 {offsets = [0, 64], sizes = [8, 32], strides = [1, 1]} : vector<8x128xf32> to vector<8x32xf32>
    %58 = vector.extract_strided_slice %17 {offsets = [0, 64], sizes = [8, 32], strides = [1, 1]} : vector<8x128xf32> to vector<8x32xf32>
    %cst_22 = arith.constant dense<0.000000e+00> : vector<8x8xf32>
    %59 = tpu.matmul %56, %57, %cst_22 {dimension_numbers = #tpu.dot_dimension_numbers<[1], [1], [0], [0], [0, 0, 1, 0], [], []>} : vector<8x32xf32>, vector<8x32xf32>, vector<8x8xf32> -> vector<8x8xf32>
    %cst_23 = arith.constant dense<0xFF800000> : vector<8xf32>
    %60 = vector.multi_reduction <maximumf>, %59, %cst_23 [1] : vector<8x8xf32> to vector<8xf32>
    %61 = vector.shape_cast %60 : vector<8xf32> to vector<8x1xf32>
    %62 = vector.broadcast %61 : vector<8x1xf32> to vector<8x8xf32>
    %63 = arith.subf %59, %62 : vector<8x8xf32>
    %64 = math.exp %63 : vector<8x8xf32>
    %cst_24 = arith.constant dense<0.000000e+00> : vector<8xf32>
    %65 = vector.multi_reduction <add>, %64, %cst_24 [1] : vector<8x8xf32> to vector<8xf32>
    %66 = vector.shape_cast %65 : vector<8xf32> to vector<8x1xf32>
    %67 = tpu.reciprocal %66 {approx = true} : vector<8x1xf32> -> vector<8x1xf32>
    %68 = vector.broadcast %67 : vector<8x1xf32> to vector<8x8xf32>
    %69 = arith.mulf %64, %68 : vector<8x8xf32>
    %cst_25 = arith.constant dense<0.000000e+00> : vector<8x32xf32>
    %70 = tpu.matmul %69, %58, %cst_25 {dimension_numbers = #tpu.dot_dimension_numbers<[1], [0], [0], [1], [0, 0, 1, 1], [], []>} : vector<8x8xf32>, vector<8x32xf32>, vector<8x32xf32> -> vector<8x32xf32>
    %c0_26 = arith.constant 0 : index
    %c64 = arith.constant 64 : index
    %71 = vector.load %arg30[%c0_26, %c64] : memref<16x128xf32, #tpu.memory_space<vmem>>, vector<8x32xf32>
    tpu.vector_store %arg30[%c0_26, %c64], %70 {strides = array<i32>} : memref<16x128xf32, #tpu.memory_space<vmem>>, vector<8x32xf32>,
    %72 = vector.extract_strided_slice %15 {offsets = [0, 96], sizes = [8, 32], strides = [1, 1]} : vector<8x128xf32> to vector<8x32xf32>
    %cst_27 = arith.constant 0.176776692 : f32
    %73 = vector.broadcast %cst_27 : f32 to vector<8x32xf32>
    %74 = arith.mulf %72, %73 : vector<8x32xf32>
    %75 = vector.extract_strided_slice %16 {offsets = [0, 96], sizes = [8, 32], strides = [1, 1]} : vector<8x128xf32> to vector<8x32xf32>
    %76 = vector.extract_strided_slice %17 {offsets = [0, 96], sizes = [8, 32], strides = [1, 1]} : vector<8x128xf32> to vector<8x32xf32>
    %cst_28 = arith.constant dense<0.000000e+00> : vector<8x8xf32>
    %77 = tpu.matmul %74, %75, %cst_28 {dimension_numbers = #tpu.dot_dimension_numbers<[1], [1], [0], [0], [0, 0, 1, 0], [], []>} : vector<8x32xf32>, vector<8x32xf32>, vector<8x8xf32> -> vector<8x8xf32>
    %cst_29 = arith.constant dense<0xFF800000> : vector<8xf32>
    %78 = vector.multi_reduction <maximumf>, %77, %cst_29 [1] : vector<8x8xf32> to vector<8xf32>
    %79 = vector.shape_cast %78 : vector<8xf32> to vector<8x1xf32>
    %80 = vector.broadcast %79 : vector<8x1xf32> to vector<8x8xf32>
    %81 = arith.subf %77, %80 : vector<8x8xf32>
    %82 = math.exp %81 : vector<8x8xf32>
    %cst_30 = arith.constant dense<0.000000e+00> : vector<8xf32>
    %83 = vector.multi_reduction <add>, %82, %cst_30 [1] : vector<8x8xf32> to vector<8xf32>
    %84 = vector.shape_cast %83 : vector<8xf32> to vector<8x1xf32>
    %85 = tpu.reciprocal %84 {approx = true} : vector<8x1xf32> -> vector<8x1xf32>
    %86 = vector.broadcast %85 : vector<8x1xf32> to vector<8x8xf32>
    %87 = arith.mulf %82, %86 : vector<8x8xf32>
    %cst_31 = arith.constant dense<0.000000e+00> : vector<8x32xf32>
    %88 = tpu.matmul %87, %76, %cst_31 {dimension_numbers = #tpu.dot_dimension_numbers<[1], [0], [0], [1], [0, 0, 1, 1], [], []>} : vector<8x8xf32>, vector<8x32xf32>, vector<8x32xf32> -> vector<8x32xf32>
    %c0_32 = arith.constant 0 : index
    %c96 = arith.constant 96 : index
    %89 = vector.load %arg30[%c0_32, %c96] : memref<16x128xf32, #tpu.memory_space<vmem>>, vector<8x32xf32>
    tpu.vector_store %arg30[%c0_32, %c96], %88 {strides = array<i32>} : memref<16x128xf32, #tpu.memory_space<vmem>>, vector<8x32xf32>,
    %90 = vector.extract_strided_slice %12 {offsets = [8, 0], sizes = [8, 128], strides = [1, 1]} : vector<16x128xf32> to vector<8x128xf32>
    %91 = vector.extract_strided_slice %13 {offsets = [8, 0], sizes = [8, 128], strides = [1, 1]} : vector<16x128xf32> to vector<8x128xf32>
    %92 = vector.extract_strided_slice %14 {offsets = [8, 0], sizes = [8, 128], strides = [1, 1]} : vector<16x128xf32> to vector<8x128xf32>
    %93 = vector.extract_strided_slice %90 {offsets = [0, 0], sizes = [8, 32], strides = [1, 1]} : vector<8x128xf32> to vector<8x32xf32>
    %cst_33 = arith.constant 0.176776692 : f32
    %94 = vector.broadcast %cst_33 : f32 to vector<8x32xf32>
    %95 = arith.mulf %93, %94 : vector<8x32xf32>
    %96 = vector.extract_strided_slice %91 {offsets = [0, 0], sizes = [8, 32], strides = [1, 1]} : vector<8x128xf32> to vector<8x32xf32>
    %97 = vector.extract_strided_slice %92 {offsets = [0, 0], sizes = [8, 32], strides = [1, 1]} : vector<8x128xf32> to vector<8x32xf32>
    %cst_34 = arith.constant dense<0.000000e+00> : vector<8x8xf32>
    %98 = tpu.matmul %95, %96, %cst_34 {dimension_numbers = #tpu.dot_dimension_numbers<[1], [1], [0], [0], [0, 0, 1, 0], [], []>} : vector<8x32xf32>, vector<8x32xf32>, vector<8x8xf32> -> vector<8x8xf32>
    %cst_35 = arith.constant dense<0xFF800000> : vector<8xf32>
    %99 = vector.multi_reduction <maximumf>, %98, %cst_35 [1] : vector<8x8xf32> to vector<8xf32>
    %100 = vector.shape_cast %99 : vector<8xf32> to vector<8x1xf32>
    %101 = vector.broadcast %100 : vector<8x1xf32> to vector<8x8xf32>
    %102 = arith.subf %98, %101 : vector<8x8xf32>
    %103 = math.exp %102 : vector<8x8xf32>
    %cst_36 = arith.constant dense<0.000000e+00> : vector<8xf32>
    %104 = vector.multi_reduction <add>, %103, %cst_36 [1] : vector<8x8xf32> to vector<8xf32>
    %105 = vector.shape_cast %104 : vector<8xf32> to vector<8x1xf32>
    %106 = tpu.reciprocal %105 {approx = true} : vector<8x1xf32> -> vector<8x1xf32>
    %107 = vector.broadcast %106 : vector<8x1xf32> to vector<8x8xf32>
    %108 = arith.mulf %103, %107 : vector<8x8xf32>
    %cst_37 = arith.constant dense<0.000000e+00> : vector<8x32xf32>
    %109 = tpu.matmul %108, %97, %cst_37 {dimension_numbers = #tpu.dot_dimension_numbers<[1], [0], [0], [1], [0, 0, 1, 1], [], []>} : vector<8x8xf32>, vector<8x32xf32>, vector<8x32xf32> -> vector<8x32xf32>
    %c8 = arith.constant 8 : index
    %c0_38 = arith.constant 0 : index
    %110 = vector.load %arg30[%c8, %c0_38] : memref<16x128xf32, #tpu.memory_space<vmem>>, vector<8x32xf32>
    tpu.vector_store %arg30[%c8, %c0_38], %109 {strides = array<i32>} : memref<16x128xf32, #tpu.memory_space<vmem>>, vector<8x32xf32>,
    %111 = vector.extract_strided_slice %90 {offsets = [0, 32], sizes = [8, 32], strides = [1, 1]} : vector<8x128xf32> to vector<8x32xf32>
    %cst_39 = arith.constant 0.176776692 : f32
    %112 = vector.broadcast %cst_39 : f32 to vector<8x32xf32>
    %113 = arith.mulf %111, %112 : vector<8x32xf32>
    %114 = vector.extract_strided_slice %91 {offsets = [0, 32], sizes = [8, 32], strides = [1, 1]} : vector<8x128xf32> to vector<8x32xf32>
    %115 = vector.extract_strided_slice %92 {offsets = [0, 32], sizes = [8, 32], strides = [1, 1]} : vector<8x128xf32> to vector<8x32xf32>
    %cst_40 = arith.constant dense<0.000000e+00> : vector<8x8xf32>
    %116 = tpu.matmul %113, %114, %cst_40 {dimension_numbers = #tpu.dot_dimension_numbers<[1], [1], [0], [0], [0, 0, 1, 0], [], []>} : vector<8x32xf32>, vector<8x32xf32>, vector<8x8xf32> -> vector<8x8xf32>
    %cst_41 = arith.constant dense<0xFF800000> : vector<8xf32>
    %117 = vector.multi_reduction <maximumf>, %116, %cst_41 [1] : vector<8x8xf32> to vector<8xf32>
    %118 = vector.shape_cast %117 : vector<8xf32> to vector<8x1xf32>
    %119 = vector.broadcast %118 : vector<8x1xf32> to vector<8x8xf32>
    %120 = arith.subf %116, %119 : vector<8x8xf32>
    %121 = math.exp %120 : vector<8x8xf32>
    %cst_42 = arith.constant dense<0.000000e+00> : vector<8xf32>
    %122 = vector.multi_reduction <add>, %121, %cst_42 [1] : vector<8x8xf32> to vector<8xf32>
    %123 = vector.shape_cast %122 : vector<8xf32> to vector<8x1xf32>
    %124 = tpu.reciprocal %123 {approx = true} : vector<8x1xf32> -> vector<8x1xf32>
    %125 = vector.broadcast %124 : vector<8x1xf32> to vector<8x8xf32>
    %126 = arith.mulf %121, %125 : vector<8x8xf32>
    %cst_43 = arith.constant dense<0.000000e+00> : vector<8x32xf32>
    %127 = tpu.matmul %126, %115, %cst_43 {dimension_numbers = #tpu.dot_dimension_numbers<[1], [0], [0], [1], [0, 0, 1, 1], [], []>} : vector<8x8xf32>, vector<8x32xf32>, vector<8x32xf32> -> vector<8x32xf32>
    %c8_44 = arith.constant 8 : index
    %c32_45 = arith.constant 32 : index
    %128 = vector.load %arg30[%c8_44, %c32_45] : memref<16x128xf32, #tpu.memory_space<vmem>>, vector<8x32xf32>
    tpu.vector_store %arg30[%c8_44, %c32_45], %127 {strides = array<i32>} : memref<16x128xf32, #tpu.memory_space<vmem>>, vector<8x32xf32>,
    %129 = vector.extract_strided_slice %90 {offsets = [0, 64], sizes = [8, 32], strides = [1, 1]} : vector<8x128xf32> to vector<8x32xf32>
    %cst_46 = arith.constant 0.176776692 : f32
    %130 = vector.broadcast %cst_46 : f32 to vector<8x32xf32>
    %131 = arith.mulf %129, %130 : vector<8x32xf32>
    %132 = vector.extract_strided_slice %91 {offsets = [0, 64], sizes = [8, 32], strides = [1, 1]} : vector<8x128xf32> to vector<8x32xf32>
    %133 = vector.extract_strided_slice %92 {offsets = [0, 64], sizes = [8, 32], strides = [1, 1]} : vector<8x128xf32> to vector<8x32xf32>
    %cst_47 = arith.constant dense<0.000000e+00> : vector<8x8xf32>
    %134 = tpu.matmul %131, %132, %cst_47 {dimension_numbers = #tpu.dot_dimension_numbers<[1], [1], [0], [0], [0, 0, 1, 0], [], []>} : vector<8x32xf32>, vector<8x32xf32>, vector<8x8xf32> -> vector<8x8xf32>
    %cst_48 = arith.constant dense<0xFF800000> : vector<8xf32>
    %135 = vector.multi_reduction <maximumf>, %134, %cst_48 [1] : vector<8x8xf32> to vector<8xf32>
    %136 = vector.shape_cast %135 : vector<8xf32> to vector<8x1xf32>
    %137 = vector.broadcast %136 : vector<8x1xf32> to vector<8x8xf32>
    %138 = arith.subf %134, %137 : vector<8x8xf32>
    %139 = math.exp %138 : vector<8x8xf32>
    %cst_49 = arith.constant dense<0.000000e+00> : vector<8xf32>
    %140 = vector.multi_reduction <add>, %139, %cst_49 [1] : vector<8x8xf32> to vector<8xf32>
    %141 = vector.shape_cast %140 : vector<8xf32> to vector<8x1xf32>
    %142 = tpu.reciprocal %141 {approx = true} : vector<8x1xf32> -> vector<8x1xf32>
    %143 = vector.broadcast %142 : vector<8x1xf32> to vector<8x8xf32>
    %144 = arith.mulf %139, %143 : vector<8x8xf32>
    %cst_50 = arith.constant dense<0.000000e+00> : vector<8x32xf32>
    %145 = tpu.matmul %144, %133, %cst_50 {dimension_numbers = #tpu.dot_dimension_numbers<[1], [0], [0], [1], [0, 0, 1, 1], [], []>} : vector<8x8xf32>, vector<8x32xf32>, vector<8x32xf32> -> vector<8x32xf32>
    %c8_51 = arith.constant 8 : index
    %c64_52 = arith.constant 64 : index
    %146 = vector.load %arg30[%c8_51, %c64_52] : memref<16x128xf32, #tpu.memory_space<vmem>>, vector<8x32xf32>
    tpu.vector_store %arg30[%c8_51, %c64_52], %145 {strides = array<i32>} : memref<16x128xf32, #tpu.memory_space<vmem>>, vector<8x32xf32>,
    %147 = vector.extract_strided_slice %90 {offsets = [0, 96], sizes = [8, 32], strides = [1, 1]} : vector<8x128xf32> to vector<8x32xf32>
    %cst_53 = arith.constant 0.176776692 : f32
    %148 = vector.broadcast %cst_53 : f32 to vector<8x32xf32>
    %149 = arith.mulf %147, %148 : vector<8x32xf32>
    %150 = vector.extract_strided_slice %91 {offsets = [0, 96], sizes = [8, 32], strides = [1, 1]} : vector<8x128xf32> to vector<8x32xf32>
    %151 = vector.extract_strided_slice %92 {offsets = [0, 96], sizes = [8, 32], strides = [1, 1]} : vector<8x128xf32> to vector<8x32xf32>
    %cst_54 = arith.constant dense<0.000000e+00> : vector<8x8xf32>
    %152 = tpu.matmul %149, %150, %cst_54 {dimension_numbers = #tpu.dot_dimension_numbers<[1], [1], [0], [0], [0, 0, 1, 0], [], []>} : vector<8x32xf32>, vector<8x32xf32>, vector<8x8xf32> -> vector<8x8xf32>
    %cst_55 = arith.constant dense<0xFF800000> : vector<8xf32>
    %153 = vector.multi_reduction <maximumf>, %152, %cst_55 [1] : vector<8x8xf32> to vector<8xf32>
    %154 = vector.shape_cast %153 : vector<8xf32> to vector<8x1xf32>
    %155 = vector.broadcast %154 : vector<8x1xf32> to vector<8x8xf32>
    %156 = arith.subf %152, %155 : vector<8x8xf32>
    %157 = math.exp %156 : vector<8x8xf32>
    %cst_56 = arith.constant dense<0.000000e+00> : vector<8xf32>
    %158 = vector.multi_reduction <add>, %157, %cst_56 [1] : vector<8x8xf32> to vector<8xf32>
    %159 = vector.shape_cast %158 : vector<8xf32> to vector<8x1xf32>
    %160 = tpu.reciprocal %159 {approx = true} : vector<8x1xf32> -> vector<8x1xf32>
    %161 = vector.broadcast %160 : vector<8x1xf32> to vector<8x8xf32>
    %162 = arith.mulf %157, %161 : vector<8x8xf32>
    %cst_57 = arith.constant dense<0.000000e+00> : vector<8x32xf32>
    %163 = tpu.matmul %162, %151, %cst_57 {dimension_numbers = #tpu.dot_dimension_numbers<[1], [0], [0], [1], [0, 0, 1, 1], [], []>} : vector<8x8xf32>, vector<8x32xf32>, vector<8x32xf32> -> vector<8x32xf32>
    %c8_58 = arith.constant 8 : index
    %c96_59 = arith.constant 96 : index
    %164 = vector.load %arg30[%c8_58, %c96_59] : memref<16x128xf32, #tpu.memory_space<vmem>>, vector<8x32xf32>
    tpu.vector_store %arg30[%c8_58, %c96_59], %163 {strides = array<i32>} : memref<16x128xf32, #tpu.memory_space<vmem>>, vector<8x32xf32>,
    %c0_60 = arith.constant 0 : index
    %c0_61 = arith.constant 0 : index
    %165 = vector.load %arg30[%c0_60, %c0_61] : memref<16x128xf32, #tpu.memory_space<vmem>>, vector<16x128xf32>
    %c0_62 = arith.constant 0 : index
    %c0_63 = arith.constant 0 : index
    %c0_64 = arith.constant 0 : index
    %166 = vector.load %arg5[%c0_62, %c0_63, %c0_64] : memref<1x128x128xbf16, #tpu.memory_space<vmem>>, vector<1x128x128xbf16>
    %167 = vector.shape_cast %166 : vector<1x128x128xbf16> to vector<128x128xbf16>
    %c0_65 = arith.constant 0 : index
    %c0_66 = arith.constant 0 : index
    %c0_67 = arith.constant 0 : index
    %168 = vector.load %arg6[%c0_65, %c0_66, %c0_67] : memref<1x1x128xf32, #tpu.memory_space<vmem>>, vector<1x1x128xf32>
    %169 = vector.shape_cast %168 : vector<1x1x128xf32> to vector<1x128xf32>
    %170 = arith.truncf %165 : vector<16x128xf32> to vector<16x128xbf16>
    %cst_68 = arith.constant dense<0.000000e+00> : vector<16x128xf32>
    %171 = tpu.matmul %170, %167, %cst_68 {dimension_numbers = #tpu.dot_dimension_numbers<[1], [0], [0], [1], [0, 0, 1, 1], [], []>} : vector<16x128xbf16>, vector<128x128xbf16>, vector<16x128xf32> -> vector<16x128xf32>
    %172 = vector.broadcast %169 : vector<1x128xf32> to vector<16x128xf32>
    %173 = arith.addf %171, %172 : vector<16x128xf32>
    %174 = arith.addf %3, %173 : vector<16x128xf32>
    %c0_69 = arith.constant 0 : index
    %c0_70 = arith.constant 0 : index
    %c0_71 = arith.constant 0 : index
    %175 = vector.load %arg15[%c0_69, %c0_70, %c0_71] : memref<1x1x128xf32, #tpu.memory_space<vmem>>, vector<1x1x128xf32>
    %176 = vector.shape_cast %175 : vector<1x1x128xf32> to vector<1x128xf32>
    %c0_72 = arith.constant 0 : index
    %c0_73 = arith.constant 0 : index
    %c0_74 = arith.constant 0 : index
    %177 = vector.load %arg16[%c0_72, %c0_73, %c0_74] : memref<1x1x128xf32, #tpu.memory_space<vmem>>, vector<1x1x128xf32>
    %178 = vector.shape_cast %177 : vector<1x1x128xf32> to vector<1x128xf32>
    %cst_75 = arith.constant dense<0.000000e+00> : vector<16xf32>
    %179 = vector.multi_reduction <add>, %174, %cst_75 [1] : vector<16x128xf32> to vector<16xf32>
    %180 = vector.shape_cast %179 : vector<16xf32> to vector<16x1xf32>
    %cst_76 = arith.constant 1.280000e+02 : f32
    %181 = vector.broadcast %cst_76 : f32 to vector<16x1xf32>
    %182 = arith.divf %180, %181 : vector<16x1xf32>
    %183 = vector.broadcast %182 : vector<16x1xf32> to vector<16x128xf32>
    %184 = arith.subf %174, %183 : vector<16x128xf32>
    %185 = arith.mulf %184, %184 : vector<16x128xf32>
    %cst_77 = arith.constant dense<0.000000e+00> : vector<16xf32>
    %186 = vector.multi_reduction <add>, %185, %cst_77 [1] : vector<16x128xf32> to vector<16xf32>
    %187 = vector.shape_cast %186 : vector<16xf32> to vector<16x1xf32>
    %cst_78 = arith.constant 1.280000e+02 : f32
    %188 = vector.broadcast %cst_78 : f32 to vector<16x1xf32>
    %189 = arith.divf %187, %188 : vector<16x1xf32>
    %cst_79 = arith.constant 9.99999974E-6 : f32
    %190 = vector.broadcast %cst_79 : f32 to vector<16x1xf32>
    %191 = arith.addf %189, %190 : vector<16x1xf32>
    %192 = math.rsqrt %191 : vector<16x1xf32>
    %193 = vector.broadcast %192 : vector<16x1xf32> to vector<16x128xf32>
    %194 = arith.mulf %184, %193 : vector<16x128xf32>
    %195 = vector.broadcast %176 : vector<1x128xf32> to vector<16x128xf32>
    %196 = arith.mulf %194, %195 : vector<16x128xf32>
    %197 = vector.broadcast %178 : vector<1x128xf32> to vector<16x128xf32>
    %198 = arith.addf %196, %197 : vector<16x128xf32>
    %c0_80 = arith.constant 0 : index
    %c0_81 = arith.constant 0 : index
    %c0_82 = arith.constant 0 : index
    %199 = vector.load %arg7[%c0_80, %c0_81, %c0_82] : memref<1x128x128xbf16, #tpu.memory_space<vmem>>, vector<1x128x128xbf16>
    %200 = vector.shape_cast %199 : vector<1x128x128xbf16> to vector<128x128xbf16>
    %c0_83 = arith.constant 0 : index
    %c0_84 = arith.constant 0 : index
    %c0_85 = arith.constant 0 : index
    %201 = vector.load %arg8[%c0_83, %c0_84, %c0_85] : memref<1x1x128xf32, #tpu.memory_space<vmem>>, vector<1x1x128xf32>
    %202 = vector.shape_cast %201 : vector<1x1x128xf32> to vector<1x128xf32>
    %203 = arith.truncf %198 : vector<16x128xf32> to vector<16x128xbf16>
    %cst_86 = arith.constant dense<0.000000e+00> : vector<16x128xf32>
    %204 = tpu.matmul %203, %200, %cst_86 {dimension_numbers = #tpu.dot_dimension_numbers<[1], [0], [0], [1], [0, 0, 1, 1], [], []>} : vector<16x128xbf16>, vector<128x128xbf16>, vector<16x128xf32> -> vector<16x128xf32>
    %205 = vector.broadcast %202 : vector<1x128xf32> to vector<16x128xf32>
    %206 = arith.addf %204, %205 : vector<16x128xf32>
    %c0_87 = arith.constant 0 : index
    %c0_88 = arith.constant 0 : index
    %c0_89 = arith.constant 0 : index
    %207 = vector.load %arg2[%c0_87, %c0_88, %c0_89] : memref<1x16x256xbf16, #tpu.memory_space<vmem>>, vector<1x16x256xbf16>
    %208 = vector.shape_cast %207 : vector<1x16x256xbf16> to vector<16x256xbf16>
    %209 = arith.extf %208 : vector<16x256xbf16> to vector<16x256xf32>
    %210 = vector.extract_strided_slice %209 {offsets = [0, 0], sizes = [16, 128], strides = [1, 1]} : vector<16x256xf32> to vector<16x128xf32>
    %211 = vector.extract_strided_slice %209 {offsets = [0, 128], sizes = [16, 128], strides = [1, 1]} : vector<16x256xf32> to vector<16x128xf32>
    %212 = vector.extract_strided_slice %206 {offsets = [0, 0], sizes = [8, 128], strides = [1, 1]} : vector<16x128xf32> to vector<8x128xf32>
    %213 = vector.extract_strided_slice %210 {offsets = [0, 0], sizes = [8, 128], strides = [1, 1]} : vector<16x128xf32> to vector<8x128xf32>
    %214 = vector.extract_strided_slice %211 {offsets = [0, 0], sizes = [8, 128], strides = [1, 1]} : vector<16x128xf32> to vector<8x128xf32>
    %215 = vector.extract_strided_slice %212 {offsets = [0, 0], sizes = [8, 32], strides = [1, 1]} : vector<8x128xf32> to vector<8x32xf32>
    %cst_90 = arith.constant 0.176776692 : f32
    %216 = vector.broadcast %cst_90 : f32 to vector<8x32xf32>
    %217 = arith.mulf %215, %216 : vector<8x32xf32>
    %218 = vector.extract_strided_slice %213 {offsets = [0, 0], sizes = [8, 32], strides = [1, 1]} : vector<8x128xf32> to vector<8x32xf32>
    %219 = vector.extract_strided_slice %214 {offsets = [0, 0], sizes = [8, 32], strides = [1, 1]} : vector<8x128xf32> to vector<8x32xf32>
    %cst_91 = arith.constant dense<0.000000e+00> : vector<8x8xf32>
    %220 = tpu.matmul %217, %218, %cst_91 {dimension_numbers = #tpu.dot_dimension_numbers<[1], [1], [0], [0], [0, 0, 1, 0], [], []>} : vector<8x32xf32>, vector<8x32xf32>, vector<8x8xf32> -> vector<8x8xf32>
    %cst_92 = arith.constant dense<0xFF800000> : vector<8xf32>
    %221 = vector.multi_reduction <maximumf>, %220, %cst_92 [1] : vector<8x8xf32> to vector<8xf32>
    %222 = vector.shape_cast %221 : vector<8xf32> to vector<8x1xf32>
    %223 = vector.broadcast %222 : vector<8x1xf32> to vector<8x8xf32>
    %224 = arith.subf %220, %223 : vector<8x8xf32>
    %225 = math.exp %224 : vector<8x8xf32>
    %cst_93 = arith.constant dense<0.000000e+00> : vector<8xf32>
    %226 = vector.multi_reduction <add>, %225, %cst_93 [1] : vector<8x8xf32> to vector<8xf32>
    %227 = vector.shape_cast %226 : vector<8xf32> to vector<8x1xf32>
    %228 = tpu.reciprocal %227 {approx = true} : vector<8x1xf32> -> vector<8x1xf32>
    %229 = vector.broadcast %228 : vector<8x1xf32> to vector<8x8xf32>
    %230 = arith.mulf %225, %229 : vector<8x8xf32>
    %cst_94 = arith.constant dense<0.000000e+00> : vector<8x32xf32>
    %231 = tpu.matmul %230, %219, %cst_94 {dimension_numbers = #tpu.dot_dimension_numbers<[1], [0], [0], [1], [0, 0, 1, 1], [], []>} : vector<8x8xf32>, vector<8x32xf32>, vector<8x32xf32> -> vector<8x32xf32>
    %c0_95 = arith.constant 0 : index
    %c0_96 = arith.constant 0 : index
    %232 = vector.load %arg30[%c0_95, %c0_96] : memref<16x128xf32, #tpu.memory_space<vmem>>, vector<8x32xf32>
    tpu.vector_store %arg30[%c0_95, %c0_96], %231 {strides = array<i32>} : memref<16x128xf32, #tpu.memory_space<vmem>>, vector<8x32xf32>,
    %233 = vector.extract_strided_slice %212 {offsets = [0, 32], sizes = [8, 32], strides = [1, 1]} : vector<8x128xf32> to vector<8x32xf32>
    %cst_97 = arith.constant 0.176776692 : f32
    %234 = vector.broadcast %cst_97 : f32 to vector<8x32xf32>
    %235 = arith.mulf %233, %234 : vector<8x32xf32>
    %236 = vector.extract_strided_slice %213 {offsets = [0, 32], sizes = [8, 32], strides = [1, 1]} : vector<8x128xf32> to vector<8x32xf32>
    %237 = vector.extract_strided_slice %214 {offsets = [0, 32], sizes = [8, 32], strides = [1, 1]} : vector<8x128xf32> to vector<8x32xf32>
    %cst_98 = arith.constant dense<0.000000e+00> : vector<8x8xf32>
    %238 = tpu.matmul %235, %236, %cst_98 {dimension_numbers = #tpu.dot_dimension_numbers<[1], [1], [0], [0], [0, 0, 1, 0], [], []>} : vector<8x32xf32>, vector<8x32xf32>, vector<8x8xf32> -> vector<8x8xf32>
    %cst_99 = arith.constant dense<0xFF800000> : vector<8xf32>
    %239 = vector.multi_reduction <maximumf>, %238, %cst_99 [1] : vector<8x8xf32> to vector<8xf32>
    %240 = vector.shape_cast %239 : vector<8xf32> to vector<8x1xf32>
    %241 = vector.broadcast %240 : vector<8x1xf32> to vector<8x8xf32>
    %242 = arith.subf %238, %241 : vector<8x8xf32>
    %243 = math.exp %242 : vector<8x8xf32>
    %cst_100 = arith.constant dense<0.000000e+00> : vector<8xf32>
    %244 = vector.multi_reduction <add>, %243, %cst_100 [1] : vector<8x8xf32> to vector<8xf32>
    %245 = vector.shape_cast %244 : vector<8xf32> to vector<8x1xf32>
    %246 = tpu.reciprocal %245 {approx = true} : vector<8x1xf32> -> vector<8x1xf32>
    %247 = vector.broadcast %246 : vector<8x1xf32> to vector<8x8xf32>
    %248 = arith.mulf %243, %247 : vector<8x8xf32>
    %cst_101 = arith.constant dense<0.000000e+00> : vector<8x32xf32>
    %249 = tpu.matmul %248, %237, %cst_101 {dimension_numbers = #tpu.dot_dimension_numbers<[1], [0], [0], [1], [0, 0, 1, 1], [], []>} : vector<8x8xf32>, vector<8x32xf32>, vector<8x32xf32> -> vector<8x32xf32>
    %c0_102 = arith.constant 0 : index
    %c32_103 = arith.constant 32 : index
    %250 = vector.load %arg30[%c0_102, %c32_103] : memref<16x128xf32, #tpu.memory_space<vmem>>, vector<8x32xf32>
    tpu.vector_store %arg30[%c0_102, %c32_103], %249 {strides = array<i32>} : memref<16x128xf32, #tpu.memory_space<vmem>>, vector<8x32xf32>,
    %251 = vector.extract_strided_slice %212 {offsets = [0, 64], sizes = [8, 32], strides = [1, 1]} : vector<8x128xf32> to vector<8x32xf32>
    %cst_104 = arith.constant 0.176776692 : f32
    %252 = vector.broadcast %cst_104 : f32 to vector<8x32xf32>
    %253 = arith.mulf %251, %252 : vector<8x32xf32>
    %254 = vector.extract_strided_slice %213 {offsets = [0, 64], sizes = [8, 32], strides = [1, 1]} : vector<8x128xf32> to vector<8x32xf32>
    %255 = vector.extract_strided_slice %214 {offsets = [0, 64], sizes = [8, 32], strides = [1, 1]} : vector<8x128xf32> to vector<8x32xf32>
    %cst_105 = arith.constant dense<0.000000e+00> : vector<8x8xf32>
    %256 = tpu.matmul %253, %254, %cst_105 {dimension_numbers = #tpu.dot_dimension_numbers<[1], [1], [0], [0], [0, 0, 1, 0], [], []>} : vector<8x32xf32>, vector<8x32xf32>, vector<8x8xf32> -> vector<8x8xf32>
    %cst_106 = arith.constant dense<0xFF800000> : vector<8xf32>
    %257 = vector.multi_reduction <maximumf>, %256, %cst_106 [1] : vector<8x8xf32> to vector<8xf32>
    %258 = vector.shape_cast %257 : vector<8xf32> to vector<8x1xf32>
    %259 = vector.broadcast %258 : vector<8x1xf32> to vector<8x8xf32>
    %260 = arith.subf %256, %259 : vector<8x8xf32>
    %261 = math.exp %260 : vector<8x8xf32>
    %cst_107 = arith.constant dense<0.000000e+00> : vector<8xf32>
    %262 = vector.multi_reduction <add>, %261, %cst_107 [1] : vector<8x8xf32> to vector<8xf32>
    %263 = vector.shape_cast %262 : vector<8xf32> to vector<8x1xf32>
    %264 = tpu.reciprocal %263 {approx = true} : vector<8x1xf32> -> vector<8x1xf32>
    %265 = vector.broadcast %264 : vector<8x1xf32> to vector<8x8xf32>
    %266 = arith.mulf %261, %265 : vector<8x8xf32>
    %cst_108 = arith.constant dense<0.000000e+00> : vector<8x32xf32>
    %267 = tpu.matmul %266, %255, %cst_108 {dimension_numbers = #tpu.dot_dimension_numbers<[1], [0], [0], [1], [0, 0, 1, 1], [], []>} : vector<8x8xf32>, vector<8x32xf32>, vector<8x32xf32> -> vector<8x32xf32>
    %c0_109 = arith.constant 0 : index
    %c64_110 = arith.constant 64 : index
    %268 = vector.load %arg30[%c0_109, %c64_110] : memref<16x128xf32, #tpu.memory_space<vmem>>, vector<8x32xf32>
    tpu.vector_store %arg30[%c0_109, %c64_110], %267 {strides = array<i32>} : memref<16x128xf32, #tpu.memory_space<vmem>>, vector<8x32xf32>,
    %269 = vector.extract_strided_slice %212 {offsets = [0, 96], sizes = [8, 32], strides = [1, 1]} : vector<8x128xf32> to vector<8x32xf32>
    %cst_111 = arith.constant 0.176776692 : f32
    %270 = vector.broadcast %cst_111 : f32 to vector<8x32xf32>
    %271 = arith.mulf %269, %270 : vector<8x32xf32>
    %272 = vector.extract_strided_slice %213 {offsets = [0, 96], sizes = [8, 32], strides = [1, 1]} : vector<8x128xf32> to vector<8x32xf32>
    %273 = vector.extract_strided_slice %214 {offsets = [0, 96], sizes = [8, 32], strides = [1, 1]} : vector<8x128xf32> to vector<8x32xf32>
    %cst_112 = arith.constant dense<0.000000e+00> : vector<8x8xf32>
    %274 = tpu.matmul %271, %272, %cst_112 {dimension_numbers = #tpu.dot_dimension_numbers<[1], [1], [0], [0], [0, 0, 1, 0], [], []>} : vector<8x32xf32>, vector<8x32xf32>, vector<8x8xf32> -> vector<8x8xf32>
    %cst_113 = arith.constant dense<0xFF800000> : vector<8xf32>
    %275 = vector.multi_reduction <maximumf>, %274, %cst_113 [1] : vector<8x8xf32> to vector<8xf32>
    %276 = vector.shape_cast %275 : vector<8xf32> to vector<8x1xf32>
    %277 = vector.broadcast %276 : vector<8x1xf32> to vector<8x8xf32>
    %278 = arith.subf %274, %277 : vector<8x8xf32>
    %279 = math.exp %278 : vector<8x8xf32>
    %cst_114 = arith.constant dense<0.000000e+00> : vector<8xf32>
    %280 = vector.multi_reduction <add>, %279, %cst_114 [1] : vector<8x8xf32> to vector<8xf32>
    %281 = vector.shape_cast %280 : vector<8xf32> to vector<8x1xf32>
    %282 = tpu.reciprocal %281 {approx = true} : vector<8x1xf32> -> vector<8x1xf32>
    %283 = vector.broadcast %282 : vector<8x1xf32> to vector<8x8xf32>
    %284 = arith.mulf %279, %283 : vector<8x8xf32>
    %cst_115 = arith.constant dense<0.000000e+00> : vector<8x32xf32>
    %285 = tpu.matmul %284, %273, %cst_115 {dimension_numbers = #tpu.dot_dimension_numbers<[1], [0], [0], [1], [0, 0, 1, 1], [], []>} : vector<8x8xf32>, vector<8x32xf32>, vector<8x32xf32> -> vector<8x32xf32>
    %c0_116 = arith.constant 0 : index
    %c96_117 = arith.constant 96 : index
    %286 = vector.load %arg30[%c0_116, %c96_117] : memref<16x128xf32, #tpu.memory_space<vmem>>, vector<8x32xf32>
    tpu.vector_store %arg30[%c0_116, %c96_117], %285 {strides = array<i32>} : memref<16x128xf32, #tpu.memory_space<vmem>>, vector<8x32xf32>,
    %287 = vector.extract_strided_slice %206 {offsets = [8, 0], sizes = [8, 128], strides = [1, 1]} : vector<16x128xf32> to vector<8x128xf32>
    %288 = vector.extract_strided_slice %210 {offsets = [8, 0], sizes = [8, 128], strides = [1, 1]} : vector<16x128xf32> to vector<8x128xf32>
    %289 = vector.extract_strided_slice %211 {offsets = [8, 0], sizes = [8, 128], strides = [1, 1]} : vector<16x128xf32> to vector<8x128xf32>
    %290 = vector.extract_strided_slice %287 {offsets = [0, 0], sizes = [8, 32], strides = [1, 1]} : vector<8x128xf32> to vector<8x32xf32>
    %cst_118 = arith.constant 0.176776692 : f32
    %291 = vector.broadcast %cst_118 : f32 to vector<8x32xf32>
    %292 = arith.mulf %290, %291 : vector<8x32xf32>
    %293 = vector.extract_strided_slice %288 {offsets = [0, 0], sizes = [8, 32], strides = [1, 1]} : vector<8x128xf32> to vector<8x32xf32>
    %294 = vector.extract_strided_slice %289 {offsets = [0, 0], sizes = [8, 32], strides = [1, 1]} : vector<8x128xf32> to vector<8x32xf32>
    %cst_119 = arith.constant dense<0.000000e+00> : vector<8x8xf32>
    %295 = tpu.matmul %292, %293, %cst_119 {dimension_numbers = #tpu.dot_dimension_numbers<[1], [1], [0], [0], [0, 0, 1, 0], [], []>} : vector<8x32xf32>, vector<8x32xf32>, vector<8x8xf32> -> vector<8x8xf32>
    %cst_120 = arith.constant dense<0xFF800000> : vector<8xf32>
    %296 = vector.multi_reduction <maximumf>, %295, %cst_120 [1] : vector<8x8xf32> to vector<8xf32>
    %297 = vector.shape_cast %296 : vector<8xf32> to vector<8x1xf32>
    %298 = vector.broadcast %297 : vector<8x1xf32> to vector<8x8xf32>
    %299 = arith.subf %295, %298 : vector<8x8xf32>
    %300 = math.exp %299 : vector<8x8xf32>
    %cst_121 = arith.constant dense<0.000000e+00> : vector<8xf32>
    %301 = vector.multi_reduction <add>, %300, %cst_121 [1] : vector<8x8xf32> to vector<8xf32>
    %302 = vector.shape_cast %301 : vector<8xf32> to vector<8x1xf32>
    %303 = tpu.reciprocal %302 {approx = true} : vector<8x1xf32> -> vector<8x1xf32>
    %304 = vector.broadcast %303 : vector<8x1xf32> to vector<8x8xf32>
    %305 = arith.mulf %300, %304 : vector<8x8xf32>
    %cst_122 = arith.constant dense<0.000000e+00> : vector<8x32xf32>
    %306 = tpu.matmul %305, %294, %cst_122 {dimension_numbers = #tpu.dot_dimension_numbers<[1], [0], [0], [1], [0, 0, 1, 1], [], []>} : vector<8x8xf32>, vector<8x32xf32>, vector<8x32xf32> -> vector<8x32xf32>
    %c8_123 = arith.constant 8 : index
    %c0_124 = arith.constant 0 : index
    %307 = vector.load %arg30[%c8_123, %c0_124] : memref<16x128xf32, #tpu.memory_space<vmem>>, vector<8x32xf32>
    tpu.vector_store %arg30[%c8_123, %c0_124], %306 {strides = array<i32>} : memref<16x128xf32, #tpu.memory_space<vmem>>, vector<8x32xf32>,
    %308 = vector.extract_strided_slice %287 {offsets = [0, 32], sizes = [8, 32], strides = [1, 1]} : vector<8x128xf32> to vector<8x32xf32>
    %cst_125 = arith.constant 0.176776692 : f32
    %309 = vector.broadcast %cst_125 : f32 to vector<8x32xf32>
    %310 = arith.mulf %308, %309 : vector<8x32xf32>
    %311 = vector.extract_strided_slice %288 {offsets = [0, 32], sizes = [8, 32], strides = [1, 1]} : vector<8x128xf32> to vector<8x32xf32>
    %312 = vector.extract_strided_slice %289 {offsets = [0, 32], sizes = [8, 32], strides = [1, 1]} : vector<8x128xf32> to vector<8x32xf32>
    %cst_126 = arith.constant dense<0.000000e+00> : vector<8x8xf32>
    %313 = tpu.matmul %310, %311, %cst_126 {dimension_numbers = #tpu.dot_dimension_numbers<[1], [1], [0], [0], [0, 0, 1, 0], [], []>} : vector<8x32xf32>, vector<8x32xf32>, vector<8x8xf32> -> vector<8x8xf32>
    %cst_127 = arith.constant dense<0xFF800000> : vector<8xf32>
    %314 = vector.multi_reduction <maximumf>, %313, %cst_127 [1] : vector<8x8xf32> to vector<8xf32>
    %315 = vector.shape_cast %314 : vector<8xf32> to vector<8x1xf32>
    %316 = vector.broadcast %315 : vector<8x1xf32> to vector<8x8xf32>
    %317 = arith.subf %313, %316 : vector<8x8xf32>
    %318 = math.exp %317 : vector<8x8xf32>
    %cst_128 = arith.constant dense<0.000000e+00> : vector<8xf32>
    %319 = vector.multi_reduction <add>, %318, %cst_128 [1] : vector<8x8xf32> to vector<8xf32>
    %320 = vector.shape_cast %319 : vector<8xf32> to vector<8x1xf32>
    %321 = tpu.reciprocal %320 {approx = true} : vector<8x1xf32> -> vector<8x1xf32>
    %322 = vector.broadcast %321 : vector<8x1xf32> to vector<8x8xf32>
    %323 = arith.mulf %318, %322 : vector<8x8xf32>
    %cst_129 = arith.constant dense<0.000000e+00> : vector<8x32xf32>
    %324 = tpu.matmul %323, %312, %cst_129 {dimension_numbers = #tpu.dot_dimension_numbers<[1], [0], [0], [1], [0, 0, 1, 1], [], []>} : vector<8x8xf32>, vector<8x32xf32>, vector<8x32xf32> -> vector<8x32xf32>
    %c8_130 = arith.constant 8 : index
    %c32_131 = arith.constant 32 : index
    %325 = vector.load %arg30[%c8_130, %c32_131] : memref<16x128xf32, #tpu.memory_space<vmem>>, vector<8x32xf32>
    tpu.vector_store %arg30[%c8_130, %c32_131], %324 {strides = array<i32>} : memref<16x128xf32, #tpu.memory_space<vmem>>, vector<8x32xf32>,
    %326 = vector.extract_strided_slice %287 {offsets = [0, 64], sizes = [8, 32], strides = [1, 1]} : vector<8x128xf32> to vector<8x32xf32>
    %cst_132 = arith.constant 0.176776692 : f32
    %327 = vector.broadcast %cst_132 : f32 to vector<8x32xf32>
    %328 = arith.mulf %326, %327 : vector<8x32xf32>
    %329 = vector.extract_strided_slice %288 {offsets = [0, 64], sizes = [8, 32], strides = [1, 1]} : vector<8x128xf32> to vector<8x32xf32>
    %330 = vector.extract_strided_slice %289 {offsets = [0, 64], sizes = [8, 32], strides = [1, 1]} : vector<8x128xf32> to vector<8x32xf32>
    %cst_133 = arith.constant dense<0.000000e+00> : vector<8x8xf32>
    %331 = tpu.matmul %328, %329, %cst_133 {dimension_numbers = #tpu.dot_dimension_numbers<[1], [1], [0], [0], [0, 0, 1, 0], [], []>} : vector<8x32xf32>, vector<8x32xf32>, vector<8x8xf32> -> vector<8x8xf32>
    %cst_134 = arith.constant dense<0xFF800000> : vector<8xf32>
    %332 = vector.multi_reduction <maximumf>, %331, %cst_134 [1] : vector<8x8xf32> to vector<8xf32>
    %333 = vector.shape_cast %332 : vector<8xf32> to vector<8x1xf32>
    %334 = vector.broadcast %333 : vector<8x1xf32> to vector<8x8xf32>
    %335 = arith.subf %331, %334 : vector<8x8xf32>
    %336 = math.exp %335 : vector<8x8xf32>
    %cst_135 = arith.constant dense<0.000000e+00> : vector<8xf32>
    %337 = vector.multi_reduction <add>, %336, %cst_135 [1] : vector<8x8xf32> to vector<8xf32>
    %338 = vector.shape_cast %337 : vector<8xf32> to vector<8x1xf32>
    %339 = tpu.reciprocal %338 {approx = true} : vector<8x1xf32> -> vector<8x1xf32>
    %340 = vector.broadcast %339 : vector<8x1xf32> to vector<8x8xf32>
    %341 = arith.mulf %336, %340 : vector<8x8xf32>
    %cst_136 = arith.constant dense<0.000000e+00> : vector<8x32xf32>
    %342 = tpu.matmul %341, %330, %cst_136 {dimension_numbers = #tpu.dot_dimension_numbers<[1], [0], [0], [1], [0, 0, 1, 1], [], []>} : vector<8x8xf32>, vector<8x32xf32>, vector<8x32xf32> -> vector<8x32xf32>
    %c8_137 = arith.constant 8 : index
    %c64_138 = arith.constant 64 : index
    %343 = vector.load %arg30[%c8_137, %c64_138] : memref<16x128xf32, #tpu.memory_space<vmem>>, vector<8x32xf32>
    tpu.vector_store %arg30[%c8_137, %c64_138], %342 {strides = array<i32>} : memref<16x128xf32, #tpu.memory_space<vmem>>, vector<8x32xf32>,
    %344 = vector.extract_strided_slice %287 {offsets = [0, 96], sizes = [8, 32], strides = [1, 1]} : vector<8x128xf32> to vector<8x32xf32>
    %cst_139 = arith.constant 0.176776692 : f32
    %345 = vector.broadcast %cst_139 : f32 to vector<8x32xf32>
    %346 = arith.mulf %344, %345 : vector<8x32xf32>
    %347 = vector.extract_strided_slice %288 {offsets = [0, 96], sizes = [8, 32], strides = [1, 1]} : vector<8x128xf32> to vector<8x32xf32>
    %348 = vector.extract_strided_slice %289 {offsets = [0, 96], sizes = [8, 32], strides = [1, 1]} : vector<8x128xf32> to vector<8x32xf32>
    %cst_140 = arith.constant dense<0.000000e+00> : vector<8x8xf32>
    %349 = tpu.matmul %346, %347, %cst_140 {dimension_numbers = #tpu.dot_dimension_numbers<[1], [1], [0], [0], [0, 0, 1, 0], [], []>} : vector<8x32xf32>, vector<8x32xf32>, vector<8x8xf32> -> vector<8x8xf32>
    %cst_141 = arith.constant dense<0xFF800000> : vector<8xf32>
    %350 = vector.multi_reduction <maximumf>, %349, %cst_141 [1] : vector<8x8xf32> to vector<8xf32>
    %351 = vector.shape_cast %350 : vector<8xf32> to vector<8x1xf32>
    %352 = vector.broadcast %351 : vector<8x1xf32> to vector<8x8xf32>
    %353 = arith.subf %349, %352 : vector<8x8xf32>
    %354 = math.exp %353 : vector<8x8xf32>
    %cst_142 = arith.constant dense<0.000000e+00> : vector<8xf32>
    %355 = vector.multi_reduction <add>, %354, %cst_142 [1] : vector<8x8xf32> to vector<8xf32>
    %356 = vector.shape_cast %355 : vector<8xf32> to vector<8x1xf32>
    %357 = tpu.reciprocal %356 {approx = true} : vector<8x1xf32> -> vector<8x1xf32>
    %358 = vector.broadcast %357 : vector<8x1xf32> to vector<8x8xf32>
    %359 = arith.mulf %354, %358 : vector<8x8xf32>
    %cst_143 = arith.constant dense<0.000000e+00> : vector<8x32xf32>
    %360 = tpu.matmul %359, %348, %cst_143 {dimension_numbers = #tpu.dot_dimension_numbers<[1], [0], [0], [1], [0, 0, 1, 1], [], []>} : vector<8x8xf32>, vector<8x32xf32>, vector<8x32xf32> -> vector<8x32xf32>
    %c8_144 = arith.constant 8 : index
    %c96_145 = arith.constant 96 : index
    %361 = vector.load %arg30[%c8_144, %c96_145] : memref<16x128xf32, #tpu.memory_space<vmem>>, vector<8x32xf32>
    tpu.vector_store %arg30[%c8_144, %c96_145], %360 {strides = array<i32>} : memref<16x128xf32, #tpu.memory_space<vmem>>, vector<8x32xf32>,
    %c0_146 = arith.constant 0 : index
    %c0_147 = arith.constant 0 : index
    %362 = vector.load %arg30[%c0_146, %c0_147] : memref<16x128xf32, #tpu.memory_space<vmem>>, vector<16x128xf32>
    %c0_148 = arith.constant 0 : index
    %c0_149 = arith.constant 0 : index
    %c0_150 = arith.constant 0 : index
    %363 = vector.load %arg9[%c0_148, %c0_149, %c0_150] : memref<1x128x128xbf16, #tpu.memory_space<vmem>>, vector<1x128x128xbf16>
    %364 = vector.shape_cast %363 : vector<1x128x128xbf16> to vector<128x128xbf16>
    %c0_151 = arith.constant 0 : index
    %c0_152 = arith.constant 0 : index
    %c0_153 = arith.constant 0 : index
    %365 = vector.load %arg10[%c0_151, %c0_152, %c0_153] : memref<1x1x128xf32, #tpu.memory_space<vmem>>, vector<1x1x128xf32>
    %366 = vector.shape_cast %365 : vector<1x1x128xf32> to vector<1x128xf32>
    %367 = arith.truncf %362 : vector<16x128xf32> to vector<16x128xbf16>
    %cst_154 = arith.constant dense<0.000000e+00> : vector<16x128xf32>
    %368 = tpu.matmul %367, %364, %cst_154 {dimension_numbers = #tpu.dot_dimension_numbers<[1], [0], [0], [1], [0, 0, 1, 1], [], []>} : vector<16x128xbf16>, vector<128x128xbf16>, vector<16x128xf32> -> vector<16x128xf32>
    %369 = vector.broadcast %366 : vector<1x128xf32> to vector<16x128xf32>
    %370 = arith.addf %368, %369 : vector<16x128xf32>
    %371 = arith.addf %198, %370 : vector<16x128xf32>
    %c0_155 = arith.constant 0 : index
    %c0_156 = arith.constant 0 : index
    %c0_157 = arith.constant 0 : index
    %372 = vector.load %arg17[%c0_155, %c0_156, %c0_157] : memref<1x1x128xf32, #tpu.memory_space<vmem>>, vector<1x1x128xf32>
    %373 = vector.shape_cast %372 : vector<1x1x128xf32> to vector<1x128xf32>
    %c0_158 = arith.constant 0 : index
    %c0_159 = arith.constant 0 : index
    %c0_160 = arith.constant 0 : index
    %374 = vector.load %arg18[%c0_158, %c0_159, %c0_160] : memref<1x1x128xf32, #tpu.memory_space<vmem>>, vector<1x1x128xf32>
    %375 = vector.shape_cast %374 : vector<1x1x128xf32> to vector<1x128xf32>
    %cst_161 = arith.constant dense<0.000000e+00> : vector<16xf32>
    %376 = vector.multi_reduction <add>, %371, %cst_161 [1] : vector<16x128xf32> to vector<16xf32>
    %377 = vector.shape_cast %376 : vector<16xf32> to vector<16x1xf32>
    %cst_162 = arith.constant 1.280000e+02 : f32
    %378 = vector.broadcast %cst_162 : f32 to vector<16x1xf32>
    %379 = arith.divf %377, %378 : vector<16x1xf32>
    %380 = vector.broadcast %379 : vector<16x1xf32> to vector<16x128xf32>
    %381 = arith.subf %371, %380 : vector<16x128xf32>
    %382 = arith.mulf %381, %381 : vector<16x128xf32>
    %cst_163 = arith.constant dense<0.000000e+00> : vector<16xf32>
    %383 = vector.multi_reduction <add>, %382, %cst_163 [1] : vector<16x128xf32> to vector<16xf32>
    %384 = vector.shape_cast %383 : vector<16xf32> to vector<16x1xf32>
    %cst_164 = arith.constant 1.280000e+02 : f32
    %385 = vector.broadcast %cst_164 : f32 to vector<16x1xf32>
    %386 = arith.divf %384, %385 : vector<16x1xf32>
    %cst_165 = arith.constant 9.99999974E-6 : f32
    %387 = vector.broadcast %cst_165 : f32 to vector<16x1xf32>
    %388 = arith.addf %386, %387 : vector<16x1xf32>
    %389 = math.rsqrt %388 : vector<16x1xf32>
    %390 = vector.broadcast %389 : vector<16x1xf32> to vector<16x128xf32>
    %391 = arith.mulf %381, %390 : vector<16x128xf32>
    %392 = vector.broadcast %373 : vector<1x128xf32> to vector<16x128xf32>
    %393 = arith.mulf %391, %392 : vector<16x128xf32>
    %394 = vector.broadcast %375 : vector<1x128xf32> to vector<16x128xf32>
    %395 = arith.addf %393, %394 : vector<16x128xf32>
    %c0_166 = arith.constant 0 : index
    %c0_167 = arith.constant 0 : index
    %c0_168 = arith.constant 0 : index
    %396 = vector.load %arg11[%c0_166, %c0_167, %c0_168] : memref<1x128x2048xbf16, #tpu.memory_space<vmem>>, vector<1x128x2048xbf16>
    %397 = vector.shape_cast %396 : vector<1x128x2048xbf16> to vector<128x2048xbf16>
    %c0_169 = arith.constant 0 : index
    %c0_170 = arith.constant 0 : index
    %c0_171 = arith.constant 0 : index
    %398 = vector.load %arg12[%c0_169, %c0_170, %c0_171] : memref<1x1x2048xf32, #tpu.memory_space<vmem>>, vector<1x1x2048xf32>
    %399 = vector.shape_cast %398 : vector<1x1x2048xf32> to vector<1x2048xf32>
    %400 = arith.truncf %395 : vector<16x128xf32> to vector<16x128xbf16>
    %cst_172 = arith.constant dense<0.000000e+00> : vector<16x2048xf32>
    %401 = tpu.matmul %400, %397, %cst_172 {dimension_numbers = #tpu.dot_dimension_numbers<[1], [0], [0], [1], [0, 0, 1, 1], [], []>} : vector<16x128xbf16>, vector<128x2048xbf16>, vector<16x2048xf32> -> vector<16x2048xf32>
    %402 = vector.broadcast %399 : vector<1x2048xf32> to vector<16x2048xf32>
    %403 = arith.addf %401, %402 : vector<16x2048xf32>
    %cst_173 = arith.constant 0.000000e+00 : f32
    %404 = vector.broadcast %cst_173 : f32 to vector<16x2048xf32>
    %405 = arith.maximumf %403, %404 : vector<16x2048xf32>
    %c0_174 = arith.constant 0 : index
    %c0_175 = arith.constant 0 : index
    %c0_176 = arith.constant 0 : index
    %406 = vector.load %arg13[%c0_174, %c0_175, %c0_176] : memref<1x2048x128xbf16, #tpu.memory_space<vmem>>, vector<1x2048x128xbf16>
    %407 = vector.shape_cast %406 : vector<1x2048x128xbf16> to vector<2048x128xbf16>
    %c0_177 = arith.constant 0 : index
    %c0_178 = arith.constant 0 : index
    %c0_179 = arith.constant 0 : index
    %408 = vector.load %arg14[%c0_177, %c0_178, %c0_179] : memref<1x1x128xf32, #tpu.memory_space<vmem>>, vector<1x1x128xf32>
    %409 = vector.shape_cast %408 : vector<1x1x128xf32> to vector<1x128xf32>
    %410 = arith.truncf %405 : vector<16x2048xf32> to vector<16x2048xbf16>
    %cst_180 = arith.constant dense<0.000000e+00> : vector<16x128xf32>
    %411 = tpu.matmul %410, %407, %cst_180 {dimension_numbers = #tpu.dot_dimension_numbers<[1], [0], [0], [1], [0, 0, 1, 1], [], []>} : vector<16x2048xbf16>, vector<2048x128xbf16>, vector<16x128xf32> -> vector<16x128xf32>
    %412 = vector.broadcast %409 : vector<1x128xf32> to vector<16x128xf32>
    %413 = arith.addf %411, %412 : vector<16x128xf32>
    %414 = arith.addf %395, %413 : vector<16x128xf32>
    %c0_181 = arith.constant 0 : index
    %c0_182 = arith.constant 0 : index
    %c0_183 = arith.constant 0 : index
    %415 = vector.load %arg19[%c0_181, %c0_182, %c0_183] : memref<1x1x128xf32, #tpu.memory_space<vmem>>, vector<1x1x128xf32>
    %416 = vector.shape_cast %415 : vector<1x1x128xf32> to vector<1x128xf32>
    %c0_184 = arith.constant 0 : index
    %c0_185 = arith.constant 0 : index
    %c0_186 = arith.constant 0 : index
    %417 = vector.load %arg20[%c0_184, %c0_185, %c0_186] : memref<1x1x128xf32, #tpu.memory_space<vmem>>, vector<1x1x128xf32>
    %418 = vector.shape_cast %417 : vector<1x1x128xf32> to vector<1x128xf32>
    %cst_187 = arith.constant dense<0.000000e+00> : vector<16xf32>
    %419 = vector.multi_reduction <add>, %414, %cst_187 [1] : vector<16x128xf32> to vector<16xf32>
    %420 = vector.shape_cast %419 : vector<16xf32> to vector<16x1xf32>
    %cst_188 = arith.constant 1.280000e+02 : f32
    %421 = vector.broadcast %cst_188 : f32 to vector<16x1xf32>
    %422 = arith.divf %420, %421 : vector<16x1xf32>
    %423 = vector.broadcast %422 : vector<16x1xf32> to vector<16x128xf32>
    %424 = arith.subf %414, %423 : vector<16x128xf32>
    %425 = arith.mulf %424, %424 : vector<16x128xf32>
    %cst_189 = arith.constant dense<0.000000e+00> : vector<16xf32>
    %426 = vector.multi_reduction <add>, %425, %cst_189 [1] : vector<16x128xf32> to vector<16xf32>
    %427 = vector.shape_cast %426 : vector<16xf32> to vector<16x1xf32>
    %cst_190 = arith.constant 1.280000e+02 : f32
    %428 = vector.broadcast %cst_190 : f32 to vector<16x1xf32>
    %429 = arith.divf %427, %428 : vector<16x1xf32>
    %cst_191 = arith.constant 9.99999974E-6 : f32
    %430 = vector.broadcast %cst_191 : f32 to vector<16x1xf32>
    %431 = arith.addf %429, %430 : vector<16x1xf32>
    %432 = math.rsqrt %431 : vector<16x1xf32>
    %433 = vector.broadcast %432 : vector<16x1xf32> to vector<16x128xf32>
    %434 = arith.mulf %424, %433 : vector<16x128xf32>
    %435 = vector.broadcast %416 : vector<1x128xf32> to vector<16x128xf32>
    %436 = arith.mulf %434, %435 : vector<16x128xf32>
    %437 = vector.broadcast %418 : vector<1x128xf32> to vector<16x128xf32>
    %438 = arith.addf %436, %437 : vector<16x128xf32>
    %c0_192 = arith.constant 0 : index
    %c0_193 = arith.constant 0 : index
    %439 = vector.load %arg29[%c0_192, %c0_193] : memref<16x128xf32, #tpu.memory_space<vmem>>, vector<16x128xf32>
    tpu.vector_store %arg29[%c0_192, %c0_193], %438 {strides = array<i32>} : memref<16x128xf32, #tpu.memory_space<vmem>>, vector<16x128xf32>,
    %c5_i32 = arith.constant 5 : i32
    %440 = arith.cmpi eq, %arg0, %c5_i32 : i32
    %441 = arith.extui %440 : i1 to i32
    %c0_i32_194 = arith.constant 0 : i32
    %442 = arith.cmpi ne, %441, %c0_i32_194 : i32
    scf.if %442 {
      %c0_195 = arith.constant 0 : index
      %c0_196 = arith.constant 0 : index
      %443 = vector.load %arg21[%c0_195, %c0_196] : memref<1x128xf32, #tpu.memory_space<vmem>>, vector<1x128xf32>
      %c0_197 = arith.constant 0 : index
      %c0_198 = arith.constant 0 : index
      %444 = vector.load %arg22[%c0_197, %c0_198] : memref<1x128xf32, #tpu.memory_space<vmem>>, vector<1x128xf32>
      %cst_199 = arith.constant dense<0.000000e+00> : vector<16xf32>
      %445 = vector.multi_reduction <add>, %438, %cst_199 [1] : vector<16x128xf32> to vector<16xf32>
      %446 = vector.shape_cast %445 : vector<16xf32> to vector<16x1xf32>
      %cst_200 = arith.constant 1.280000e+02 : f32
      %447 = vector.broadcast %cst_200 : f32 to vector<16x1xf32>
      %448 = arith.divf %446, %447 : vector<16x1xf32>
      %449 = vector.broadcast %448 : vector<16x1xf32> to vector<16x128xf32>
      %450 = arith.subf %438, %449 : vector<16x128xf32>
      %451 = arith.mulf %450, %450 : vector<16x128xf32>
      %cst_201 = arith.constant dense<0.000000e+00> : vector<16xf32>
      %452 = vector.multi_reduction <add>, %451, %cst_201 [1] : vector<16x128xf32> to vector<16xf32>
      %453 = vector.shape_cast %452 : vector<16xf32> to vector<16x1xf32>
      %cst_202 = arith.constant 1.280000e+02 : f32
      %454 = vector.broadcast %cst_202 : f32 to vector<16x1xf32>
      %455 = arith.divf %453, %454 : vector<16x1xf32>
      %cst_203 = arith.constant 9.99999974E-6 : f32
      %456 = vector.broadcast %cst_203 : f32 to vector<16x1xf32>
      %457 = arith.addf %455, %456 : vector<16x1xf32>
      %458 = math.rsqrt %457 : vector<16x1xf32>
      %459 = vector.broadcast %458 : vector<16x1xf32> to vector<16x128xf32>
      %460 = arith.mulf %450, %459 : vector<16x128xf32>
      %461 = vector.broadcast %443 : vector<1x128xf32> to vector<16x128xf32>
      %462 = arith.mulf %460, %461 : vector<16x128xf32>
      %463 = vector.broadcast %444 : vector<1x128xf32> to vector<16x128xf32>
      %464 = arith.addf %462, %463 : vector<16x128xf32>
      %c0_204 = arith.constant 0 : index
      %c0_205 = arith.constant 0 : index
      %465 = vector.load %arg23[%c0_204, %c0_205] : memref<1x128xf32, #tpu.memory_space<vmem>>, vector<1x128xf32>
      %466 = vector.broadcast %465 : vector<1x128xf32> to vector<16x128xf32>
      %467 = arith.mulf %464, %466 : vector<16x128xf32>
      %cst_206 = arith.constant dense<0.000000e+00> : vector<16xf32>
      %468 = vector.multi_reduction <add>, %467, %cst_206 [1] : vector<16x128xf32> to vector<16xf32>
      %469 = vector.shape_cast %468 : vector<16xf32> to vector<16x1xf32>
      %c0_207 = arith.constant 0 : index
      %c0_208 = arith.constant 0 : index
      %470 = vector.load %arg24[%c0_207, %c0_208] : memref<1x1xf32, #tpu.memory_space<vmem>>, vector<1x1xf32>
      %471 = vector.broadcast %470 : vector<1x1xf32> to vector<16x1xf32>
      %472 = arith.addf %469, %471 : vector<16x1xf32>
      %c0_209 = arith.constant 0 : index
      %c0_210 = arith.constant 0 : index
      %473 = vector.load %arg27[%c0_209, %c0_210] : memref<16x1xf32, #tpu.memory_space<vmem>>, vector<16x1xf32>
      tpu.vector_store %arg27[%c0_209, %c0_210], %472 {strides = array<i32>} : memref<16x1xf32, #tpu.memory_space<vmem>>, vector<16x1xf32>,
      %474 = vector.extract_strided_slice %464 {offsets = [0, 0], sizes = [8, 128], strides = [1, 1]} : vector<16x128xf32> to vector<8x128xf32>
      %cst_211 = arith.constant dense<0.000000e+00> : vector<128xf32>
      %475 = vector.multi_reduction <add>, %474, %cst_211 [0] : vector<8x128xf32> to vector<128xf32>
      %476 = vector.shape_cast %475 : vector<128xf32> to vector<1x128xf32>
      %cst_212 = arith.constant 8.000000e+00 : f32
      %477 = vector.broadcast %cst_212 : f32 to vector<1x128xf32>
      %478 = arith.divf %476, %477 : vector<1x128xf32>
      %479 = vector.extract_strided_slice %464 {offsets = [8, 0], sizes = [8, 128], strides = [1, 1]} : vector<16x128xf32> to vector<8x128xf32>
      %cst_213 = arith.constant dense<0.000000e+00> : vector<128xf32>
      %480 = vector.multi_reduction <add>, %479, %cst_213 [0] : vector<8x128xf32> to vector<128xf32>
      %481 = vector.shape_cast %480 : vector<128xf32> to vector<1x128xf32>
      %cst_214 = arith.constant 8.000000e+00 : f32
      %482 = vector.broadcast %cst_214 : f32 to vector<1x128xf32>
      %483 = arith.divf %481, %482 : vector<1x128xf32>
      %484 = tpu.concatenate %478, %483 in 0 : vector<1x128xf32>, vector<1x128xf32> -> vector<2x128xf32>
      %c0_215 = arith.constant 0 : index
      %c0_216 = arith.constant 0 : index
      %485 = vector.load %arg25[%c0_215, %c0_216] : memref<128x6xf32, #tpu.memory_space<vmem>>, vector<128x6xf32>
      %cst_217 = arith.constant dense<0.000000e+00> : vector<2x6xf32>
      %486 = tpu.matmul %484, %485, %cst_217 {dimension_numbers = #tpu.dot_dimension_numbers<[1], [0], [0], [1], [0, 0, 1, 1], [], []>} : vector<2x128xf32>, vector<128x6xf32>, vector<2x6xf32> -> vector<2x6xf32>
      %c0_218 = arith.constant 0 : index
      %c0_219 = arith.constant 0 : index
      %487 = vector.load %arg26[%c0_218, %c0_219] : memref<1x6xf32, #tpu.memory_space<vmem>>, vector<1x6xf32>
      %488 = vector.broadcast %487 : vector<1x6xf32> to vector<2x6xf32>
      %489 = arith.addf %486, %488 : vector<2x6xf32>
      %c0_220 = arith.constant 0 : index
      %c0_221 = arith.constant 0 : index
      %490 = vector.load %arg28[%c0_220, %c0_221] : memref<2x6xf32, #tpu.memory_space<vmem>>, vector<2x6xf32>
      tpu.vector_store %arg28[%c0_220, %c0_221], %489 {strides = array<i32>} : memref<2x6xf32, #tpu.memory_space<vmem>>, vector<2x6xf32>,
    } else {
    }
    return
  }
  func.func @transform_0(%arg0: i32) -> (i32, i32) {
    %c0_i32 = arith.constant 0 : i32
    %c0_i32_0 = arith.constant 0 : i32
    %c0_i32_1 = arith.constant 0 : i32
    return %c0_i32, %c0_i32_0 : i32, i32
  }
  func.func @transform_1(%arg0: i32) -> (i32, i32, i32) {
    %c0_i32 = arith.constant 0 : i32
    %c0_i32_0 = arith.constant 0 : i32
    %c0_i32_1 = arith.constant 0 : i32
    return %arg0, %c0_i32, %c0_i32_0 : i32, i32, i32
  }
  func.func @transform_2(%arg0: i32) -> (i32, i32, i32) {
    %c0_i32 = arith.constant 0 : i32
    %c0_i32_0 = arith.constant 0 : i32
    %c0_i32_1 = arith.constant 0 : i32
    return %arg0, %c0_i32, %c0_i32_0 : i32, i32, i32
  }
  func.func @transform_3(%arg0: i32) -> (i32, i32, i32) {
    %c0_i32 = arith.constant 0 : i32
    %c0_i32_0 = arith.constant 0 : i32
    %c0_i32_1 = arith.constant 0 : i32
    return %arg0, %c0_i32, %c0_i32_0 : i32, i32, i32
  }
  func.func @transform_4(%arg0: i32) -> (i32, i32, i32) {
    %c0_i32 = arith.constant 0 : i32
    %c0_i32_0 = arith.constant 0 : i32
    %c0_i32_1 = arith.constant 0 : i32
    return %arg0, %c0_i32, %c0_i32_0 : i32, i32, i32
  }
  func.func @transform_5(%arg0: i32) -> (i32, i32, i32) {
    %c0_i32 = arith.constant 0 : i32
    %c0_i32_0 = arith.constant 0 : i32
    %c0_i32_1 = arith.constant 0 : i32
    return %arg0, %c0_i32, %c0_i32_0 : i32, i32, i32
  }
  func.func @transform_6(%arg0: i32) -> (i32, i32, i32) {
    %c0_i32 = arith.constant 0 : i32
    %c0_i32_0 = arith.constant 0 : i32
    %c0_i32_1 = arith.constant 0 : i32
    return %arg0, %c0_i32, %c0_i32_0 : i32, i32, i32
  }
  func.func @transform_7(%arg0: i32) -> (i32, i32, i32) {
    %c0_i32 = arith.constant 0 : i32
    %c0_i32_0 = arith.constant 0 : i32
    %c0_i32_1 = arith.constant 0 : i32
    return %arg0, %c0_i32, %c0_i32_0 : i32, i32, i32
  }
  func.func @transform_8(%arg0: i32) -> (i32, i32, i32) {
    %c0_i32 = arith.constant 0 : i32
    %c0_i32_0 = arith.constant 0 : i32
    %c0_i32_1 = arith.constant 0 : i32
    return %arg0, %c0_i32, %c0_i32_0 : i32, i32, i32
  }
  func.func @transform_9(%arg0: i32) -> (i32, i32, i32) {
    %c0_i32 = arith.constant 0 : i32
    %c0_i32_0 = arith.constant 0 : i32
    %c0_i32_1 = arith.constant 0 : i32
    return %arg0, %c0_i32, %c0_i32_0 : i32, i32, i32
  }
  func.func @transform_10(%arg0: i32) -> (i32, i32, i32) {
    %c0_i32 = arith.constant 0 : i32
    %c0_i32_0 = arith.constant 0 : i32
    %c0_i32_1 = arith.constant 0 : i32
    return %arg0, %c0_i32, %c0_i32_0 : i32, i32, i32
  }
  func.func @transform_11(%arg0: i32) -> (i32, i32, i32) {
    %c0_i32 = arith.constant 0 : i32
    %c0_i32_0 = arith.constant 0 : i32
    %c0_i32_1 = arith.constant 0 : i32
    return %arg0, %c0_i32, %c0_i32_0 : i32, i32, i32
  }
  func.func @transform_12(%arg0: i32) -> (i32, i32, i32) {
    %c0_i32 = arith.constant 0 : i32
    %c0_i32_0 = arith.constant 0 : i32
    %c0_i32_1 = arith.constant 0 : i32
    return %arg0, %c0_i32, %c0_i32_0 : i32, i32, i32
  }
  func.func @transform_13(%arg0: i32) -> (i32, i32, i32) {
    %c0_i32 = arith.constant 0 : i32
    %c0_i32_0 = arith.constant 0 : i32
    %c0_i32_1 = arith.constant 0 : i32
    return %arg0, %c0_i32, %c0_i32_0 : i32, i32, i32
  }
  func.func @transform_14(%arg0: i32) -> (i32, i32, i32) {
    %c0_i32 = arith.constant 0 : i32
    %c0_i32_0 = arith.constant 0 : i32
    %c0_i32_1 = arith.constant 0 : i32
    return %arg0, %c0_i32, %c0_i32_0 : i32, i32, i32
  }
  func.func @transform_15(%arg0: i32) -> (i32, i32, i32) {
    %c0_i32 = arith.constant 0 : i32
    %c0_i32_0 = arith.constant 0 : i32
    %c0_i32_1 = arith.constant 0 : i32
    return %arg0, %c0_i32, %c0_i32_0 : i32, i32, i32
  }
  func.func @transform_16(%arg0: i32) -> (i32, i32, i32) {
    %c0_i32 = arith.constant 0 : i32
    %c0_i32_0 = arith.constant 0 : i32
    %c0_i32_1 = arith.constant 0 : i32
    return %arg0, %c0_i32, %c0_i32_0 : i32, i32, i32
  }
  func.func @transform_17(%arg0: i32) -> (i32, i32, i32) {
    %c0_i32 = arith.constant 0 : i32
    %c0_i32_0 = arith.constant 0 : i32
    %c0_i32_1 = arith.constant 0 : i32
    return %arg0, %c0_i32, %c0_i32_0 : i32, i32, i32
  }
  func.func @transform_18(%arg0: i32) -> (i32, i32, i32) {
    %c0_i32 = arith.constant 0 : i32
    %c0_i32_0 = arith.constant 0 : i32
    %c0_i32_1 = arith.constant 0 : i32
    return %arg0, %c0_i32, %c0_i32_0 : i32, i32, i32
  }
  func.func @transform_19(%arg0: i32) -> (i32, i32, i32) {
    %c0_i32 = arith.constant 0 : i32
    %c0_i32_0 = arith.constant 0 : i32
    %c0_i32_1 = arith.constant 0 : i32
    return %arg0, %c0_i32, %c0_i32_0 : i32, i32, i32
  }
  func.func @transform_20(%arg0: i32) -> (i32, i32) {
    %c0_i32 = arith.constant 0 : i32
    %c0_i32_0 = arith.constant 0 : i32
    %c0_i32_1 = arith.constant 0 : i32
    return %c0_i32, %c0_i32_0 : i32, i32
  }
  func.func @transform_21(%arg0: i32) -> (i32, i32) {
    %c0_i32 = arith.constant 0 : i32
    %c0_i32_0 = arith.constant 0 : i32
    %c0_i32_1 = arith.constant 0 : i32
    return %c0_i32, %c0_i32_0 : i32, i32
  }
  func.func @transform_22(%arg0: i32) -> (i32, i32) {
    %c0_i32 = arith.constant 0 : i32
    %c0_i32_0 = arith.constant 0 : i32
    %c0_i32_1 = arith.constant 0 : i32
    return %c0_i32, %c0_i32_0 : i32, i32
  }
  func.func @transform_23(%arg0: i32) -> (i32, i32) {
    %c0_i32 = arith.constant 0 : i32
    %c0_i32_0 = arith.constant 0 : i32
    %c0_i32_1 = arith.constant 0 : i32
    return %c0_i32, %c0_i32_0 : i32, i32
  }
  func.func @transform_24(%arg0: i32) -> (i32, i32) {
    %c0_i32 = arith.constant 0 : i32
    %c0_i32_0 = arith.constant 0 : i32
    %c0_i32_1 = arith.constant 0 : i32
    return %c0_i32, %c0_i32_0 : i32, i32
  }
  func.func @transform_25(%arg0: i32) -> (i32, i32) {
    %c0_i32 = arith.constant 0 : i32
    %c0_i32_0 = arith.constant 0 : i32
    %c0_i32_1 = arith.constant 0 : i32
    return %c0_i32, %c0_i32_0 : i32, i32
  }
  func.func @transform_26(%arg0: i32) -> (i32, i32) {
    %c0_i32 = arith.constant 0 : i32
    %c0_i32_0 = arith.constant 0 : i32
    %c0_i32_1 = arith.constant 0 : i32
    return %c0_i32, %c0_i32_0 : i32, i32
  }
  func.func @transform_27(%arg0: i32) -> (i32, i32) {
    %c0_i32 = arith.constant 0 : i32
    %c0_i32_0 = arith.constant 0 : i32
    %c0_i32_1 = arith.constant 0 : i32
    return %c0_i32, %c0_i32_0 : i32, i32
  }
}

module attributes {stable_mosaic.version = 11 : i64} {
  func.func @_encoder_stack_kernel(%arg0: i32, %arg1: memref<2x64xf32, #tpu.memory_space<vmem>>, %arg2: memref<16x48xf32, #tpu.memory_space<vmem>>, %arg3: memref<64x128xbf16, #tpu.memory_space<vmem>>, %arg4: memref<1x128xf32, #tpu.memory_space<vmem>>, %arg5: memref<48x128xbf16, #tpu.memory_space<vmem>>, %arg6: memref<1x128xf32, #tpu.memory_space<vmem>>, %arg7: memref<1x128x384xbf16, #tpu.memory_space<vmem>>, %arg8: memref<1x1x384xf32, #tpu.memory_space<vmem>>, %arg9: memref<1x128x128xbf16, #tpu.memory_space<vmem>>, %arg10: memref<1x1x128xf32, #tpu.memory_space<vmem>>, %arg11: memref<1x128x2048xbf16, #tpu.memory_space<vmem>>, %arg12: memref<1x1x2048xf32, #tpu.memory_space<vmem>>, %arg13: memref<1x2048x128xbf16, #tpu.memory_space<vmem>>, %arg14: memref<1x1x128xf32, #tpu.memory_space<vmem>>, %arg15: memref<1x1x128xf32, #tpu.memory_space<vmem>>, %arg16: memref<1x1x128xf32, #tpu.memory_space<vmem>>, %arg17: memref<1x1x128xf32, #tpu.memory_space<vmem>>, %arg18: memref<1x1x128xf32, #tpu.memory_space<vmem>>, %arg19: memref<1x128xf32, #tpu.memory_space<vmem>>, %arg20: memref<1x128xf32, #tpu.memory_space<vmem>>, %arg21: memref<6x128x256xbf16, #tpu.memory_space<vmem>>, %arg22: memref<6x1x256xf32, #tpu.memory_space<vmem>>, %arg23: memref<16x128xf32, #tpu.memory_space<vmem>>, %arg24: memref<6x16x256xbf16, #tpu.memory_space<vmem>>, %arg25: memref<16x128xf32, #tpu.memory_space<vmem>>, %arg26: memref<16x128xf32, #tpu.memory_space<vmem>>) attributes {dimension_semantics = [#tpu.dimension_semantics<arbitrary>], iteration_bounds = array<i64: 2>, scalar_prefetch = 0 : i64, scratch_operands = 2 : i64, tpu.core_type = #tpu.core_type<tc>, window_params = [{pipeline_mode = #tpu.pipeline_mode<synchronous>, transform_indices = @transform_0, window_bounds = array<i64: 2, 64>}, {pipeline_mode = #tpu.pipeline_mode<synchronous>, transform_indices = @transform_1, window_bounds = array<i64: 16, 48>}, {pipeline_mode = #tpu.pipeline_mode<synchronous>, transform_indices = @transform_2, window_bounds = array<i64: 64, 128>}, {pipeline_mode = #tpu.pipeline_mode<synchronous>, transform_indices = @transform_3, window_bounds = array<i64: 1, 128>}, {pipeline_mode = #tpu.pipeline_mode<synchronous>, transform_indices = @transform_4, window_bounds = array<i64: 48, 128>}, {pipeline_mode = #tpu.pipeline_mode<synchronous>, transform_indices = @transform_5, window_bounds = array<i64: 1, 128>}, {transform_indices = @transform_6, window_bounds = array<i64: 1, 128, 384>}, {transform_indices = @transform_7, window_bounds = array<i64: 1, 1, 384>}, {transform_indices = @transform_8, window_bounds = array<i64: 1, 128, 128>}, {transform_indices = @transform_9, window_bounds = array<i64: 1, 1, 128>}, {transform_indices = @transform_10, window_bounds = array<i64: 1, 128, 2048>}, {transform_indices = @transform_11, window_bounds = array<i64: 1, 1, 2048>}, {transform_indices = @transform_12, window_bounds = array<i64: 1, 2048, 128>}, {transform_indices = @transform_13, window_bounds = array<i64: 1, 1, 128>}, {transform_indices = @transform_14, window_bounds = array<i64: 1, 1, 128>}, {transform_indices = @transform_15, window_bounds = array<i64: 1, 1, 128>}, {transform_indices = @transform_16, window_bounds = array<i64: 1, 1, 128>}, {transform_indices = @transform_17, window_bounds = array<i64: 1, 1, 128>}, {pipeline_mode = #tpu.pipeline_mode<synchronous>, transform_indices = @transform_18, window_bounds = array<i64: 1, 128>}, {pipeline_mode = #tpu.pipeline_mode<synchronous>, transform_indices = @transform_19, window_bounds = array<i64: 1, 128>}, {pipeline_mode = #tpu.pipeline_mode<synchronous>, transform_indices = @transform_20, window_bounds = array<i64: 6, 128, 256>}, {pipeline_mode = #tpu.pipeline_mode<synchronous>, transform_indices = @transform_21, window_bounds = array<i64: 6, 1, 256>}, {pipeline_mode = #tpu.pipeline_mode<synchronous>, transform_indices = @transform_22, window_bounds = array<i64: 16, 128>}, {pipeline_mode = #tpu.pipeline_mode<synchronous>, transform_indices = @transform_23, window_bounds = array<i64: 6, 16, 256>}]} {
    %c0_i32 = arith.constant 0 : i32
    %0 = arith.cmpi eq, %arg0, %c0_i32 : i32
    %1 = arith.extui %0 : i1 to i32
    %c0_i32_0 = arith.constant 0 : i32
    %2 = arith.cmpi ne, %1, %c0_i32_0 : i32
    scf.if %2 {
      %c0_109 = arith.constant 0 : index
      %c0_110 = arith.constant 0 : index
      %246 = vector.load %arg5[%c0_109, %c0_110] : memref<48x128xbf16, #tpu.memory_space<vmem>>, vector<48x128xbf16>
      %c0_111 = arith.constant 0 : index
      %c0_112 = arith.constant 0 : index
      %247 = vector.load %arg2[%c0_111, %c0_112] : memref<16x48xf32, #tpu.memory_space<vmem>>, vector<16x48xf32>
      %248 = arith.truncf %247 : vector<16x48xf32> to vector<16x48xbf16>
      %cst_113 = arith.constant dense<0.000000e+00> : vector<16x128xf32>
      %249 = tpu.matmul %248, %246, %cst_113 {dimension_numbers = #tpu.dot_dimension_numbers<[1], [0], [0], [1], [0, 0, 1, 1], [], []>} : vector<16x48xbf16>, vector<48x128xbf16>, vector<16x128xf32> -> vector<16x128xf32>
      %c0_114 = arith.constant 0 : index
      %c0_115 = arith.constant 0 : index
      %250 = vector.load %arg6[%c0_114, %c0_115] : memref<1x128xf32, #tpu.memory_space<vmem>>, vector<1x128xf32>
      %251 = vector.broadcast %250 : vector<1x128xf32> to vector<16x128xf32>
      %252 = arith.addf %249, %251 : vector<16x128xf32>
      %cst_116 = arith.constant 0.000000e+00 : f32
      %253 = vector.broadcast %cst_116 : f32 to vector<16x128xf32>
      %254 = arith.maximumf %252, %253 : vector<16x128xf32>
      %c0_117 = arith.constant 0 : index
      %c0_118 = arith.constant 0 : index
      %255 = vector.load %arg25[%c0_117, %c0_118] : memref<16x128xf32, #tpu.memory_space<vmem>>, vector<16x128xf32>
      tpu.vector_store %arg25[%c0_117, %c0_118], %254 {strides = array<i32>} : memref<16x128xf32, #tpu.memory_space<vmem>>, vector<16x128xf32>,
      %c0_119 = arith.constant 0 : index
      %c0_120 = arith.constant 0 : index
      %256 = vector.load %arg3[%c0_119, %c0_120] : memref<64x128xbf16, #tpu.memory_space<vmem>>, vector<64x128xbf16>
      %c0_121 = arith.constant 0 : index
      %c0_122 = arith.constant 0 : index
      %257 = vector.load %arg1[%c0_121, %c0_122] : memref<2x64xf32, #tpu.memory_space<vmem>>, vector<2x64xf32>
      %258 = arith.truncf %257 : vector<2x64xf32> to vector<2x64xbf16>
      %cst_123 = arith.constant dense<0.000000e+00> : vector<2x128xf32>
      %259 = tpu.matmul %258, %256, %cst_123 {dimension_numbers = #tpu.dot_dimension_numbers<[1], [0], [0], [1], [0, 0, 1, 1], [], []>} : vector<2x64xbf16>, vector<64x128xbf16>, vector<2x128xf32> -> vector<2x128xf32>
      %c0_124 = arith.constant 0 : index
      %c0_125 = arith.constant 0 : index
      %260 = vector.load %arg4[%c0_124, %c0_125] : memref<1x128xf32, #tpu.memory_space<vmem>>, vector<1x128xf32>
      %261 = vector.broadcast %260 : vector<1x128xf32> to vector<2x128xf32>
      %262 = arith.addf %259, %261 : vector<2x128xf32>
      %cst_126 = arith.constant 0.000000e+00 : f32
      %263 = vector.broadcast %cst_126 : f32 to vector<2x128xf32>
      %264 = arith.maximumf %262, %263 : vector<2x128xf32>
      %265 = vector.extract_strided_slice %264 {offsets = [0, 0], sizes = [1, 128], strides = [1, 1]} : vector<2x128xf32> to vector<1x128xf32>
      %266 = vector.shape_cast %265 : vector<1x128xf32> to vector<1x128xf32>
      %267 = vector.broadcast %266 : vector<1x128xf32> to vector<8x128xf32>
      %c0_127 = arith.constant 0 : index
      %c0_128 = arith.constant 0 : index
      %268 = vector.load %arg23[%c0_127, %c0_128] : memref<16x128xf32, #tpu.memory_space<vmem>>, vector<8x128xf32>
      tpu.vector_store %arg23[%c0_127, %c0_128], %267 {strides = array<i32>} : memref<16x128xf32, #tpu.memory_space<vmem>>, vector<8x128xf32>,
      %269 = vector.extract_strided_slice %264 {offsets = [1, 0], sizes = [1, 128], strides = [1, 1]} : vector<2x128xf32> to vector<1x128xf32>
      %270 = vector.shape_cast %269 : vector<1x128xf32> to vector<1x128xf32>
      %271 = vector.broadcast %270 : vector<1x128xf32> to vector<8x128xf32>
      %c8_129 = arith.constant 8 : index
      %c0_130 = arith.constant 0 : index
      %272 = vector.load %arg23[%c8_129, %c0_130] : memref<16x128xf32, #tpu.memory_space<vmem>>, vector<8x128xf32>
      tpu.vector_store %arg23[%c8_129, %c0_130], %271 {strides = array<i32>} : memref<16x128xf32, #tpu.memory_space<vmem>>, vector<8x128xf32>,
    } else {
    }
    %c0 = arith.constant 0 : index
    %c0_1 = arith.constant 0 : index
    %3 = vector.load %arg25[%c0, %c0_1] : memref<16x128xf32, #tpu.memory_space<vmem>>, vector<16x128xf32>
    %c0_2 = arith.constant 0 : index
    %c0_3 = arith.constant 0 : index
    %c0_4 = arith.constant 0 : index
    %4 = vector.load %arg7[%c0_2, %c0_3, %c0_4] : memref<1x128x384xbf16, #tpu.memory_space<vmem>>, vector<1x128x384xbf16>
    %5 = vector.shape_cast %4 : vector<1x128x384xbf16> to vector<128x384xbf16>
    %c0_5 = arith.constant 0 : index
    %c0_6 = arith.constant 0 : index
    %c0_7 = arith.constant 0 : index
    %6 = vector.load %arg8[%c0_5, %c0_6, %c0_7] : memref<1x1x384xf32, #tpu.memory_space<vmem>>, vector<1x1x384xf32>
    %7 = vector.shape_cast %6 : vector<1x1x384xf32> to vector<1x384xf32>
    %8 = arith.truncf %3 : vector<16x128xf32> to vector<16x128xbf16>
    %cst = arith.constant dense<0.000000e+00> : vector<16x384xf32>
    %9 = tpu.matmul %8, %5, %cst {dimension_numbers = #tpu.dot_dimension_numbers<[1], [0], [0], [1], [0, 0, 1, 1], [], []>} : vector<16x128xbf16>, vector<128x384xbf16>, vector<16x384xf32> -> vector<16x384xf32>
    %10 = vector.broadcast %7 : vector<1x384xf32> to vector<16x384xf32>
    %11 = arith.addf %9, %10 : vector<16x384xf32>
    %12 = vector.extract_strided_slice %11 {offsets = [0, 0], sizes = [16, 128], strides = [1, 1]} : vector<16x384xf32> to vector<16x128xf32>
    %13 = vector.extract_strided_slice %11 {offsets = [0, 128], sizes = [16, 128], strides = [1, 1]} : vector<16x384xf32> to vector<16x128xf32>
    %14 = vector.extract_strided_slice %11 {offsets = [0, 256], sizes = [16, 128], strides = [1, 1]} : vector<16x384xf32> to vector<16x128xf32>
    %15 = vector.extract_strided_slice %12 {offsets = [0, 0], sizes = [8, 128], strides = [1, 1]} : vector<16x128xf32> to vector<8x128xf32>
    %16 = vector.extract_strided_slice %13 {offsets = [0, 0], sizes = [8, 128], strides = [1, 1]} : vector<16x128xf32> to vector<8x128xf32>
    %17 = vector.extract_strided_slice %14 {offsets = [0, 0], sizes = [8, 128], strides = [1, 1]} : vector<16x128xf32> to vector<8x128xf32>
    %18 = vector.extract_strided_slice %15 {offsets = [0, 0], sizes = [8, 32], strides = [1, 1]} : vector<8x128xf32> to vector<8x32xf32>
    %cst_8 = arith.constant 0.176776692 : f32
    %19 = vector.broadcast %cst_8 : f32 to vector<8x32xf32>
    %20 = arith.mulf %18, %19 : vector<8x32xf32>
    %21 = vector.extract_strided_slice %16 {offsets = [0, 0], sizes = [8, 32], strides = [1, 1]} : vector<8x128xf32> to vector<8x32xf32>
    %22 = vector.extract_strided_slice %17 {offsets = [0, 0], sizes = [8, 32], strides = [1, 1]} : vector<8x128xf32> to vector<8x32xf32>
    %cst_9 = arith.constant dense<0.000000e+00> : vector<8x8xf32>
    %23 = tpu.matmul %20, %21, %cst_9 {dimension_numbers = #tpu.dot_dimension_numbers<[1], [1], [0], [0], [0, 0, 1, 0], [], []>} : vector<8x32xf32>, vector<8x32xf32>, vector<8x8xf32> -> vector<8x8xf32>
    %cst_10 = arith.constant dense<0xFF800000> : vector<8xf32>
    %24 = vector.multi_reduction <maximumf>, %23, %cst_10 [1] : vector<8x8xf32> to vector<8xf32>
    %25 = vector.shape_cast %24 : vector<8xf32> to vector<8x1xf32>
    %26 = vector.broadcast %25 : vector<8x1xf32> to vector<8x8xf32>
    %27 = arith.subf %23, %26 : vector<8x8xf32>
    %28 = math.exp %27 : vector<8x8xf32>
    %cst_11 = arith.constant dense<0.000000e+00> : vector<8xf32>
    %29 = vector.multi_reduction <add>, %28, %cst_11 [1] : vector<8x8xf32> to vector<8xf32>
    %30 = vector.shape_cast %29 : vector<8xf32> to vector<8x1xf32>
    %31 = tpu.reciprocal %30 {approx = true} : vector<8x1xf32> -> vector<8x1xf32>
    %32 = vector.broadcast %31 : vector<8x1xf32> to vector<8x8xf32>
    %33 = arith.mulf %28, %32 : vector<8x8xf32>
    %cst_12 = arith.constant dense<0.000000e+00> : vector<8x32xf32>
    %34 = tpu.matmul %33, %22, %cst_12 {dimension_numbers = #tpu.dot_dimension_numbers<[1], [0], [0], [1], [0, 0, 1, 1], [], []>} : vector<8x8xf32>, vector<8x32xf32>, vector<8x32xf32> -> vector<8x32xf32>
    %c0_13 = arith.constant 0 : index
    %c0_14 = arith.constant 0 : index
    %35 = vector.load %arg26[%c0_13, %c0_14] : memref<16x128xf32, #tpu.memory_space<vmem>>, vector<8x32xf32>
    tpu.vector_store %arg26[%c0_13, %c0_14], %34 {strides = array<i32>} : memref<16x128xf32, #tpu.memory_space<vmem>>, vector<8x32xf32>,
    %36 = vector.extract_strided_slice %15 {offsets = [0, 32], sizes = [8, 32], strides = [1, 1]} : vector<8x128xf32> to vector<8x32xf32>
    %cst_15 = arith.constant 0.176776692 : f32
    %37 = vector.broadcast %cst_15 : f32 to vector<8x32xf32>
    %38 = arith.mulf %36, %37 : vector<8x32xf32>
    %39 = vector.extract_strided_slice %16 {offsets = [0, 32], sizes = [8, 32], strides = [1, 1]} : vector<8x128xf32> to vector<8x32xf32>
    %40 = vector.extract_strided_slice %17 {offsets = [0, 32], sizes = [8, 32], strides = [1, 1]} : vector<8x128xf32> to vector<8x32xf32>
    %cst_16 = arith.constant dense<0.000000e+00> : vector<8x8xf32>
    %41 = tpu.matmul %38, %39, %cst_16 {dimension_numbers = #tpu.dot_dimension_numbers<[1], [1], [0], [0], [0, 0, 1, 0], [], []>} : vector<8x32xf32>, vector<8x32xf32>, vector<8x8xf32> -> vector<8x8xf32>
    %cst_17 = arith.constant dense<0xFF800000> : vector<8xf32>
    %42 = vector.multi_reduction <maximumf>, %41, %cst_17 [1] : vector<8x8xf32> to vector<8xf32>
    %43 = vector.shape_cast %42 : vector<8xf32> to vector<8x1xf32>
    %44 = vector.broadcast %43 : vector<8x1xf32> to vector<8x8xf32>
    %45 = arith.subf %41, %44 : vector<8x8xf32>
    %46 = math.exp %45 : vector<8x8xf32>
    %cst_18 = arith.constant dense<0.000000e+00> : vector<8xf32>
    %47 = vector.multi_reduction <add>, %46, %cst_18 [1] : vector<8x8xf32> to vector<8xf32>
    %48 = vector.shape_cast %47 : vector<8xf32> to vector<8x1xf32>
    %49 = tpu.reciprocal %48 {approx = true} : vector<8x1xf32> -> vector<8x1xf32>
    %50 = vector.broadcast %49 : vector<8x1xf32> to vector<8x8xf32>
    %51 = arith.mulf %46, %50 : vector<8x8xf32>
    %cst_19 = arith.constant dense<0.000000e+00> : vector<8x32xf32>
    %52 = tpu.matmul %51, %40, %cst_19 {dimension_numbers = #tpu.dot_dimension_numbers<[1], [0], [0], [1], [0, 0, 1, 1], [], []>} : vector<8x8xf32>, vector<8x32xf32>, vector<8x32xf32> -> vector<8x32xf32>
    %c0_20 = arith.constant 0 : index
    %c32 = arith.constant 32 : index
    %53 = vector.load %arg26[%c0_20, %c32] : memref<16x128xf32, #tpu.memory_space<vmem>>, vector<8x32xf32>
    tpu.vector_store %arg26[%c0_20, %c32], %52 {strides = array<i32>} : memref<16x128xf32, #tpu.memory_space<vmem>>, vector<8x32xf32>,
    %54 = vector.extract_strided_slice %15 {offsets = [0, 64], sizes = [8, 32], strides = [1, 1]} : vector<8x128xf32> to vector<8x32xf32>
    %cst_21 = arith.constant 0.176776692 : f32
    %55 = vector.broadcast %cst_21 : f32 to vector<8x32xf32>
    %56 = arith.mulf %54, %55 : vector<8x32xf32>
    %57 = vector.extract_strided_slice %16 {offsets = [0, 64], sizes = [8, 32], strides = [1, 1]} : vector<8x128xf32> to vector<8x32xf32>
    %58 = vector.extract_strided_slice %17 {offsets = [0, 64], sizes = [8, 32], strides = [1, 1]} : vector<8x128xf32> to vector<8x32xf32>
    %cst_22 = arith.constant dense<0.000000e+00> : vector<8x8xf32>
    %59 = tpu.matmul %56, %57, %cst_22 {dimension_numbers = #tpu.dot_dimension_numbers<[1], [1], [0], [0], [0, 0, 1, 0], [], []>} : vector<8x32xf32>, vector<8x32xf32>, vector<8x8xf32> -> vector<8x8xf32>
    %cst_23 = arith.constant dense<0xFF800000> : vector<8xf32>
    %60 = vector.multi_reduction <maximumf>, %59, %cst_23 [1] : vector<8x8xf32> to vector<8xf32>
    %61 = vector.shape_cast %60 : vector<8xf32> to vector<8x1xf32>
    %62 = vector.broadcast %61 : vector<8x1xf32> to vector<8x8xf32>
    %63 = arith.subf %59, %62 : vector<8x8xf32>
    %64 = math.exp %63 : vector<8x8xf32>
    %cst_24 = arith.constant dense<0.000000e+00> : vector<8xf32>
    %65 = vector.multi_reduction <add>, %64, %cst_24 [1] : vector<8x8xf32> to vector<8xf32>
    %66 = vector.shape_cast %65 : vector<8xf32> to vector<8x1xf32>
    %67 = tpu.reciprocal %66 {approx = true} : vector<8x1xf32> -> vector<8x1xf32>
    %68 = vector.broadcast %67 : vector<8x1xf32> to vector<8x8xf32>
    %69 = arith.mulf %64, %68 : vector<8x8xf32>
    %cst_25 = arith.constant dense<0.000000e+00> : vector<8x32xf32>
    %70 = tpu.matmul %69, %58, %cst_25 {dimension_numbers = #tpu.dot_dimension_numbers<[1], [0], [0], [1], [0, 0, 1, 1], [], []>} : vector<8x8xf32>, vector<8x32xf32>, vector<8x32xf32> -> vector<8x32xf32>
    %c0_26 = arith.constant 0 : index
    %c64 = arith.constant 64 : index
    %71 = vector.load %arg26[%c0_26, %c64] : memref<16x128xf32, #tpu.memory_space<vmem>>, vector<8x32xf32>
    tpu.vector_store %arg26[%c0_26, %c64], %70 {strides = array<i32>} : memref<16x128xf32, #tpu.memory_space<vmem>>, vector<8x32xf32>,
    %72 = vector.extract_strided_slice %15 {offsets = [0, 96], sizes = [8, 32], strides = [1, 1]} : vector<8x128xf32> to vector<8x32xf32>
    %cst_27 = arith.constant 0.176776692 : f32
    %73 = vector.broadcast %cst_27 : f32 to vector<8x32xf32>
    %74 = arith.mulf %72, %73 : vector<8x32xf32>
    %75 = vector.extract_strided_slice %16 {offsets = [0, 96], sizes = [8, 32], strides = [1, 1]} : vector<8x128xf32> to vector<8x32xf32>
    %76 = vector.extract_strided_slice %17 {offsets = [0, 96], sizes = [8, 32], strides = [1, 1]} : vector<8x128xf32> to vector<8x32xf32>
    %cst_28 = arith.constant dense<0.000000e+00> : vector<8x8xf32>
    %77 = tpu.matmul %74, %75, %cst_28 {dimension_numbers = #tpu.dot_dimension_numbers<[1], [1], [0], [0], [0, 0, 1, 0], [], []>} : vector<8x32xf32>, vector<8x32xf32>, vector<8x8xf32> -> vector<8x8xf32>
    %cst_29 = arith.constant dense<0xFF800000> : vector<8xf32>
    %78 = vector.multi_reduction <maximumf>, %77, %cst_29 [1] : vector<8x8xf32> to vector<8xf32>
    %79 = vector.shape_cast %78 : vector<8xf32> to vector<8x1xf32>
    %80 = vector.broadcast %79 : vector<8x1xf32> to vector<8x8xf32>
    %81 = arith.subf %77, %80 : vector<8x8xf32>
    %82 = math.exp %81 : vector<8x8xf32>
    %cst_30 = arith.constant dense<0.000000e+00> : vector<8xf32>
    %83 = vector.multi_reduction <add>, %82, %cst_30 [1] : vector<8x8xf32> to vector<8xf32>
    %84 = vector.shape_cast %83 : vector<8xf32> to vector<8x1xf32>
    %85 = tpu.reciprocal %84 {approx = true} : vector<8x1xf32> -> vector<8x1xf32>
    %86 = vector.broadcast %85 : vector<8x1xf32> to vector<8x8xf32>
    %87 = arith.mulf %82, %86 : vector<8x8xf32>
    %cst_31 = arith.constant dense<0.000000e+00> : vector<8x32xf32>
    %88 = tpu.matmul %87, %76, %cst_31 {dimension_numbers = #tpu.dot_dimension_numbers<[1], [0], [0], [1], [0, 0, 1, 1], [], []>} : vector<8x8xf32>, vector<8x32xf32>, vector<8x32xf32> -> vector<8x32xf32>
    %c0_32 = arith.constant 0 : index
    %c96 = arith.constant 96 : index
    %89 = vector.load %arg26[%c0_32, %c96] : memref<16x128xf32, #tpu.memory_space<vmem>>, vector<8x32xf32>
    tpu.vector_store %arg26[%c0_32, %c96], %88 {strides = array<i32>} : memref<16x128xf32, #tpu.memory_space<vmem>>, vector<8x32xf32>,
    %90 = vector.extract_strided_slice %12 {offsets = [8, 0], sizes = [8, 128], strides = [1, 1]} : vector<16x128xf32> to vector<8x128xf32>
    %91 = vector.extract_strided_slice %13 {offsets = [8, 0], sizes = [8, 128], strides = [1, 1]} : vector<16x128xf32> to vector<8x128xf32>
    %92 = vector.extract_strided_slice %14 {offsets = [8, 0], sizes = [8, 128], strides = [1, 1]} : vector<16x128xf32> to vector<8x128xf32>
    %93 = vector.extract_strided_slice %90 {offsets = [0, 0], sizes = [8, 32], strides = [1, 1]} : vector<8x128xf32> to vector<8x32xf32>
    %cst_33 = arith.constant 0.176776692 : f32
    %94 = vector.broadcast %cst_33 : f32 to vector<8x32xf32>
    %95 = arith.mulf %93, %94 : vector<8x32xf32>
    %96 = vector.extract_strided_slice %91 {offsets = [0, 0], sizes = [8, 32], strides = [1, 1]} : vector<8x128xf32> to vector<8x32xf32>
    %97 = vector.extract_strided_slice %92 {offsets = [0, 0], sizes = [8, 32], strides = [1, 1]} : vector<8x128xf32> to vector<8x32xf32>
    %cst_34 = arith.constant dense<0.000000e+00> : vector<8x8xf32>
    %98 = tpu.matmul %95, %96, %cst_34 {dimension_numbers = #tpu.dot_dimension_numbers<[1], [1], [0], [0], [0, 0, 1, 0], [], []>} : vector<8x32xf32>, vector<8x32xf32>, vector<8x8xf32> -> vector<8x8xf32>
    %cst_35 = arith.constant dense<0xFF800000> : vector<8xf32>
    %99 = vector.multi_reduction <maximumf>, %98, %cst_35 [1] : vector<8x8xf32> to vector<8xf32>
    %100 = vector.shape_cast %99 : vector<8xf32> to vector<8x1xf32>
    %101 = vector.broadcast %100 : vector<8x1xf32> to vector<8x8xf32>
    %102 = arith.subf %98, %101 : vector<8x8xf32>
    %103 = math.exp %102 : vector<8x8xf32>
    %cst_36 = arith.constant dense<0.000000e+00> : vector<8xf32>
    %104 = vector.multi_reduction <add>, %103, %cst_36 [1] : vector<8x8xf32> to vector<8xf32>
    %105 = vector.shape_cast %104 : vector<8xf32> to vector<8x1xf32>
    %106 = tpu.reciprocal %105 {approx = true} : vector<8x1xf32> -> vector<8x1xf32>
    %107 = vector.broadcast %106 : vector<8x1xf32> to vector<8x8xf32>
    %108 = arith.mulf %103, %107 : vector<8x8xf32>
    %cst_37 = arith.constant dense<0.000000e+00> : vector<8x32xf32>
    %109 = tpu.matmul %108, %97, %cst_37 {dimension_numbers = #tpu.dot_dimension_numbers<[1], [0], [0], [1], [0, 0, 1, 1], [], []>} : vector<8x8xf32>, vector<8x32xf32>, vector<8x32xf32> -> vector<8x32xf32>
    %c8 = arith.constant 8 : index
    %c0_38 = arith.constant 0 : index
    %110 = vector.load %arg26[%c8, %c0_38] : memref<16x128xf32, #tpu.memory_space<vmem>>, vector<8x32xf32>
    tpu.vector_store %arg26[%c8, %c0_38], %109 {strides = array<i32>} : memref<16x128xf32, #tpu.memory_space<vmem>>, vector<8x32xf32>,
    %111 = vector.extract_strided_slice %90 {offsets = [0, 32], sizes = [8, 32], strides = [1, 1]} : vector<8x128xf32> to vector<8x32xf32>
    %cst_39 = arith.constant 0.176776692 : f32
    %112 = vector.broadcast %cst_39 : f32 to vector<8x32xf32>
    %113 = arith.mulf %111, %112 : vector<8x32xf32>
    %114 = vector.extract_strided_slice %91 {offsets = [0, 32], sizes = [8, 32], strides = [1, 1]} : vector<8x128xf32> to vector<8x32xf32>
    %115 = vector.extract_strided_slice %92 {offsets = [0, 32], sizes = [8, 32], strides = [1, 1]} : vector<8x128xf32> to vector<8x32xf32>
    %cst_40 = arith.constant dense<0.000000e+00> : vector<8x8xf32>
    %116 = tpu.matmul %113, %114, %cst_40 {dimension_numbers = #tpu.dot_dimension_numbers<[1], [1], [0], [0], [0, 0, 1, 0], [], []>} : vector<8x32xf32>, vector<8x32xf32>, vector<8x8xf32> -> vector<8x8xf32>
    %cst_41 = arith.constant dense<0xFF800000> : vector<8xf32>
    %117 = vector.multi_reduction <maximumf>, %116, %cst_41 [1] : vector<8x8xf32> to vector<8xf32>
    %118 = vector.shape_cast %117 : vector<8xf32> to vector<8x1xf32>
    %119 = vector.broadcast %118 : vector<8x1xf32> to vector<8x8xf32>
    %120 = arith.subf %116, %119 : vector<8x8xf32>
    %121 = math.exp %120 : vector<8x8xf32>
    %cst_42 = arith.constant dense<0.000000e+00> : vector<8xf32>
    %122 = vector.multi_reduction <add>, %121, %cst_42 [1] : vector<8x8xf32> to vector<8xf32>
    %123 = vector.shape_cast %122 : vector<8xf32> to vector<8x1xf32>
    %124 = tpu.reciprocal %123 {approx = true} : vector<8x1xf32> -> vector<8x1xf32>
    %125 = vector.broadcast %124 : vector<8x1xf32> to vector<8x8xf32>
    %126 = arith.mulf %121, %125 : vector<8x8xf32>
    %cst_43 = arith.constant dense<0.000000e+00> : vector<8x32xf32>
    %127 = tpu.matmul %126, %115, %cst_43 {dimension_numbers = #tpu.dot_dimension_numbers<[1], [0], [0], [1], [0, 0, 1, 1], [], []>} : vector<8x8xf32>, vector<8x32xf32>, vector<8x32xf32> -> vector<8x32xf32>
    %c8_44 = arith.constant 8 : index
    %c32_45 = arith.constant 32 : index
    %128 = vector.load %arg26[%c8_44, %c32_45] : memref<16x128xf32, #tpu.memory_space<vmem>>, vector<8x32xf32>
    tpu.vector_store %arg26[%c8_44, %c32_45], %127 {strides = array<i32>} : memref<16x128xf32, #tpu.memory_space<vmem>>, vector<8x32xf32>,
    %129 = vector.extract_strided_slice %90 {offsets = [0, 64], sizes = [8, 32], strides = [1, 1]} : vector<8x128xf32> to vector<8x32xf32>
    %cst_46 = arith.constant 0.176776692 : f32
    %130 = vector.broadcast %cst_46 : f32 to vector<8x32xf32>
    %131 = arith.mulf %129, %130 : vector<8x32xf32>
    %132 = vector.extract_strided_slice %91 {offsets = [0, 64], sizes = [8, 32], strides = [1, 1]} : vector<8x128xf32> to vector<8x32xf32>
    %133 = vector.extract_strided_slice %92 {offsets = [0, 64], sizes = [8, 32], strides = [1, 1]} : vector<8x128xf32> to vector<8x32xf32>
    %cst_47 = arith.constant dense<0.000000e+00> : vector<8x8xf32>
    %134 = tpu.matmul %131, %132, %cst_47 {dimension_numbers = #tpu.dot_dimension_numbers<[1], [1], [0], [0], [0, 0, 1, 0], [], []>} : vector<8x32xf32>, vector<8x32xf32>, vector<8x8xf32> -> vector<8x8xf32>
    %cst_48 = arith.constant dense<0xFF800000> : vector<8xf32>
    %135 = vector.multi_reduction <maximumf>, %134, %cst_48 [1] : vector<8x8xf32> to vector<8xf32>
    %136 = vector.shape_cast %135 : vector<8xf32> to vector<8x1xf32>
    %137 = vector.broadcast %136 : vector<8x1xf32> to vector<8x8xf32>
    %138 = arith.subf %134, %137 : vector<8x8xf32>
    %139 = math.exp %138 : vector<8x8xf32>
    %cst_49 = arith.constant dense<0.000000e+00> : vector<8xf32>
    %140 = vector.multi_reduction <add>, %139, %cst_49 [1] : vector<8x8xf32> to vector<8xf32>
    %141 = vector.shape_cast %140 : vector<8xf32> to vector<8x1xf32>
    %142 = tpu.reciprocal %141 {approx = true} : vector<8x1xf32> -> vector<8x1xf32>
    %143 = vector.broadcast %142 : vector<8x1xf32> to vector<8x8xf32>
    %144 = arith.mulf %139, %143 : vector<8x8xf32>
    %cst_50 = arith.constant dense<0.000000e+00> : vector<8x32xf32>
    %145 = tpu.matmul %144, %133, %cst_50 {dimension_numbers = #tpu.dot_dimension_numbers<[1], [0], [0], [1], [0, 0, 1, 1], [], []>} : vector<8x8xf32>, vector<8x32xf32>, vector<8x32xf32> -> vector<8x32xf32>
    %c8_51 = arith.constant 8 : index
    %c64_52 = arith.constant 64 : index
    %146 = vector.load %arg26[%c8_51, %c64_52] : memref<16x128xf32, #tpu.memory_space<vmem>>, vector<8x32xf32>
    tpu.vector_store %arg26[%c8_51, %c64_52], %145 {strides = array<i32>} : memref<16x128xf32, #tpu.memory_space<vmem>>, vector<8x32xf32>,
    %147 = vector.extract_strided_slice %90 {offsets = [0, 96], sizes = [8, 32], strides = [1, 1]} : vector<8x128xf32> to vector<8x32xf32>
    %cst_53 = arith.constant 0.176776692 : f32
    %148 = vector.broadcast %cst_53 : f32 to vector<8x32xf32>
    %149 = arith.mulf %147, %148 : vector<8x32xf32>
    %150 = vector.extract_strided_slice %91 {offsets = [0, 96], sizes = [8, 32], strides = [1, 1]} : vector<8x128xf32> to vector<8x32xf32>
    %151 = vector.extract_strided_slice %92 {offsets = [0, 96], sizes = [8, 32], strides = [1, 1]} : vector<8x128xf32> to vector<8x32xf32>
    %cst_54 = arith.constant dense<0.000000e+00> : vector<8x8xf32>
    %152 = tpu.matmul %149, %150, %cst_54 {dimension_numbers = #tpu.dot_dimension_numbers<[1], [1], [0], [0], [0, 0, 1, 0], [], []>} : vector<8x32xf32>, vector<8x32xf32>, vector<8x8xf32> -> vector<8x8xf32>
    %cst_55 = arith.constant dense<0xFF800000> : vector<8xf32>
    %153 = vector.multi_reduction <maximumf>, %152, %cst_55 [1] : vector<8x8xf32> to vector<8xf32>
    %154 = vector.shape_cast %153 : vector<8xf32> to vector<8x1xf32>
    %155 = vector.broadcast %154 : vector<8x1xf32> to vector<8x8xf32>
    %156 = arith.subf %152, %155 : vector<8x8xf32>
    %157 = math.exp %156 : vector<8x8xf32>
    %cst_56 = arith.constant dense<0.000000e+00> : vector<8xf32>
    %158 = vector.multi_reduction <add>, %157, %cst_56 [1] : vector<8x8xf32> to vector<8xf32>
    %159 = vector.shape_cast %158 : vector<8xf32> to vector<8x1xf32>
    %160 = tpu.reciprocal %159 {approx = true} : vector<8x1xf32> -> vector<8x1xf32>
    %161 = vector.broadcast %160 : vector<8x1xf32> to vector<8x8xf32>
    %162 = arith.mulf %157, %161 : vector<8x8xf32>
    %cst_57 = arith.constant dense<0.000000e+00> : vector<8x32xf32>
    %163 = tpu.matmul %162, %151, %cst_57 {dimension_numbers = #tpu.dot_dimension_numbers<[1], [0], [0], [1], [0, 0, 1, 1], [], []>} : vector<8x8xf32>, vector<8x32xf32>, vector<8x32xf32> -> vector<8x32xf32>
    %c8_58 = arith.constant 8 : index
    %c96_59 = arith.constant 96 : index
    %164 = vector.load %arg26[%c8_58, %c96_59] : memref<16x128xf32, #tpu.memory_space<vmem>>, vector<8x32xf32>
    tpu.vector_store %arg26[%c8_58, %c96_59], %163 {strides = array<i32>} : memref<16x128xf32, #tpu.memory_space<vmem>>, vector<8x32xf32>,
    %c0_60 = arith.constant 0 : index
    %c0_61 = arith.constant 0 : index
    %165 = vector.load %arg26[%c0_60, %c0_61] : memref<16x128xf32, #tpu.memory_space<vmem>>, vector<16x128xf32>
    %c0_62 = arith.constant 0 : index
    %c0_63 = arith.constant 0 : index
    %c0_64 = arith.constant 0 : index
    %166 = vector.load %arg9[%c0_62, %c0_63, %c0_64] : memref<1x128x128xbf16, #tpu.memory_space<vmem>>, vector<1x128x128xbf16>
    %167 = vector.shape_cast %166 : vector<1x128x128xbf16> to vector<128x128xbf16>
    %c0_65 = arith.constant 0 : index
    %c0_66 = arith.constant 0 : index
    %c0_67 = arith.constant 0 : index
    %168 = vector.load %arg10[%c0_65, %c0_66, %c0_67] : memref<1x1x128xf32, #tpu.memory_space<vmem>>, vector<1x1x128xf32>
    %169 = vector.shape_cast %168 : vector<1x1x128xf32> to vector<1x128xf32>
    %170 = arith.truncf %165 : vector<16x128xf32> to vector<16x128xbf16>
    %cst_68 = arith.constant dense<0.000000e+00> : vector<16x128xf32>
    %171 = tpu.matmul %170, %167, %cst_68 {dimension_numbers = #tpu.dot_dimension_numbers<[1], [0], [0], [1], [0, 0, 1, 1], [], []>} : vector<16x128xbf16>, vector<128x128xbf16>, vector<16x128xf32> -> vector<16x128xf32>
    %172 = vector.broadcast %169 : vector<1x128xf32> to vector<16x128xf32>
    %173 = arith.addf %171, %172 : vector<16x128xf32>
    %174 = arith.addf %3, %173 : vector<16x128xf32>
    %c0_69 = arith.constant 0 : index
    %c0_70 = arith.constant 0 : index
    %c0_71 = arith.constant 0 : index
    %175 = vector.load %arg15[%c0_69, %c0_70, %c0_71] : memref<1x1x128xf32, #tpu.memory_space<vmem>>, vector<1x1x128xf32>
    %176 = vector.shape_cast %175 : vector<1x1x128xf32> to vector<1x128xf32>
    %c0_72 = arith.constant 0 : index
    %c0_73 = arith.constant 0 : index
    %c0_74 = arith.constant 0 : index
    %177 = vector.load %arg16[%c0_72, %c0_73, %c0_74] : memref<1x1x128xf32, #tpu.memory_space<vmem>>, vector<1x1x128xf32>
    %178 = vector.shape_cast %177 : vector<1x1x128xf32> to vector<1x128xf32>
    %cst_75 = arith.constant dense<0.000000e+00> : vector<16xf32>
    %179 = vector.multi_reduction <add>, %174, %cst_75 [1] : vector<16x128xf32> to vector<16xf32>
    %180 = vector.shape_cast %179 : vector<16xf32> to vector<16x1xf32>
    %cst_76 = arith.constant 1.280000e+02 : f32
    %181 = vector.broadcast %cst_76 : f32 to vector<16x1xf32>
    %182 = arith.divf %180, %181 : vector<16x1xf32>
    %183 = vector.broadcast %182 : vector<16x1xf32> to vector<16x128xf32>
    %184 = arith.subf %174, %183 : vector<16x128xf32>
    %185 = arith.mulf %184, %184 : vector<16x128xf32>
    %cst_77 = arith.constant dense<0.000000e+00> : vector<16xf32>
    %186 = vector.multi_reduction <add>, %185, %cst_77 [1] : vector<16x128xf32> to vector<16xf32>
    %187 = vector.shape_cast %186 : vector<16xf32> to vector<16x1xf32>
    %cst_78 = arith.constant 1.280000e+02 : f32
    %188 = vector.broadcast %cst_78 : f32 to vector<16x1xf32>
    %189 = arith.divf %187, %188 : vector<16x1xf32>
    %cst_79 = arith.constant 9.99999974E-6 : f32
    %190 = vector.broadcast %cst_79 : f32 to vector<16x1xf32>
    %191 = arith.addf %189, %190 : vector<16x1xf32>
    %192 = math.rsqrt %191 : vector<16x1xf32>
    %193 = vector.broadcast %192 : vector<16x1xf32> to vector<16x128xf32>
    %194 = arith.mulf %184, %193 : vector<16x128xf32>
    %195 = vector.broadcast %176 : vector<1x128xf32> to vector<16x128xf32>
    %196 = arith.mulf %194, %195 : vector<16x128xf32>
    %197 = vector.broadcast %178 : vector<1x128xf32> to vector<16x128xf32>
    %198 = arith.addf %196, %197 : vector<16x128xf32>
    %c0_80 = arith.constant 0 : index
    %c0_81 = arith.constant 0 : index
    %c0_82 = arith.constant 0 : index
    %199 = vector.load %arg11[%c0_80, %c0_81, %c0_82] : memref<1x128x2048xbf16, #tpu.memory_space<vmem>>, vector<1x128x2048xbf16>
    %200 = vector.shape_cast %199 : vector<1x128x2048xbf16> to vector<128x2048xbf16>
    %c0_83 = arith.constant 0 : index
    %c0_84 = arith.constant 0 : index
    %c0_85 = arith.constant 0 : index
    %201 = vector.load %arg12[%c0_83, %c0_84, %c0_85] : memref<1x1x2048xf32, #tpu.memory_space<vmem>>, vector<1x1x2048xf32>
    %202 = vector.shape_cast %201 : vector<1x1x2048xf32> to vector<1x2048xf32>
    %203 = arith.truncf %198 : vector<16x128xf32> to vector<16x128xbf16>
    %cst_86 = arith.constant dense<0.000000e+00> : vector<16x2048xf32>
    %204 = tpu.matmul %203, %200, %cst_86 {dimension_numbers = #tpu.dot_dimension_numbers<[1], [0], [0], [1], [0, 0, 1, 1], [], []>} : vector<16x128xbf16>, vector<128x2048xbf16>, vector<16x2048xf32> -> vector<16x2048xf32>
    %205 = vector.broadcast %202 : vector<1x2048xf32> to vector<16x2048xf32>
    %206 = arith.addf %204, %205 : vector<16x2048xf32>
    %cst_87 = arith.constant 0.000000e+00 : f32
    %207 = vector.broadcast %cst_87 : f32 to vector<16x2048xf32>
    %208 = arith.maximumf %206, %207 : vector<16x2048xf32>
    %c0_88 = arith.constant 0 : index
    %c0_89 = arith.constant 0 : index
    %c0_90 = arith.constant 0 : index
    %209 = vector.load %arg13[%c0_88, %c0_89, %c0_90] : memref<1x2048x128xbf16, #tpu.memory_space<vmem>>, vector<1x2048x128xbf16>
    %210 = vector.shape_cast %209 : vector<1x2048x128xbf16> to vector<2048x128xbf16>
    %c0_91 = arith.constant 0 : index
    %c0_92 = arith.constant 0 : index
    %c0_93 = arith.constant 0 : index
    %211 = vector.load %arg14[%c0_91, %c0_92, %c0_93] : memref<1x1x128xf32, #tpu.memory_space<vmem>>, vector<1x1x128xf32>
    %212 = vector.shape_cast %211 : vector<1x1x128xf32> to vector<1x128xf32>
    %213 = arith.truncf %208 : vector<16x2048xf32> to vector<16x2048xbf16>
    %cst_94 = arith.constant dense<0.000000e+00> : vector<16x128xf32>
    %214 = tpu.matmul %213, %210, %cst_94 {dimension_numbers = #tpu.dot_dimension_numbers<[1], [0], [0], [1], [0, 0, 1, 1], [], []>} : vector<16x2048xbf16>, vector<2048x128xbf16>, vector<16x128xf32> -> vector<16x128xf32>
    %215 = vector.broadcast %212 : vector<1x128xf32> to vector<16x128xf32>
    %216 = arith.addf %214, %215 : vector<16x128xf32>
    %217 = arith.addf %198, %216 : vector<16x128xf32>
    %c0_95 = arith.constant 0 : index
    %c0_96 = arith.constant 0 : index
    %c0_97 = arith.constant 0 : index
    %218 = vector.load %arg17[%c0_95, %c0_96, %c0_97] : memref<1x1x128xf32, #tpu.memory_space<vmem>>, vector<1x1x128xf32>
    %219 = vector.shape_cast %218 : vector<1x1x128xf32> to vector<1x128xf32>
    %c0_98 = arith.constant 0 : index
    %c0_99 = arith.constant 0 : index
    %c0_100 = arith.constant 0 : index
    %220 = vector.load %arg18[%c0_98, %c0_99, %c0_100] : memref<1x1x128xf32, #tpu.memory_space<vmem>>, vector<1x1x128xf32>
    %221 = vector.shape_cast %220 : vector<1x1x128xf32> to vector<1x128xf32>
    %cst_101 = arith.constant dense<0.000000e+00> : vector<16xf32>
    %222 = vector.multi_reduction <add>, %217, %cst_101 [1] : vector<16x128xf32> to vector<16xf32>
    %223 = vector.shape_cast %222 : vector<16xf32> to vector<16x1xf32>
    %cst_102 = arith.constant 1.280000e+02 : f32
    %224 = vector.broadcast %cst_102 : f32 to vector<16x1xf32>
    %225 = arith.divf %223, %224 : vector<16x1xf32>
    %226 = vector.broadcast %225 : vector<16x1xf32> to vector<16x128xf32>
    %227 = arith.subf %217, %226 : vector<16x128xf32>
    %228 = arith.mulf %227, %227 : vector<16x128xf32>
    %cst_103 = arith.constant dense<0.000000e+00> : vector<16xf32>
    %229 = vector.multi_reduction <add>, %228, %cst_103 [1] : vector<16x128xf32> to vector<16xf32>
    %230 = vector.shape_cast %229 : vector<16xf32> to vector<16x1xf32>
    %cst_104 = arith.constant 1.280000e+02 : f32
    %231 = vector.broadcast %cst_104 : f32 to vector<16x1xf32>
    %232 = arith.divf %230, %231 : vector<16x1xf32>
    %cst_105 = arith.constant 9.99999974E-6 : f32
    %233 = vector.broadcast %cst_105 : f32 to vector<16x1xf32>
    %234 = arith.addf %232, %233 : vector<16x1xf32>
    %235 = math.rsqrt %234 : vector<16x1xf32>
    %236 = vector.broadcast %235 : vector<16x1xf32> to vector<16x128xf32>
    %237 = arith.mulf %227, %236 : vector<16x128xf32>
    %238 = vector.broadcast %219 : vector<1x128xf32> to vector<16x128xf32>
    %239 = arith.mulf %237, %238 : vector<16x128xf32>
    %240 = vector.broadcast %221 : vector<1x128xf32> to vector<16x128xf32>
    %241 = arith.addf %239, %240 : vector<16x128xf32>
    %c0_106 = arith.constant 0 : index
    %c0_107 = arith.constant 0 : index
    %242 = vector.load %arg25[%c0_106, %c0_107] : memref<16x128xf32, #tpu.memory_space<vmem>>, vector<16x128xf32>
    tpu.vector_store %arg25[%c0_106, %c0_107], %241 {strides = array<i32>} : memref<16x128xf32, #tpu.memory_space<vmem>>, vector<16x128xf32>,
    %c1_i32 = arith.constant 1 : i32
    %243 = arith.cmpi eq, %arg0, %c1_i32 : i32
    %244 = arith.extui %243 : i1 to i32
    %c0_i32_108 = arith.constant 0 : i32
    %245 = arith.cmpi ne, %244, %c0_i32_108 : i32
    scf.if %245 {
      %c0_109 = arith.constant 0 : index
      %c0_110 = arith.constant 0 : index
      %246 = vector.load %arg19[%c0_109, %c0_110] : memref<1x128xf32, #tpu.memory_space<vmem>>, vector<1x128xf32>
      %c0_111 = arith.constant 0 : index
      %c0_112 = arith.constant 0 : index
      %247 = vector.load %arg20[%c0_111, %c0_112] : memref<1x128xf32, #tpu.memory_space<vmem>>, vector<1x128xf32>
      %cst_113 = arith.constant dense<0.000000e+00> : vector<16xf32>
      %248 = vector.multi_reduction <add>, %241, %cst_113 [1] : vector<16x128xf32> to vector<16xf32>
      %249 = vector.shape_cast %248 : vector<16xf32> to vector<16x1xf32>
      %cst_114 = arith.constant 1.280000e+02 : f32
      %250 = vector.broadcast %cst_114 : f32 to vector<16x1xf32>
      %251 = arith.divf %249, %250 : vector<16x1xf32>
      %252 = vector.broadcast %251 : vector<16x1xf32> to vector<16x128xf32>
      %253 = arith.subf %241, %252 : vector<16x128xf32>
      %254 = arith.mulf %253, %253 : vector<16x128xf32>
      %cst_115 = arith.constant dense<0.000000e+00> : vector<16xf32>
      %255 = vector.multi_reduction <add>, %254, %cst_115 [1] : vector<16x128xf32> to vector<16xf32>
      %256 = vector.shape_cast %255 : vector<16xf32> to vector<16x1xf32>
      %cst_116 = arith.constant 1.280000e+02 : f32
      %257 = vector.broadcast %cst_116 : f32 to vector<16x1xf32>
      %258 = arith.divf %256, %257 : vector<16x1xf32>
      %cst_117 = arith.constant 9.99999974E-6 : f32
      %259 = vector.broadcast %cst_117 : f32 to vector<16x1xf32>
      %260 = arith.addf %258, %259 : vector<16x1xf32>
      %261 = math.rsqrt %260 : vector<16x1xf32>
      %262 = vector.broadcast %261 : vector<16x1xf32> to vector<16x128xf32>
      %263 = arith.mulf %253, %262 : vector<16x128xf32>
      %264 = vector.broadcast %246 : vector<1x128xf32> to vector<16x128xf32>
      %265 = arith.mulf %263, %264 : vector<16x128xf32>
      %266 = vector.broadcast %247 : vector<1x128xf32> to vector<16x128xf32>
      %267 = arith.addf %265, %266 : vector<16x128xf32>
      %c0_118 = arith.constant 0 : index
      %c0_119 = arith.constant 0 : index
      %c0_120 = arith.constant 0 : index
      %268 = vector.load %arg21[%c0_118, %c0_119, %c0_120] : memref<6x128x256xbf16, #tpu.memory_space<vmem>>, vector<1x128x256xbf16>
      %269 = vector.shape_cast %268 : vector<1x128x256xbf16> to vector<128x256xbf16>
      %c0_121 = arith.constant 0 : index
      %c0_122 = arith.constant 0 : index
      %c0_123 = arith.constant 0 : index
      %270 = vector.load %arg22[%c0_121, %c0_122, %c0_123] : memref<6x1x256xf32, #tpu.memory_space<vmem>>, vector<1x1x256xf32>
      %271 = vector.shape_cast %270 : vector<1x1x256xf32> to vector<1x256xf32>
      %272 = arith.truncf %267 : vector<16x128xf32> to vector<16x128xbf16>
      %cst_124 = arith.constant dense<0.000000e+00> : vector<16x256xf32>
      %273 = tpu.matmul %272, %269, %cst_124 {dimension_numbers = #tpu.dot_dimension_numbers<[1], [0], [0], [1], [0, 0, 1, 1], [], []>} : vector<16x128xbf16>, vector<128x256xbf16>, vector<16x256xf32> -> vector<16x256xf32>
      %274 = vector.broadcast %271 : vector<1x256xf32> to vector<16x256xf32>
      %275 = arith.addf %273, %274 : vector<16x256xf32>
      %276 = arith.truncf %275 : vector<16x256xf32> to vector<16x256xbf16>
      %c0_125 = arith.constant 0 : index
      %c0_126 = arith.constant 0 : index
      %c0_127 = arith.constant 0 : index
      %277 = vector.load %arg24[%c0_125, %c0_126, %c0_127] : memref<6x16x256xbf16, #tpu.memory_space<vmem>>, vector<1x16x256xbf16>
      %278 = vector.shape_cast %277 : vector<1x16x256xbf16> to vector<16x256xbf16>
      %279 = vector.shape_cast %276 : vector<16x256xbf16> to vector<1x16x256xbf16>
      tpu.vector_store %arg24[%c0_125, %c0_126, %c0_127], %279 {strides = array<i32>} : memref<6x16x256xbf16, #tpu.memory_space<vmem>>, vector<1x16x256xbf16>,
      %c1 = arith.constant 1 : index
      %c0_128 = arith.constant 0 : index
      %c0_129 = arith.constant 0 : index
      %280 = vector.load %arg21[%c1, %c0_128, %c0_129] : memref<6x128x256xbf16, #tpu.memory_space<vmem>>, vector<1x128x256xbf16>
      %281 = vector.shape_cast %280 : vector<1x128x256xbf16> to vector<128x256xbf16>
      %c1_130 = arith.constant 1 : index
      %c0_131 = arith.constant 0 : index
      %c0_132 = arith.constant 0 : index
      %282 = vector.load %arg22[%c1_130, %c0_131, %c0_132] : memref<6x1x256xf32, #tpu.memory_space<vmem>>, vector<1x1x256xf32>
      %283 = vector.shape_cast %282 : vector<1x1x256xf32> to vector<1x256xf32>
      %284 = arith.truncf %267 : vector<16x128xf32> to vector<16x128xbf16>
      %cst_133 = arith.constant dense<0.000000e+00> : vector<16x256xf32>
      %285 = tpu.matmul %284, %281, %cst_133 {dimension_numbers = #tpu.dot_dimension_numbers<[1], [0], [0], [1], [0, 0, 1, 1], [], []>} : vector<16x128xbf16>, vector<128x256xbf16>, vector<16x256xf32> -> vector<16x256xf32>
      %286 = vector.broadcast %283 : vector<1x256xf32> to vector<16x256xf32>
      %287 = arith.addf %285, %286 : vector<16x256xf32>
      %288 = arith.truncf %287 : vector<16x256xf32> to vector<16x256xbf16>
      %c1_134 = arith.constant 1 : index
      %c0_135 = arith.constant 0 : index
      %c0_136 = arith.constant 0 : index
      %289 = vector.load %arg24[%c1_134, %c0_135, %c0_136] : memref<6x16x256xbf16, #tpu.memory_space<vmem>>, vector<1x16x256xbf16>
      %290 = vector.shape_cast %289 : vector<1x16x256xbf16> to vector<16x256xbf16>
      %291 = vector.shape_cast %288 : vector<16x256xbf16> to vector<1x16x256xbf16>
      tpu.vector_store %arg24[%c1_134, %c0_135, %c0_136], %291 {strides = array<i32>} : memref<6x16x256xbf16, #tpu.memory_space<vmem>>, vector<1x16x256xbf16>,
      %c2 = arith.constant 2 : index
      %c0_137 = arith.constant 0 : index
      %c0_138 = arith.constant 0 : index
      %292 = vector.load %arg21[%c2, %c0_137, %c0_138] : memref<6x128x256xbf16, #tpu.memory_space<vmem>>, vector<1x128x256xbf16>
      %293 = vector.shape_cast %292 : vector<1x128x256xbf16> to vector<128x256xbf16>
      %c2_139 = arith.constant 2 : index
      %c0_140 = arith.constant 0 : index
      %c0_141 = arith.constant 0 : index
      %294 = vector.load %arg22[%c2_139, %c0_140, %c0_141] : memref<6x1x256xf32, #tpu.memory_space<vmem>>, vector<1x1x256xf32>
      %295 = vector.shape_cast %294 : vector<1x1x256xf32> to vector<1x256xf32>
      %296 = arith.truncf %267 : vector<16x128xf32> to vector<16x128xbf16>
      %cst_142 = arith.constant dense<0.000000e+00> : vector<16x256xf32>
      %297 = tpu.matmul %296, %293, %cst_142 {dimension_numbers = #tpu.dot_dimension_numbers<[1], [0], [0], [1], [0, 0, 1, 1], [], []>} : vector<16x128xbf16>, vector<128x256xbf16>, vector<16x256xf32> -> vector<16x256xf32>
      %298 = vector.broadcast %295 : vector<1x256xf32> to vector<16x256xf32>
      %299 = arith.addf %297, %298 : vector<16x256xf32>
      %300 = arith.truncf %299 : vector<16x256xf32> to vector<16x256xbf16>
      %c2_143 = arith.constant 2 : index
      %c0_144 = arith.constant 0 : index
      %c0_145 = arith.constant 0 : index
      %301 = vector.load %arg24[%c2_143, %c0_144, %c0_145] : memref<6x16x256xbf16, #tpu.memory_space<vmem>>, vector<1x16x256xbf16>
      %302 = vector.shape_cast %301 : vector<1x16x256xbf16> to vector<16x256xbf16>
      %303 = vector.shape_cast %300 : vector<16x256xbf16> to vector<1x16x256xbf16>
      tpu.vector_store %arg24[%c2_143, %c0_144, %c0_145], %303 {strides = array<i32>} : memref<6x16x256xbf16, #tpu.memory_space<vmem>>, vector<1x16x256xbf16>,
      %c3 = arith.constant 3 : index
      %c0_146 = arith.constant 0 : index
      %c0_147 = arith.constant 0 : index
      %304 = vector.load %arg21[%c3, %c0_146, %c0_147] : memref<6x128x256xbf16, #tpu.memory_space<vmem>>, vector<1x128x256xbf16>
      %305 = vector.shape_cast %304 : vector<1x128x256xbf16> to vector<128x256xbf16>
      %c3_148 = arith.constant 3 : index
      %c0_149 = arith.constant 0 : index
      %c0_150 = arith.constant 0 : index
      %306 = vector.load %arg22[%c3_148, %c0_149, %c0_150] : memref<6x1x256xf32, #tpu.memory_space<vmem>>, vector<1x1x256xf32>
      %307 = vector.shape_cast %306 : vector<1x1x256xf32> to vector<1x256xf32>
      %308 = arith.truncf %267 : vector<16x128xf32> to vector<16x128xbf16>
      %cst_151 = arith.constant dense<0.000000e+00> : vector<16x256xf32>
      %309 = tpu.matmul %308, %305, %cst_151 {dimension_numbers = #tpu.dot_dimension_numbers<[1], [0], [0], [1], [0, 0, 1, 1], [], []>} : vector<16x128xbf16>, vector<128x256xbf16>, vector<16x256xf32> -> vector<16x256xf32>
      %310 = vector.broadcast %307 : vector<1x256xf32> to vector<16x256xf32>
      %311 = arith.addf %309, %310 : vector<16x256xf32>
      %312 = arith.truncf %311 : vector<16x256xf32> to vector<16x256xbf16>
      %c3_152 = arith.constant 3 : index
      %c0_153 = arith.constant 0 : index
      %c0_154 = arith.constant 0 : index
      %313 = vector.load %arg24[%c3_152, %c0_153, %c0_154] : memref<6x16x256xbf16, #tpu.memory_space<vmem>>, vector<1x16x256xbf16>
      %314 = vector.shape_cast %313 : vector<1x16x256xbf16> to vector<16x256xbf16>
      %315 = vector.shape_cast %312 : vector<16x256xbf16> to vector<1x16x256xbf16>
      tpu.vector_store %arg24[%c3_152, %c0_153, %c0_154], %315 {strides = array<i32>} : memref<6x16x256xbf16, #tpu.memory_space<vmem>>, vector<1x16x256xbf16>,
      %c4 = arith.constant 4 : index
      %c0_155 = arith.constant 0 : index
      %c0_156 = arith.constant 0 : index
      %316 = vector.load %arg21[%c4, %c0_155, %c0_156] : memref<6x128x256xbf16, #tpu.memory_space<vmem>>, vector<1x128x256xbf16>
      %317 = vector.shape_cast %316 : vector<1x128x256xbf16> to vector<128x256xbf16>
      %c4_157 = arith.constant 4 : index
      %c0_158 = arith.constant 0 : index
      %c0_159 = arith.constant 0 : index
      %318 = vector.load %arg22[%c4_157, %c0_158, %c0_159] : memref<6x1x256xf32, #tpu.memory_space<vmem>>, vector<1x1x256xf32>
      %319 = vector.shape_cast %318 : vector<1x1x256xf32> to vector<1x256xf32>
      %320 = arith.truncf %267 : vector<16x128xf32> to vector<16x128xbf16>
      %cst_160 = arith.constant dense<0.000000e+00> : vector<16x256xf32>
      %321 = tpu.matmul %320, %317, %cst_160 {dimension_numbers = #tpu.dot_dimension_numbers<[1], [0], [0], [1], [0, 0, 1, 1], [], []>} : vector<16x128xbf16>, vector<128x256xbf16>, vector<16x256xf32> -> vector<16x256xf32>
      %322 = vector.broadcast %319 : vector<1x256xf32> to vector<16x256xf32>
      %323 = arith.addf %321, %322 : vector<16x256xf32>
      %324 = arith.truncf %323 : vector<16x256xf32> to vector<16x256xbf16>
      %c4_161 = arith.constant 4 : index
      %c0_162 = arith.constant 0 : index
      %c0_163 = arith.constant 0 : index
      %325 = vector.load %arg24[%c4_161, %c0_162, %c0_163] : memref<6x16x256xbf16, #tpu.memory_space<vmem>>, vector<1x16x256xbf16>
      %326 = vector.shape_cast %325 : vector<1x16x256xbf16> to vector<16x256xbf16>
      %327 = vector.shape_cast %324 : vector<16x256xbf16> to vector<1x16x256xbf16>
      tpu.vector_store %arg24[%c4_161, %c0_162, %c0_163], %327 {strides = array<i32>} : memref<6x16x256xbf16, #tpu.memory_space<vmem>>, vector<1x16x256xbf16>,
      %c5 = arith.constant 5 : index
      %c0_164 = arith.constant 0 : index
      %c0_165 = arith.constant 0 : index
      %328 = vector.load %arg21[%c5, %c0_164, %c0_165] : memref<6x128x256xbf16, #tpu.memory_space<vmem>>, vector<1x128x256xbf16>
      %329 = vector.shape_cast %328 : vector<1x128x256xbf16> to vector<128x256xbf16>
      %c5_166 = arith.constant 5 : index
      %c0_167 = arith.constant 0 : index
      %c0_168 = arith.constant 0 : index
      %330 = vector.load %arg22[%c5_166, %c0_167, %c0_168] : memref<6x1x256xf32, #tpu.memory_space<vmem>>, vector<1x1x256xf32>
      %331 = vector.shape_cast %330 : vector<1x1x256xf32> to vector<1x256xf32>
      %332 = arith.truncf %267 : vector<16x128xf32> to vector<16x128xbf16>
      %cst_169 = arith.constant dense<0.000000e+00> : vector<16x256xf32>
      %333 = tpu.matmul %332, %329, %cst_169 {dimension_numbers = #tpu.dot_dimension_numbers<[1], [0], [0], [1], [0, 0, 1, 1], [], []>} : vector<16x128xbf16>, vector<128x256xbf16>, vector<16x256xf32> -> vector<16x256xf32>
      %334 = vector.broadcast %331 : vector<1x256xf32> to vector<16x256xf32>
      %335 = arith.addf %333, %334 : vector<16x256xf32>
      %336 = arith.truncf %335 : vector<16x256xf32> to vector<16x256xbf16>
      %c5_170 = arith.constant 5 : index
      %c0_171 = arith.constant 0 : index
      %c0_172 = arith.constant 0 : index
      %337 = vector.load %arg24[%c5_170, %c0_171, %c0_172] : memref<6x16x256xbf16, #tpu.memory_space<vmem>>, vector<1x16x256xbf16>
      %338 = vector.shape_cast %337 : vector<1x16x256xbf16> to vector<16x256xbf16>
      %339 = vector.shape_cast %336 : vector<16x256xbf16> to vector<1x16x256xbf16>
      tpu.vector_store %arg24[%c5_170, %c0_171, %c0_172], %339 {strides = array<i32>} : memref<6x16x256xbf16, #tpu.memory_space<vmem>>, vector<1x16x256xbf16>,
    } else {
    }
    return
  }
  func.func @transform_0(%arg0: i32) -> (i32, i32) {
    %c0_i32 = arith.constant 0 : i32
    %c0_i32_0 = arith.constant 0 : i32
    %c0_i32_1 = arith.constant 0 : i32
    return %c0_i32, %c0_i32_0 : i32, i32
  }
  func.func @transform_1(%arg0: i32) -> (i32, i32) {
    %c0_i32 = arith.constant 0 : i32
    %c0_i32_0 = arith.constant 0 : i32
    %c0_i32_1 = arith.constant 0 : i32
    return %c0_i32, %c0_i32_0 : i32, i32
  }
  func.func @transform_2(%arg0: i32) -> (i32, i32) {
    %c0_i32 = arith.constant 0 : i32
    %c0_i32_0 = arith.constant 0 : i32
    %c0_i32_1 = arith.constant 0 : i32
    return %c0_i32, %c0_i32_0 : i32, i32
  }
  func.func @transform_3(%arg0: i32) -> (i32, i32) {
    %c0_i32 = arith.constant 0 : i32
    %c0_i32_0 = arith.constant 0 : i32
    %c0_i32_1 = arith.constant 0 : i32
    return %c0_i32, %c0_i32_0 : i32, i32
  }
  func.func @transform_4(%arg0: i32) -> (i32, i32) {
    %c0_i32 = arith.constant 0 : i32
    %c0_i32_0 = arith.constant 0 : i32
    %c0_i32_1 = arith.constant 0 : i32
    return %c0_i32, %c0_i32_0 : i32, i32
  }
  func.func @transform_5(%arg0: i32) -> (i32, i32) {
    %c0_i32 = arith.constant 0 : i32
    %c0_i32_0 = arith.constant 0 : i32
    %c0_i32_1 = arith.constant 0 : i32
    return %c0_i32, %c0_i32_0 : i32, i32
  }
  func.func @transform_6(%arg0: i32) -> (i32, i32, i32) {
    %c0_i32 = arith.constant 0 : i32
    %c0_i32_0 = arith.constant 0 : i32
    %c0_i32_1 = arith.constant 0 : i32
    return %arg0, %c0_i32, %c0_i32_0 : i32, i32, i32
  }
  func.func @transform_7(%arg0: i32) -> (i32, i32, i32) {
    %c0_i32 = arith.constant 0 : i32
    %c0_i32_0 = arith.constant 0 : i32
    %c0_i32_1 = arith.constant 0 : i32
    return %arg0, %c0_i32, %c0_i32_0 : i32, i32, i32
  }
  func.func @transform_8(%arg0: i32) -> (i32, i32, i32) {
    %c0_i32 = arith.constant 0 : i32
    %c0_i32_0 = arith.constant 0 : i32
    %c0_i32_1 = arith.constant 0 : i32
    return %arg0, %c0_i32, %c0_i32_0 : i32, i32, i32
  }
  func.func @transform_9(%arg0: i32) -> (i32, i32, i32) {
    %c0_i32 = arith.constant 0 : i32
    %c0_i32_0 = arith.constant 0 : i32
    %c0_i32_1 = arith.constant 0 : i32
    return %arg0, %c0_i32, %c0_i32_0 : i32, i32, i32
  }
  func.func @transform_10(%arg0: i32) -> (i32, i32, i32) {
    %c0_i32 = arith.constant 0 : i32
    %c0_i32_0 = arith.constant 0 : i32
    %c0_i32_1 = arith.constant 0 : i32
    return %arg0, %c0_i32, %c0_i32_0 : i32, i32, i32
  }
  func.func @transform_11(%arg0: i32) -> (i32, i32, i32) {
    %c0_i32 = arith.constant 0 : i32
    %c0_i32_0 = arith.constant 0 : i32
    %c0_i32_1 = arith.constant 0 : i32
    return %arg0, %c0_i32, %c0_i32_0 : i32, i32, i32
  }
  func.func @transform_12(%arg0: i32) -> (i32, i32, i32) {
    %c0_i32 = arith.constant 0 : i32
    %c0_i32_0 = arith.constant 0 : i32
    %c0_i32_1 = arith.constant 0 : i32
    return %arg0, %c0_i32, %c0_i32_0 : i32, i32, i32
  }
  func.func @transform_13(%arg0: i32) -> (i32, i32, i32) {
    %c0_i32 = arith.constant 0 : i32
    %c0_i32_0 = arith.constant 0 : i32
    %c0_i32_1 = arith.constant 0 : i32
    return %arg0, %c0_i32, %c0_i32_0 : i32, i32, i32
  }
  func.func @transform_14(%arg0: i32) -> (i32, i32, i32) {
    %c0_i32 = arith.constant 0 : i32
    %c0_i32_0 = arith.constant 0 : i32
    %c0_i32_1 = arith.constant 0 : i32
    return %arg0, %c0_i32, %c0_i32_0 : i32, i32, i32
  }
  func.func @transform_15(%arg0: i32) -> (i32, i32, i32) {
    %c0_i32 = arith.constant 0 : i32
    %c0_i32_0 = arith.constant 0 : i32
    %c0_i32_1 = arith.constant 0 : i32
    return %arg0, %c0_i32, %c0_i32_0 : i32, i32, i32
  }
  func.func @transform_16(%arg0: i32) -> (i32, i32, i32) {
    %c0_i32 = arith.constant 0 : i32
    %c0_i32_0 = arith.constant 0 : i32
    %c0_i32_1 = arith.constant 0 : i32
    return %arg0, %c0_i32, %c0_i32_0 : i32, i32, i32
  }
  func.func @transform_17(%arg0: i32) -> (i32, i32, i32) {
    %c0_i32 = arith.constant 0 : i32
    %c0_i32_0 = arith.constant 0 : i32
    %c0_i32_1 = arith.constant 0 : i32
    return %arg0, %c0_i32, %c0_i32_0 : i32, i32, i32
  }
  func.func @transform_18(%arg0: i32) -> (i32, i32) {
    %c0_i32 = arith.constant 0 : i32
    %c0_i32_0 = arith.constant 0 : i32
    %c0_i32_1 = arith.constant 0 : i32
    return %c0_i32, %c0_i32_0 : i32, i32
  }
  func.func @transform_19(%arg0: i32) -> (i32, i32) {
    %c0_i32 = arith.constant 0 : i32
    %c0_i32_0 = arith.constant 0 : i32
    %c0_i32_1 = arith.constant 0 : i32
    return %c0_i32, %c0_i32_0 : i32, i32
  }
  func.func @transform_20(%arg0: i32) -> (i32, i32, i32) {
    %c0_i32 = arith.constant 0 : i32
    %c0_i32_0 = arith.constant 0 : i32
    %c0_i32_1 = arith.constant 0 : i32
    %c0_i32_2 = arith.constant 0 : i32
    return %c0_i32, %c0_i32_0, %c0_i32_1 : i32, i32, i32
  }
  func.func @transform_21(%arg0: i32) -> (i32, i32, i32) {
    %c0_i32 = arith.constant 0 : i32
    %c0_i32_0 = arith.constant 0 : i32
    %c0_i32_1 = arith.constant 0 : i32
    %c0_i32_2 = arith.constant 0 : i32
    return %c0_i32, %c0_i32_0, %c0_i32_1 : i32, i32, i32
  }
  func.func @transform_22(%arg0: i32) -> (i32, i32) {
    %c0_i32 = arith.constant 0 : i32
    %c0_i32_0 = arith.constant 0 : i32
    %c0_i32_1 = arith.constant 0 : i32
    return %c0_i32, %c0_i32_0 : i32, i32
  }
  func.func @transform_23(%arg0: i32) -> (i32, i32, i32) {
    %c0_i32 = arith.constant 0 : i32
    %c0_i32_0 = arith.constant 0 : i32
    %c0_i32_1 = arith.constant 0 : i32
    %c0_i32_2 = arith.constant 0 : i32
    return %c0_i32, %c0_i32_0, %c0_i32_1 : i32, i32, i32
  }
}

</mosaic_0001>

<bundles_post_ra>
// kernel: variable_input_nn_forward.3
= control target key start
LH: loop header
LB: loop body
LE: loop exit
PB: predicated region body
PF: predicated region fallthrough
CT: control target
= control target key end

     0   :  { %s10349_s0 = inlined_call_operand.vmem [shape: f32[16,128], index: 0, kind: input, shape index: {}]   ;;  %s10350_s1 = inlined_call_operand.vmem [shape: bf16[6,16,256], index: 1, kind: input, shape index: {}]   ;;  %s10351_s2 = inlined_call_operand.hbm [shape: bf16[6,128,384], index: 2, kind: input, shape index: {}]   ;;  %s10352_s3 = inlined_call_operand.hbm [shape: f32[6,1,384], index: 3, kind: input, shape index: {}]   ;;  %s10353_s4 = inlined_call_operand.hbm [shape: bf16[6,128,128], index: 4, kind: input, shape index: {}]   ;;  %s10354_s5 = inlined_call_operand.hbm [shape: f32[6,1,128], index: 5, kind: input, shape index: {}]   ;;  %s10355_s6 = inlined_call_operand.hbm [shape: bf16[6,128,128], index: 6, kind: input, shape index: {}]   ;;  %s10356_s7 = inlined_call_operand.hbm [shape: f32[6,1,128], index: 7, kind: input, shape index: {}]   ;;  %s10357_s8 = inlined_call_operand.hbm [shape: bf16[6,128,128], index: 8, kind: input, shape index: {}]   ;;  %s10358_s9 = inlined_call_operand.hbm [shape: f32[6,1,128], index: 9, kind: input, shape index: {}]   ;;  %s10359_s10 = inlined_call_operand.hbm [shape: bf16[6,128,2048], index: 10, kind: input, shape index: {}]   ;;  %s10360_s11 = inlined_call_operand.hbm [shape: f32[6,1,2048], index: 11, kind: input, shape index: {}]   ;;  %s10361_s12 = inlined_call_operand.hbm [shape: bf16[6,2048,128], index: 12, kind: input, shape index: {}]   ;;  %s10362_s13 = inlined_call_operand.hbm [shape: f32[6,1,128], index: 13, kind: input, shape index: {}]   ;;  %s10363_s14 = inlined_call_operand.hbm [shape: f32[6,1,128], index: 14, kind: input, shape index: {}]   ;;  %s10364_s15 = inlined_call_operand.hbm [shape: f32[6,1,128], index: 15, kind: input, shape index: {}]   ;;  %s10365_s16 = inlined_call_operand.hbm [shape: f32[6,1,128], index: 16, kind: input, shape index: {}]   ;;  %s10366_s17 = inlined_call_operand.hbm [shape: f32[6,1,128], index: 17, kind: input, shape index: {}]   ;;  %s10367_s18 = inlined_call_operand.hbm [shape: f32[6,1,128], index: 18, kind: input, shape index: {}]   ;;  %s10368_s19 = inlined_call_operand.hbm [shape: f32[6,1,128], index: 19, kind: input, shape index: {}]   ;;  %s10369_s20 = inlined_call_operand.hbm [shape: f32[1,128], index: 20, kind: input, shape index: {}]   ;;  %s10370_s21 = inlined_call_operand.hbm [shape: f32[1,128], index: 21, kind: input, shape index: {}]   ;;  %s10371_s22 = inlined_call_operand.hbm [shape: f32[1,128], index: 22, kind: input, shape index: {}]   ;;  %s10372_s23 = inlined_call_operand.<no memory space> [shape: f32[1,1], index: 23, kind: input, shape index: {}]   ;;  %s10373_s24 = inlined_call_operand.vmem [shape: f32[128,6], index: 24, kind: input, shape index: {}]   ;;  %s10374_s25 = inlined_call_operand.hbm [shape: f32[1,6], index: 25, kind: input, shape index: {}]   ;;  %s10375_s26 = inlined_call_operand.vmem [shape: f32[16,1], index: 26, kind: output, shape index: {0}]   ;;  %s10376_s27 = inlined_call_operand.hbm [shape: f32[2,6], index: 27, kind: output, shape index: {1}]  }
   0x1   :  { %10413 = sst [smem:[#allocation60_spill]] %s10349_s0  ;;  %v33_v0 = vstv %s10372_s23 }
   0x2   :  { %10414 = sst [smem:[#allocation61_spill]] %s10350_s1  ;;  %34 = vst [vmem:[#allocation4] sm:$0x1] %v33_v0 }
   0x3   :  { %10415 = sst [smem:[#allocation62_spill]] %s10351_s2 }
   0x4   :  { %10416 = sst [smem:[#allocation63_spill]] %s10352_s3 }
   0x5   :  { %10417 = sst [smem:[#allocation64_spill]] %s10353_s4 }
   0x6   :  { %10418 = sst [smem:[#allocation65_spill]] %s10354_s5 }
   0x7   :  { %10419 = sst [smem:[#allocation66_spill]] %s10355_s6 }
   0x8   :  { %10420 = sst [smem:[#allocation67_spill]] %s10356_s7 }
   0x9   :  { %10421 = sst [smem:[#allocation68_spill]] %s10357_s8 }
   0xa   :  { %10422 = sst [smem:[#allocation69_spill]] %s10358_s9 }
   0xb   :  { %10423 = sst [smem:[#allocation70_spill]] %s10359_s10 }
   0xc   :  { %10424 = sst [smem:[#allocation71_spill]] %s10360_s11 }
   0xd   :  { %10425 = sst [smem:[#allocation72_spill]] %s10362_s13 }
   0xe   :  { %10426 = sst [smem:[#allocation73_spill]] %s10364_s15 }
   0xf   :  { %10427 = sst [smem:[#allocation74_spill]] %s10366_s17 }
  0x10   :  { %10428 = sst [smem:[#allocation75_spill]] %s10369_s20 }
  0x11   :  { %10429 = sst [smem:[#allocation76_spill]] %s10370_s21 }
  0x12   :  { %10430 = sst [smem:[#allocation77_spill]] %s10371_s22 }
  0x13   :  { %10431 = sst [smem:[#allocation78_spill]] %s10373_s24 }
  0x14   :  { %10432 = sst [smem:[#allocation79_spill]] %s10374_s25 }
  0x15   :  { %10433 = sst [smem:[#allocation80_spill]] %s10375_s26 }
  0x16   :  { %10434 = sst [smem:[#allocation81_spill]] %s10376_s27 }
  0x17   :  { %35 = vsyncpa [#allocation6], 0 }
  0x18   :  { %37 = vsyncpa [#allocation6 + $0x1], 0 }
  0x19   :  { %38 = vsyncpa [#allocation9], 0 }
  0x1a   :  { %40 = vsyncpa [#allocation9 + $0x1], 0 }
  0x1b   :  { %41 = vsyncpa [#allocation12], 0 }
  0x1c   :  { %43 = vsyncpa [#allocation12 + $0x1], 0 }
  0x1d   :  { %44 = vsyncpa [#allocation15], 0 }
  0x1e   :  { %46 = vsyncpa [#allocation15 + $0x1], 0 }
  0x1f   :  { %47 = vsyncpa [#allocation18], 0 }
  0x20   :  { %49 = vsyncpa [#allocation18 + $0x1], 0 }
  0x21   :  { %50 = vsyncpa [#allocation21], 0 }
  0x22   :  { %52 = vsyncpa [#allocation21 + $0x1], 0 }
  0x23   :  { %53 = vsyncpa [#allocation24], 0 }
  0x24   :  { %55 = vsyncpa [#allocation24 + $0x1], 0 }
  0x25   :  { %56 = vsyncpa [#allocation27], 0 }
  0x26   :  { %58 = vsyncpa [#allocation27 + $0x1], 0 }
  0x27   :  { %59 = vsyncpa [#allocation30], 0 }
  0x28   :  { %61 = vsyncpa [#allocation30 + $0x1], 0 }
  0x29   :  { %62 = vsyncpa [#allocation33], 0 }
  0x2a   :  { %64 = vsyncpa [#allocation33 + $0x1], 0 }
  0x2b   :  { %65 = vsyncpa [#allocation36], 0 }
  0x2c   :  { %66 = vsyncpa [#allocation39], 0 }
  0x2d   :  { %67 = vsyncpa [#allocation7], 0  ;;  %s8930_s23 = smov 0   ;;  %s8932_s8 = smov 0  }
  0x2e   :  { %s8934_s30 = smov 0   ;;  %s8936_s9 = smov 0  }
  0x2f LB: > { %10435 = sst [smem:[#allocation55_spill]] %s8766_s30  ;;  %s8949_s5 = sadd.s32 4294967295, %s8770_s9   ;;  %s8770_s9 = sphi %s8936_s9, %s10490_s9   ;;  %s8766_s30 = sphi %s8934_s30, %s10492_s30   ;;  %s8762_s8 = sphi %s8932_s8, %s10494_s8   ;;  %s8758_s23 = sphi %s8930_s23, %s10493_s23  }
  0x30   : > { %10436 = sst [smem:[#allocation56_spill]] %s8949_s5  ;;  %s8952_s28 = sadd.s32 1, %s8770_s9  }
  0x31   : > { %10437 = sst [smem:[#allocation57_spill]] %s8952_s28  ;;  %s124_s0 = ssub.s32 %s8770_s9, %s8952_s28 }
  0x32   : > { %s127_s10 = sadd.s32 1, %s8766_s30  ;;  %p125_p0 = scmp.eq.s32.totalorder %s124_s0, 0 }
  0x33   : > { %p134_p1 = scmp.ne.s32.totalorder %s8766_s30, %s8762_s8  ;;  %p135_p2 = scmp.eq.s32.totalorder %s8770_s9, 0 }
  0x34   : > { %p140_p3 = scmp.ne.s32.totalorder %s8762_s8, %s8758_s23  ;;  %p141_p5 = scmp.eq.s32.totalorder %s8949_s5, 0 }
  0x35   : > { %s8962_s29 = scalar_select %p125_p0, %s8766_s30, %s127_s10  }
  0x36   : > { %p8964_p4 = por %p135_p2, %p134_p1  ;;  %p6179_p6 = scmp.ge.s32.totalorder %s8770_s9, 1 }
  0x37   : > { %10438 = sst [smem:[#allocation58_spill]] %s8962_s29  ;;  %p761_p7 = scmp.lt.s32.totalorder %s8770_s9, 7 }
  0x38   : > { %p8973_p8 = por %p141_p5, %p140_p3  ;;  %p6180_p9 = scmp.ne.s32.totalorder %s8949_s5, 0 }
  0x39   : > { %p8978_p10 = pnand %p6179_p6, %p761_p7  ;;  %s10443_s21 = sld [smem:[#allocation76_spill]] }
  0x3a   : > { %s10440_s6 = scalar_select %p8973_p8, 1, 0 }
  0x3b   : > { %p7858_p11 = pneg %p8978_p10  ;;  %s8772_s4 = smov [#allocation35]  }
  0x3c   : > { %10441 = sst [smem:[#allocation59_spill]] %s10440_s6  ;;  %s790_s23 = sshll.u32 %s8772_s4, 4  ;;  %s791_s23 = int_to_ptr.vmem [resolvable:$true] %s790_s23 }
  0x3d   : > { %s10444_s20 = sld [smem:[#allocation75_spill]]  ;;  %p8992_p12 = pnand %p7858_p11, %p141_p5 }
  0x3e   : > { %s10446_s22 = sld [smem:[#allocation77_spill]]  ;;  %s8773_s4 = smov [#allocation34]  }
  0x3f   : > { %s788_s7 = sshll.u32 %s10443_s21, 4  ;;  %s778_s27 = sshll.u32 %s8773_s4, 4  ;;  %s789_s7 = int_to_ptr.hbm [resolvable:$true] %s788_s7  ;;  %s779_s27 = int_to_ptr.vmem [resolvable:$true] %s778_s27 }
  0x40   : > { %7864 = dma.hbm_to_vmem [thread:$0]  (!%p8992_p12), %s789_s7, 16, %s791_s23, [#allocation36]  }
  0x41   : > { %s10447_s25 = sld [smem:[#allocation79_spill]]  ;;  %s8774_s26 = smov [#allocation37]  }
  0x42   : > { %s802_s24 = sshll.u32 %s8774_s26, 4  ;;  %s8775_s2 = smov [#allocation38]   ;;  %s803_s24 = int_to_ptr.vmem [resolvable:$true] %s802_s24 }
  0x43   : > { %s776_s29 = sshll.u32 %s10444_s20, 4  ;;  %s820_s3 = sshll.u32 %s8775_s2, 4  ;;  %s777_s29 = int_to_ptr.hbm [resolvable:$true] %s776_s29  ;;  %s821_s3 = int_to_ptr.vmem [resolvable:$true] %s820_s3 }
  0x44   : > { %s800_s21 = sshll.u32 %s10446_s22, 4  ;;  %p6184_p13 = scmp.ge.s32.totalorder %s8770_s9, 6  ;;  %s801_s21 = int_to_ptr.hbm [resolvable:$true] %s800_s21 }
  0x45   : > { %7861 = dma.hbm_to_vmem [thread:$0]  (!%p8992_p12), %s777_s29, 16, %s779_s27, [#allocation33]  }
  0x46   : > { %7867 = dma.hbm_to_vmem [thread:$0]  (!%p8992_p12), %s801_s21, 16, %s803_s24, [#allocation36]  }
  0x47   : > { %s818_s20 = sshll.u32 %s10447_s25, 4  ;;  %827 = sbr.rel (%p6184_p13) target bundleno = 403 (0x193), region = 44  ;;  %s819_s20 = int_to_ptr.hbm [resolvable:$true] %s818_s20 }
  0x48   : > { %7870 = dma.hbm_to_vmem [thread:$0]  (!%p8992_p12), %s819_s20, 16, %s821_s3, [#allocation39]  }
  0x49   : > { %s9012_s27 = sand.u32 (!%p6184_p13), 1, %s8766_s30   ;;  %s9015_s26 = sand.u32 (!%p6184_p13), 1, %s8770_s9  }
  0x4a   : > { %s7798_s21 = smul.u32 (!%p6184_p13), 3, %s9012_s27  ;;  %s10448_s28 = sld [smem:[#allocation63_spill]] (!%p6184_p13) }
  0x4b   : > { %s7799_s24 = smul.u32 (!%p6184_p13), 3, %s8770_s9  ;;  %s10449_s3 = sld [smem:[#allocation65_spill]] (!%p6184_p13) }
  0x4c   : > { %s865_s23 = scalar_lea.vmem [#allocation8], %s7798_s21  ;;  %s10397_s25 = scalar_lea.sflag [#allocation9], %s9015_s26 }
  0x4d   : > { %s873_s4 = sshll.u32 %s865_s23, 4  ;;  %s874_s4 = int_to_ptr.vmem [resolvable:$true] %s873_s4 }
  0x50   : > { %s869_s20 = scalar_lea.hbm %s10448_s28, %s7799_s24  ;;  %s8158_s21 = scalar_lea.hbm %s10448_s28, 18 }
  0x51   : > { %s871_s0 = sshll.u32 %s869_s20, 4  ;;  %s908_s22 = scalar_lea.hbm %s10449_s3, %s8770_s9  ;;  %s872_s0 = int_to_ptr.hbm [resolvable:$true] %s871_s0 }
  0x52   : > { %s8152_s30 = sshra.s32 %s872_s0, 4  ;;  %s8153_s30 = int_to_ptr.hbm [resolvable:$true] %s8152_s30 }
  0x53   : > { %s8154_s5 = scalar_lea.hbm %s8153_s30, 3  ;;  %p8159_p3 = scmp.lt.s32.totalorder %s8153_s30, %s10448_s28 }
  0x54   : > { %p8155_p0 = scmp.ne.s32.totalorder %s8153_s30, %s8154_s5  ;;  %p8160_p6 = scmp.lt.s32.totalorder %s8158_s21, %s8154_s5 }
  0x56   : > { %p8156_p1 = pnand %p8155_p0, %p8964_p4  ;;  %p8161_p7 = por %p8160_p6, %p8159_p3 }
  0x58   : > { %p8157_p2 = pneg %p8156_p1 }
  0x5a   : > { %p8162_p11 = pnand %p8161_p7, %p8157_p2 }
  0x5c   : > { %8165 = shalt.err (!%p8162_p11)
}
  0x5d   : > { %7811 = dma.hbm_to_vmem [thread:$0]  (%p8964_p4), %s872_s0, 48, %s874_s4, %s10397_s25  }
  0x5e   : > { %s910_s20 = sshll.u32 %s908_s22, 4  ;;  %s905_s23 = scalar_lea.vmem [#allocation11], %s9012_s27  ;;  %s911_s20 = int_to_ptr.hbm [resolvable:$true] %s910_s20 }
  0x5f   : > { %s912_s6 = sshll.u32 %s905_s23, 4  ;;  %s10398_s10 = scalar_lea.sflag [#allocation12], %s9015_s26  ;;  %s913_s6 = int_to_ptr.vmem [resolvable:$true] %s912_s6 }
  0x60   : > { %s8180_s2 = sshra.s32 %s911_s20, 4  ;;  %s8186_s21 = scalar_lea.hbm %s10449_s3, 6  ;;  %s8181_s2 = int_to_ptr.hbm [resolvable:$true] %s8180_s2 }
  0x61   : > { %s8182_s30 = scalar_lea.hbm %s8181_s2, 1  ;;  %p8187_p1 = scmp.lt.s32.totalorder %s8181_s2, %s10449_s3 }
  0x62   : > { %p8183_p12 = scmp.ne.s32.totalorder %s8181_s2, %s8182_s30  ;;  %p8188_p2 = scmp.lt.s32.totalorder %s8186_s21, %s8182_s30 }
  0x64   : > { %p8184_p13 = pnand %p8183_p12, %p8964_p4  ;;  %p8189_p3 = por %p8188_p2, %p8187_p1 }
  0x66   : > { %p8185_p0 = pneg %p8184_p13 }
  0x68   : > { %p8190_p6 = pnand %p8189_p3, %p8185_p0 }
  0x6a   : > { %8193 = shalt.err (!%p8190_p6)
}
  0x6b   : > { %7813 = dma.hbm_to_vmem [thread:$0]  (%p8964_p4), %s911_s20, 16, %s913_s6, %s10398_s10  }
  0x6c   : > { %s10450_s0 = sld [smem:[#allocation67_spill]]  ;;  %s944_s5 = scalar_lea.vmem [#allocation14], %s9012_s27 }
  0x6d   : > { %s951_s29 = sshll.u32 %s944_s5, 4  ;;  %s10401_s30 = scalar_lea.sflag [#allocation15], %s9015_s26  ;;  %s952_s29 = int_to_ptr.vmem [resolvable:$true] %s951_s29 }
  0x72   : > { %s947_s23 = scalar_lea.hbm %s10450_s0, %s8770_s9  ;;  %s8214_s20 = scalar_lea.hbm %s10450_s0, 6 }
  0x73   : > { %s949_s2 = sshll.u32 %s947_s23, 4  ;;  %s950_s2 = int_to_ptr.hbm [resolvable:$true] %s949_s2 }
  0x74   : > { %s8208_s21 = sshra.s32 %s950_s2, 4  ;;  %s8209_s21 = int_to_ptr.hbm [resolvable:$true] %s8208_s21 }
  0x75   : > { %s8210_s24 = scalar_lea.hbm %s8209_s21, 1  ;;  %p8215_p13 = scmp.lt.s32.totalorder %s8209_s21, %s10450_s0 }
  0x76   : > { %p8211_p7 = scmp.ne.s32.totalorder %s8209_s21, %s8210_s24  ;;  %p8216_p0 = scmp.lt.s32.totalorder %s8214_s20, %s8210_s24 }
  0x78   : > { %p8212_p11 = pnand %p8211_p7, %p8964_p4  ;;  %p8217_p1 = por %p8216_p0, %p8215_p13 }
  0x7a   : > { %p8213_p12 = pneg %p8212_p11 }
  0x7c   : > { %p8218_p2 = pnand %p8217_p1, %p8213_p12 }
  0x7e   : > { %8221 = shalt.err (!%p8218_p2)
}
  0x7f   : > { %7815 = dma.hbm_to_vmem [thread:$0]  (%p8964_p4), %s950_s2, 16, %s952_s29, %s10401_s30  }
  0x80   : > { %s10451_s23 = sld [smem:[#allocation69_spill]]  ;;  %s983_s6 = scalar_lea.vmem [#allocation17], %s9012_s27 }
  0x81   : > { %s990_s21 = sshll.u32 %s983_s6, 4  ;;  %s10402_s24 = scalar_lea.sflag [#allocation18], %s9015_s26  ;;  %s991_s21 = int_to_ptr.vmem [resolvable:$true] %s990_s21 }
  0x86   : > { %s10452_s5 = smov %s10451_s23  ;;  %s986_s7 = scalar_lea.hbm %s10451_s23, %s8770_s9 }
  0x87   : > { %s988_s10 = sshll.u32 %s986_s7, 4  ;;  %s8242_s29 = scalar_lea.hbm %s10452_s5, 6  ;;  %s989_s10 = int_to_ptr.hbm [resolvable:$true] %s988_s10 }
  0x88   : > { %s8236_s20 = sshra.s32 %s989_s10, 4  ;;  %s8237_s20 = int_to_ptr.hbm [resolvable:$true] %s8236_s20 }
  0x89   : > { %s8238_s22 = scalar_lea.hbm %s8237_s20, 1  ;;  %p8243_p11 = scmp.lt.s32.totalorder %s8237_s20, %s10452_s5 }
  0x8a   : > { %p8239_p3 = scmp.ne.s32.totalorder %s8237_s20, %s8238_s22  ;;  %p8244_p12 = scmp.lt.s32.totalorder %s8242_s29, %s8238_s22 }
  0x8c   : > { %p8240_p6 = pnand %p8239_p3, %p8964_p4  ;;  %p8245_p13 = por %p8244_p12, %p8243_p11 }
  0x8e   : > { %p8241_p7 = pneg %p8240_p6 }
  0x90   : > { %p8246_p0 = pnand %p8245_p13, %p8241_p7 }
  0x92   : > { %8249 = shalt.err (!%p8246_p0)
}
  0x93   : > { %7817 = dma.hbm_to_vmem [thread:$0]  (%p8964_p4), %s989_s10, 16, %s991_s21, %s10402_s24  }
  0x94   : > { %s6198_s25 = sshll.u32 %s9012_s27, 4  ;;  %s6199_s3 = sshll.u32 %s8770_s9, 4 }
  0x95   : > { %s10453_s7 = sld [smem:[#allocation71_spill]]  ;;  %s1023_s20 = scalar_lea.vmem [#allocation20], %s6198_s25 }
  0x96   : > { %s1031_s22 = sshll.u32 %s1023_s20, 4  ;;  %s10406_s2 = scalar_lea.sflag [#allocation21], %s9015_s26  ;;  %s1032_s22 = int_to_ptr.vmem [resolvable:$true] %s1031_s22 }
  0x9b   : > { %s1027_s6 = scalar_lea.hbm %s10453_s7, %s6199_s3  ;;  %s8270_s24 = scalar_lea.hbm %s10453_s7, 96 }
  0x9c   : > { %s1029_s29 = sshll.u32 %s1027_s6, 4  ;;  %s1030_s29 = int_to_ptr.hbm [resolvable:$true] %s1029_s29 }
  0x9d   : > { %s8264_s4 = sshra.s32 %s1030_s29, 4  ;;  %s8265_s4 = int_to_ptr.hbm [resolvable:$true] %s8264_s4 }
  0x9e   : > { %s8266_s30 = scalar_lea.hbm %s8265_s4, 16  ;;  %p8271_p6 = scmp.lt.s32.totalorder %s8265_s4, %s10453_s7 }
  0x9f   : > { %p8267_p1 = scmp.ne.s32.totalorder %s8265_s4, %s8266_s30  ;;  %p8272_p7 = scmp.lt.s32.totalorder %s8270_s24, %s8266_s30 }
  0xa1   : > { %p8268_p2 = pnand %p8267_p1, %p8964_p4  ;;  %p8273_p11 = por %p8272_p7, %p8271_p6 }
  0xa3   : > { %p8269_p3 = pneg %p8268_p2 }
  0xa5   : > { %p8274_p12 = pnand %p8273_p11, %p8269_p3 }
  0xa7   : > { %8277 = shalt.err (!%p8274_p12)
}
  0xa8   : > { %7819 = dma.hbm_to_vmem [thread:$0]  (%p8964_p4), %s1030_s29, 256, %s1032_s22, %s10406_s2  }
  0xa9   : > { %s10454_s13 = sld [smem:[#allocation72_spill]]  ;;  %s1063_s5 = scalar_lea.vmem [#allocation23], %s9012_s27 }
  0xaa   : > { %s1070_s20 = sshll.u32 %s1063_s5, 4  ;;  %s10404_s30 = scalar_lea.sflag [#allocation24], %s9015_s26  ;;  %s1071_s20 = int_to_ptr.vmem [resolvable:$true] %s1070_s20 }
  0xaf   : > { %s1066_s23 = scalar_lea.hbm %s10454_s13, %s8770_s9  ;;  %s8298_s22 = scalar_lea.hbm %s10454_s13, 6 }
  0xb0   : > { %s1068_s6 = sshll.u32 %s1066_s23, 4  ;;  %s1069_s6 = int_to_ptr.hbm [resolvable:$true] %s1068_s6 }
  0xb1   : > { %s8292_s24 = sshra.s32 %s1069_s6, 4  ;;  %s8293_s24 = int_to_ptr.hbm [resolvable:$true] %s8292_s24 }
  0xb2   : > { %s8294_s4 = scalar_lea.hbm %s8293_s24, 1  ;;  %p8299_p2 = scmp.lt.s32.totalorder %s8293_s24, %s10454_s13 }
  0xb3   : > { %p8295_p13 = scmp.ne.s32.totalorder %s8293_s24, %s8294_s4  ;;  %p8300_p3 = scmp.lt.s32.totalorder %s8298_s22, %s8294_s4 }
  0xb5   : > { %p8296_p0 = pnand %p8295_p13, %p8964_p4  ;;  %p8301_p6 = por %p8300_p3, %p8299_p2 }
  0xb7   : > { %p8297_p1 = pneg %p8296_p0 }
  0xb9   : > { %p8302_p7 = pnand %p8301_p6, %p8297_p1 }
  0xbb   : > { %8305 = shalt.err (!%p8302_p7)
}
  0xbc   : > { %7821 = dma.hbm_to_vmem [thread:$0]  (%p8964_p4), %s1069_s6, 16, %s1071_s20, %s10404_s30  }
  0xbd   : > { %s10455_s15 = sld [smem:[#allocation73_spill]]  ;;  %s1097_s5 = scalar_lea.vmem [#allocation26], %s9012_s27 }
  0xbe   : > { %s1104_s10 = sshll.u32 %s1097_s5, 4  ;;  %s10405_s4 = scalar_lea.sflag [#allocation27], %s9015_s26  ;;  %s1105_s10 = int_to_ptr.vmem [resolvable:$true] %s1104_s10 }
  0xc3   : > { %s1100_s23 = scalar_lea.hbm %s10455_s15, %s8770_s9  ;;  %s8326_s6 = scalar_lea.hbm %s10455_s15, 6 }
  0xc4   : > { %s1102_s24 = sshll.u32 %s1100_s23, 4  ;;  %s1103_s24 = int_to_ptr.hbm [resolvable:$true] %s1102_s24 }
  0xc5   : > { %s8320_s21 = sshra.s32 %s1103_s24, 4  ;;  %s8321_s21 = int_to_ptr.hbm [resolvable:$true] %s8320_s21 }
  0xc6   : > { %s8322_s22 = scalar_lea.hbm %s8321_s21, 1  ;;  %p8327_p0 = scmp.lt.s32.totalorder %s8321_s21, %s10455_s15 }
  0xc7   : > { %p8323_p11 = scmp.ne.s32.totalorder %s8321_s21, %s8322_s22  ;;  %p8328_p1 = scmp.lt.s32.totalorder %s8326_s6, %s8322_s22 }
  0xc9   : > { %p8324_p12 = pnand %p8323_p11, %p8964_p4  ;;  %p8329_p2 = por %p8328_p1, %p8327_p0 }
  0xcb   : > { %p8325_p13 = pneg %p8324_p12 }
  0xcd   : > { %p8330_p3 = pnand %p8329_p2, %p8325_p13 }
  0xcf   : > { %8333 = shalt.err (!%p8330_p3)
}
  0xd0   : > { %7823 = dma.hbm_to_vmem [thread:$0]  (%p8964_p4), %s1103_s24, 16, %s1105_s10, %s10405_s4  }
  0xd1   : > { %s10456_s17 = sld [smem:[#allocation74_spill]]  ;;  %s1131_s0 = scalar_lea.vmem [#allocation29], %s9012_s27 }
  0xd2   : > { %s1138_s21 = sshll.u32 %s1131_s0, 4  ;;  %s10408_s22 = scalar_lea.sflag [#allocation30], %s9015_s26  ;;  %s1139_s21 = int_to_ptr.vmem [resolvable:$true] %s1138_s21 }
  0xd7   : > { %s1134_s5 = scalar_lea.hbm %s10456_s17, %s8770_s9  ;;  %s8354_s10 = scalar_lea.hbm %s10456_s17, 6 }
  0xd8   : > { %s1136_s29 = sshll.u32 %s1134_s5, 4  ;;  %s1137_s29 = int_to_ptr.hbm [resolvable:$true] %s1136_s29 }
  0xd9   : > { %s8348_s6 = sshra.s32 %s1137_s29, 4  ;;  %s8349_s6 = int_to_ptr.hbm [resolvable:$true] %s8348_s6 }
  0xda   : > { %s8350_s20 = scalar_lea.hbm %s8349_s6, 1  ;;  %p8355_p12 = scmp.lt.s32.totalorder %s8349_s6, %s10456_s17 }
  0xdb   : > { %p8351_p6 = scmp.ne.s32.totalorder %s8349_s6, %s8350_s20  ;;  %p8356_p13 = scmp.lt.s32.totalorder %s8354_s10, %s8350_s20 }
  0xdd   : > { %p8352_p7 = pnand %p8351_p6, %p8964_p4  ;;  %p8357_p0 = por %p8356_p13, %p8355_p12 }
  0xdf   : > { %p8353_p11 = pneg %p8352_p7 }
  0xe1   : > { %p8358_p1 = pnand %p8357_p0, %p8353_p11 }
  0xe3   : > { %8361 = shalt.err (!%p8358_p1)
}
  0xe4   : > { %7825 = dma.hbm_to_vmem [thread:$0]  (%p8964_p4), %s1137_s29, 16, %s1139_s21, %s10408_s22  }
  0xe5   : > { %s7796_s30 = smul.u32 192, %s9012_s27  ;;  %s10457_s25 = sld [smem:[#allocation62_spill]] }
  0xe6   : > { %s7797_s23 = smul.u32 192, %s8770_s9  ;;  %s9167_s3 = sshll.u32 %s9012_s27, 6 }
  0xe7   : > { %s843_s20 = scalar_lea.vmem [#allocation5], %s7796_s30  ;;  %s840_s4 = scalar_lea.sflag [#allocation6], %s9012_s27 }
  0xe8   : > { %s851_s10 = sshll.u32 %s843_s20, 4  ;;  %s852_s10 = int_to_ptr.vmem [resolvable:$true] %s851_s10 }
  0xeb   : > { %s848_s6 = scalar_lea.hbm %s10457_s25, %s7797_s23  ;;  %s8382_s5 = scalar_lea.hbm %s10457_s25, 1152 }
  0xec   : > { %s849_s24 = sshll.u32 %s848_s6, 4  ;;  %s850_s24 = int_to_ptr.hbm [resolvable:$true] %s849_s24 }
  0xed   : > { %s8376_s2 = sshra.s32 %s850_s24, 4  ;;  %s8377_s2 = int_to_ptr.hbm [resolvable:$true] %s8376_s2 }
  0xee   : > { %s8378_s7 = scalar_lea.hbm %s8377_s2, 192  ;;  %p8383_p7 = scmp.lt.s32.totalorder %s8377_s2, %s10457_s25 }
  0xef   : > { %p8379_p2 = scmp.ne.s32.totalorder %s8377_s2, %s8378_s7  ;;  %p8384_p11 = scmp.lt.s32.totalorder %s8382_s5, %s8378_s7 }
  0xf1   : > { %p8380_p3 = pnand %p8379_p2, %p8964_p4  ;;  %p8385_p12 = por %p8384_p11, %p8383_p7 }
  0xf3   : > { %p8381_p6 = pneg %p8380_p3 }
  0xf5   : > { %p8386_p13 = pnand %p8385_p12, %p8381_p6 }
  0xf7   : > { %8389 = shalt.err (!%p8386_p13)
}
  0xf8   : > { %s8776_s0 = smov 192   ;;  %s8777_s6 = smov 12  }
  0xf9   : > { %7810 = dma.hbm_to_vmem [thread:$0]  (%p8964_p4), %s850_s24, 3072, %s852_s10, %s840_s4, %s8776_s0, %s8776_s0, %s8777_s6  }
  0xfa   : > { %s9181_s20 = sshll.u32 %s8770_s9, 6  ;;  %s10458_s22 = sld [smem:[#allocation64_spill]] }
  0xfb   : > { %s884_s2 = scalar_lea.vmem [#allocation10], %s9167_s3 }
  0xfc   : > { %s892_s7 = sshll.u32 %s884_s2, 4  ;;  %s893_s7 = int_to_ptr.vmem [resolvable:$true] %s892_s7 }
 0x100   : > { %s889_s23 = scalar_lea.hbm %s10458_s22, %s9181_s20  ;;  %s8410_s24 = scalar_lea.hbm %s10458_s22, 384 }
 0x101   : > { %s890_s5 = sshll.u32 %s889_s23, 4  ;;  %s891_s5 = int_to_ptr.hbm [resolvable:$true] %s890_s5 }
 0x102   : > { %s8404_s30 = sshra.s32 %s891_s5, 4  ;;  %s8405_s30 = int_to_ptr.hbm [resolvable:$true] %s8404_s30 }
 0x103   : > { %s8406_s13 = scalar_lea.hbm %s8405_s30, 64  ;;  %p8411_p3 = scmp.lt.s32.totalorder %s8405_s30, %s10458_s22 }
 0x104   : > { %p8407_p0 = scmp.ne.s32.totalorder %s8405_s30, %s8406_s13  ;;  %p8412_p6 = scmp.lt.s32.totalorder %s8410_s24, %s8406_s13 }
 0x106   : > { %p8408_p1 = pnand %p8407_p0, %p8964_p4  ;;  %p8413_p7 = por %p8412_p6, %p8411_p3 }
 0x108   : > { %p8409_p2 = pneg %p8408_p1 }
 0x10a   : > { %p8414_p11 = pnand %p8413_p7, %p8409_p2 }
 0x10c   : > { %8417 = shalt.err (!%p8414_p11)
}
 0x10d   : > { %s8778_s29 = smov 64   ;;  %s10412_s21 = smov 4  }
 0x10e   : > { %s10459_s23 = scalar_lea.sflag [#allocation9], %s9015_s26  ;;  %s10460_s30 = sld [smem:[#allocation66_spill]] }
 0x10f   : > { %7812 = dma.hbm_to_vmem [thread:$0]  (%p8964_p4), %s891_s5, 1024, %s893_s7, %s10459_s23, %s8778_s29, %s8778_s29, %s10412_s21  }
 0x110   : > { %s923_s24 = scalar_lea.vmem [#allocation13], %s9167_s3 }
 0x111   : > { %s931_s0 = sshll.u32 %s923_s24, 4  ;;  %s932_s0 = int_to_ptr.vmem [resolvable:$true] %s931_s0 }
 0x114   : > { %s10461_s10 = smov %s10460_s30  ;;  %s928_s13 = scalar_lea.hbm %s10460_s30, %s9181_s20 }
 0x115   : > { %s929_s6 = sshll.u32 %s928_s13, 4  ;;  %s8438_s7 = scalar_lea.hbm %s10461_s10, 384  ;;  %s930_s6 = int_to_ptr.hbm [resolvable:$true] %s929_s6 }
 0x116   : > { %s8432_s15 = sshra.s32 %s930_s6, 4  ;;  %s8433_s15 = int_to_ptr.hbm [resolvable:$true] %s8432_s15 }
 0x117   : > { %s8434_s17 = scalar_lea.hbm %s8433_s15, 64  ;;  %p8439_p1 = scmp.lt.s32.totalorder %s8433_s15, %s10461_s10 }
 0x118   : > { %p8435_p12 = scmp.ne.s32.totalorder %s8433_s15, %s8434_s17  ;;  %p8440_p2 = scmp.lt.s32.totalorder %s8438_s7, %s8434_s17 }
 0x11a   : > { %p8436_p13 = pnand %p8435_p12, %p8964_p4  ;;  %p8441_p3 = por %p8440_p2, %p8439_p1 }
 0x11c   : > { %p8437_p0 = pneg %p8436_p13 }
 0x11e   : > { %p8442_p6 = pnand %p8441_p3, %p8437_p0 }
 0x120   : > { %8445 = shalt.err (!%p8442_p6)
}
 0x121   : > { %s10462_s2 = scalar_lea.sflag [#allocation12], %s9015_s26  ;;  %s10463_s4 = sld [smem:[#allocation68_spill]] }
 0x122   : > { %7814 = dma.hbm_to_vmem [thread:$0]  (%p8964_p4), %s930_s6, 1024, %s932_s0, %s10462_s2, %s8778_s29, %s8778_s29, %s10412_s21  }
 0x123   : > { %s962_s17 = scalar_lea.vmem [#allocation16], %s9167_s3  ;;  %s6195_s24 = sshll.u32 %s9012_s27, 10 }
 0x124   : > { %s970_s30 = sshll.u32 %s962_s17, 4  ;;  %s971_s30 = int_to_ptr.vmem [resolvable:$true] %s970_s30 }
 0x127   : > { %s967_s15 = scalar_lea.hbm %s10463_s4, %s9181_s20  ;;  %s8466_s0 = scalar_lea.hbm %s10463_s4, 384 }
 0x128   : > { %s968_s13 = sshll.u32 %s967_s15, 4  ;;  %s969_s13 = int_to_ptr.hbm [resolvable:$true] %s968_s13 }
 0x129   : > { %s8460_s7 = sshra.s32 %s969_s13, 4  ;;  %s8461_s7 = int_to_ptr.hbm [resolvable:$true] %s8460_s7 }
 0x12a   : > { %s8462_s5 = scalar_lea.hbm %s8461_s7, 64  ;;  %p8467_p13 = scmp.lt.s32.totalorder %s8461_s7, %s10463_s4 }
 0x12b   : > { %p8463_p7 = scmp.ne.s32.totalorder %s8461_s7, %s8462_s5  ;;  %p8468_p0 = scmp.lt.s32.totalorder %s8466_s0, %s8462_s5 }
 0x12d   : > { %p8464_p11 = pnand %p8463_p7, %p8964_p4  ;;  %p8469_p1 = por %p8468_p0, %p8467_p13 }
 0x12f   : > { %p8465_p12 = pneg %p8464_p11 }
 0x131   : > { %p8470_p2 = pnand %p8469_p1, %p8465_p12 }
 0x133   : > { %8473 = shalt.err (!%p8470_p2)
}
 0x134   : > { %s10464_s3 = scalar_lea.sflag [#allocation15], %s9015_s26  ;;  %s7489_s20 = sshll.u32 %s8770_s9, 10 }
 0x135   : > { %7816 = dma.hbm_to_vmem [thread:$0]  (%p8964_p4), %s969_s13, 1024, %s971_s30, %s10464_s3, %s8778_s29, %s8778_s29, %s10412_s21  }
 0x136   : > { %s10465_s25 = sld [smem:[#allocation70_spill]]  ;;  %s1001_s17 = scalar_lea.vmem [#allocation19], %s6195_s24 }
 0x137   : > { %s1009_s7 = sshll.u32 %s1001_s17, 4  ;;  %s1010_s7 = int_to_ptr.vmem [resolvable:$true] %s1009_s7 }
 0x13c   : > { %s1006_s15 = scalar_lea.hbm %s10465_s25, %s7489_s20  ;;  %s8494_s13 = scalar_lea.hbm %s10465_s25, 6144 }
 0x13d   : > { %s1007_s5 = sshll.u32 %s1006_s15, 4  ;;  %s1008_s5 = int_to_ptr.hbm [resolvable:$true] %s1007_s5 }
 0x13e   : > { %s8488_s23 = sshra.s32 %s1008_s5, 4  ;;  %s8489_s23 = int_to_ptr.hbm [resolvable:$true] %s8488_s23 }
 0x13f   : > { %s8490_s0 = scalar_lea.hbm %s8489_s23, 1024  ;;  %p8495_p11 = scmp.lt.s32.totalorder %s8489_s23, %s10465_s25 }
 0x140   : > { %p8491_p3 = scmp.ne.s32.totalorder %s8489_s23, %s8490_s0  ;;  %p8496_p12 = scmp.lt.s32.totalorder %s8494_s13, %s8490_s0 }
 0x142   : > { %p8492_p6 = pnand %p8491_p3, %p8964_p4  ;;  %p8497_p13 = por %p8496_p12, %p8495_p11 }
 0x144   : > { %p8493_p7 = pneg %p8492_p6 }
 0x146   : > { %p8498_p0 = pnand %p8497_p13, %p8493_p7 }
 0x148   : > { %8501 = shalt.err (!%p8498_p0)
}
 0x149   : > { %s8780_s10 = smov 1024   ;;  %s10466_s22 = scalar_lea.sflag [#allocation18], %s9015_s26 }
 0x14a   : > { %7818 = dma.hbm_to_vmem [thread:$0]  (%p8964_p4), %s1008_s5, 16384, %s1010_s7, %s10466_s22, %s8780_s10, %s8780_s10, %s8778_s29  }
 0x14b   : > { %s1047_s6 = scalar_lea.hbm %s10361_s12, %s7489_s20  ;;  %s1042_s23 = scalar_lea.vmem [#allocation22], %s6195_s24 }
 0x14c   : > { %s1048_s30 = sshll.u32 %s1047_s6, 4  ;;  %s1050_s0 = sshll.u32 %s1042_s23, 4  ;;  %s1049_s30 = int_to_ptr.hbm [resolvable:$true] %s1048_s30  ;;  %s1051_s0 = int_to_ptr.vmem [resolvable:$true] %s1050_s0 }
 0x14d   : > { %s8516_s13 = sshra.s32 %s1049_s30, 4  ;;  %s8522_s7 = scalar_lea.hbm %s10361_s12, 6144  ;;  %s8517_s13 = int_to_ptr.hbm [resolvable:$true] %s8516_s13 }
 0x14e   : > { %s8518_s2 = scalar_lea.hbm %s8517_s13, 1024  ;;  %p8523_p6 = scmp.lt.s32.totalorder %s8517_s13, %s10361_s12 }
 0x14f   : > { %p8519_p1 = scmp.ne.s32.totalorder %s8517_s13, %s8518_s2  ;;  %p8524_p7 = scmp.lt.s32.totalorder %s8522_s7, %s8518_s2 }
 0x151   : > { %p8520_p2 = pnand %p8519_p1, %p8964_p4  ;;  %p8525_p11 = por %p8524_p7, %p8523_p6 }
 0x153   : > { %p8521_p3 = pneg %p8520_p2 }
 0x155   : > { %p8526_p12 = pnand %p8525_p11, %p8521_p3 }
 0x157   : > { %8529 = shalt.err (!%p8526_p12)
}
 0x158   : > { %s10467_s24 = smov 4   ;;  %s10468_s20 = scalar_lea.sflag [#allocation21], %s9015_s26 }
 0x159   : > { %7820 = dma.hbm_to_vmem [thread:$0]  (%p8964_p4), %s1049_s30, 16384, %s1051_s0, %s10468_s20, %s8778_s29, %s8778_s29, %s10467_s24  }
 0x15a   : > { %s1083_s15 = scalar_lea.hbm %s10363_s14, %s8770_s9  ;;  %s1080_s6 = scalar_lea.vmem [#allocation25], %s9012_s27 }
 0x15b   : > { %s1085_s17 = sshll.u32 %s1083_s15, 4  ;;  %s1087_s23 = sshll.u32 %s1080_s6, 4  ;;  %s1086_s17 = int_to_ptr.hbm [resolvable:$true] %s1085_s17  ;;  %s1088_s23 = int_to_ptr.vmem [resolvable:$true] %s1087_s23 }
 0x15c   : > { %s8544_s13 = sshra.s32 %s1086_s17, 4  ;;  %s8550_s29 = scalar_lea.hbm %s10363_s14, 6  ;;  %s8545_s13 = int_to_ptr.hbm [resolvable:$true] %s8544_s13 }
 0x15d   : > { %s8546_s2 = scalar_lea.hbm %s8545_s13, 1  ;;  %p8551_p2 = scmp.lt.s32.totalorder %s8545_s13, %s10363_s14 }
 0x15e   : > { %p8547_p13 = scmp.ne.s32.totalorder %s8545_s13, %s8546_s2  ;;  %p8552_p3 = scmp.lt.s32.totalorder %s8550_s29, %s8546_s2 }
 0x160   : > { %p8548_p0 = pnand %p8547_p13, %p8964_p4  ;;  %p8553_p6 = por %p8552_p3, %p8551_p2 }
 0x162   : > { %p8549_p1 = pneg %p8548_p0 }
 0x164   : > { %p8554_p7 = pnand %p8553_p6, %p8549_p1 }
 0x166   : > { %8557 = shalt.err (!%p8554_p7)
}
 0x167   : > { %s10469_s5 = scalar_lea.sflag [#allocation24], %s9015_s26  ;;  %s1117_s20 = scalar_lea.hbm %s10365_s16, %s8770_s9 }
 0x168   : > { %7822 = dma.hbm_to_vmem [thread:$0]  (%p8964_p4), %s1086_s17, 16, %s1088_s23, %s10469_s5  }
 0x169   : > { %s1119_s21 = sshll.u32 %s1117_s20, 4  ;;  %s1114_s22 = scalar_lea.vmem [#allocation28], %s9012_s27  ;;  %s1120_s21 = int_to_ptr.hbm [resolvable:$true] %s1119_s21 }
 0x16a   : > { %s1121_s15 = sshll.u32 %s1114_s22, 4  ;;  %s8572_s6 = sshra.s32 %s1120_s21, 4  ;;  %s1122_s15 = int_to_ptr.vmem [resolvable:$true] %s1121_s15  ;;  %s8573_s6 = int_to_ptr.hbm [resolvable:$true] %s8572_s6 }
 0x16b   : > { %s8574_s13 = scalar_lea.hbm %s8573_s6, 1  ;;  %s8578_s17 = scalar_lea.hbm %s10365_s16, 6 }
 0x16c   : > { %p8575_p11 = scmp.ne.s32.totalorder %s8573_s6, %s8574_s13  ;;  %p8579_p0 = scmp.lt.s32.totalorder %s8573_s6, %s10365_s16 }
 0x16d   : > { %p8580_p1 = scmp.lt.s32.totalorder %s8578_s17, %s8574_s13 }
 0x16e   : > { %p8576_p12 = pnand %p8575_p11, %p8964_p4 }
 0x16f   : > { %p8581_p2 = por %p8580_p1, %p8579_p0 }
 0x170   : > { %p8577_p13 = pneg %p8576_p12 }
 0x172   : > { %p8582_p3 = pnand %p8581_p2, %p8577_p13 }
 0x174   : > { %8585 = shalt.err (!%p8582_p3)
}
 0x175   : > { %s10470_s29 = scalar_lea.sflag [#allocation27], %s9015_s26  ;;  %s1151_s5 = scalar_lea.hbm %s10367_s18, %s8770_s9 }
 0x176   : > { %7824 = dma.hbm_to_vmem [thread:$0]  (%p8964_p4), %s1120_s21, 16, %s1122_s15, %s10470_s29  }
 0x177   : > { %s1153_s10 = sshll.u32 %s1151_s5, 4  ;;  %s1148_s24 = scalar_lea.vmem [#allocation31], %s9012_s27  ;;  %s1154_s10 = int_to_ptr.hbm [resolvable:$true] %s1153_s10 }
 0x178   : > { %s1155_s20 = sshll.u32 %s1148_s24, 4  ;;  %s8600_s22 = sshra.s32 %s1154_s10, 4  ;;  %s1156_s20 = int_to_ptr.vmem [resolvable:$true] %s1155_s20  ;;  %s8601_s22 = int_to_ptr.hbm [resolvable:$true] %s8600_s22 }
 0x179   : > { %s8602_s6 = scalar_lea.hbm %s8601_s22, 1  ;;  %s8606_s21 = scalar_lea.hbm %s10367_s18, 6 }
 0x17a   : > { %p8603_p6 = scmp.ne.s32.totalorder %s8601_s22, %s8602_s6  ;;  %p8607_p12 = scmp.lt.s32.totalorder %s8601_s22, %s10367_s18 }
 0x17b   : > { %p8608_p13 = scmp.lt.s32.totalorder %s8606_s21, %s8602_s6 }
 0x17c   : > { %p8604_p7 = pnand %p8603_p6, %p8964_p4 }
 0x17d   : > { %p8609_p0 = por %p8608_p13, %p8607_p12 }
 0x17e   : > { %p8605_p11 = pneg %p8604_p7 }
 0x180   : > { %p8610_p1 = pnand %p8609_p0, %p8605_p11 }
 0x182   : > { %8613 = shalt.err (!%p8610_p1)
}
 0x183   : > { %s10471_s17 = scalar_lea.sflag [#allocation30], %s9015_s26  ;;  %s1168_s29 = scalar_lea.hbm %s10368_s19, %s8770_s9 }
 0x184   : > { %7826 = dma.hbm_to_vmem [thread:$0]  (%p8964_p4), %s1154_s10, 16, %s1156_s20, %s10471_s17  }
 0x185   : > { %s1165_s30 = scalar_lea.vmem [#allocation32], %s9012_s27  ;;  %s1170_s5 = sshll.u32 %s1168_s29, 4  ;;  %s1171_s5 = int_to_ptr.hbm [resolvable:$true] %s1170_s5 }
 0x186   : > { %s1172_s0 = sshll.u32 %s1165_s30, 4  ;;  %s1163_s24 = scalar_lea.sflag [#allocation33], %s9015_s26  ;;  %s1173_s0 = int_to_ptr.vmem [resolvable:$true] %s1172_s0 }
 0x187   : > { %s8628_s22 = sshra.s32 %s1171_s5, 4  ;;  %s8634_s10 = scalar_lea.hbm %s10368_s19, 6  ;;  %s8629_s22 = int_to_ptr.hbm [resolvable:$true] %s8628_s22 }
 0x188   : > { %s8630_s6 = scalar_lea.hbm %s8629_s22, 1  ;;  %p8635_p7 = scmp.lt.s32.totalorder %s8629_s22, %s10368_s19 }
 0x189   : > { %p8631_p2 = scmp.ne.s32.totalorder %s8629_s22, %s8630_s6  ;;  %p8636_p11 = scmp.lt.s32.totalorder %s8634_s10, %s8630_s6 }
 0x18b   : > { %p8632_p3 = pnand %p8631_p2, %p8964_p4  ;;  %p8637_p12 = por %p8636_p11, %p8635_p7 }
 0x18d   : > { %p8633_p6 = pneg %p8632_p3 }
 0x18f   : > { %p8638_p13 = pnand %p8637_p12, %p8633_p6 }
 0x191   : > { %8641 = shalt.err (!%p8638_p13)
}
 0x192   : > { %7827 = dma.hbm_to_vmem [thread:$0]  (%p8964_p4), %s1171_s5, 16, %s1173_s0, %s1163_s24  }
 0x193 PF: > { %1181 = sbr.rel (%p8978_p10) target bundleno = 5280 (0x14a0), region = 124  ;;  %s9353_s27 = sand.u32 (!%p8978_p10), 1, %s8762_s8  }
 0x194   : > { %s7800_s26 = smul.u32 (!%p8978_p10), 192, %s9353_s27  ;;  %s1184_s15 = scalar_lea.sflag (!%p8978_p10), [#allocation6], %s9353_s27 }
 0x196   : > { %s9357_s3 = scalar_lea.vmem (!%p8978_p10), [#allocation5], %s7800_s26 }
 0x198   : > { %8701 = dma.done.wait (%p8973_p8), %s1184_s15, 3072  }
 0x199   : > { %8703 = vsyncadd (%p8973_p8), %s1184_s15, 4294964224  ;;  %s10473_s1 = sld [smem:[#allocation56_spill]]  ;;  %s7801_s17 = smul.u32 3, %s9353_s27 }
 0x19b   : > { %s9368_s7 = scalar_lea.vmem [#allocation8], %s7801_s17 }
 0x19f   : > { %s9364_s11 = sand.u32 1, %s10473_s1  }
 0x1a0   : > { %s1194_s23 = scalar_lea.sflag [#allocation9], %s9364_s11 }
 0x1a1   : > { %8705 = dma.done.wait (%p8973_p8), %s1194_s23, 1072  }
 0x1a2   : > { %8707 = vsyncadd (%p8973_p8), %s1194_s23, 4294966224  ;;  %s6204_s29 = sshll.u32 %s9353_s27, 6  ;;  %s1214_s0 = scalar_lea.sflag [#allocation12], %s9364_s11 }
 0x1a3   : > { %s9375_s30 = scalar_lea.vmem [#allocation10], %s6204_s29  ;;  %s1216_s5 = scalar_lea.vmem [#allocation11], %s9353_s27 }
 0x1a4   : > { %8709 = dma.done.wait (%p8973_p8), %s1214_s0, 1040  }
 0x1a5   : > { %8711 = vsyncadd (%p8973_p8), %s1214_s0, 4294966256  ;;  %s9383_s24 = scalar_lea.vmem [#allocation13], %s6204_s29  ;;  %s1233_s22 = scalar_lea.sflag [#allocation15], %s9364_s11 }
 0x1a6   : > { %8713 = dma.done.wait (%p8973_p8), %s1233_s22, 1040  }
 0x1a7   : > { %8715 = vsyncadd (%p8973_p8), %s1233_s22, 4294966256  ;;  %s9391_s13 = scalar_lea.vmem [#allocation16], %s6204_s29  ;;  %s1252_s2 = scalar_lea.sflag [#allocation18], %s9364_s11 }
 0x1a8   : > { %8717 = dma.done.wait (%p8973_p8), %s1252_s2, 16400  }
 0x1a9   : > { %8719 = vsyncadd (%p8973_p8), %s1252_s2, 4294950896  ;;  %s6207_s20 = sshll.u32 %s9353_s27, 10  ;;  %s6208_s21 = sshll.u32 %s9353_s27, 4 }
 0x1aa   : > { %s9401_s26 = scalar_lea.vmem [#allocation19], %s6207_s20  ;;  %s1271_s15 = scalar_lea.sflag [#allocation21], %s9364_s11 }
 0x1ab   : > { %s9404_s17 = scalar_lea.vmem [#allocation20], %s6208_s21 }
 0x1ac   : > { %8721 = dma.done.wait (%p8973_p8), %s1271_s15, 16640  }
 0x1ad   : > { %8723 = vsyncadd (%p8973_p8), %s1271_s15, 4294950656  ;;  %s9410_s23 = scalar_lea.vmem [#allocation22], %s6207_s20  ;;  %s1291_s29 = scalar_lea.sflag [#allocation24], %s9364_s11 }
 0x1ae   : > { %8725 = dma.done.wait (%p8973_p8), %s1291_s29, 32  }
 0x1af   : > { %8727 = vsyncadd (%p8973_p8), %s1291_s29, 4294967264  ;;  %s1309_s2 = scalar_lea.sflag [#allocation27], %s9364_s11 }
 0x1b0   : > { %8729 = dma.done.wait (%p8973_p8), %s1309_s2, 32  }
 0x1b1   : > { %8731 = vsyncadd (%p8973_p8), %s1309_s2, 4294967264  ;;  %s1327_s15 = scalar_lea.sflag [#allocation30], %s9364_s11 }
 0x1b2   : > { %8733 = dma.done.wait (%p8973_p8), %s1327_s15, 32  }
 0x1b3   : > { %8735 = vsyncadd (%p8973_p8), %s1327_s15, 4294967264  ;;  %s1345_s10 = scalar_lea.sflag [#allocation33], %s9364_s11 }
 0x1b4   : > { %8737 = dma.done.wait (%p8973_p8), %s1345_s10, 16  }
 0x1b5   : > { %8739 = vsyncadd (%p8973_p8), %s1345_s10, 4294967280 }
 0x1b6   : > { %8741 = dma.done.wait (%p141_p5), [#allocation33], 16  }
 0x1b7   : > { %8743 = vsyncadd (%p141_p5), [#allocation33], 4294967280 }
 0x1b8   : > { %8745 = dma.done.wait (%p141_p5), [#allocation36], 32  }
 0x1b9   : > { %8747 = vsyncadd (%p141_p5), [#allocation36], 4294967264 }
 0x1ba   : > { %8749 = dma.done.wait (%p141_p5), [#allocation39], 16  }
 0x1bb   : > { %8751 = vsyncadd (%p141_p5), [#allocation39], 4294967280  ;;  %p1514_p4 = scmp.lt.s32.totalorder %s10473_s1, 5  ;;  %s10474_s15 = sld [smem:[#allocation61_spill]] }
 0x1bc   : > { %s10475_s20 = sld [smem:[#allocation60_spill]] (!%p6180_p9) }
 0x1bd   : > { %s1515_s9 = scalar_select %p1514_p4, %s10473_s1, 5 }
 0x1be   : > { %1522 = sbr.rel (%p6180_p9) target bundleno = 454 (0x1c6), region = 216 }
 0x1bf   : > { %s7491_s11 = sshll.u32 %s1515_s9, 4 }
 0x1c1   : > { %s9456_s6 = scalar_lea.vmem %s10474_s15, %s7491_s11 }
 0x1c3   : > { %v1523_v1 = vld [vmem:[%s10475_s20] sm:$0xff]  ;;  %v1524_v2 = vld [vmem:[%s10475_s20 + $0x8] sm:$0xff] }
 0x1c4   : > { %1525 = vst [vmem:[#allocation2] sm:$0xff] %v1523_v1 }
 0x1c5   : > { %1526 = vst [vmem:[#allocation2 + $0x8] sm:$0xff] %v1524_v2 }
 0x1c6 PF: > { %v6303_v3 = vld [vmem:[%s9357_s3 + $0xa8] sm:$0xf]  ;;  %v7514_v4 = vld [vmem:[%s9357_s3 + $0xb0] sm:$0xf0]  ;;  %v7513_v5 = vld [vmem:[%s9357_s3 + $0xac] sm:$0xf] }
 0x1c7   : > { %v6304_v6 = vor.u32 %v7514_v4, %v6303_v3  ;;  %v6305_v7 = vld [vmem:[%s9357_s3 + $0xb4] sm:$0xf0]  ;;  %v6291_v8 = vld [vmem:[%s9357_s3 + $0x90] sm:$0xf]  ;;  %v7511_v9 = vld [vmem:[%s9357_s3 + $0x98] sm:$0xf0] }
 0x1c8   : > { %v6308_v10 = vor.u32 %v7513_v5, %v6305_v7  ;;  %v7510_v11 = vld [vmem:[%s9357_s3 + $0x94] sm:$0xf]  ;;  %v6293_v12 = vld [vmem:[%s9357_s3 + $0x9c] sm:$0xf0]  ;;  %v6292_v13 = vor.u32 %v7511_v9, %v6291_v8  ;;  %v6279_v15 = vld [vmem:[%s9357_s3 + $0x78] sm:$0xf] }
 0x1c9   : > { %1698 = vmatpush.bf16.msra.mxu0 %v6304_v6  ;;  %v6296_v14 = vor.u32 %v7510_v11, %v6293_v12  ;;  %v7508_v16 = vld [vmem:[%s9357_s3 + $0x80] sm:$0xf0]  ;;  %v7507_v17 = vld [vmem:[%s9357_s3 + $0x7c] sm:$0xf]  ;;  %v6281_v18 = vld [vmem:[%s9357_s3 + $0x84] sm:$0xf0] }
 0x1ca   : > { %1712 = vmatpush.bf16.msra.mxu1 %v6308_v10  ;;  %v6280_v19 = vor.u32 %v7508_v16, %v6279_v15  ;;  %v6284_v20 = vor.u32 %v7507_v17, %v6281_v18  ;;  %v6267_v21 = vld [vmem:[%s9357_s3 + $0x60] sm:$0xf]  ;;  %v7505_v22 = vld [vmem:[%s9357_s3 + $0x68] sm:$0xf0]  ;;  %v7504_v23 = vld [vmem:[%s9357_s3 + $0x64] sm:$0xf] }
 0x1cb   : > { %v6269_v24 = vld [vmem:[%s9357_s3 + $0x6c] sm:$0xf0]  ;;  %v6268_v25 = vor.u32 %v7505_v22, %v6267_v21  ;;  %v6255_v26 = vld [vmem:[%s9357_s3 + $0x48] sm:$0xf]  ;;  %v7515_v28 = vld [vmem:[%s9357_s3 + $0xb8] sm:$0xf0] }
 0x1cc   : > { %v6311_v27 = vld [vmem:[%s9357_s3 + $0xb0] sm:$0xf]  ;;  %v6272_v29 = vor.u32 %v7504_v23, %v6269_v24  ;;  %v7502_v30 = vld [vmem:[%s9357_s3 + $0x50] sm:$0xf0]  ;;  %v6299_v32 = vld [vmem:[%s9357_s3 + $0x98] sm:$0xf] }
 0x1cd   : > { %1699 = vmatpush.bf16.msra.mxu0 %v6292_v13  ;;  %v6312_v31 = vor.u32 %v7515_v28, %v6311_v27  ;;  %v7512_v33 = vld [vmem:[%s9357_s3 + $0xa0] sm:$0xf0]  ;;  %v7501_v34 = vld [vmem:[%s9357_s3 + $0x4c] sm:$0xf]  ;;  %v6257_v35 = vld [vmem:[%s9357_s3 + $0x54] sm:$0xf0]  ;;  %v6256_v37 = vor.u32 %v7502_v30, %v6255_v26 }
 0x1ce   : > { %1713 = vmatpush.bf16.msra.mxu1 %v6296_v14  ;;  %v6300_v36 = vor.u32 %v7512_v33, %v6299_v32  ;;  %v6243_v38 = vld [vmem:[%s9357_s3 + $0x30] sm:$0xf]  ;;  %v6287_v39 = vld [vmem:[%s9357_s3 + $0x80] sm:$0xf]  ;;  %v7509_v40 = vld [vmem:[%s9357_s3 + $0x88] sm:$0xf0]  ;;  %v6260_v41 = vor.u32 %v7501_v34, %v6257_v35 }
 0x1cf   : > { %1726 = vmatpush.bf16.msra.mxu2 %v6312_v31  ;;  %v7499_v42 = vld [vmem:[%s9357_s3 + $0x38] sm:$0xf0]  ;;  %v7498_v43 = vld [vmem:[%s9357_s3 + $0x34] sm:$0xf]  ;;  %v6245_v44 = vld [vmem:[%s9357_s3 + $0x3c] sm:$0xf0]  ;;  %v6288_v48 = vor.u32 %v7509_v40, %v6287_v39 }
 0x1d0   : > { %v6275_v45 = vld [vmem:[%s9357_s3 + $0x68] sm:$0xf]  ;;  %v7506_v46 = vld [vmem:[%s9357_s3 + $0x70] sm:$0xf0]  ;;  %v6231_v47 = vld [vmem:[%s9357_s3 + $0x18] sm:$0xf]  ;;  %v6244_v49 = vor.u32 %v7499_v42, %v6243_v38  ;;  %v6248_v50 = vor.u32 %v7498_v43, %v6245_v44 }
 0x1d1   : > { %1700 = vmatpush.bf16.msra.mxu0 %v6280_v19  ;;  %v7496_v51 = vld [vmem:[%s9357_s3 + $0x20] sm:$0xf0]  ;;  %v7495_v52 = vld [vmem:[%s9357_s3 + $0x1c] sm:$0xf]  ;;  %v6233_v53 = vld [vmem:[%s9357_s3 + $0x24] sm:$0xf0]  ;;  %v6276_v54 = vor.u32 %v7506_v46, %v6275_v45 }
 0x1d2   : > { %1714 = vmatpush.bf16.msra.mxu1 %v6284_v20  ;;  %v6232_v55 = vor.u32 %v7496_v51, %v6231_v47  ;;  %v6263_v56 = vld [vmem:[%s9357_s3 + $0x50] sm:$0xf]  ;;  %v7503_v57 = vld [vmem:[%s9357_s3 + $0x58] sm:$0xf0]  ;;  %v6236_v58 = vor.u32 %v7495_v52, %v6233_v53  ;;  %v6219_v59 = vld [vmem:[%s9357_s3] sm:$0xf] }
 0x1d3   : > { %1727 = vmatpush.bf16.msra.mxu2 %v6300_v36  ;;  %v7493_v60 = vld [vmem:[%s9357_s3 + $0x8] sm:$0xf0]  ;;  %v7492_v61 = vld [vmem:[%s9357_s3 + $0x4] sm:$0xf]  ;;  %v6221_v62 = vld [vmem:[%s9357_s3 + $0xc] sm:$0xf0]  ;;  %v6264_v0 = vor.u32 %v7503_v57, %v6263_v56 }
 0x1d4   : > { %v9508_v63 = vld [vmem:[#allocation2] sm:$0xff]  ;;  %v6220_v1 = vor.u32 %v7493_v60, %v6219_v59  ;;  %v9510_v2 = vld [vmem:[#allocation2 + $0x8] sm:$0xff]  ;;  %v6251_v3 = vld [vmem:[%s9357_s3 + $0x38] sm:$0xf]  ;;  %v6224_v5 = vor.u32 %v7492_v61, %v6221_v62  ;;  %vm1741_vm0 = vcmask 261120   ;;  %s8781_s1 = smov 96  }
 0x1d5   : > { %1701 = vmatpush.bf16.msra.mxu0 %v6268_v25  ;;  %v7500_v4 = vld [vmem:[%s9357_s3 + $0x40] sm:$0xf0]  ;;  %v1562_v6 = vpack.c.bf16 %v9510_v2, %v9508_v63  ;;  %v6239_v8 = vld [vmem:[%s9357_s3 + $0x20] sm:$0xf]  ;;  %v7497_v9 = vld [vmem:[%s9357_s3 + $0x28] sm:$0xf0] }
 0x1d6   : > { %1715 = vmatpush.bf16.msra.mxu1 %v6272_v29  ;;  %v6252_v7 = vor.u32 %v7500_v4, %v6251_v3  ;;  %v6240_v10 = vor.u32 %v7497_v9, %v6239_v8  ;;  %v6227_v11 = vld [vmem:[%s9357_s3 + $0x8] sm:$0xf]  ;;  %v7494_v12 = vld [vmem:[%s9357_s3 + $0x10] sm:$0xf0]  ;;  %v9521_v14 = vld [vmem:[%s9368_s7] sm:$0x7] }
 0x1d7   : > { %1728 = vmatpush.bf16.msra.mxu2 %v6288_v48  ;;  %v6228_v13 = vor.u32 %v7494_v12, %v6227_v11  ;;  %v1564_v15 = vperm.slane %v9521_v14, 0  ;;  %v1565_v16 = vperm.slane %v9521_v14, 1  ;;  %v1566_v27 = vperm.slane %v9521_v14, 2  ;;  %s8782_s3 = smov 64   ;;  %s8783_s7 = smov 32  }
 0x1d8   : > { %vm1768_vm1 = vcmask 64512   ;;  %vm1874_vm2 = vcmask 523520   ;;  %vm1945_vm3 = vcmask 785920   ;;  %vm2016_vm4 = vcmask 1048320   ;;  %s10481_s0 = scalar_lea.vmem [#allocation29], %s9353_s27  ;;  %s10485_s22 = sld [smem:[#allocation56_spill]] }
 0x1d9   : > { %1702 = vmatpush.bf16.msra.mxu0 %v6256_v37 }
 0x1da   : > { %1716 = vmatpush.bf16.msra.mxu1 %v6260_v41 }
 0x1db   : > { %1729 = vmatpush.bf16.msra.mxu2 %v6276_v54 }
 0x1dd   : > { %1703 = vmatpush.bf16.msra.mxu0 %v6244_v49 }
 0x1de   : > { %1717 = vmatpush.bf16.msra.mxu1 %v6248_v50  ;;  %p7481_p5 = scmp.ne.s32.totalorder %s10485_s22, 5 }
 0x1df   : > { %1730 = vmatpush.bf16.msra.mxu2 %v6264_v0  ;;  %s10486_s29 = sld [smem:[#allocation78_spill]] (!%p7481_p5) }
 0x1e1   : > { %1704 = vmatpush.bf16.msra.mxu0 %v6232_v55 }
 0x1e2   : > { %1718 = vmatpush.bf16.msra.mxu1 %v6236_v58 }
 0x1e3   : > { %1731 = vmatpush.bf16.msra.mxu2 %v6252_v7 }
 0x1e5   : > { %1705 = vmatpush.bf16.msra.mxu0 %v6220_v1 }
 0x1e6   : > { %1719 = vmatpush.bf16.msra.mxu1 %v6224_v5 }
 0x1e7   : > { %1732 = vmatpush.bf16.msra.mxu2 %v6240_v10 }
 0x1e8   : > { %1706 = vmatmul.bf16.vlgmr.msra.gmra.mxu0 %v1562_v6 }
 0x1e9   : > { %1720 = vmatmul.bf16.vlgmr.msra.gmra.mxu1 %v1562_v6 }
 0x1eb   : > { %1733 = vmatpush.bf16.msra.mxu2 %v6228_v13 }
 0x1ee   : > { %1734 = vmatmul.bf16.vlgmr.msra.gmra.mxu2 %v1562_v6 }
 0x265   : > { %v1707_v17 = vpop.f32.mrf.mxu0 }
 0x266   : > { %v1708_v18 = vadd.f32 %v1707_v17, %v1564_v15  ;;  %v1721_v19 = vpop.f32.mrf.mxu1 }
 0x267   : > { %v9525_v20 = vadd.f32 %v1721_v19, %v1565_v16 }
 0x268   : > { %v9527_v21 = vmul.f32 0.17677669, %v1708_v18 }
 0x269   : > { %1806 = vrot.lane.b32.xlu1 %v9525_v20, %s8781_s1  ;;  %6313 = vmatpush.xpose.msk.msra.mxu3 %vm1741_vm0, %v9525_v20 }
 0x26c   : > { %6314 = vmatmul.msk.f32.vlgmr.msra.gmra.mxu3 %vm1741_vm0, %v9527_v21 }
 0x26d   : > { %v1709_v22 = vpop.f32.mrf.mxu0 }
 0x26e   : > { %v1710_v23 = vadd.f32 %v1709_v22, %v1564_v15  ;;  %v1723_v24 = vpop.f32.mrf.mxu1 }
 0x26f   : > { %v1724_v25 = vadd.f32 %v1723_v24, %v1565_v16 }
 0x270   : > { %v9535_v26 = vmul.f32 0.17677669, %v1710_v23 }
 0x271   : > { %6325 = vmatpush.xpose.msk.msrb.mxu2 %vm1741_vm0, %v1724_v25  ;;  %1804 = vrot.lane.b32.xlu1 %v9527_v21, %s8781_s1  ;;  %v1735_v28 = vpop.f32.mrf.mxu2 }
 0x272   : > { %v9545_v29 = vadd.f32 %v1735_v28, %v1566_v27 }
 0x274   : > { %6326 = vmatmul.msk.f32.vlgmr.msrb.gmra.mxu2 %vm1741_vm0, %v9535_v26  ;;  %1798 = vmatpush.msrb.mxu3 %v9545_v29 }
 0x279   : > { %1878 = vrot.lane.b32.xlu1 %v9525_v20, %s8782_s3  ;;  %v9563_v42 = vpop.f32.mrf.mxu2 }
 0x27a   : > { %v9600_v19 = vadd.f32 %v9563_v42, %v1566_v27 }
 0x281   : > { %2082 = vrot.lane.b32.xlu1 %v1724_v25, %s8781_s1 }
 0x289   : > { %2080 = vrot.lane.b32.xlu1 %v9535_v26, %s8781_s1 }
 0x291   : > { %2151 = vrot.lane.b32.xlu1 %v9535_v26, %s8782_s3 }
 0x2db   : > { %v1807_v30 = vpop.permute.xlu1 %1806 }
 0x2dc   : > { %6316 = vmatpush.xpose.msk.msra.mxu3 %vm1741_vm0, %v1807_v30 }
 0x2e3   : > { %v1805_v31 = vpop.permute.xlu1 %1804 }
 0x2eb   : > { %v1879_v32 = vpop.permute.xlu1 %1878 }
 0x2ef   : > { %v1765_v33 = vpop.f32.mrf.mxu3 }
 0x2f0   : > { %v1769_v34 = vsel %vm1768_vm1, %v1765_v33, -inf }
 0x2f1   : > { %1770 = vmax.xlane.f32.xlu0 %v1769_v34 }
 0x2f3   : > { %v2083_v35 = vpop.permute.xlu1 %2082 }
 0x2f4   : > { %6328 = vmatpush.xpose.msk.msra.mxu2 %vm1741_vm0, %v2083_v35 }
 0x2f7   : > { %v2042_v43 = vpop.f32.mrf.mxu2 }
 0x2f8   : > { %v2045_v44 = vsel %vm1768_vm1, %v2042_v43, -inf }
 0x2fb   : > { %v2081_v36 = vpop.permute.xlu1 %2080 }
 0x2fc   : > { %6329 = vmatmul.msk.f32.vlgmr.msra.gmra.mxu2 %vm1741_vm0, %v2081_v36 }
 0x303   : > { %v2152_v50 = vpop.permute.xlu1 %2151 }
 0x364   : > { %v1771_v37 = vpop.xlane.xlu0 %1770 }
 0x365   : > { %v1772_v38 = vsub.f32 %v1765_v33, %v1771_v37 }
 0x367   : > { %v1773_v39 = vmul.f32 1.442695, %v1772_v38 }
 0x369   : > { %7943 = vpow2.f32 %v1773_v39 }
 0x36f   : > { %v7944_v40 = vpop.eup %7943 }
 0x370   : > { %v1775_v41 = vsel %vm1768_vm1, %v7944_v40, 0.0 }
 0x371   : > { %1776 = vadd.xlane.f32.xlu0 %v1775_v41 }
 0x37f   : > { %v2105_v59 = vpop.f32.mrf.mxu2 }
 0x380   : > { %v2108_v12 = vsel %vm1768_vm1, %v2105_v59, -inf }
 0x385   : > { %1844 = vrot.lane.b32.xlu0 %v9545_v29, %s8781_s1 }
 0x38d   : > { %2153 = vrot.lane.b32.xlu0 %v1724_v25, %s8782_s3 }
 0x3b7   : > { %2046 = vmax.xlane.f32.xlu0 %v2045_v44 }
 0x3e4   : > { %v1777_v45 = vpop.xlane.xlu0 %1776 }
 0x3e5   : > { %7945 = vrcp.f32 %v1777_v45 }
 0x3eb   : > { %v7946_v46 = vpop.eup %7945 }
 0x3ec   : > { %v1779_v47 = vmul.f32 %v7946_v46, %v7944_v40 }
 0x3ee   : > { %6315 = vmatmul.msk.f32.vlgmr.msrb.gmra.mxu3 %vm1768_vm1, %v1779_v47 }
 0x3f6   : > { %6317 = vmatmul.msk.f32.vlgmr.msra.gmra.mxu3 %vm1741_vm0, %v1805_v31 }
 0x3f7   : > { %v1845_v48 = vpop.permute.xlu0 %1844 }
 0x3f8   : > { %1865 = vmatpush.msrb.mxu3 %v1845_v48 }
 0x3fa   : > { %6319 = vmatpush.xpose.msk.msra.mxu3 %vm1741_vm0, %v1879_v32 }
 0x3ff   : > { %v2154_v49 = vpop.permute.xlu0 %2153 }
 0x400   : > { %6331 = vmatpush.xpose.msk.msrb.mxu2 %vm1741_vm0, %v2154_v49 }
 0x403   : > { %6332 = vmatmul.msk.f32.vlgmr.msrb.gmra.mxu2 %vm1741_vm0, %v2152_v50 }
 0x42a   : > { %v2047_v51 = vpop.xlane.xlu0 %2046 }
 0x42b   : > { %v2048_v52 = vsub.f32 %v2042_v43, %v2047_v51 }
 0x42d   : > { %v2049_v53 = vmul.f32 1.442695, %v2048_v52 }
 0x42f   : > { %7947 = vpow2.f32 %v2049_v53 }
 0x435   : > { %v9571_v54 = vpop.eup %7947 }
 0x436   : > { %v2051_v55 = vsel %vm1768_vm1, %v9571_v54, 0.0 }
 0x437   : > { %2052 = vadd.xlane.f32.xlu0 %v2051_v55 }
 0x44b   : > { %1949 = vrot.lane.b32.xlu0 %v9525_v20, %s8783_s7 }
 0x453   : > { %2223 = vrot.lane.b32.xlu0 %v1724_v25, %s8783_s7 }
 0x471   : > { %v1800_v56 = vpop.f32.mrf.mxu3 }
 0x472   : > { %1803 = vst.msk [vmem:[#allocation3] sm:$0xff] %vm1741_vm0, %v1800_v56 }
 0x479   : > { %v1829_v57 = vpop.f32.mrf.mxu3 }
 0x47a   : > { %v1832_v58 = vsel %vm1768_vm1, %v1829_v57, -inf }
 0x47b   : > { %1833 = vmax.xlane.f32.xlu2 %v1832_v58 }
 0x486   : > { %v2176_v60 = vpop.f32.mrf.mxu2 }
 0x487   : > { %v2179_v61 = vsel %vm1768_vm1, %v2176_v60, -inf }
 0x488   : > { %2180 = vmax.xlane.f32.xlu1 %v2179_v61 }
 0x4aa   : > { %v9581_v62 = vpop.xlane.xlu0 %2052 }
 0x4bd   : > { %v1950_v0 = vpop.permute.xlu0 %1949 }
 0x4be   : > { %6322 = vmatpush.xpose.msk.msrb.mxu1 %vm1741_vm0, %v1950_v0 }
 0x4c5   : > { %v2224_v36 = vpop.permute.xlu0 %2223 }
 0x4ee   : > { %v1834_v1 = vpop.xlane.xlu2 %1833 }
 0x4ef   : > { %v1835_v3 = vsub.f32 %v1829_v57, %v1834_v1 }
 0x4f1   : > { %v1836_v4 = vmul.f32 1.442695, %v1835_v3 }
 0x4f3   : > { %7949 = vpow2.f32 %v1836_v4 }
 0x4f9   : > { %v7950_v5 = vpop.eup %7949 }
 0x4fa   : > { %v1838_v6 = vsel %vm1768_vm1, %v7950_v5, 0.0 }
 0x4fb   : > { %1839 = vadd.xlane.f32.xlu2 %v1838_v6  ;;  %v2181_v7 = vpop.xlane.xlu1 %2180 }
 0x4fc   : > { %v2182_v8 = vsub.f32 %v2176_v60, %v2181_v7 }
 0x4fe   : > { %v2183_v9 = vmul.f32 1.442695, %v2182_v8 }
 0x500   : > { %7951 = vpow2.f32 %v2183_v9 }
 0x506   : > { %v9585_v10 = vpop.eup %7951 }
 0x507   : > { %v2185_v11 = vsel %vm1768_vm1, %v9585_v10, 0.0 }
 0x508   : > { %2186 = vadd.xlane.f32.xlu1 %v2185_v11 }
 0x513   : > { %1876 = vrot.lane.b32.xlu2 %v9527_v21, %s8782_s3 }
 0x51b   : > { %1915 = vrot.lane.b32.xlu2 %v9545_v29, %s8782_s3 }
 0x521   : > { %1947 = vrot.lane.b32.xlu1 %v9527_v21, %s8783_s7 }
 0x54b   : > { %2109 = vmax.xlane.f32.xlu1 %v2108_v12 }
 0x56e   : > { %v1840_v13 = vpop.xlane.xlu2 %1839 }
 0x56f   : > { %7953 = vrcp.f32 %v1840_v13 }
 0x575   : > { %v7954_v15 = vpop.eup %7953 }
 0x576   : > { %v1842_v16 = vmul.f32 %v7954_v15, %v7950_v5  ;;  %v1877_v17 = vpop.permute.xlu2 %1876 }
 0x578   : > { %6318 = vmatmul.msk.f32.vlgmr.msrb.gmra.mxu3 %vm1768_vm1, %v1842_v16  ;;  %v7523_v16 = vld [vmem:[%s9375_s30 + $0x38] sm:$0xff] }
 0x579   : > { %2362 = vmatpush.bf16.msra.mxu2 %v7523_v16 }
 0x57b   : > { %v2187_v20 = vpop.xlane.xlu1 %2186 }
 0x57e   : > { %v1916_v18 = vpop.permute.xlu2 %1915 }
 0x57f   : > { %1936 = vmatpush.msrb.mxu3 %v1916_v18  ;;  %v7521_v18 = vld [vmem:[%s9375_s30 + $0x28] sm:$0xff] }
 0x580   : > { %6320 = vmatmul.msk.f32.vlgmr.msra.gmra.mxu3 %vm1741_vm0, %v1877_v17  ;;  %v7522_v17 = vld [vmem:[%s9375_s30 + $0x30] sm:$0xff] }
 0x581   : > { %2074 = vmatpush.msra.mxu3 %v9600_v19  ;;  %2363 = vmatpush.bf16.msra.mxu2 %v7522_v17 }
 0x585   : > { %2364 = vmatpush.bf16.msra.mxu2 %v7521_v18 }
 0x593   : > { %v1948_v21 = vpop.permute.xlu1 %1947 }
 0x594   : > { %6323 = vmatmul.msk.f32.vlgmr.msrb.gmra.mxu1 %vm1741_vm0, %v1948_v21 }
 0x5be   : > { %v2110_v22 = vpop.xlane.xlu1 %2109 }
 0x5bf   : > { %v2111_v23 = vsub.f32 %v2105_v59, %v2110_v22 }
 0x5c1   : > { %v2112_v24 = vmul.f32 1.442695, %v2111_v23  ;;  %v7518_v23 = vld [vmem:[%s9375_s30 + $0x10] sm:$0xff] }
 0x5c3   : > { %7955 = vpow2.f32 %v2112_v24 }
 0x5c9   : > { %v9605_v25 = vpop.eup %7955 }
 0x5ca   : > { %v2114_v14 = vsel %vm1768_vm1, %v9605_v25, 0.0 }
 0x5cb   : > { %2115 = vadd.xlane.f32.xlu1 %v2114_v14  ;;  %v7517_v14 = vld [vmem:[%s9375_s30 + $0x8] sm:$0xff] }
 0x5e4   : > { %2120 = vrot.lane.b32.xlu1 %v9600_v19, %s8781_s1 }
 0x5fb   : > { %v1867_v27 = vpop.f32.mrf.mxu3 }
 0x603   : > { %v1901_v28 = vpop.f32.mrf.mxu3 }
 0x604   : > { %v1904_v30 = vsel %vm1768_vm1, %v1901_v28, -inf }
 0x605   : > { %1905 = vmax.xlane.f32.xlu2 %v1904_v30 }
 0x611   : > { %v1972_v31 = vpop.f32.mrf.mxu1 }
 0x612   : > { %v1975_v32 = vsel %vm1768_vm1, %v1972_v31, -inf }
 0x613   : > { %1976 = vmax.xlane.f32.xlu0 %v1975_v32 }
 0x61d   : > { %2190 = vrot.lane.b32.xlu2 %v9600_v19, %s8782_s3 }
 0x63e   : > { %v2116_v60 = vpop.xlane.xlu1 %2115 }
 0x656   : > { %v2121_v3 = vpop.permute.xlu1 %2120 }
 0x678   : > { %v1906_v33 = vpop.xlane.xlu2 %1905 }
 0x679   : > { %v1907_v34 = vsub.f32 %v1901_v28, %v1906_v33  ;;  %v7933_v33 = vld [vmem:[%s1216_s5] ss:$0 sm:$0xff]  ;;  %s10477_s5 = scalar_lea.vmem [#allocation26], %s9353_s27 }
 0x67b   : > { %v1908_v35 = vmul.f32 1.442695, %v1907_v34 }
 0x67d   : > { %7957 = vpow2.f32 %v1908_v35 }
 0x680   : > { %v2191_v44 = vpop.permute.xlu2 %2190 }
 0x683   : > { %v7958_v37 = vpop.eup %7957 }
 0x684   : > { %v1910_v38 = vsel %vm1768_vm1, %v7958_v37, 0.0 }
 0x685   : > { %1911 = vadd.xlane.f32.xlu2 %v1910_v38 }
 0x686   : > { %v1977_v39 = vpop.xlane.xlu0 %1976 }
 0x687   : > { %v1978_v40 = vsub.f32 %v1972_v31, %v1977_v39 }
 0x689   : > { %v1979_v41 = vmul.f32 1.442695, %v1978_v40  ;;  %v8784_v40 = vmov 128.0  }
 0x68b   : > { %7959 = vpow2.f32 %v1979_v41 }
 0x691   : > { %v7960_v42 = vpop.eup %7959 }
 0x692   : > { %v1981_v43 = vsel %vm1768_vm1, %v7960_v42, 0.0 }
 0x693   : > { %1982 = vadd.xlane.f32.xlu0 %v1981_v43 }
 0x69d   : > { %2221 = vrot.lane.b32.xlu2 %v9535_v26, %s8783_s7 }
 0x6f8   : > { %v1912_v45 = vpop.xlane.xlu2 %1911 }
 0x6f9   : > { %7961 = vrcp.f32 %v1912_v45 }
 0x6fa   : > { %7963 = vrcp.f32 %v9581_v62 }
 0x6fb   : > { %7965 = vrcp.f32 %v2187_v20  ;;  %v7519_v20 = vld [vmem:[%s9375_s30 + $0x18] sm:$0xff] }
 0x6ff   : > { %v7962_v46 = vpop.eup %7961 }
 0x700   : > { %v1914_v47 = vmul.f32 %v7962_v46, %v7958_v37  ;;  %v7964_v48 = vpop.eup %7963  ;;  %v2222_v51 = vpop.permute.xlu2 %2221 }
 0x701   : > { %v2055_v49 = vmul.f32 %v7964_v48, %v9571_v54  ;;  %v7966_v50 = vpop.eup %7965 }
 0x702   : > { %6321 = vmatmul.msk.f32.vlgmr.msrb.gmra.mxu3 %vm1768_vm1, %v1914_v47  ;;  %v2189_v26 = vmul.f32 %v7966_v50, %v9585_v10 }
 0x703   : > { %2211 = vmatpush.msrb.mxu3 %v2191_v44 }
 0x706   : > { %v1983_v57 = vpop.xlane.xlu0 %1982 }
 0x707   : > { %7967 = vrcp.f32 %v1983_v57  ;;  %v7526_v57 = vld [vmem:[%s9383_s24 + $0x10] sm:$0xff] }
 0x70a   : > { %6327 = vmatmul.msk.f32.vlgmr.msra.gmra.mxu3 %vm1768_vm1, %v2055_v49 }
 0x70b   : > { %6334 = vmatpush.xpose.msk.msra.mxu3 %vm1741_vm0, %v2224_v36 }
 0x70d   : > { %v7968_v62 = vpop.eup %7967 }
 0x70e   : > { %v1985_v0 = vmul.f32 %v7968_v62, %v7960_v42 }
 0x712   : > { %6333 = vmatmul.msk.f32.vlgmr.msrb.gmra.mxu3 %vm1768_vm1, %v2189_v26 }
 0x71a   : > { %6335 = vmatmul.msk.f32.vlgmr.msra.gmra.mxu3 %vm1741_vm0, %v2222_v51 }
 0x785   : > { %v1938_v52 = vpop.f32.mrf.mxu3 }
 0x78d   : > { %v2076_v53 = vpop.f32.mrf.mxu3 }
 0x78e   : > { %2079 = vst.msk [vmem:[#allocation3 + $0x8] sm:$0xff] %vm1741_vm0, %v2076_v53  ;;  %v7530_v53 = vld [vmem:[%s9383_s24 + $0x30] sm:$0xff] }
 0x795   : > { %v2213_v55 = vpop.f32.mrf.mxu3 }
 0x79d   : > { %v2246_v56 = vpop.f32.mrf.mxu3 }
 0x79e   : > { %v2249_v54 = vsel %vm1768_vm1, %v2246_v56, -inf }
 0x79f   : > { %2250 = vmax.xlane.f32.xlu2 %v2249_v54  ;;  %v7527_v54 = vld [vmem:[%s9383_s24 + $0x18] sm:$0xff] }
 0x7b7   : > { %1986 = vrot.lane.b32.xlu2 %v9545_v29, %s8783_s7 }
 0x7bf   : > { %1871 = vrot.lane.b32.xlu2 %v1867_v27, %s8783_s7  ;;  %v7516_v27 = vld [vmem:[%s9375_s30] sm:$0xff] }
 0x7c7   : > { %2217 = vrot.lane.b32.xlu2 %v2213_v55, %s8782_s3  ;;  %v7529_v55 = vld [vmem:[%s9383_s24 + $0x28] sm:$0xff] }
 0x812   : > { %v2251_v58 = vpop.xlane.xlu2 %2250 }
 0x813   : > { %v2252_v59 = vsub.f32 %v2246_v56, %v2251_v58  ;;  %v7528_v56 = vld [vmem:[%s9383_s24 + $0x20] sm:$0xff]  ;;  %v7525_v58 = vld [vmem:[%s9383_s24 + $0x8] sm:$0xff] }
 0x815   : > { %v2253_v61 = vmul.f32 1.442695, %v2252_v59 }
 0x817   : > { %7969 = vpow2.f32 %v2253_v61  ;;  %v7524_v61 = vld [vmem:[%s9383_s24] sm:$0xff] }
 0x818   : > { %7971 = vrcp.f32 %v2116_v60 }
 0x81a   : > { %v1987_v1 = vpop.permute.xlu2 %1986 }
 0x81b   : > { %2007 = vmatpush.msra.mxu1 %v1987_v1 }
 0x81c   : > { %6324 = vmatmul.msk.f32.vlgmr.msra.gmra.mxu1 %vm1768_vm1, %v1985_v0  ;;  %v9676_v0 = vld [vmem:[%s9456_s6] sm:$0xff] }
 0x81d   : > { %v7970_v29 = vpop.eup %7969  ;;  %2141 = vmatpush.msrb.mxu1 %v2121_v3  ;;  %v2522_v3 = vunpack.c.l.bf16 %v9676_v0 }
 0x81e   : > { %v2255_v4 = vsel %vm1768_vm1, %v7970_v29, 0.0  ;;  %v7972_v5 = vpop.eup %7971 }
 0x81f   : > { %2256 = vadd.xlane.f32.xlu0 %v2255_v4  ;;  %v2118_v6 = vmul.f32 %v7972_v5, %v9605_v25  ;;  %6401 = vmatpush.xpose.msk.msrb.mxu0 %vm1741_vm0, %v2522_v3 }
 0x822   : > { %v1872_v7 = vpop.permute.xlu2 %1871 }
 0x823   : > { %1875 = vst.msk [vmem:[#allocation3] sm:$0xff] %vm1874_vm2, %v1872_v7 }
 0x824   : > { %6330 = vmatmul.msk.f32.vlgmr.msrb.gmra.mxu1 %vm1768_vm1, %v2118_v6  ;;  %v9683_v6 = vld [vmem:[%s9456_s6 + $0x8] sm:$0xff]  ;;  %s10479_s6 = scalar_lea.vmem [#allocation17], %s9353_s27 }
 0x82a   : > { %v2218_v22 = vpop.permute.xlu2 %2217 }
 0x833   : > { %2260 = vrot.lane.b32.xlu0 %v9600_v19, %s8783_s7  ;;  %v7520_v19 = vld [vmem:[%s9375_s30 + $0x20] sm:$0xff]  ;;  %s10476_s30 = scalar_lea.vmem [#allocation25], %s9353_s27 }
 0x834   : > { %2365 = vmatpush.bf16.msra.mxu2 %v7520_v19 }
 0x838   : > { %2366 = vmatpush.bf16.msra.mxu2 %v7519_v20 }
 0x83b   : > { %1942 = vrot.lane.b32.xlu0 %v1938_v52, %s8782_s3  ;;  %v7531_v52 = vld [vmem:[%s9383_s24 + $0x38] sm:$0xff]  ;;  %s10478_s24 = scalar_lea.vmem [#allocation14], %s9353_s27 }
 0x83c   : > { %2367 = vmatpush.bf16.msra.mxu2 %v7518_v23  ;;  %2506 = vmatpush.bf16.msrb.mxu3 %v7531_v52 }
 0x840   : > { %2368 = vmatpush.bf16.msra.mxu2 %v7517_v14  ;;  %2507 = vmatpush.bf16.msrb.mxu3 %v7530_v53  ;;  %v7935_v14 = vld [vmem:[%s10477_s5] ss:$0 sm:$0xff] }
 0x844   : > { %2369 = vmatpush.bf16.msra.mxu2 %v7516_v27  ;;  %2508 = vmatpush.bf16.msrb.mxu3 %v7529_v55 }
 0x848   : > { %2509 = vmatpush.bf16.msrb.mxu3 %v7528_v56 }
 0x84c   : > { %2510 = vmatpush.bf16.msrb.mxu3 %v7527_v54 }
 0x850   : > { %2511 = vmatpush.bf16.msrb.mxu3 %v7526_v57 }
 0x854   : > { %2512 = vmatpush.bf16.msrb.mxu3 %v7525_v58 }
 0x858   : > { %2513 = vmatpush.bf16.msrb.mxu3 %v7524_v61 }
 0x892   : > { %v2257_v8 = vpop.xlane.xlu0 %2256 }
 0x893   : > { %7973 = vrcp.f32 %v2257_v8 }
 0x894   : > { %7975 = vrcp.f32 %v8784_v40 }
 0x899   : > { %v2009_v9 = vpop.f32.mrf.mxu1  ;;  %v7974_v11 = vpop.eup %7973 }
 0x89a   : > { %v2259_v12 = vmul.f32 %v7974_v11, %v7970_v29  ;;  %v7976_v41 = vpop.eup %7975 }
 0x89b   : > { %v2385_v42 = vmul.f32 128.0, %v7976_v41  ;;  %vm2389_vm5 = vweird.f32 %v7976_v41 }
 0x89d   : > { %v2386_v43 = vsub.f32 1.0, %v2385_v42 }
 0x89f   : > { %v2387_v44 = vmul.f32 %v7976_v41, %v2386_v43 }
 0x8a1   : > { %v2143_v10 = vpop.f32.mrf.mxu1  ;;  %v2388_v45 = vadd.f32 %v7976_v41, %v2387_v44 }
 0x8a2   : > { %2147 = vrot.lane.b32.xlu1 %v2143_v10, %s8783_s7 }
 0x8a3   : > { %v9662_v46 = vsel %vm2389_vm5, %v7976_v41, %v2388_v45 }
 0x8a5   : > { %v2261_v13 = vpop.permute.xlu0 %2260 }
 0x8a6   : > { %2281 = vmatpush.msra.mxu1 %v2261_v13 }
 0x8a7   : > { %6336 = vmatmul.msk.f32.vlgmr.msra.gmra.mxu1 %vm1768_vm1, %v2259_v12 }
 0x8aa   : > { %2013 = vrot.lane.b32.xlu1 %v2009_v9, %s8781_s1  ;;  %v2524_v9 = vunpack.c.l.bf16 %v9683_v6 }
 0x8ad   : > { %v1943_v15 = vpop.permute.xlu0 %1942 }
 0x8ae   : > { %1946 = vst.msk [vmem:[#allocation3] sm:$0xff] %vm1945_vm3, %v1943_v15 }
 0x914   : > { %v2148_v21 = vpop.permute.xlu1 %2147 }
 0x915   : > { %2150 = vst.msk [vmem:[#allocation3 + $0x8] sm:$0xff] %vm1874_vm2, %v2148_v21  ;;  %v7934_v21 = vld [vmem:[%s10476_s30] ss:$0 sm:$0xff] }
 0x916   : > { %2220 = vst.msk [vmem:[#allocation3 + $0x8] sm:$0xff] %vm1945_vm3, %v2218_v22 }
 0x91c   : > { %v2014_v24 = vpop.permute.xlu1 %2013 }
 0x91d   : > { %2017 = vst.msk [vmem:[#allocation3] sm:$0xff] %vm2016_vm4, %v2014_v24 }
 0x924   : > { %v2283_v25 = vpop.f32.mrf.mxu1  ;;  %v2291_v30 = vld [vmem:[#allocation3] sm:$0xff] }
 0x925   : > { %2287 = vrot.lane.b32.xlu0 %v2283_v25, %s8781_s1 }
 0x997   : > { %v2288_v28 = vpop.permute.xlu0 %2287 }
 0x998   : > { %2290 = vst.msk [vmem:[#allocation3 + $0x8] sm:$0xff] %vm2016_vm4, %v2288_v28 }
 0x99f   : > { %v2292_v31 = vld [vmem:[#allocation3 + $0x8] sm:$0xff] }
 0x9a0   : > { %v2310_v32 = vpack.c.bf16 %v2292_v31, %v2291_v30 }
 0x9a2   : > { %2370 = vmatmul.bf16.vlgmr.msra.gmra.mxu2 %v2310_v32  ;;  %v7936_v32 = vld [vmem:[%s10478_s24] ss:$0 sm:$0xff] }
 0xa25   : > { %v2371_v34 = vpop.f32.mrf.mxu2 }
 0xa26   : > { %v2372_v35 = vadd.f32 %v7933_v33, %v2371_v34 }
 0xa28   : > { %v2376_v36 = vadd.f32 %v2372_v35, %v9508_v63 }
 0xa2a   : > { %2380 = vadd.xlane.f32.xlu2 %v2376_v36 }
 0xa2d   : > { %v2373_v37 = vpop.f32.mrf.mxu2 }
 0xa2e   : > { %v2374_v38 = vadd.f32 %v7933_v33, %v2373_v37 }
 0xa30   : > { %v2377_v39 = vadd.f32 %v2374_v38, %v9510_v2 }
 0xa32   : > { %2382 = vadd.xlane.f32.xlu1 %v2377_v39 }
 0xa4b   : > { %2590 = vrot.lane.b32.xlu1 %v2522_v3, %s8781_s1 }
 0xa53   : > { %2863 = vrot.lane.b32.xlu1 %v2524_v9, %s8781_s1 }
 0xa9d   : > { %v2381_v63 = vpop.xlane.xlu2 %2380 }
 0xa9e   : > { %v2391_v47 = vmul.f32 %v9662_v46, %v2381_v63 }
 0xaa0   : > { %v2393_v48 = vsub.f32 %v2376_v36, %v2391_v47 }
 0xaa2   : > { %v2395_v2 = vmul.f32 %v2393_v48, %v2393_v48 }
 0xaa4   : > { %2397 = vadd.xlane.f32.xlu0 %v2395_v2 }
 0xaa5   : > { %v2383_v49 = vpop.xlane.xlu1 %2382 }
 0xaa6   : > { %v2392_v50 = vmul.f32 %v9662_v46, %v2383_v49 }
 0xaa8   : > { %v2394_v26 = vsub.f32 %v2377_v39, %v2392_v50 }
 0xaaa   : > { %v2396_v51 = vmul.f32 %v2394_v26, %v2394_v26 }
 0xaac   : > { %2399 = vadd.xlane.f32.xlu2 %v2396_v51 }
 0xabd   : > { %v2591_v33 = vpop.permute.xlu1 %2590 }
 0xabe   : > { %6404 = vmatpush.xpose.msk.msra.mxu0 %vm1741_vm0, %v2591_v33 }
 0xac4   : > { %2661 = vrot.lane.b32.xlu2 %v2522_v3, %s8782_s3 }
 0xac5   : > { %v2864_v42 = vpop.permute.xlu1 %2863 }
 0xac6   : > { %6416 = vmatpush.xpose.msk.msrb.mxu2 %vm1741_vm0, %v2864_v42 }
 0xacc   : > { %2731 = vrot.lane.b32.xlu2 %v2522_v3, %s8783_s7 }
 0xad4   : > { %3004 = vrot.lane.b32.xlu2 %v2524_v9, %s8783_s7 }
 0xb17   : > { %v2398_v59 = vpop.xlane.xlu0 %2397 }
 0xb18   : > { %v2401_v60 = vmul.f32 %v2398_v59, %v9662_v46 }
 0xb1a   : > { %v2403_v62 = vadd.f32 1e-05, %v2401_v60 }
 0xb1c   : > { %7977 = vrsqrt.f32 %v2403_v62  ;;  %vm2411_vm7 = vweird.f32 %v2403_v62 }
 0xb1f   : > { %v2400_v1 = vpop.xlane.xlu2 %2399 }
 0xb20   : > { %v2402_v29 = vmul.f32 %v2400_v1, %v9662_v46 }
 0xb22   : > { %v7978_v4 = vpop.eup %7977  ;;  %v2404_v5 = vadd.f32 1e-05, %v2402_v29 }
 0xb23   : > { %v2406_v7 = vmul.f32 %v7978_v4, %v2403_v62  ;;  %vm2412_vm6 = vweird.f32 %v7978_v4 }
 0xb24   : > { %7979 = vrsqrt.f32 %v2404_v5  ;;  %vm2413_vm8 = vmor %vm2411_vm7, %vm2412_vm6  ;;  %vm2421_vm10 = vweird.f32 %v2404_v5 }
 0xb25   : > { %v2407_v8 = vmul.f32 %v7978_v4, %v2406_v7 }
 0xb27   : > { %v2408_v10 = vmul.f32 0.5, %v2407_v8  ;;  %v2662_v37 = vpop.permute.xlu2 %2661 }
 0xb29   : > { %v2409_v11 = vsub.f32 1.5, %v2408_v10 }
 0xb2a   : > { %v7980_v12 = vpop.eup %7979 }
 0xb2b   : > { %v2410_v13 = vmul.f32 %v7978_v4, %v2409_v11  ;;  %v2416_v15 = vmul.f32 %v7980_v12, %v2404_v5  ;;  %vm2422_vm9 = vweird.f32 %v7980_v12 }
 0xb2c   : > { %vm2423_vm11 = vmor %vm2421_vm10, %vm2422_vm9 }
 0xb2d   : > { %v2417_v16 = vmul.f32 %v7980_v12, %v2416_v15  ;;  %v2414_v17 = vsel %vm2413_vm8, %v7978_v4, %v2410_v13  ;;  %v9735_v13 = vunpack.c.h.bf16 %v9683_v6 }
 0xb2e   : > { %v2425_v20 = vmul.f32 %v2414_v17, %v2393_v48 }
 0xb2f   : > { %v2418_v18 = vmul.f32 0.5, %v2417_v16  ;;  %v2732_v41 = vpop.permute.xlu2 %2731 }
 0xb30   : > { %v2430_v25 = vmul.f32 %v7934_v21, %v2425_v20 }
 0xb31   : > { %v2419_v19 = vsub.f32 1.5, %v2418_v18 }
 0xb32   : > { %v9694_v28 = vadd.f32 %v7935_v14, %v2430_v25 }
 0xb33   : > { %v2420_v22 = vmul.f32 %v7980_v12, %v2419_v19 }
 0xb35   : > { %v2424_v23 = vsel %vm2423_vm11, %v7980_v12, %v2420_v22 }
 0xb36   : > { %v2426_v24 = vmul.f32 %v2424_v23, %v2394_v26 }
 0xb37   : > { %v3005_v43 = vpop.permute.xlu2 %3004 }
 0xb38   : > { %v2431_v27 = vmul.f32 %v7934_v21, %v2426_v24  ;;  %6422 = vmatpush.xpose.msk.msra.mxu2 %vm1741_vm0, %v3005_v43 }
 0xb3a   : > { %v9696_v30 = vadd.f32 %v7935_v14, %v2431_v27 }
 0xb3c   : > { %v2454_v31 = vpack.c.bf16 %v9696_v30, %v9694_v28 }
 0xb3e   : > { %2514 = vmatmul.bf16.vlgmr.msrb.gmra.mxu3 %v2454_v31 }
 0xbc1   : > { %v2515_v34 = vpop.f32.mrf.mxu3 }
 0xbc2   : > { %v2516_v35 = vadd.f32 %v7936_v32, %v2515_v34 }
 0xbc4   : > { %v2526_v36 = vmul.f32 0.17677669, %v2516_v35 }
 0xbc6   : > { %2729 = vrot.lane.b32.xlu1 %v2526_v36, %s8783_s7  ;;  %2588 = vrot.lane.b32.xlu0 %v2526_v36, %s8781_s1 }
 0xbc7   : > { %6402 = vmatmul.msk.f32.vlgmr.msrb.gmra.mxu0 %vm1741_vm0, %v2526_v36 }
 0xbc8   : > { %6407 = vmatpush.xpose.msk.msrb.mxu0 %vm1741_vm0, %v2662_v37 }
 0xbc9   : > { %v2517_v38 = vpop.f32.mrf.mxu3 }
 0xbca   : > { %v2518_v39 = vadd.f32 %v7936_v32, %v2517_v38 }
 0xbcc   : > { %v2799_v40 = vmul.f32 0.17677669, %v2518_v39 }
 0xbce   : > { %2932 = vrot.lane.b32.xlu2 %v2799_v40, %s8782_s3  ;;  %2659 = vrot.lane.b32.xlu0 %v2526_v36, %s8782_s3 }
 0xbcf   : > { %2934 = vrot.lane.b32.xlu1 %v2524_v9, %s8782_s3 }
 0xbd6   : > { %2861 = vrot.lane.b32.xlu0 %v2799_v40, %s8781_s1 }
 0xbde   : > { %3002 = vrot.lane.b32.xlu0 %v2799_v40, %s8783_s7 }
 0xc28   : > { %v2933_v26 = vpop.permute.xlu2 %2932 }
 0xc38   : > { %v2589_v44 = vpop.permute.xlu0 %2588  ;;  %v2730_v45 = vpop.permute.xlu1 %2729 }
 0xc39   : > { %6405 = vmatmul.msk.f32.vlgmr.msra.gmra.mxu0 %vm1741_vm0, %v2589_v44 }
 0xc3a   : > { %6410 = vmatpush.xpose.msk.msra.mxu0 %vm1741_vm0, %v2732_v41 }
 0xc40   : > { %v2660_v63 = vpop.permute.xlu0 %2659 }
 0xc41   : > { %6408 = vmatmul.msk.f32.vlgmr.msrb.gmra.mxu0 %vm1741_vm0, %v2660_v63  ;;  %v2935_v2 = vpop.permute.xlu1 %2934 }
 0xc42   : > { %6413 = vmatpush.xpose.msk.msrb.mxu0 %vm1741_vm0, %v2524_v9  ;;  %v2523_v9 = vunpack.c.h.bf16 %v9676_v0 }
 0xc44   : > { %v2550_v47 = vpop.f32.mrf.mxu0  ;;  %2582 = vmatpush.msrb.mxu1 %v2523_v9  ;;  %v7928_v19 = vpack.i.bf16 %v9735_v13, %v2523_v9 }
 0xc45   : > { %v2553_v48 = vsel %vm1768_vm1, %v2550_v47, -inf }
 0xc46   : > { %2554 = vmax.xlane.f32.xlu0 %v2553_v48 }
 0xc48   : > { %v2862_v49 = vpop.permute.xlu0 %2861 }
 0xc49   : > { %6411 = vmatmul.msk.f32.vlgmr.msra.gmra.mxu0 %vm1741_vm0, %v2730_v45  ;;  %6417 = vmatmul.msk.f32.vlgmr.msrb.gmra.mxu2 %vm1741_vm0, %v2862_v49 }
 0xc4a   : > { %6419 = vmatpush.xpose.msk.msra.mxu0 %vm1741_vm0, %v2935_v2 }
 0xc50   : > { %v3003_v50 = vpop.permute.xlu0 %3002 }
 0xc51   : > { %6414 = vmatmul.msk.f32.vlgmr.msrb.gmra.mxu0 %vm1741_vm0, %v2799_v40  ;;  %6423 = vmatmul.msk.f32.vlgmr.msra.gmra.mxu2 %vm1741_vm0, %v3003_v50 }
 0xc59   : > { %6420 = vmatmul.msk.f32.vlgmr.msra.gmra.mxu0 %vm1741_vm0, %v2933_v26 }
 0xcb6   : > { %v2613_v51 = vpop.f32.mrf.mxu0 }
 0xcb7   : > { %v2616_v52 = vsel %vm1768_vm1, %v2613_v51, -inf }
 0xcb8   : > { %2617 = vmax.xlane.f32.xlu1 %v2616_v52 }
 0xcb9   : > { %v2555_v53 = vpop.xlane.xlu0 %2554 }
 0xcba   : > { %v2556_v55 = vsub.f32 %v2550_v47, %v2555_v53 }
 0xcbc   : > { %v2557_v56 = vmul.f32 1.442695, %v2556_v55 }
 0xcbe   : > { %7981 = vpow2.f32 %v2557_v56  ;;  %v2684_v54 = vpop.f32.mrf.mxu0 }
 0xcbf   : > { %v2687_v57 = vsel %vm1768_vm1, %v2684_v54, -inf }
 0xcc0   : > { %2688 = vmax.xlane.f32.xlu2 %v2687_v57 }
 0xcc4   : > { %v7982_v58 = vpop.eup %7981 }
 0xcc5   : > { %v2559_v60 = vsel %vm1768_vm1, %v7982_v58, 0.0 }
 0xcc6   : > { %v2754_v59 = vpop.f32.mrf.mxu0 }
 0xcc7   : > { %v2757_v61 = vsel %vm1768_vm1, %v2754_v59, -inf }
 0xcc8   : > { %2560 = vadd.xlane.f32.xlu2 %v2559_v60  ;;  %2758 = vmax.xlane.f32.xlu0 %v2757_v61 }
 0xccc   : > { %v2886_v62 = vpop.f32.mrf.mxu2 }
 0xccd   : > { %v2889_v1 = vsel %vm1768_vm1, %v2886_v62, -inf }
 0xcce   : > { %2890 = vmax.xlane.f32.xlu1 %v2889_v1  ;;  %v2823_v3 = vpop.f32.mrf.mxu0 }
 0xccf   : > { %v2826_v29 = vsel %vm1768_vm1, %v2823_v3, -inf }
 0xcd0   : > { %2827 = vmax.xlane.f32.xlu2 %v2826_v29 }
 0xcd4   : > { %v3027_v4 = vpop.f32.mrf.mxu2 }
 0xcd5   : > { %v3030_v5 = vsel %vm1768_vm1, %v3027_v4, -inf }
 0xcd6   : > { %3031 = vmax.xlane.f32.xlu0 %v3030_v5  ;;  %v2957_v7 = vpop.f32.mrf.mxu0 }
 0xcd7   : > { %v2960_v8 = vsel %vm1768_vm1, %v2957_v7, -inf }
 0xcd8   : > { %2961 = vmax.xlane.f32.xlu1 %v2960_v8 }
 0xce8   : > { %7929 = vrot.lane.b32.xlu2 %v7928_v19, %s8781_s1 }
 0xcf0   : > { %2768 = vrot.lane.b32.xlu2 %v2523_v9, %s8783_s7 }
 0xcf8   : > { %3041 = vrot.lane.b32.xlu2 %v9735_v13, %s8783_s7 }
 0xd2b   : > { %v2618_v10 = vpop.xlane.xlu1 %2617 }
 0xd2c   : > { %v2619_v11 = vsub.f32 %v2613_v51, %v2618_v10 }
 0xd2e   : > { %v2620_v12 = vmul.f32 1.442695, %v2619_v11 }
 0xd30   : > { %7983 = vpow2.f32 %v2620_v12 }
 0xd33   : > { %v2689_v15 = vpop.xlane.xlu2 %2688 }
 0xd34   : > { %v2690_v16 = vsub.f32 %v2684_v54, %v2689_v15 }
 0xd36   : > { %v9737_v17 = vpop.eup %7983  ;;  %v2691_v18 = vmul.f32 1.442695, %v2690_v16 }
 0xd37   : > { %v2622_v20 = vsel %vm1768_vm1, %v9737_v17, 0.0 }
 0xd38   : > { %7985 = vpow2.f32 %v2691_v18  ;;  %2623 = vadd.xlane.f32.xlu0 %v2622_v20 }
 0xd3b   : > { %v2561_v0 = vpop.xlane.xlu2 %2560  ;;  %v2759_v22 = vpop.xlane.xlu0 %2758 }
 0xd3c   : > { %7987 = vrcp.f32 %v2561_v0  ;;  %v2760_v27 = vsub.f32 %v2754_v59, %v2759_v22 }
 0xd3e   : > { %v9743_v21 = vpop.eup %7985  ;;  %v2761_v32 = vmul.f32 1.442695, %v2760_v27 }
 0xd3f   : > { %v2693_v6 = vsel %vm1768_vm1, %v9743_v21, 0.0 }
 0xd40   : > { %2694 = vadd.xlane.f32.xlu1 %v2693_v6 }
 0xd41   : > { %v2891_v23 = vpop.xlane.xlu1 %2890 }
 0xd42   : > { %v7988_v24 = vpop.eup %7987  ;;  %v2892_v25 = vsub.f32 %v2886_v62, %v2891_v23 }
 0xd43   : > { %v2563_v14 = vmul.f32 %v7988_v24, %v7982_v58  ;;  %v2828_v38 = vpop.xlane.xlu2 %2827 }
 0xd44   : > { %v2893_v31 = vmul.f32 1.442695, %v2892_v25  ;;  %v2829_v40 = vsub.f32 %v2823_v3, %v2828_v38  ;;  %v7539_v25 = vld [vmem:[%s9391_s13 + $0x38] sm:$0xff] }
 0xd45   : > { %6403 = vmatmul.msk.f32.vlgmr.msrb.gmra.mxu1 %vm1768_vm1, %v2563_v14  ;;  %3143 = vmatpush.bf16.msrb.mxu0 %v7539_v25  ;;  %v7538_v14 = vld [vmem:[%s9391_s13 + $0x30] sm:$0xff]  ;;  %v6723_v25 = vld [vmem:[%s9401_s26 + $0x208] sm:$0xf] }
 0xd46   : > { %7989 = vpow2.f32 %v2893_v31  ;;  %v2830_v42 = vmul.f32 1.442695, %v2829_v40  ;;  %v7537_v31 = vld [vmem:[%s9391_s13 + $0x28] sm:$0xff] }
 0xd47   : > { %7991 = vpow2.f32 %v2761_v32  ;;  %v7536_v32 = vld [vmem:[%s9391_s13 + $0x20] sm:$0xff] }
 0xd49   : > { %v3032_v33 = vpop.xlane.xlu0 %3031  ;;  %3144 = vmatpush.bf16.msrb.mxu0 %v7538_v14  ;;  %v7613_v14 = vld [vmem:[%s9401_s26 + $0x244] sm:$0xf0] }
 0xd4a   : > { %v3033_v35 = vsub.f32 %v3027_v4, %v3032_v33  ;;  %v7535_v33 = vld [vmem:[%s9391_s13 + $0x18] sm:$0xff] }
 0xd4b   : > { %v2962_v47 = vpop.xlane.xlu1 %2961  ;;  %v7930_v26 = vpop.permute.xlu2 %7929 }
 0xd4c   : > { %v7990_v34 = vpop.eup %7989  ;;  %v3034_v37 = vmul.f32 1.442695, %v3033_v35  ;;  %v2963_v48 = vsub.f32 %v2957_v7, %v2962_v47  ;;  %v7932_v51 = vunpack.i.h.bf16 %v7930_v26  ;;  %v7931_v52 = vunpack.i.l.bf16 %v7930_v26  ;;  %v7660_v26 = vld [vmem:[%s9401_s26 + $0x3bc] sm:$0xf0] }
 0xd4d   : > { %v2895_v36 = vsel %vm1768_vm1, %v7990_v34, 0.0  ;;  %v7992_v39 = vpop.eup %7991  ;;  %3145 = vmatpush.bf16.msrb.mxu0 %v7537_v31  ;;  %v6725_v31 = vld [vmem:[%s9401_s26 + $0x248] sm:$0xf0] }
 0xd4e   : > { %2896 = vadd.xlane.f32.xlu0 %v2895_v36  ;;  %7993 = vpow2.f32 %v3034_v37  ;;  %v2763_v41 = vsel %vm1768_vm1, %v7992_v39, 0.0  ;;  %v2964_v2 = vmul.f32 1.442695, %v2963_v48  ;;  %2649 = vmatpush.msra.mxu1 %v7931_v52  ;;  %v7533_v36 = vld [vmem:[%s9391_s13 + $0x8] sm:$0xff]  ;;  %v7532_v37 = vld [vmem:[%s9391_s13] sm:$0xff] }
 0xd4f   : > { %7995 = vpow2.f32 %v2830_v42  ;;  %2922 = vmatpush.msra.mxu3 %v7932_v51  ;;  %v7652_v51 = vld [vmem:[%s9401_s26 + $0x384] sm:$0xf] }
 0xd50   : > { %7997 = vpow2.f32 %v2964_v2 }
 0xd51   : > { %3146 = vmatpush.bf16.msrb.mxu0 %v7536_v32 }
 0xd53   : > { %v2769_v56 = vpop.permute.xlu2 %2768 }
 0xd54   : > { %v7994_v43 = vpop.eup %7993 }
 0xd55   : > { %v3036_v44 = vsel %vm1768_vm1, %v7994_v43, 0.0  ;;  %v7996_v45 = vpop.eup %7995  ;;  %3147 = vmatpush.bf16.msrb.mxu0 %v7535_v33 }
 0xd56   : > { %2764 = vadd.xlane.f32.xlu0 %v2763_v41  ;;  %v2832_v63 = vsel %vm1768_vm1, %v7996_v45, 0.0  ;;  %v7998_v49 = vpop.eup %7997 }
 0xd57   : > { %v2966_v50 = vsel %vm1768_vm1, %v7998_v49, 0.0 }
 0xd59   : > { %2698 = vrot.lane.b32.xlu1 %v2523_v9, %s8782_s3 }
 0xd5b   : > { %v3042_v57 = vpop.permute.xlu2 %3041 }
 0xd5c   : > { %3062 = vmatpush.msrb.mxu3 %v3042_v57  ;;  %v7653_v57 = vld [vmem:[%s9401_s26 + $0x38c] sm:$0xf] }
 0xd5e   : > { %3037 = vadd.xlane.f32.xlu0 %v3036_v44  ;;  %v7937_v44 = vld [vmem:[%s10479_s6] ss:$0 sm:$0xff] }
 0xd66   : > { %2833 = vadd.xlane.f32.xlu0 %v2832_v63 }
 0xd7a   : > { %2971 = vrot.lane.b32.xlu0 %v9735_v13, %s8782_s3 }
 0xd83   : > { %2967 = vadd.xlane.f32.xlu1 %v2966_v50  ;;  %v6907_v50 = vld [vmem:[%s9401_s26 + $0x380] sm:$0xf] }
 0xd84   : > { %v6908_v52 = vor.u32 %v7660_v26, %v6907_v50 }
 0xdab   : > { %v2624_v53 = vpop.xlane.xlu0 %2623 }
 0xdac   : > { %7999 = vrcp.f32 %v2624_v53  ;;  %v6915_v53 = vld [vmem:[%s9401_s26 + $0x388] sm:$0xf] }
 0xdb2   : > { %v8000_v55 = vpop.eup %7999 }
 0xdb3   : > { %v2626_v54 = vmul.f32 %v8000_v55, %v9737_v17  ;;  %v2695_v58 = vpop.xlane.xlu1 %2694  ;;  %v7661_v55 = vld [vmem:[%s9401_s26 + $0x3c4] sm:$0xf0] }
 0xdb4   : > { %8001 = vrcp.f32 %v2695_v58  ;;  %v6843_v58 = vld [vmem:[%s9401_s26 + $0x300] sm:$0xf] }
 0xdb5   : > { %6406 = vmatmul.msk.f32.vlgmr.msra.gmra.mxu1 %vm1768_vm1, %v2626_v54  ;;  %v6916_v54 = vor.u32 %v7661_v55, %v6915_v53  ;;  %v6587_v55 = vld [vmem:[%s9401_s26 + $0x100] sm:$0xf] }
 0xdba   : > { %v8002_v61 = vpop.eup %8001 }
 0xdbb   : > { %v2697_v29 = vmul.f32 %v8002_v61, %v9743_v21  ;;  %v7636_v61 = vld [vmem:[%s9401_s26 + $0x304] sm:$0xf] }
 0xdc1   : > { %v2897_v59 = vpop.xlane.xlu0 %2896 }
 0xdc2   : > { %8003 = vrcp.f32 %v2897_v59  ;;  %v2584_v60 = vpop.f32.mrf.mxu1 }
 0xdc3   : > { %2587 = vst.msk [vmem:[#allocation3] sm:$0xff] %vm1741_vm0, %v2584_v60  ;;  %v7644_v60 = vld [vmem:[%s9401_s26 + $0x33c] sm:$0xf0] }
 0xdc8   : > { %v8004_v62 = vpop.eup %8003 }
 0xdc9   : > { %v2899_v1 = vmul.f32 %v8004_v62, %v7990_v34  ;;  %v2765_v3 = vpop.xlane.xlu0 %2764  ;;  %v7534_v34 = vld [vmem:[%s9391_s13 + $0x10] sm:$0xff]  ;;  %v6845_v62 = vld [vmem:[%s9401_s26 + $0x340] sm:$0xf0]  ;;  %s10480_s13 = scalar_lea.vmem [#allocation28], %s9353_s27 }
 0xdca   : > { %8005 = vrcp.f32 %v2765_v3  ;;  %3148 = vmatpush.bf16.msrb.mxu0 %v7534_v34  ;;  %v6848_v3 = vor.u32 %v7636_v61, %v6845_v62  ;;  %v6724_v34 = vor.u32 %v7613_v14, %v6723_v25  ;;  %v7573_v61 = vld [vmem:[%s9401_s26 + $0x10c] sm:$0xf]  ;;  %v6923_v25 = vld [vmem:[%s9401_s26 + $0x390] sm:$0xf] }
 0xdcb   : > { %v2699_v4 = vpop.permute.xlu1 %2698  ;;  %6418 = vmatmul.msk.f32.vlgmr.msra.gmra.mxu3 %vm1768_vm1, %v2899_v1  ;;  %v6844_v1 = vor.u32 %v7644_v60, %v6843_v58  ;;  %v6595_v58 = vld [vmem:[%s9401_s26 + $0x108] sm:$0xf]  ;;  %v6597_v62 = vld [vmem:[%s9401_s26 + $0x148] sm:$0xf0] }
 0xdcc   : > { %2719 = vmatpush.msrb.mxu1 %v2699_v4  ;;  %4044 = vmatpush.bf16.msra.mxu3 %v6916_v54  ;;  %v7645_v4 = vld [vmem:[%s9401_s26 + $0x344] sm:$0xf0]  ;;  %v7572_v54 = vld [vmem:[%s9401_s26 + $0x104] sm:$0xf] }
 0xdcd   : > { %6409 = vmatmul.msk.f32.vlgmr.msrb.gmra.mxu1 %vm1768_vm1, %v2697_v29  ;;  %v6851_v29 = vld [vmem:[%s9401_s26 + $0x308] sm:$0xf] }
 0xdce   : > { %2789 = vmatpush.msra.mxu1 %v2769_v56  ;;  %3149 = vmatpush.bf16.msrb.mxu0 %v7533_v36  ;;  %v7596_v36 = vld [vmem:[%s9401_s26 + $0x1bc] sm:$0xf0] }
 0xdd0   : > { %2855 = vmatpush.msrb.mxu1 %v9735_v13  ;;  %v8006_v5 = vpop.eup %8005 }
 0xdd1   : > { %v3038_v7 = vpop.xlane.xlu0 %3037  ;;  %v2767_v8 = vmul.f32 %v8006_v5, %v7992_v39  ;;  %v7637_v5 = vld [vmem:[%s9401_s26 + $0x30c] sm:$0xf] }
 0xdd2   : > { %8007 = vrcp.f32 %v3038_v7  ;;  %3150 = vmatpush.bf16.msrb.mxu0 %v7532_v37  ;;  %v6852_v7 = vor.u32 %v7645_v4, %v6851_v29  ;;  %v7588_v37 = vld [vmem:[%s9401_s26 + $0x184] sm:$0xf]  ;;  %v7564_v29 = vld [vmem:[%s9401_s26 + $0xbc] sm:$0xf0] }
 0xdd3   : > { %v7556_v4 = vld [vmem:[%s9401_s26 + $0x84] sm:$0xf] }
 0xdd4   : > { %4045 = vmatpush.bf16.msra.mxu3 %v6852_v7  ;;  %v6525_v7 = vld [vmem:[%s9401_s26 + $0xc0] sm:$0xf0] }
 0xdd5   : > { %6412 = vmatmul.msk.f32.vlgmr.msra.gmra.mxu1 %vm1768_vm1, %v2767_v8  ;;  %v6853_v8 = vld [vmem:[%s9401_s26 + $0x348] sm:$0xf0] }
 0xdd8   : > { %v8008_v9 = vpop.eup %8007 }
 0xdd9   : > { %v3040_v10 = vmul.f32 %v8008_v9, %v7994_v43  ;;  %v2834_v11 = vpop.xlane.xlu0 %2833  ;;  %v6779_v9 = vld [vmem:[%s9401_s26 + $0x280] sm:$0xf] }
 0xdda   : > { %8009 = vrcp.f32 %v2834_v11  ;;  %v6856_v11 = vor.u32 %v7637_v5, %v6853_v8  ;;  %v6531_v8 = vld [vmem:[%s9401_s26 + $0x88] sm:$0xf] }
 0xddb   : > { %6424 = vmatmul.msk.f32.vlgmr.msrb.gmra.mxu3 %vm1768_vm1, %v3040_v10  ;;  %v7628_v10 = vld [vmem:[%s9401_s26 + $0x2bc] sm:$0xf0] }
 0xde0   : > { %v8010_v12 = vpop.eup %8009 }
 0xde1   : > { %v2836_v15 = vmul.f32 %v8010_v12, %v7996_v45  ;;  %v7620_v12 = vld [vmem:[%s9401_s26 + $0x284] sm:$0xf] }
 0xde3   : > { %6415 = vmatmul.msk.f32.vlgmr.msrb.gmra.mxu1 %vm1768_vm1, %v2836_v15  ;;  %v6781_v15 = vld [vmem:[%s9401_s26 + $0x2c0] sm:$0xf0] }
 0xdec   : > { %v2972_v16 = vpop.permute.xlu0 %2971 }
 0xded   : > { %2992 = vmatpush.msra.mxu1 %v2972_v16  ;;  %v6787_v16 = vld [vmem:[%s9401_s26 + $0x288] sm:$0xf] }
 0xdef   : > { %4016 = vmatpush.bf16.msrb.mxu1 %v6908_v52 }
 0xdf3   : > { %4017 = vmatpush.bf16.msrb.mxu1 %v6844_v1  ;;  %v6600_v1 = vor.u32 %v7573_v61, %v6597_v62  ;;  %v6805_v61 = vld [vmem:[%s9401_s26 + $0x2d8] sm:$0xf0] }
 0xdf6   : > { %v2968_v17 = vpop.xlane.xlu1 %2967 }
 0xdf7   : > { %8011 = vrcp.f32 %v2968_v17  ;;  %v6780_v17 = vor.u32 %v7628_v10, %v6779_v9  ;;  %v7565_v9 = vld [vmem:[%s9401_s26 + $0xc4] sm:$0xf0]  ;;  %v6528_v10 = vor.u32 %v7556_v4, %v6525_v7  ;;  %v6739_v7 = vld [vmem:[%s9401_s26 + $0x218] sm:$0xf] }
 0xdf9   : > { %4018 = vmatpush.bf16.msrb.mxu1 %v6780_v17  ;;  %v6459_v17 = vld [vmem:[%s9401_s26] sm:$0xf] }
 0xdfd   : > { %v8012_v13 = vpop.eup %8011 }
 0xdfe   : > { %v2970_v18 = vmul.f32 %v8012_v13, %v7998_v49  ;;  %v7629_v13 = vld [vmem:[%s9401_s26 + $0x2c4] sm:$0xf0] }
 0xe00   : > { %6421 = vmatmul.msk.f32.vlgmr.msra.gmra.mxu1 %vm1768_vm1, %v2970_v18  ;;  %v7621_v18 = vld [vmem:[%s9401_s26 + $0x28c] sm:$0xf] }
 0xe32   : > { %v2651_v19 = vpop.f32.mrf.mxu1 }
 0xe33   : > { %2655 = vrot.lane.b32.xlu2 %v2651_v19, %s8783_s7  ;;  %v6789_v19 = vld [vmem:[%s9401_s26 + $0x2c8] sm:$0xf0] }
 0xe4a   : > { %v2721_v20 = vpop.f32.mrf.mxu1 }
 0xe4b   : > { %2725 = vrot.lane.b32.xlu0 %v2721_v20, %s8782_s3  ;;  %v6784_v20 = vor.u32 %v7620_v12, %v6781_v15  ;;  %v7557_v12 = vld [vmem:[%s9401_s26 + $0x8c] sm:$0xf] }
 0xe4c   : > { %v6533_v15 = vld [vmem:[%s9401_s26 + $0xc8] sm:$0xf0] }
 0xe4e   : > { %v2924_v0 = vpop.f32.mrf.mxu3 }
 0xe4f   : > { %2928 = vrot.lane.b32.xlu2 %v2924_v0, %s8783_s7  ;;  %v6788_v0 = vor.u32 %v7629_v13, %v6787_v16  ;;  %v6536_v16 = vor.u32 %v7557_v12, %v6533_v15  ;;  %v7548_v13 = vld [vmem:[%s9401_s26 + $0x3c] sm:$0xf0]  ;;  %v6741_v12 = vld [vmem:[%s9401_s26 + $0x258] sm:$0xf0] }
 0xe51   : > { %4046 = vmatpush.bf16.msra.mxu3 %v6788_v0  ;;  %v6467_v0 = vld [vmem:[%s9401_s26 + $0x8] sm:$0xf] }
 0xe52   : > { %v2791_v21 = vpop.f32.mrf.mxu1 }
 0xe53   : > { %2795 = vrot.lane.b32.xlu0 %v2791_v21, %s8781_s1  ;;  %v6715_v21 = vld [vmem:[%s9401_s26 + $0x200] sm:$0xf] }
 0xe55   : > { %4047 = vmatpush.bf16.msra.mxu3 %v6724_v34 }
 0xe5e   : > { %v3064_v23 = vpop.f32.mrf.mxu3 }
 0xe60   : > { %v2857_v6 = vpop.f32.mrf.mxu1 }
 0xe61   : > { %2860 = vst.msk [vmem:[#allocation3 + $0x8] sm:$0xff] %vm1741_vm0, %v2857_v6  ;;  %v7612_v6 = vld [vmem:[%s9401_s26 + $0x23c] sm:$0xf0] }
 0xe62   : > { %v6716_v32 = vor.u32 %v7612_v6, %v6715_v21  ;;  %v7549_v21 = vld [vmem:[%s9401_s26 + $0x44] sm:$0xf0] }
 0xe64   : > { %4019 = vmatpush.bf16.msrb.mxu1 %v6716_v32  ;;  %v6925_v32 = vld [vmem:[%s9401_s26 + $0x3d0] sm:$0xf0] }
 0xe7d   : > { %v2994_v22 = vpop.f32.mrf.mxu1 }
 0xe7e   : > { %2998 = vrot.lane.b32.xlu2 %v2994_v22, %s8782_s3  ;;  %v7604_v22 = vld [vmem:[%s9401_s26 + $0x204] sm:$0xf] }
 0xe86   : > { %3068 = vrot.lane.b32.xlu2 %v3064_v23, %s8781_s1  ;;  %v6792_v23 = vor.u32 %v7621_v18, %v6789_v19  ;;  %v7540_v18 = vld [vmem:[%s9401_s26 + $0x4] sm:$0xf]  ;;  %v6460_v19 = vor.u32 %v7548_v13, %v6459_v17  ;;  %v7598_v17 = vld [vmem:[%s9401_s26 + $0x1cc] sm:$0xf0]  ;;  %v7590_v13 = vld [vmem:[%s9401_s26 + $0x194] sm:$0xf] }
 0xe8d   : > { %v2656_v24 = vpop.permute.xlu2 %2655 }
 0xe8e   : > { %2658 = vst.msk [vmem:[#allocation3] sm:$0xff] %vm1874_vm2, %v2656_v24  ;;  %v6717_v24 = vld [vmem:[%s9401_s26 + $0x240] sm:$0xf0] }
 0xe8f   : > { %v6720_v33 = vor.u32 %v7604_v22, %v6717_v24  ;;  %v6468_v22 = vor.u32 %v7549_v21, %v6467_v0  ;;  %v6469_v24 = vld [vmem:[%s9401_s26 + $0x48] sm:$0xf0]  ;;  %v7599_v0 = vld [vmem:[%s9401_s26 + $0x1d4] sm:$0xf0] }
 0xea9   : > { %v2929_v27 = vpop.permute.xlu2 %2928 }
 0xeaa   : > { %2931 = vst.msk [vmem:[#allocation3 + $0x8] sm:$0xff] %vm1874_vm2, %v2929_v27  ;;  %v7605_v27 = vld [vmem:[%s9401_s26 + $0x20c] sm:$0xf] }
 0xebd   : > { %v2726_v35 = vpop.permute.xlu0 %2725 }
 0xebe   : > { %2728 = vst.msk [vmem:[#allocation3] sm:$0xff] %vm1945_vm3, %v2726_v35  ;;  %v6651_v35 = vld [vmem:[%s9401_s26 + $0x180] sm:$0xf] }
 0xec5   : > { %v2796_v38 = vpop.permute.xlu0 %2795 }
 0xec6   : > { %2798 = vst.msk [vmem:[#allocation3] sm:$0xff] %vm2016_vm4, %v2796_v38  ;;  %v6728_v38 = vor.u32 %v7605_v27, %v6725_v31  ;;  %v7662_v27 = vld [vmem:[%s9401_s26 + $0x3cc] sm:$0xf0]  ;;  %v7654_v31 = vld [vmem:[%s9401_s26 + $0x394] sm:$0xf] }
 0xec7   : > { %v6928_v34 = vor.u32 %v7654_v31, %v6925_v32  ;;  %v6605_v32 = vld [vmem:[%s9401_s26 + $0x150] sm:$0xf0] }
 0xecd   : > { %v3072_v41 = vld [vmem:[#allocation3] sm:$0xff] }
 0xed8   : > { %v2999_v39 = vpop.permute.xlu2 %2998 }
 0xed9   : > { %3001 = vst.msk [vmem:[#allocation3 + $0x8] sm:$0xff] %vm1945_vm3, %v2999_v39  ;;  %v6653_v39 = vld [vmem:[%s9401_s26 + $0x1c0] sm:$0xf0] }
 0xee0   : > { %v3069_v40 = vpop.permute.xlu2 %3068 }
 0xee1   : > { %3071 = vst.msk [vmem:[#allocation3 + $0x8] sm:$0xff] %vm2016_vm4, %v3069_v40  ;;  %v6659_v40 = vld [vmem:[%s9401_s26 + $0x188] sm:$0xf] }
 0xee8   : > { %v3073_v42 = vld [vmem:[#allocation3 + $0x8] sm:$0xff] }
 0xee9   : > { %v3091_v43 = vpack.c.bf16 %v3073_v42, %v3072_v41  ;;  %v7597_v41 = vld [vmem:[%s9401_s26 + $0x1c4] sm:$0xf0]  ;;  %v7589_v42 = vld [vmem:[%s9401_s26 + $0x18c] sm:$0xf] }
 0xeeb   : > { %3151 = vmatmul.bf16.vlgmr.msrb.gmra.mxu0 %v3091_v43  ;;  %v6661_v43 = vld [vmem:[%s9401_s26 + $0x1c8] sm:$0xf0] }
 0xf68   : > { %v3152_v45 = vpop.f32.mrf.mxu0 }
 0xf69   : > { %v3153_v63 = vadd.f32 %v7937_v44, %v3152_v45  ;;  %v6656_v45 = vor.u32 %v7588_v37, %v6653_v39  ;;  %v7655_v37 = vld [vmem:[%s9401_s26 + $0x39c] sm:$0xf] }
 0xf6a   : > { %v6933_v39 = vld [vmem:[%s9401_s26 + $0x3d8] sm:$0xf0] }
 0xf6b   : > { %v9794_v47 = vadd.f32 %v3153_v63, %v9694_v28  ;;  %v6909_v28 = vld [vmem:[%s9401_s26 + $0x3c0] sm:$0xf0]  ;;  %v6660_v63 = vor.u32 %v7597_v41, %v6659_v40  ;;  %v6859_v40 = vld [vmem:[%s9401_s26 + $0x310] sm:$0xf] }
 0xf6c   : > { %v6912_v56 = vor.u32 %v7652_v51, %v6909_v28  ;;  %v7646_v41 = vld [vmem:[%s9401_s26 + $0x34c] sm:$0xf0] }
 0xf6d   : > { %3161 = vadd.xlane.f32.xlu0 %v9794_v47  ;;  %4048 = vmatpush.bf16.msra.mxu3 %v6660_v63  ;;  %v6867_v63 = vld [vmem:[%s9401_s26 + $0x318] sm:$0xf] }
 0xf6e   : > { %4030 = vmatpush.bf16.msrb.mxu2 %v6912_v56  ;;  %v7580_v56 = vld [vmem:[%s9401_s26 + $0x13c] sm:$0xf0] }
 0xf70   : > { %v3154_v48 = vpop.f32.mrf.mxu0 }
 0xf71   : > { %v3155_v2 = vadd.f32 %v7937_v44, %v3154_v48  ;;  %v6652_v44 = vor.u32 %v7596_v36, %v6651_v35  ;;  %v6931_v35 = vld [vmem:[%s9401_s26 + $0x398] sm:$0xf] }
 0xf72   : > { %4031 = vmatpush.bf16.msrb.mxu2 %v6848_v3  ;;  %v6523_v3 = vld [vmem:[%s9401_s26 + $0x80] sm:$0xf]  ;;  %v7663_v36 = vld [vmem:[%s9401_s26 + $0x3d4] sm:$0xf0] }
 0xf73   : > { %v9798_v49 = vadd.f32 %v3155_v2, %v9696_v30  ;;  %v6917_v30 = vld [vmem:[%s9401_s26 + $0x3c8] sm:$0xf0]  ;;  %v6664_v2 = vor.u32 %v7589_v42, %v6661_v43  ;;  %4020 = vmatpush.bf16.msrb.mxu1 %v6652_v44  ;;  %v6524_v5 = vor.u32 %v7564_v29, %v6523_v3  ;;  %v6936_v42 = vor.u32 %v7655_v37, %v6933_v39  ;;  %v7638_v44 = vld [vmem:[%s9401_s26 + $0x314] sm:$0xf]  ;;  %v7614_v3 = vld [vmem:[%s9401_s26 + $0x24c] sm:$0xf0] }
 0xf74   : > { %v6920_v59 = vor.u32 %v7653_v57, %v6917_v30  ;;  %v6588_v57 = vor.u32 %v7580_v56, %v6587_v55  ;;  %v6589_v30 = vld [vmem:[%s9401_s26 + $0x140] sm:$0xf0]  ;;  %v6860_v43 = vor.u32 %v7646_v41, %v6859_v40  ;;  %v7630_v55 = vld [vmem:[%s9401_s26 + $0x2cc] sm:$0xf0]  ;;  %v7622_v56 = vld [vmem:[%s9401_s26 + $0x294] sm:$0xf] }
 0xf75   : > { %3163 = vadd.xlane.f32.xlu2 %v9798_v49  ;;  %v6592_v60 = vor.u32 %v7572_v54, %v6589_v30  ;;  %v6803_v30 = vld [vmem:[%s9401_s26 + $0x298] sm:$0xf]  ;;  %v7606_v29 = vld [vmem:[%s9401_s26 + $0x214] sm:$0xf]  ;;  %v7575_v37 = vld [vmem:[%s9401_s26 + $0x11c] sm:$0xf] }
 0xf76   : > { %4058 = vmatpush.bf16.msra.mxu0 %v6920_v59  ;;  %4032 = vmatpush.bf16.msrb.mxu2 %v6784_v20  ;;  %v7581_v59 = vld [vmem:[%s9401_s26 + $0x144] sm:$0xf0]  ;;  %v6461_v20 = vld [vmem:[%s9401_s26 + $0x40] sm:$0xf0]  ;;  %v6539_v41 = vld [vmem:[%s9401_s26 + $0x90] sm:$0xf] }
 0xf77   : > { %4021 = vmatpush.bf16.msrb.mxu1 %v6588_v57  ;;  %v6464_v6 = vor.u32 %v7540_v18, %v6461_v20  ;;  %v6797_v57 = vld [vmem:[%s9401_s26 + $0x2d0] sm:$0xf0]  ;;  %v6675_v20 = vld [vmem:[%s9401_s26 + $0x198] sm:$0xf] }
 0xf7a   : > { %4059 = vmatpush.bf16.msra.mxu0 %v6856_v11  ;;  %4033 = vmatpush.bf16.msrb.mxu2 %v6720_v33  ;;  %v6532_v11 = vor.u32 %v7565_v9, %v6531_v8  ;;  %v6924_v33 = vor.u32 %v7662_v27, %v6923_v25  ;;  %v7615_v8 = vld [vmem:[%s9401_s26 + $0x254] sm:$0xf0]  ;;  %v6603_v25 = vld [vmem:[%s9401_s26 + $0x110] sm:$0xf]  ;;  %v7574_v27 = vld [vmem:[%s9401_s26 + $0x114] sm:$0xf] }
 0xf7b   : > { %4022 = vmatpush.bf16.msrb.mxu1 %v6524_v5  ;;  %v6733_v5 = vld [vmem:[%s9401_s26 + $0x250] sm:$0xf0] }
 0xf7c   : > { %v6736_v9 = vor.u32 %v7606_v29, %v6733_v5 }
 0xf7e   : > { %4060 = vmatpush.bf16.msra.mxu0 %v6792_v23  ;;  %4034 = vmatpush.bf16.msrb.mxu2 %v6656_v45  ;;  %v7541_v23 = vld [vmem:[%s9401_s26 + $0xc] sm:$0xf]  ;;  %v6861_v45 = vld [vmem:[%s9401_s26 + $0x350] sm:$0xf0] }
 0xf7f   : > { %4023 = vmatpush.bf16.msrb.mxu1 %v6460_v19  ;;  %v6472_v14 = vor.u32 %v7541_v23, %v6469_v24  ;;  %v6669_v19 = vld [vmem:[%s9401_s26 + $0x1d0] sm:$0xf0]  ;;  %v6677_v23 = vld [vmem:[%s9401_s26 + $0x1d8] sm:$0xf0] }
 0xf80   : > { %v6672_v21 = vor.u32 %v7590_v13, %v6669_v19 }
 0xf82   : > { %4061 = vmatpush.bf16.msra.mxu0 %v6728_v38  ;;  %4035 = vmatpush.bf16.msrb.mxu2 %v6592_v60  ;;  %v6932_v38 = vor.u32 %v7663_v36, %v6931_v35  ;;  %v6608_v35 = vor.u32 %v7574_v27, %v6605_v32  ;;  %v7664_v27 = vld [vmem:[%s9401_s26 + $0x3dc] sm:$0xf0]  ;;  %v6947_v32 = vld [vmem:[%s9401_s26 + $0x3a8] sm:$0xf] }
 0xf83   : > { %4072 = vmatpush.bf16.msra.mxu1 %v6924_v33  ;;  %v6611_v33 = vld [vmem:[%s9401_s26 + $0x118] sm:$0xf] }
 0xf86   : > { %4062 = vmatpush.bf16.msra.mxu0 %v6664_v2  ;;  %4036 = vmatpush.bf16.msrb.mxu2 %v6528_v10  ;;  %v7647_v2 = vld [vmem:[%s9401_s26 + $0x354] sm:$0xf0]  ;;  %v6740_v10 = vor.u32 %v7615_v8, %v6739_v7 }
 0xf87   : > { %4073 = vmatpush.bf16.msra.mxu1 %v6860_v43  ;;  %v7558_v43 = vld [vmem:[%s9401_s26 + $0x94] sm:$0xf] }
 0xf8a   : > { %4063 = vmatpush.bf16.msra.mxu0 %v6600_v1  ;;  %4037 = vmatpush.bf16.msrb.mxu2 %v6464_v6  ;;  %v6731_v1 = vld [vmem:[%s9401_s26 + $0x210] sm:$0xf]  ;;  %v6676_v6 = vor.u32 %v7599_v0, %v6675_v20 }
 0xf8b   : > { %v6732_v4 = vor.u32 %v7614_v3, %v6731_v1  ;;  %v6485_v1 = vld [vmem:[%s9401_s26 + $0x58] sm:$0xf0]  ;;  %v7938_v20 = vld [vmem:[%s10480_s13] ss:$0 sm:$0xff]  ;;  %s10487_s13 = sld [smem:[#allocation80_spill]] (!%p7481_p5) }
 0xf8e   : > { %4064 = vmatpush.bf16.msra.mxu0 %v6536_v16  ;;  %4086 = vmatpush.bf16.msra.mxu2 %v6928_v34  ;;  %v6667_v16 = vld [vmem:[%s9401_s26 + $0x190] sm:$0xf]  ;;  %v7583_v34 = vld [vmem:[%s9401_s26 + $0x154] sm:$0xf0] }
 0xf8f   : > { %v6668_v18 = vor.u32 %v7598_v17, %v6667_v16  ;;  %v6612_v36 = vor.u32 %v7583_v34, %v6611_v33 }
 0xf92   : > { %4065 = vmatpush.bf16.msra.mxu0 %v6472_v14  ;;  %v7582_v14 = vld [vmem:[%s9401_s26 + $0x14c] sm:$0xf0] }
 0xf93   : > { %v6604_v31 = vor.u32 %v7582_v14, %v6603_v25  ;;  %v6939_v14 = vld [vmem:[%s9401_s26 + $0x3a0] sm:$0xf] }
 0xf96   : > { %4114 = vmatpush.bf16.msrb.mxu0 %v6936_v42  ;;  %v7566_v42 = vld [vmem:[%s9401_s26 + $0xcc] sm:$0xf0] }
 0xfe0   : > { %v3162_v48 = vpop.xlane.xlu0 %3161 }
 0xfe1   : > { %v3165_v50 = vmul.f32 %v3162_v48, %v9662_v46  ;;  %v6864_v48 = vor.u32 %v7638_v44, %v6861_v45  ;;  %v6540_v45 = vor.u32 %v7566_v42, %v6539_v41  ;;  %v7648_v41 = vld [vmem:[%s9401_s26 + $0x35c] sm:$0xf0] }
 0xfe3   : > { %v9843_v26 = vsub.f32 %v9794_v47, %v3165_v50  ;;  %v7639_v50 = vld [vmem:[%s9401_s26 + $0x31c] sm:$0xf]  ;;  %4087 = vmatpush.bf16.msra.mxu2 %v6864_v48  ;;  %v6547_v48 = vld [vmem:[%s9401_s26 + $0x98] sm:$0xf] }
 0xfe5   : > { %v3169_v51 = vmul.f32 %v9843_v26, %v9843_v26 }
 0xfe7   : > { %3171 = vadd.xlane.f32.xlu1 %v3169_v51  ;;  %v6869_v51 = vld [vmem:[%s9401_s26 + $0x358] sm:$0xf0] }
 0xfe8   : > { %v3164_v52 = vpop.xlane.xlu2 %3163 }
 0xfe9   : > { %v3166_v28 = vmul.f32 %v3164_v52, %v9662_v46  ;;  %v6868_v52 = vor.u32 %v7647_v2, %v6867_v63  ;;  %v6541_v63 = vld [vmem:[%s9401_s26 + $0xd0] sm:$0xf0]  ;;  %v7567_v2 = vld [vmem:[%s9401_s26 + $0xd4] sm:$0xf0] }
 0xfeb   : > { %v9849_v53 = vsub.f32 %v9798_v49, %v3166_v28  ;;  %v6596_v49 = vor.u32 %v7581_v59, %v6595_v58  ;;  %v6872_v28 = vor.u32 %v7639_v50, %v6869_v51  ;;  %v7631_v58 = vld [vmem:[%s9401_s26 + $0x2d4] sm:$0xf0]  ;;  %v6800_v59 = vor.u32 %v7622_v56, %v6797_v57  ;;  %v6475_v56 = vld [vmem:[%s9401_s26 + $0x10] sm:$0xf]  ;;  %v7542_v57 = vld [vmem:[%s9401_s26 + $0x14] sm:$0xf] }
 0xfec   : > { %v6804_v60 = vor.u32 %v7631_v58, %v6803_v30  ;;  %v6544_v50 = vor.u32 %v7558_v43, %v6541_v63  ;;  %v6548_v51 = vor.u32 %v7567_v2, %v6547_v48  ;;  %v6477_v58 = vld [vmem:[%s9401_s26 + $0x50] sm:$0xf0]  ;;  %v6883_v63 = vld [vmem:[%s9401_s26 + $0x328] sm:$0xf]  ;;  %v7641_v2 = vld [vmem:[%s9401_s26 + $0x32c] sm:$0xf] }
 0xfed   : > { %v3170_v47 = vmul.f32 %v9849_v53, %v9849_v53  ;;  %4049 = vmatpush.bf16.msra.mxu3 %v6596_v49  ;;  %v7623_v49 = vld [vmem:[%s9401_s26 + $0x29c] sm:$0xf]  ;;  %4115 = vmatpush.bf16.msrb.mxu0 %v6872_v28  ;;  %v7649_v48 = vld [vmem:[%s9401_s26 + $0x364] sm:$0xf0] }
 0xfee   : > { %v6808_v62 = vor.u32 %v7623_v49, %v6805_v61  ;;  %4088 = vmatpush.bf16.msra.mxu2 %v6800_v59  ;;  %v6549_v28 = vld [vmem:[%s9401_s26 + $0xd8] sm:$0xf0]  ;;  %v6483_v59 = vld [vmem:[%s9401_s26 + $0x18] sm:$0xf]  ;;  %v6480_v49 = vor.u32 %v7542_v57, %v6477_v58  ;;  %v6813_v57 = vld [vmem:[%s9401_s26 + $0x2e0] sm:$0xf0] }
 0xfef   : > { %3173 = vadd.xlane.f32.xlu1 %v3170_v47  ;;  %v6795_v47 = vld [vmem:[%s9401_s26 + $0x290] sm:$0xf]  ;;  %v7633_v58 = vld [vmem:[%s9401_s26 + $0x2e4] sm:$0xf0] }
 0xff0   : > { %v6796_v54 = vor.u32 %v7630_v55, %v6795_v47 }
 0xff1   : > { %4050 = vmatpush.bf16.msra.mxu3 %v6532_v11  ;;  %v7607_v11 = vld [vmem:[%s9401_s26 + $0x21c] sm:$0xf]  ;;  %4116 = vmatpush.bf16.msrb.mxu0 %v6808_v62 }
 0xff2   : > { %4074 = vmatpush.bf16.msra.mxu1 %v6796_v54  ;;  %v6744_v15 = vor.u32 %v7607_v11, %v6741_v12  ;;  %4089 = vmatpush.bf16.msra.mxu2 %v6736_v9  ;;  %v7550_v54 = vld [vmem:[%s9401_s26 + $0x4c] sm:$0xf0]  ;;  %v7543_v62 = vld [vmem:[%s9401_s26 + $0x1c] sm:$0xf] }
 0xff3   : > { %v6476_v30 = vor.u32 %v7550_v54, %v6475_v56  ;;  %v6488_v3 = vor.u32 %v7543_v62, %v6485_v1  ;;  %v7624_v54 = vld [vmem:[%s9401_s26 + $0x2a4] sm:$0xf]  ;;  %v6747_v62 = vld [vmem:[%s9401_s26 + $0x220] sm:$0xf] }
 0xff4   : > { %v7616_v1 = vld [vmem:[%s9401_s26 + $0x25c] sm:$0xf0] }
 0xff5   : > { %4051 = vmatpush.bf16.msra.mxu3 %v6468_v22  ;;  %v7591_v22 = vld [vmem:[%s9401_s26 + $0x19c] sm:$0xf]  ;;  %4117 = vmatpush.bf16.msrb.mxu0 %v6744_v15 }
 0xff6   : > { %4075 = vmatpush.bf16.msra.mxu1 %v6732_v4  ;;  %v6680_v24 = vor.u32 %v7591_v22, %v6677_v23  ;;  %4090 = vmatpush.bf16.msra.mxu2 %v6672_v21  ;;  %v7939_v22 = vld [vmem:[%s10481_s0] ss:$0 sm:$0xff] }
 0xff9   : > { %4100 = vmatpush.bf16.msrb.mxu3 %v6932_v38  ;;  %v6613_v38 = vld [vmem:[%s9401_s26 + $0x158] sm:$0xf0]  ;;  %4118 = vmatpush.bf16.msrb.mxu0 %v6680_v24 }
 0xffa   : > { %4076 = vmatpush.bf16.msra.mxu1 %v6668_v18  ;;  %v6616_v39 = vor.u32 %v7575_v37, %v6613_v38  ;;  %4091 = vmatpush.bf16.msra.mxu2 %v6608_v35  ;;  %v7665_v35 = vld [vmem:[%s9401_s26 + $0x3e4] sm:$0xf0]  ;;  %v6940_v38 = vor.u32 %v7664_v27, %v6939_v14 }
 0xffb   : > { %v6948_v42 = vor.u32 %v7665_v35, %v6947_v32  ;;  %v6627_v32 = vld [vmem:[%s9401_s26 + $0x128] sm:$0xf] }
 0xffc   : > { %v7585_v35 = vld [vmem:[%s9401_s26 + $0x164] sm:$0xf0] }
 0xffd   : > { %4101 = vmatpush.bf16.msrb.mxu3 %v6868_v52  ;;  %v7559_v52 = vld [vmem:[%s9401_s26 + $0x9c] sm:$0xf]  ;;  %4119 = vmatpush.bf16.msrb.mxu0 %v6616_v39 }
 0xffe   : > { %4077 = vmatpush.bf16.msra.mxu1 %v6604_v31  ;;  %v6552_v55 = vor.u32 %v7559_v52, %v6549_v28  ;;  %4092 = vmatpush.bf16.msra.mxu2 %v6544_v50  ;;  %v7656_v31 = vld [vmem:[%s9401_s26 + $0x3a4] sm:$0xf]  ;;  %v6885_v50 = vld [vmem:[%s9401_s26 + $0x368] sm:$0xf0]  ;;  %v6811_v28 = vld [vmem:[%s9401_s26 + $0x2a0] sm:$0xf] }
 0xfff   : > { %v6888_v56 = vor.u32 %v7641_v2, %v6885_v50  ;;  %v7561_v2 = vld [vmem:[%s9401_s26 + $0xac] sm:$0xf] }
0x1000   : > { %v6565_v50 = vld [vmem:[%s9401_s26 + $0xe8] sm:$0xf0] }
0x1001   : > { %4102 = vmatpush.bf16.msrb.mxu3 %v6804_v60  ;;  %v7551_v60 = vld [vmem:[%s9401_s26 + $0x54] sm:$0xf0]  ;;  %4120 = vmatpush.bf16.msrb.mxu0 %v6552_v55  ;;  %v6884_v55 = vor.u32 %v7649_v48, %v6883_v63  ;;  %v6563_v63 = vld [vmem:[%s9401_s26 + $0xa8] sm:$0xf] }
0x1002   : > { %4078 = vmatpush.bf16.msra.mxu1 %v6540_v45  ;;  %v6484_v61 = vor.u32 %v7551_v60, %v6483_v59  ;;  %4093 = vmatpush.bf16.msra.mxu2 %v6480_v49  ;;  %v6877_v45 = vld [vmem:[%s9401_s26 + $0x360] sm:$0xf0]  ;;  %v7625_v59 = vld [vmem:[%s9401_s26 + $0x2ac] sm:$0xf]  ;;  %v7569_v48 = vld [vmem:[%s9401_s26 + $0xe4] sm:$0xf0] }
0x1003   : > { %v6821_v60 = vld [vmem:[%s9401_s26 + $0x2e8] sm:$0xf0] }
0x1005   : > { %4103 = vmatpush.bf16.msrb.mxu3 %v6740_v10  ;;  %4121 = vmatpush.bf16.msrb.mxu0 %v6488_v3 }
0x1006   : > { %4079 = vmatpush.bf16.msra.mxu1 %v6476_v30  ;;  %v6819_v30 = vld [vmem:[%s9401_s26 + $0x2a8] sm:$0xf] }
0x1007   : > { %v6820_v3 = vor.u32 %v7633_v58, %v6819_v30  ;;  %v6499_v30 = vld [vmem:[%s9401_s26 + $0x28] sm:$0xf] }
0x1008   : > { %v7553_v58 = vld [vmem:[%s9401_s26 + $0x64] sm:$0xf0] }
0x1009   : > { %4104 = vmatpush.bf16.msrb.mxu3 %v6676_v6 }
0x100d   : > { %4105 = vmatpush.bf16.msrb.mxu3 %v6612_v36  ;;  %v7657_v36 = vld [vmem:[%s9401_s26 + $0x3ac] sm:$0xf] }
0x1011   : > { %4106 = vmatpush.bf16.msrb.mxu3 %v6548_v51 }
0x1015   : > { %4107 = vmatpush.bf16.msrb.mxu3 %v6484_v61  ;;  %v6816_v61 = vor.u32 %v7624_v54, %v6813_v57  ;;  %v6564_v54 = vor.u32 %v7569_v48, %v6563_v63  ;;  %v6568_v57 = vor.u32 %v7561_v2, %v6565_v50  ;;  %v6771_v63 = vld [vmem:[%s9401_s26 + $0x238] sm:$0xf]  ;;  %v7611_v2 = vld [vmem:[%s9401_s26 + $0x23c] sm:$0xf] }
0x1016   : > { %v7619_v48 = vld [vmem:[%s9401_s26 + $0x274] sm:$0xf0]  ;;  %v6773_v50 = vld [vmem:[%s9401_s26 + $0x278] sm:$0xf0] }
0x105a   : > { %v3172_v40 = vpop.xlane.xlu1 %3171 }
0x105b   : > { %v3175_v44 = vmul.f32 %v3172_v40, %v9662_v46  ;;  %v6875_v40 = vld [vmem:[%s9401_s26 + $0x320] sm:$0xf] }
0x105c   : > { %v6876_v51 = vor.u32 %v7648_v41, %v6875_v40  ;;  %v6555_v40 = vld [vmem:[%s9401_s26 + $0xa0] sm:$0xf] }
0x105d   : > { %v3177_v47 = vadd.f32 1e-05, %v3175_v44  ;;  %v7640_v44 = vld [vmem:[%s9401_s26 + $0x324] sm:$0xf]  ;;  %v7568_v41 = vld [vmem:[%s9401_s26 + $0xdc] sm:$0xf0] }
0x105e   : > { %v6880_v52 = vor.u32 %v7640_v44, %v6877_v45  ;;  %v7560_v44 = vld [vmem:[%s9401_s26 + $0xa4] sm:$0xf] }
0x105f   : > { %8013 = vrsqrt.f32 %v3177_v47  ;;  %vm3185_vm13 = vweird.f32 %v3177_v47  ;;  %v6557_v45 = vld [vmem:[%s9401_s26 + $0xe0] sm:$0xf0] }
0x1062   : > { %v3174_v29 = vpop.xlane.xlu1 %3173 }
0x1063   : > { %v3176_v4 = vmul.f32 %v3174_v29, %v9662_v46  ;;  %v6824_v29 = vor.u32 %v7625_v59, %v6821_v60  ;;  %v7545_v59 = vld [vmem:[%s9401_s26 + $0x2c] sm:$0xf] }
0x1064   : > { %v6501_v60 = vld [vmem:[%s9401_s26 + $0x68] sm:$0xf0] }
0x1065   : > { %v8014_v5 = vpop.eup %8013  ;;  %v3178_v7 = vadd.f32 1e-05, %v3176_v4  ;;  %v7608_v4 = vld [vmem:[%s9401_s26 + $0x224] sm:$0xf] }
0x1066   : > { %v3180_v8 = vmul.f32 %v8014_v5, %v3177_v47  ;;  %vm3186_vm12 = vweird.f32 %v8014_v5  ;;  %v7632_v47 = vld [vmem:[%s9401_s26 + $0x2dc] sm:$0xf0] }
0x1067   : > { %8015 = vrsqrt.f32 %v3178_v7  ;;  %vm3187_vm14 = vmor %vm3185_vm13, %vm3186_vm12  ;;  %vm3195_vm0 = vweird.f32 %v3178_v7  ;;  %v6812_v49 = vor.u32 %v7632_v47, %v6811_v28  ;;  %v6560_v28 = vor.u32 %v7560_v44, %v6557_v45  ;;  %v7552_v47 = vld [vmem:[%s9401_s26 + $0x5c] sm:$0xf0]  ;;  %v7610_v44 = vld [vmem:[%s9401_s26 + $0x234] sm:$0xf] }
0x1068   : > { %v3181_v9 = vmul.f32 %v8014_v5, %v3180_v8  ;;  %v7617_v8 = vld [vmem:[%s9401_s26 + $0x264] sm:$0xf0]  ;;  %v6765_v45 = vld [vmem:[%s9401_s26 + $0x270] sm:$0xf0] }
0x106a   : > { %v3182_v10 = vmul.f32 0.5, %v3181_v9  ;;  %v7609_v9 = vld [vmem:[%s9401_s26 + $0x22c] sm:$0xf] }
0x106c   : > { %v3183_v11 = vsub.f32 1.5, %v3182_v10  ;;  %v6757_v10 = vld [vmem:[%s9401_s26 + $0x268] sm:$0xf0] }
0x106d   : > { %v8016_v12 = vpop.eup %8015 }
0x106e   : > { %v3184_v15 = vmul.f32 %v8014_v5, %v3183_v11  ;;  %v3190_v16 = vmul.f32 %v8016_v12, %v3178_v7  ;;  %vm3196_vm15 = vweird.f32 %v8016_v12  ;;  %v6755_v7 = vld [vmem:[%s9401_s26 + $0x228] sm:$0xf]  ;;  %v6748_v11 = vor.u32 %v7616_v1, %v6747_v62  ;;  %v7658_v62 = vld [vmem:[%s9401_s26 + $0x3b4] sm:$0xf] }
0x106f   : > { %vm3197_vm1 = vmor %vm3195_vm0, %vm3196_vm15  ;;  %v6957_v1 = vld [vmem:[%s9401_s26 + $0x3f0] sm:$0xf0] }
0x1070   : > { %v3191_v17 = vmul.f32 %v8016_v12, %v3190_v16  ;;  %v3188_v13 = vsel %vm3187_vm14, %v8014_v5, %v3184_v15  ;;  %v6749_v5 = vld [vmem:[%s9401_s26 + $0x260] sm:$0xf0]  ;;  %v6683_v15 = vld [vmem:[%s9401_s26 + $0x1a0] sm:$0xf] }
0x1071   : > { %v3199_v0 = vmul.f32 %v3188_v13, %v9843_v26  ;;  %v6941_v26 = vld [vmem:[%s9401_s26 + $0x3e0] sm:$0xf0]  ;;  %v7600_v16 = vld [vmem:[%s9401_s26 + $0x1dc] sm:$0xf0]  ;;  %v6760_v13 = vor.u32 %v7609_v9, %v6757_v10  ;;  %v6500_v9 = vor.u32 %v7553_v58, %v6499_v30  ;;  %v6504_v10 = vor.u32 %v7545_v59, %v6501_v60  ;;  %v6707_v30 = vld [vmem:[%s9401_s26 + $0x1b8] sm:$0xf] }
0x1072   : > { %v3192_v18 = vmul.f32 0.5, %v3191_v17  ;;  %v6944_v39 = vor.u32 %v7656_v31, %v6941_v26  ;;  %v6756_v17 = vor.u32 %v7617_v8, %v6755_v7  ;;  %v7576_v31 = vld [vmem:[%s9401_s26 + $0x124] sm:$0xf]  ;;  %v7659_v7 = vld [vmem:[%s9401_s26 + $0x3bc] sm:$0xf] }
0x1073   : > { %v3204_v23 = vmul.f32 %v7938_v20, %v3199_v0  ;;  %v7601_v0 = vld [vmem:[%s9401_s26 + $0x1e4] sm:$0xf0]  ;;  %v6621_v26 = vld [vmem:[%s9401_s26 + $0x160] sm:$0xf0]  ;;  %v6965_v8 = vld [vmem:[%s9401_s26 + $0x3f8] sm:$0xf0] }
0x1074   : > { %v3193_v19 = vsub.f32 1.5, %v3192_v18  ;;  %v7592_v18 = vld [vmem:[%s9401_s26 + $0x1a4] sm:$0xf]  ;;  %v7603_v58 = vld [vmem:[%s9401_s26 + $0x1f4] sm:$0xf0] }
0x1075   : > { %v9954_v33 = vadd.f32 %v7939_v22, %v3204_v23  ;;  %v7595_v59 = vld [vmem:[%s9401_s26 + $0x1bc] sm:$0xf] }
0x1076   : > { %v3194_v21 = vmul.f32 %v8016_v12, %v3193_v19  ;;  %v6685_v19 = vld [vmem:[%s9401_s26 + $0x1e0] sm:$0xf0]  ;;  %v6709_v60 = vld [vmem:[%s9401_s26 + $0x1f8] sm:$0xf0] }
0x1077   : > { %v6688_v23 = vor.u32 %v7592_v18, %v6685_v19  ;;  %v7642_v18 = vld [vmem:[%s9401_s26 + $0x334] sm:$0xf] }
0x1078   : > { %v3198_v6 = vsel %vm3197_vm1, %v8016_v12, %v3194_v21  ;;  %v6752_v12 = vor.u32 %v7608_v4, %v6749_v5  ;;  %v7593_v21 = vld [vmem:[%s9401_s26 + $0x1ac] sm:$0xf]  ;;  %v7667_v5 = vld [vmem:[%s9401_s26 + $0x3f4] sm:$0xf0]  ;;  %v6893_v19 = vld [vmem:[%s9401_s26 + $0x370] sm:$0xf0] }
0x1079   : > { %v3200_v24 = vmul.f32 %v3198_v6, %v9849_v53  ;;  %v6949_v53 = vld [vmem:[%s9401_s26 + $0x3e8] sm:$0xf0] }
0x107a   : > { %v6952_v43 = vor.u32 %v7657_v36, %v6949_v53  ;;  %v6693_v6 = vld [vmem:[%s9401_s26 + $0x1e8] sm:$0xf0] }
0x107b   : > { %v3205_v25 = vmul.f32 %v7938_v20, %v3200_v24  ;;  %v6691_v20 = vld [vmem:[%s9401_s26 + $0x1a8] sm:$0xf]  ;;  %v6619_v24 = vld [vmem:[%s9401_s26 + $0x120] sm:$0xf]  ;;  %v6696_v27 = vor.u32 %v7593_v21, %v6693_v6  ;;  %v7577_v36 = vld [vmem:[%s9401_s26 + $0x12c] sm:$0xf] }
0x107c   : > { %v6692_v14 = vor.u32 %v7601_v0, %v6691_v20  ;;  %v6629_v53 = vld [vmem:[%s9401_s26 + $0x168] sm:$0xf0]  ;;  %v6899_v20 = vld [vmem:[%s9401_s26 + $0x338] sm:$0xf]  ;;  %v7643_v21 = vld [vmem:[%s9401_s26 + $0x33c] sm:$0xf] }
0x107d   : > { %v9956_v34 = vadd.f32 %v7939_v22, %v3205_v25  ;;  %v6684_v22 = vor.u32 %v7600_v16, %v6683_v15  ;;  %v7584_v25 = vld [vmem:[%s9401_s26 + $0x15c] sm:$0xf0]  ;;  %v6891_v15 = vld [vmem:[%s9401_s26 + $0x330] sm:$0xf]  ;;  %v7651_v0 = vld [vmem:[%s9401_s26 + $0x374] sm:$0xf0] }
0x107e   : > { %v7650_v16 = vld [vmem:[%s9401_s26 + $0x36c] sm:$0xf0]  ;;  %v6901_v6 = vld [vmem:[%s9401_s26 + $0x378] sm:$0xf0] }
0x107f   : > { %v9963_v37 = vpack.c.bf16 %v9956_v34, %v9954_v33 }
0x1081   : > { %4024 = vmatmul.bf16.vlgmr.msrb.gmra.mxu1 %v9963_v37  ;;  %4038 = vmatmul.bf16.vlgmr.msrb.gmra.mxu2 %v9963_v37 }
0x1082   : > { %4052 = vmatmul.bf16.vlgmr.msra.gmra.mxu3 %v9963_v37  ;;  %4066 = vmatmul.bf16.vlgmr.msra.gmra.mxu0 %v9963_v37 }
0x1083   : > { %4128 = vmatpush.bf16.msrb.mxu1 %v6940_v38  ;;  %4142 = vmatpush.bf16.msrb.mxu2 %v6944_v39  ;;  %v6620_v38 = vor.u32 %v7584_v25, %v6619_v24  ;;  %v6624_v39 = vor.u32 %v7576_v31, %v6621_v26  ;;  %v6827_v24 = vld [vmem:[%s9401_s26 + $0x2b0] sm:$0xf]  ;;  %v7626_v31 = vld [vmem:[%s9401_s26 + $0x2b4] sm:$0xf] }
0x1084   : > { %4156 = vmatpush.bf16.msra.mxu3 %v6948_v42  ;;  %4170 = vmatpush.bf16.msra.mxu0 %v6952_v43  ;;  %v6628_v42 = vor.u32 %v7585_v35, %v6627_v32  ;;  %v6632_v43 = vor.u32 %v7577_v36, %v6629_v53  ;;  %v7634_v25 = vld [vmem:[%s9401_s26 + $0x2ec] sm:$0xf0]  ;;  %v6829_v26 = vld [vmem:[%s9401_s26 + $0x2f0] sm:$0xf0]  ;;  %v6835_v32 = vld [vmem:[%s9401_s26 + $0x2b8] sm:$0xf] }
0x1085   : > { %v7635_v35 = vld [vmem:[%s9401_s26 + $0x2f4] sm:$0xf0]  ;;  %v7627_v36 = vld [vmem:[%s9401_s26 + $0x2bc] sm:$0xf] }
0x1086   : > { %v6837_v53 = vld [vmem:[%s9401_s26 + $0x2f8] sm:$0xf0] }
0x1087   : > { %4129 = vmatpush.bf16.msrb.mxu1 %v6876_v51  ;;  %4143 = vmatpush.bf16.msrb.mxu2 %v6880_v52  ;;  %v6491_v51 = vld [vmem:[%s9401_s26 + $0x20] sm:$0xf]  ;;  %v6556_v52 = vor.u32 %v7568_v41, %v6555_v40  ;;  %v6763_v40 = vld [vmem:[%s9401_s26 + $0x230] sm:$0xf] }
0x1088   : > { %4157 = vmatpush.bf16.msra.mxu3 %v6884_v55  ;;  %4171 = vmatpush.bf16.msra.mxu0 %v6888_v56  ;;  %v7544_v55 = vld [vmem:[%s9401_s26 + $0x24] sm:$0xf]  ;;  %v7618_v41 = vld [vmem:[%s9401_s26 + $0x26c] sm:$0xf0] }
0x1089   : > { %v6493_v56 = vld [vmem:[%s9401_s26 + $0x60] sm:$0xf0] }
0x108a   : > { %v6496_v4 = vor.u32 %v7544_v55, %v6493_v56  ;;  %v6772_v55 = vor.u32 %v7619_v48, %v6771_v63  ;;  %v6776_v56 = vor.u32 %v7611_v2, %v6773_v50  ;;  %v7674_v63 = vld [vmem:[%s9410_s23 + $0x30] sm:$0xff] }
0x108b   : > { %4130 = vmatpush.bf16.msrb.mxu1 %v6812_v49  ;;  %4144 = vmatpush.bf16.msrb.mxu2 %v6816_v61  ;;  %v6955_v49 = vld [vmem:[%s9401_s26 + $0x3b0] sm:$0xf] }
0x108c   : > { %4158 = vmatpush.bf16.msra.mxu3 %v6820_v3  ;;  %4172 = vmatpush.bf16.msra.mxu0 %v6824_v29  ;;  %v7666_v61 = vld [vmem:[%s9401_s26 + $0x3ec] sm:$0xf0]  ;;  %v6963_v3 = vld [vmem:[%s9401_s26 + $0x3b8] sm:$0xf]  ;;  %v6492_v29 = vor.u32 %v7552_v47, %v6491_v51  ;;  %v6764_v51 = vor.u32 %v7618_v41, %v6763_v40 }
0x108d   : > { %v7602_v47 = vld [vmem:[%s9401_s26 + $0x1ec] sm:$0xf0] }
0x108e   : > { %v7698_v48 = vld [vmem:[%s9410_s23 + $0xf0] sm:$0xff] }
0x108f   : > { %4131 = vmatpush.bf16.msrb.mxu1 %v6748_v11  ;;  %4145 = vmatpush.bf16.msrb.mxu2 %v6752_v12  ;;  %v6956_v11 = vor.u32 %v7666_v61, %v6955_v49  ;;  %v6960_v12 = vor.u32 %v7658_v62, %v6957_v1  ;;  %v6635_v62 = vld [vmem:[%s9401_s26 + $0x130] sm:$0xf] }
0x1090   : > { %4159 = vmatpush.bf16.msra.mxu3 %v6756_v17  ;;  %4173 = vmatpush.bf16.msra.mxu0 %v6760_v13  ;;  %v6964_v17 = vor.u32 %v7667_v5, %v6963_v3  ;;  %v6968_v13 = vor.u32 %v7659_v7, %v6965_v8  ;;  %v7586_v1 = vld [vmem:[%s9401_s26 + $0x16c] sm:$0xf0]  ;;  %v6708_v3 = vor.u32 %v7603_v58, %v6707_v30  ;;  %v6637_v5 = vld [vmem:[%s9401_s26 + $0x170] sm:$0xf0]  ;;  %v6643_v7 = vld [vmem:[%s9401_s26 + $0x138] sm:$0xf] }
0x1091   : > { %4080 = vmatmul.bf16.vlgmr.msra.gmra.mxu1 %v9963_v37  ;;  %4094 = vmatmul.bf16.vlgmr.msra.gmra.mxu2 %v9963_v37  ;;  %v7587_v8 = vld [vmem:[%s9401_s26 + $0x174] sm:$0xf0]  ;;  %v7682_v2 = vld [vmem:[%s9410_s23 + $0x70] sm:$0xff] }
0x1092   : > { %4108 = vmatmul.bf16.vlgmr.msrb.gmra.mxu3 %v9963_v37  ;;  %4122 = vmatmul.bf16.vlgmr.msrb.gmra.mxu0 %v9963_v37  ;;  %v7690_v50 = vld [vmem:[%s9410_s23 + $0xb0] sm:$0xff]  ;;  %v7695_v30 = vld [vmem:[%s9410_s23 + $0xd8] sm:$0xff] }
0x1093   : > { %4132 = vmatpush.bf16.msrb.mxu1 %v6684_v22  ;;  %4146 = vmatpush.bf16.msrb.mxu2 %v6688_v23  ;;  %v6892_v22 = vor.u32 %v7650_v16, %v6891_v15  ;;  %v6896_v23 = vor.u32 %v7642_v18, %v6893_v19  ;;  %v6571_v15 = vld [vmem:[%s9401_s26 + $0xb0] sm:$0xf]  ;;  %v7562_v18 = vld [vmem:[%s9401_s26 + $0xb4] sm:$0xf]  ;;  %v7679_v58 = vld [vmem:[%s9410_s23 + $0x58] sm:$0xff] }
0x1094   : > { %4160 = vmatpush.bf16.msra.mxu3 %v6692_v14  ;;  %4174 = vmatpush.bf16.msra.mxu0 %v6696_v27  ;;  %v6900_v14 = vor.u32 %v7651_v0, %v6899_v20  ;;  %v6904_v27 = vor.u32 %v7643_v21, %v6901_v6  ;;  %v7570_v16 = vld [vmem:[%s9401_s26 + $0xec] sm:$0xf0]  ;;  %v6573_v19 = vld [vmem:[%s9401_s26 + $0xf0] sm:$0xf0]  ;;  %v6579_v20 = vld [vmem:[%s9401_s26 + $0xb8] sm:$0xf] }
0x1095   : > { %v7571_v0 = vld [vmem:[%s9401_s26 + $0xf4] sm:$0xf0]  ;;  %v7563_v21 = vld [vmem:[%s9401_s26 + $0xbc] sm:$0xf] }
0x1096   : > { %v6581_v6 = vld [vmem:[%s9401_s26 + $0xf8] sm:$0xf0] }
0x1097   : > { %4133 = vmatpush.bf16.msrb.mxu1 %v6620_v38  ;;  %4147 = vmatpush.bf16.msrb.mxu2 %v6624_v39  ;;  %v6828_v38 = vor.u32 %v7634_v25, %v6827_v24  ;;  %v6832_v39 = vor.u32 %v7626_v31, %v6829_v26  ;;  %v6507_v24 = vld [vmem:[%s9401_s26 + $0x30] sm:$0xf]  ;;  %v7546_v31 = vld [vmem:[%s9401_s26 + $0x34] sm:$0xf] }
0x1098   : > { %4161 = vmatpush.bf16.msra.mxu3 %v6628_v42  ;;  %4175 = vmatpush.bf16.msra.mxu0 %v6632_v43  ;;  %v6836_v42 = vor.u32 %v7635_v35, %v6835_v32  ;;  %v6840_v43 = vor.u32 %v7627_v36, %v6837_v53  ;;  %v7554_v25 = vld [vmem:[%s9401_s26 + $0x6c] sm:$0xf0]  ;;  %v6509_v26 = vld [vmem:[%s9401_s26 + $0x70] sm:$0xf0]  ;;  %v6515_v32 = vld [vmem:[%s9401_s26 + $0x38] sm:$0xf] }
0x1099   : > { %v7555_v35 = vld [vmem:[%s9401_s26 + $0x74] sm:$0xf0]  ;;  %v7547_v36 = vld [vmem:[%s9401_s26 + $0x3c] sm:$0xf] }
0x109a   : > { %v6517_v53 = vld [vmem:[%s9401_s26 + $0x78] sm:$0xf0]  ;;  %v6516_v40 = vor.u32 %v7555_v35, %v6515_v32  ;;  %v7726_v32 = vld [vmem:[%s9410_s23 + $0x1d0] sm:$0xff] }
0x109b   : > { %4134 = vmatpush.bf16.msrb.mxu1 %v6556_v52  ;;  %4148 = vmatpush.bf16.msrb.mxu2 %v6560_v28  ;;  %v6768_v52 = vor.u32 %v7610_v44, %v6765_v45  ;;  %v6699_v28 = vld [vmem:[%s9401_s26 + $0x1b0] sm:$0xf]  ;;  %v6520_v41 = vor.u32 %v7547_v36, %v6517_v53  ;;  %v7683_v44 = vld [vmem:[%s9410_s23 + $0x78] sm:$0xff]  ;;  %v7701_v53 = vld [vmem:[%s9410_s23 + $0x108] sm:$0xff] }
0x109c   : > { %4162 = vmatpush.bf16.msra.mxu3 %v6564_v54  ;;  %4176 = vmatpush.bf16.msra.mxu0 %v6568_v57  ;;  %v7594_v54 = vld [vmem:[%s9401_s26 + $0x1b4] sm:$0xf]  ;;  %v6700_v49 = vor.u32 %v7602_v47, %v6699_v28  ;;  %v7691_v45 = vld [vmem:[%s9410_s23 + $0xb8] sm:$0xff]  ;;  %v7681_v28 = vld [vmem:[%s9410_s23 + $0x68] sm:$0xff] }
0x109d   : > { %v6701_v57 = vld [vmem:[%s9401_s26 + $0x1f0] sm:$0xf0]  ;;  %v7689_v47 = vld [vmem:[%s9410_s23 + $0xa8] sm:$0xff] }
0x109e   : > { %v6704_v61 = vor.u32 %v7594_v54, %v6701_v57  ;;  %v7688_v54 = vld [vmem:[%s9410_s23 + $0xa0] sm:$0xff]  ;;  %v7671_v57 = vld [vmem:[%s9410_s23 + $0x18] sm:$0xff]  ;;  %v7710_v35 = vld [vmem:[%s9410_s23 + $0x150] sm:$0xff] }
0x109f   : > { %4135 = vmatpush.bf16.msrb.mxu1 %v6492_v29  ;;  %4149 = vmatpush.bf16.msrb.mxu2 %v6496_v4  ;;  %v6712_v29 = vor.u32 %v7595_v59, %v6709_v60  ;;  %v7578_v4 = vld [vmem:[%s9401_s26 + $0x134] sm:$0xf]  ;;  %v7687_v59 = vld [vmem:[%s9410_s23 + $0x98] sm:$0xff] }
0x10a0   : > { %4163 = vmatpush.bf16.msra.mxu3 %v6500_v9  ;;  %4177 = vmatpush.bf16.msra.mxu0 %v6504_v10  ;;  %v7579_v9 = vld [vmem:[%s9401_s26 + $0x13c] sm:$0xf]  ;;  %v7670_v60 = vld [vmem:[%s9410_s23 + $0x10] sm:$0xff] }
0x10a1   : > { %v6645_v10 = vld [vmem:[%s9401_s26 + $0x178] sm:$0xf0]  ;;  %v7718_v36 = vld [vmem:[%s9410_s23 + $0x190] sm:$0xff]  ;;  %s10482_s26 = scalar_lea.vmem [#allocation23], %s9353_s27 }
0x10a2   : > { %4136 = vmatmul.bf16.vlgmr.msrb.gmra.mxu1 %v9963_v37  ;;  %4150 = vmatmul.bf16.vlgmr.msrb.gmra.mxu2 %v9963_v37 }
0x10a3   : > { %4184 = vmatpush.bf16.msra.mxu1 %v6956_v11  ;;  %4198 = vmatpush.bf16.msra.mxu2 %v6960_v12  ;;  %v6636_v11 = vor.u32 %v7586_v1, %v6635_v62  ;;  %v6640_v12 = vor.u32 %v7578_v4, %v6637_v5  ;;  %v7686_v62 = vld [vmem:[%s9410_s23 + $0x90] sm:$0xff]  ;;  %v7669_v1 = vld [vmem:[%s9410_s23 + $0x8] sm:$0xff]  ;;  %v7668_v5 = vld [vmem:[%s9410_s23] sm:$0xff] }
0x10a4   : > { %4212 = vmatpush.bf16.msrb.mxu3 %v6964_v17  ;;  %4226 = vmatpush.bf16.msrb.mxu0 %v6968_v13  ;;  %v6644_v17 = vor.u32 %v7587_v8, %v6643_v7  ;;  %v6648_v13 = vor.u32 %v7579_v9, %v6645_v10  ;;  %v7685_v4 = vld [vmem:[%s9410_s23 + $0x88] sm:$0xff]  ;;  %v7692_v7 = vld [vmem:[%s9410_s23 + $0xc0] sm:$0xff]  ;;  %v7707_v8 = vld [vmem:[%s9410_s23 + $0x138] sm:$0xff] }
0x10a5   : > { %4164 = vmatmul.bf16.vlgmr.msra.gmra.mxu3 %v9963_v37  ;;  %4178 = vmatmul.bf16.vlgmr.msra.gmra.mxu0 %v9963_v37  ;;  %v7731_v9 = vld [vmem:[%s9410_s23 + $0x1f8] sm:$0xff]  ;;  %v7676_v10 = vld [vmem:[%s9410_s23 + $0x40] sm:$0xff] }
0x10a7   : > { %4185 = vmatpush.bf16.msra.mxu1 %v6892_v22  ;;  %4199 = vmatpush.bf16.msra.mxu2 %v6896_v23  ;;  %v6572_v22 = vor.u32 %v7570_v16, %v6571_v15  ;;  %v6576_v23 = vor.u32 %v7562_v18, %v6573_v19  ;;  %v7723_v15 = vld [vmem:[%s9410_s23 + $0x1b8] sm:$0xff]  ;;  %v7706_v16 = vld [vmem:[%s9410_s23 + $0x130] sm:$0xff]  ;;  %v7705_v19 = vld [vmem:[%s9410_s23 + $0x128] sm:$0xff] }
0x10a8   : > { %4213 = vmatpush.bf16.msrb.mxu3 %v6900_v14  ;;  %4227 = vmatpush.bf16.msrb.mxu0 %v6904_v27  ;;  %v6580_v14 = vor.u32 %v7571_v0, %v6579_v20  ;;  %v6584_v27 = vor.u32 %v7563_v21, %v6581_v6  ;;  %v7722_v18 = vld [vmem:[%s9410_s23 + $0x1b0] sm:$0xff]  ;;  %v7729_v20 = vld [vmem:[%s9410_s23 + $0x1e8] sm:$0xff]  ;;  %v7704_v6 = vld [vmem:[%s9410_s23 + $0x120] sm:$0xff] }
0x10a9   : > { %v7713_v0 = vld [vmem:[%s9410_s23 + $0x168] sm:$0xff] }
0x10aa   : > { %v7721_v21 = vld [vmem:[%s9410_s23 + $0x1a8] sm:$0xff] }
0x10ab   : > { %4186 = vmatpush.bf16.msra.mxu1 %v6828_v38  ;;  %4200 = vmatpush.bf16.msra.mxu2 %v6832_v39  ;;  %v6508_v38 = vor.u32 %v7554_v25, %v6507_v24  ;;  %v6512_v39 = vor.u32 %v7546_v31, %v6509_v26  ;;  %v7720_v24 = vld [vmem:[%s9410_s23 + $0x1a0] sm:$0xff]  ;;  %v7703_v25 = vld [vmem:[%s9410_s23 + $0x118] sm:$0xff]  ;;  %v7702_v26 = vld [vmem:[%s9410_s23 + $0x110] sm:$0xff] }
0x10ac   : > { %4214 = vmatpush.bf16.msrb.mxu3 %v6836_v42  ;;  %4228 = vmatpush.bf16.msrb.mxu0 %v6840_v43  ;;  %v7675_v42 = vld [vmem:[%s9410_s23 + $0x38] sm:$0xff] }
0x10ad   : > { %v7699_v43 = vld [vmem:[%s9410_s23 + $0xf8] sm:$0xff] }
0x10ae   : > { %v7719_v31 = vld [vmem:[%s9410_s23 + $0x198] sm:$0xff] }
0x10af   : > { %4187 = vmatpush.bf16.msra.mxu1 %v6764_v51  ;;  %4201 = vmatpush.bf16.msra.mxu2 %v6768_v52  ;;  %v7673_v51 = vld [vmem:[%s9410_s23 + $0x28] sm:$0xff] }
0x10b0   : > { %4215 = vmatpush.bf16.msrb.mxu3 %v6772_v55  ;;  %4229 = vmatpush.bf16.msrb.mxu0 %v6776_v56  ;;  %v7697_v52 = vld [vmem:[%s9410_s23 + $0xe8] sm:$0xff]  ;;  %v7696_v55 = vld [vmem:[%s9410_s23 + $0xe0] sm:$0xff] }
0x10b1   : > { %v7680_v56 = vld [vmem:[%s9410_s23 + $0x60] sm:$0xff] }
0x10b3   : > { %4188 = vmatpush.bf16.msra.mxu1 %v6700_v49  ;;  %4202 = vmatpush.bf16.msra.mxu2 %v6704_v61  ;;  %v7694_v49 = vld [vmem:[%s9410_s23 + $0xd0] sm:$0xff] }
0x10b4   : > { %4216 = vmatpush.bf16.msrb.mxu3 %v6708_v3  ;;  %4230 = vmatpush.bf16.msrb.mxu0 %v6712_v29  ;;  %v7678_v61 = vld [vmem:[%s9410_s23 + $0x50] sm:$0xff]  ;;  %v7693_v3 = vld [vmem:[%s9410_s23 + $0xc8] sm:$0xff] }
0x10b5   : > { %v7677_v29 = vld [vmem:[%s9410_s23 + $0x48] sm:$0xff] }
0x10b7   : > { %4189 = vmatpush.bf16.msra.mxu1 %v6636_v11  ;;  %4203 = vmatpush.bf16.msra.mxu2 %v6640_v12  ;;  %v7684_v11 = vld [vmem:[%s9410_s23 + $0x80] sm:$0xff]  ;;  %v7715_v12 = vld [vmem:[%s9410_s23 + $0x178] sm:$0xff] }
0x10b8   : > { %4217 = vmatpush.bf16.msrb.mxu3 %v6644_v17  ;;  %4231 = vmatpush.bf16.msrb.mxu0 %v6648_v13  ;;  %v7730_v17 = vld [vmem:[%s9410_s23 + $0x1f0] sm:$0xff] }
0x10b9   : > { %v7714_v13 = vld [vmem:[%s9410_s23 + $0x170] sm:$0xff] }
0x10bb   : > { %4190 = vmatpush.bf16.msra.mxu1 %v6572_v22  ;;  %4204 = vmatpush.bf16.msra.mxu2 %v6576_v23  ;;  %v7728_v22 = vld [vmem:[%s9410_s23 + $0x1e0] sm:$0xff] }
0x10bc   : > { %4218 = vmatpush.bf16.msrb.mxu3 %v6580_v14  ;;  %4232 = vmatpush.bf16.msrb.mxu0 %v6584_v27  ;;  %v7712_v23 = vld [vmem:[%s9410_s23 + $0x160] sm:$0xff]  ;;  %v7727_v14 = vld [vmem:[%s9410_s23 + $0x1d8] sm:$0xff] }
0x10bd   : > { %v7711_v27 = vld [vmem:[%s9410_s23 + $0x158] sm:$0xff] }
0x10bf   : > { %4191 = vmatpush.bf16.msra.mxu1 %v6508_v38  ;;  %4205 = vmatpush.bf16.msra.mxu2 %v6512_v39  ;;  %v7725_v38 = vld [vmem:[%s9410_s23 + $0x1c8] sm:$0xff] }
0x10c0   : > { %4219 = vmatpush.bf16.msrb.mxu3 %v6516_v40  ;;  %4233 = vmatpush.bf16.msrb.mxu0 %v6520_v41  ;;  %v7709_v39 = vld [vmem:[%s9410_s23 + $0x148] sm:$0xff]  ;;  %v7700_v41 = vld [vmem:[%s9410_s23 + $0x100] sm:$0xff] }
0x10c1   : > { %v7717_v40 = vld [vmem:[%s9410_s23 + $0x188] sm:$0xff] }
0x10c2   : > { %4192 = vmatmul.bf16.vlgmr.msra.gmra.mxu1 %v9963_v37  ;;  %4206 = vmatmul.bf16.vlgmr.msra.gmra.mxu2 %v9963_v37 }
0x10c3   : > { %5316 = vmatpush.bf16.msrb.mxu1 %v7675_v42  ;;  %4220 = vmatmul.bf16.vlgmr.msrb.gmra.mxu3 %v9963_v37  ;;  %v7724_v42 = vld [vmem:[%s9410_s23 + $0x1c0] sm:$0xff] }
0x10c4   : > { %5358 = vmatpush.bf16.msra.mxu0 %v7699_v43  ;;  %5330 = vmatpush.bf16.msrb.mxu2 %v7683_v44  ;;  %v7708_v43 = vld [vmem:[%s9410_s23 + $0x140] sm:$0xff] }
0x10c5   : > { %4234 = vmatmul.bf16.vlgmr.msrb.gmra.mxu0 %v9963_v37  ;;  %5344 = vmatpush.bf16.msra.mxu3 %v7691_v45  ;;  %v7672_v37 = vld [vmem:[%s9410_s23 + $0x20] sm:$0xff] }
0x10c6   : > { %v7716_v44 = vld [vmem:[%s9410_s23 + $0x180] sm:$0xff] }
0x10c7   : > { %5317 = vmatpush.bf16.msrb.mxu1 %v7674_v63  ;;  %v10166_v45 = vld [vmem:[%s9404_s17] sm:$0xff] }
0x10c8   : > { %5359 = vmatpush.bf16.msra.mxu0 %v7698_v48  ;;  %5331 = vmatpush.bf16.msrb.mxu2 %v7682_v2  ;;  %v3344_v2 = vperm.slane %v10166_v45, 0 }
0x10c9   : > { %5345 = vmatpush.bf16.msra.mxu3 %v7690_v50  ;;  %v3347_v50 = vperm.slane %v10166_v45, 3 }
0x10cb   : > { %5318 = vmatpush.bf16.msrb.mxu1 %v7673_v51 }
0x10cc   : > { %5360 = vmatpush.bf16.msra.mxu0 %v7697_v52  ;;  %5332 = vmatpush.bf16.msrb.mxu2 %v7681_v28 }
0x10cd   : > { %5346 = vmatpush.bf16.msra.mxu3 %v7689_v47 }
0x10cf   : > { %5319 = vmatpush.bf16.msrb.mxu1 %v7672_v37 }
0x10d0   : > { %5361 = vmatpush.bf16.msra.mxu0 %v7696_v55  ;;  %5333 = vmatpush.bf16.msrb.mxu2 %v7680_v56  ;;  %v3345_v55 = vperm.slane %v10166_v45, 1 }
0x10d1   : > { %5347 = vmatpush.bf16.msra.mxu3 %v7688_v54 }
0x10d3   : > { %5320 = vmatpush.bf16.msrb.mxu1 %v7671_v57  ;;  %v3346_v57 = vperm.slane %v10166_v45, 2 }
0x10d4   : > { %5362 = vmatpush.bf16.msra.mxu0 %v7695_v30  ;;  %5334 = vmatpush.bf16.msrb.mxu2 %v7679_v58 }
0x10d5   : > { %5348 = vmatpush.bf16.msra.mxu3 %v7687_v59 }
0x10d7   : > { %5321 = vmatpush.bf16.msrb.mxu1 %v7670_v60 }
0x10d8   : > { %5363 = vmatpush.bf16.msra.mxu0 %v7694_v49  ;;  %5335 = vmatpush.bf16.msrb.mxu2 %v7678_v61  ;;  %v7739_v61 = vld [vmem:[%s9410_s23 + $0x238] sm:$0xff] }
0x10d9   : > { %5349 = vmatpush.bf16.msra.mxu3 %v7686_v62 }
0x10db   : > { %5322 = vmatpush.bf16.msrb.mxu1 %v7669_v1 }
0x10dc   : > { %5364 = vmatpush.bf16.msra.mxu0 %v7693_v3  ;;  %5336 = vmatpush.bf16.msrb.mxu2 %v7677_v29  ;;  %v7763_v3 = vld [vmem:[%s9410_s23 + $0x2f8] sm:$0xff] }
0x10dd   : > { %5350 = vmatpush.bf16.msra.mxu3 %v7685_v4 }
0x10df   : > { %5323 = vmatpush.bf16.msrb.mxu1 %v7668_v5 }
0x10e0   : > { %5365 = vmatpush.bf16.msra.mxu0 %v7692_v7  ;;  %5337 = vmatpush.bf16.msrb.mxu2 %v7676_v10 }
0x10e1   : > { %5351 = vmatpush.bf16.msra.mxu3 %v7684_v11  ;;  %v7738_v11 = vld [vmem:[%s9410_s23 + $0x230] sm:$0xff] }
0x10e3   : > { %5372 = vmatpush.bf16.msra.mxu1 %v7707_v8 }
0x10e4   : > { %5414 = vmatpush.bf16.msrb.mxu0 %v7731_v9  ;;  %5386 = vmatpush.bf16.msra.mxu2 %v7715_v12 }
0x10e5   : > { %5400 = vmatpush.bf16.msrb.mxu3 %v7723_v15 }
0x10e7   : > { %5373 = vmatpush.bf16.msra.mxu1 %v7706_v16 }
0x10e8   : > { %5415 = vmatpush.bf16.msrb.mxu0 %v7730_v17  ;;  %5387 = vmatpush.bf16.msra.mxu2 %v7714_v13  ;;  %v7762_v17 = vld [vmem:[%s9410_s23 + $0x2f0] sm:$0xff] }
0x10e9   : > { %5401 = vmatpush.bf16.msrb.mxu3 %v7722_v18 }
0x10eb   : > { %5374 = vmatpush.bf16.msra.mxu1 %v7705_v19  ;;  %v7747_v19 = vld [vmem:[%s9410_s23 + $0x278] sm:$0xff] }
0x10ec   : > { %5416 = vmatpush.bf16.msrb.mxu0 %v7729_v20  ;;  %5388 = vmatpush.bf16.msra.mxu2 %v7713_v0  ;;  %v3348_v0 = vperm.slane %v10166_v45, 4 }
0x10ed   : > { %5402 = vmatpush.bf16.msrb.mxu3 %v7721_v21  ;;  %v7755_v21 = vld [vmem:[%s9410_s23 + $0x2b8] sm:$0xff] }
0x10ef   : > { %5375 = vmatpush.bf16.msra.mxu1 %v7704_v6 }
0x10f0   : > { %5417 = vmatpush.bf16.msrb.mxu0 %v7728_v22  ;;  %5389 = vmatpush.bf16.msra.mxu2 %v7712_v23  ;;  %v3351_v22 = vperm.slane %v10166_v45, 7  ;;  %v7737_v23 = vld [vmem:[%s9410_s23 + $0x228] sm:$0xff] }
0x10f1   : > { %5403 = vmatpush.bf16.msrb.mxu3 %v7720_v24  ;;  %v7761_v24 = vld [vmem:[%s9410_s23 + $0x2e8] sm:$0xff] }
0x10f3   : > { %5376 = vmatpush.bf16.msra.mxu1 %v7703_v25 }
0x10f4   : > { %5418 = vmatpush.bf16.msrb.mxu0 %v7727_v14  ;;  %5390 = vmatpush.bf16.msra.mxu2 %v7711_v27  ;;  %v7746_v14 = vld [vmem:[%s9410_s23 + $0x270] sm:$0xff] }
0x10f5   : > { %5404 = vmatpush.bf16.msrb.mxu3 %v7719_v31 }
0x10f7   : > { %5377 = vmatpush.bf16.msra.mxu1 %v7702_v26  ;;  %v7754_v26 = vld [vmem:[%s9410_s23 + $0x2b0] sm:$0xff] }
0x10f8   : > { %5419 = vmatpush.bf16.msrb.mxu0 %v7726_v32  ;;  %5391 = vmatpush.bf16.msra.mxu2 %v7710_v35 }
0x10f9   : > { %5405 = vmatpush.bf16.msrb.mxu3 %v7718_v36  ;;  %v7736_v36 = vld [vmem:[%s9410_s23 + $0x220] sm:$0xff] }
0x10fb   : > { %5378 = vmatpush.bf16.msra.mxu1 %v7701_v53  ;;  %v3349_v53 = vperm.slane %v10166_v45, 5 }
0x10fc   : > { %5420 = vmatpush.bf16.msrb.mxu0 %v7725_v38  ;;  %5392 = vmatpush.bf16.msra.mxu2 %v7709_v39 }
0x10fd   : > { %5406 = vmatpush.bf16.msrb.mxu3 %v7717_v40  ;;  %v7760_v40 = vld [vmem:[%s9410_s23 + $0x2e0] sm:$0xff] }
0x10fe   : > { %v4025_v63 = vpop.f32.mrf.mxu1 }
0x10ff   : > { %5379 = vmatpush.bf16.msra.mxu1 %v7700_v41  ;;  %v4067_v48 = vpop.f32.mrf.mxu0  ;;  %v4026_v52 = vadd.f32 %v4025_v63, %v3344_v2  ;;  %v3350_v41 = vperm.slane %v10166_v45, 6 }
0x1100   : > { %5421 = vmatpush.bf16.msrb.mxu0 %v7724_v42  ;;  %5393 = vmatpush.bf16.msra.mxu2 %v7708_v43  ;;  %v4068_v47 = vadd.f32 %v4067_v48, %v3347_v50  ;;  %v7745_v43 = vld [vmem:[%s9410_s23 + $0x268] sm:$0xff] }
0x1101   : > { %5407 = vmatpush.bf16.msrb.mxu3 %v7716_v44  ;;  %v4240_v58 = vmax.f32 %v4026_v52, 0.0  ;;  %v7753_v48 = vld [vmem:[%s9410_s23 + $0x2a8] sm:$0xff] }
0x1102   : > { %v4243_v60 = vmax.f32 %v4068_v47, 0.0  ;;  %v7759_v47 = vld [vmem:[%s9410_s23 + $0x2d8] sm:$0xff] }
0x1104   : > { %v4039_v51 = vpop.f32.mrf.mxu2 }
0x1105   : > { %v4053_v28 = vpop.f32.mrf.mxu3  ;;  %v4040_v62 = vadd.f32 %v4039_v51, %v3345_v55  ;;  %v7735_v51 = vld [vmem:[%s9410_s23 + $0x218] sm:$0xff] }
0x1106   : > { %v4027_v37 = vpop.f32.mrf.mxu1  ;;  %v4054_v29 = vadd.f32 %v4053_v28, %v3346_v57 }
0x1107   : > { %v4028_v56 = vadd.f32 %v4027_v37, %v3344_v2  ;;  %v4069_v54 = vpop.f32.mrf.mxu0  ;;  %v4241_v12 = vmax.f32 %v4040_v62, 0.0 }
0x1108   : > { %v4070_v30 = vadd.f32 %v4069_v54, %v3347_v50  ;;  %v4242_v13 = vmax.f32 %v4054_v29, 0.0 }
0x1109   : > { %v4256_v59 = vmax.f32 %v4028_v56, 0.0  ;;  %v7744_v56 = vld [vmem:[%s9410_s23 + $0x260] sm:$0xff] }
0x110a   : > { %v4259_v49 = vmax.f32 %v4070_v30, 0.0  ;;  %v7752_v30 = vld [vmem:[%s9410_s23 + $0x2a0] sm:$0xff] }
0x110b   : > { %v4529_v1 = vpack.c.bf16 %v4256_v59, %v4240_v58  ;;  %v7734_v59 = vld [vmem:[%s9410_s23 + $0x210] sm:$0xff] }
0x110c   : > { %v4532_v4 = vpack.c.bf16 %v4259_v49, %v4243_v60  ;;  %v4041_v5 = vpop.f32.mrf.mxu2 }
0x110d   : > { %v4042_v7 = vadd.f32 %v4041_v5, %v3345_v55  ;;  %v4055_v8 = vpop.f32.mrf.mxu3  ;;  %5324 = vmatmul.bf16.vlgmr.msrb.gmra.mxu1 %v4529_v1 }
0x110e   : > { %v4056_v9 = vadd.f32 %v4055_v8, %v3346_v57  ;;  %5366 = vmatmul.bf16.vlgmr.msra.gmra.mxu0 %v4532_v4  ;;  %5428 = vmatpush.bf16.msrb.mxu1 %v7739_v61  ;;  %v4081_v10 = vpop.f32.mrf.mxu1  ;;  %v7758_v61 = vld [vmem:[%s9410_s23 + $0x2d0] sm:$0xff]  ;;  %v7743_v4 = vld [vmem:[%s9410_s23 + $0x258] sm:$0xff] }
0x110f   : > { %v4257_v15 = vmax.f32 %v4042_v7, 0.0  ;;  %5470 = vmatpush.bf16.msra.mxu0 %v7763_v3  ;;  %v4123_v16 = vpop.f32.mrf.mxu0  ;;  %v4082_v27 = vadd.f32 %v4081_v10, %v3348_v0  ;;  %v10197_v3 = vld [vmem:[%s9404_s17 + $0x8] sm:$0xff]  ;;  %s10483_s17 = scalar_lea.vmem [#allocation31], %s9353_s27 }
0x1110   : > { %v4258_v18 = vmax.f32 %v4056_v9, 0.0  ;;  %v4124_v32 = vadd.f32 %v4123_v16, %v3351_v22  ;;  %v7751_v8 = vld [vmem:[%s9410_s23 + $0x298] sm:$0xff]  ;;  %v7733_v10 = vld [vmem:[%s9410_s23 + $0x208] sm:$0xff]  ;;  %v7742_v16 = vld [vmem:[%s9410_s23 + $0x250] sm:$0xff] }
0x1111   : > { %v4530_v20 = vpack.c.bf16 %v4257_v15, %v4241_v12  ;;  %v4244_v44 = vmax.f32 %v4082_v27, 0.0  ;;  %v7757_v12 = vld [vmem:[%s9410_s23 + $0x2c8] sm:$0xff]  ;;  %v3355_v15 = vperm.slane %v10197_v3, 3 }
0x1112   : > { %v4531_v6 = vpack.c.bf16 %v4258_v18, %v4242_v13  ;;  %5429 = vmatpush.bf16.msrb.mxu1 %v7738_v11  ;;  %v4247_v2 = vmax.f32 %v4124_v32, 0.0  ;;  %v3352_v11 = vperm.slane %v10197_v3, 0  ;;  %v7732_v18 = vld [vmem:[%s9410_s23 + $0x200] sm:$0xff] }
0x1113   : > { %5471 = vmatpush.bf16.msra.mxu0 %v7762_v17  ;;  %5338 = vmatmul.bf16.vlgmr.msrb.gmra.mxu2 %v4530_v20  ;;  %v7750_v17 = vld [vmem:[%s9410_s23 + $0x290] sm:$0xff] }
0x1114   : > { %5352 = vmatmul.bf16.vlgmr.msra.gmra.mxu3 %v4531_v6  ;;  %5442 = vmatpush.bf16.msrb.mxu2 %v7747_v19  ;;  %v4095_v25 = vpop.f32.mrf.mxu2 }
0x1115   : > { %5456 = vmatpush.bf16.msra.mxu3 %v7755_v21  ;;  %v4109_v31 = vpop.f32.mrf.mxu3  ;;  %v4096_v52 = vadd.f32 %v4095_v25, %v3349_v53  ;;  %v7771_v21 = vld [vmem:[%s9410_s23 + $0x338] sm:$0xff]  ;;  %v3353_v25 = vperm.slane %v10197_v3, 1 }
0x1116   : > { %5430 = vmatpush.bf16.msrb.mxu1 %v7737_v23  ;;  %v4083_v35 = vpop.f32.mrf.mxu1  ;;  %v4110_v37 = vadd.f32 %v4109_v31, %v3350_v41  ;;  %v7795_v23 = vld [vmem:[%s9410_s23 + $0x3f8] sm:$0xff]  ;;  %v7749_v31 = vld [vmem:[%s9410_s23 + $0x288] sm:$0xff] }
0x1117   : > { %5472 = vmatpush.bf16.msra.mxu0 %v7761_v24  ;;  %v4084_v38 = vadd.f32 %v4083_v35, %v3348_v0  ;;  %v4125_v39 = vpop.f32.mrf.mxu0  ;;  %v4245_v60 = vmax.f32 %v4096_v52, 0.0  ;;  %v7756_v0 = vld [vmem:[%s9410_s23 + $0x2c0] sm:$0xff]  ;;  %v7741_v24 = vld [vmem:[%s9410_s23 + $0x248] sm:$0xff] }
0x1118   : > { %v4126_v42 = vadd.f32 %v4125_v39, %v3351_v22  ;;  %5443 = vmatpush.bf16.msrb.mxu2 %v7746_v14  ;;  %v4246_v62 = vmax.f32 %v4110_v37, 0.0  ;;  %v7770_v39 = vld [vmem:[%s9410_s23 + $0x330] sm:$0xff]  ;;  %v7769_v37 = vld [vmem:[%s9410_s23 + $0x328] sm:$0xff] }
0x1119   : > { %v4260_v63 = vmax.f32 %v4084_v38, 0.0  ;;  %5457 = vmatpush.bf16.msra.mxu3 %v7754_v26  ;;  %v3354_v26 = vperm.slane %v10197_v3, 2 }
0x111a   : > { %v4263_v50 = vmax.f32 %v4126_v42, 0.0  ;;  %5431 = vmatpush.bf16.msrb.mxu1 %v7736_v36  ;;  %v7794_v42 = vld [vmem:[%s9410_s23 + $0x3f0] sm:$0xff] }
0x111b   : > { %v4533_v28 = vpack.c.bf16 %v4260_v63, %v4244_v44  ;;  %5473 = vmatpush.bf16.msra.mxu0 %v7760_v40 }
0x111c   : > { %v4536_v45 = vpack.c.bf16 %v4263_v50, %v4247_v2  ;;  %5444 = vmatpush.bf16.msrb.mxu2 %v7745_v43  ;;  %v4097_v55 = vpop.f32.mrf.mxu2  ;;  %v7740_v43 = vld [vmem:[%s9410_s23 + $0x240] sm:$0xff]  ;;  %v7779_v50 = vld [vmem:[%s9410_s23 + $0x378] sm:$0xff] }
0x111d   : > { %5458 = vmatpush.bf16.msra.mxu3 %v7753_v48  ;;  %v4098_v54 = vadd.f32 %v4097_v55, %v3349_v53  ;;  %v4111_v57 = vpop.f32.mrf.mxu3  ;;  %5380 = vmatmul.bf16.vlgmr.msra.gmra.mxu1 %v4533_v28  ;;  %v7748_v2 = vld [vmem:[%s9410_s23 + $0x280] sm:$0xff]  ;;  %v7787_v28 = vld [vmem:[%s9410_s23 + $0x3b8] sm:$0xff] }
0x111e   : > { %v4112_v58 = vadd.f32 %v4111_v57, %v3350_v41  ;;  %5422 = vmatmul.bf16.vlgmr.msrb.gmra.mxu0 %v4536_v45  ;;  %5432 = vmatpush.bf16.msrb.mxu1 %v7735_v51 }
0x111f   : > { %v4261_v49 = vmax.f32 %v4098_v54, 0.0  ;;  %5474 = vmatpush.bf16.msra.mxu0 %v7759_v47  ;;  %v4137_v29 = vpop.f32.mrf.mxu1 }
0x1120   : > { %v4262_v1 = vmax.f32 %v4112_v58, 0.0  ;;  %5445 = vmatpush.bf16.msrb.mxu2 %v7744_v56  ;;  %v4138_v19 = vadd.f32 %v4137_v29, %v3352_v11  ;;  %v7793_v56 = vld [vmem:[%s9410_s23 + $0x3e8] sm:$0xff]  ;;  %v7767_v29 = vld [vmem:[%s9410_s23 + $0x318] sm:$0xff] }
0x1121   : > { %v4534_v5 = vpack.c.bf16 %v4261_v49, %v4245_v60  ;;  %5459 = vmatpush.bf16.msra.mxu3 %v7752_v30  ;;  %v7778_v30 = vld [vmem:[%s9410_s23 + $0x370] sm:$0xff]  ;;  %v7768_v49 = vld [vmem:[%s9410_s23 + $0x320] sm:$0xff] }
0x1122   : > { %v4179_v7 = vpop.f32.mrf.mxu0  ;;  %v4535_v9 = vpack.c.bf16 %v4262_v1, %v4246_v62  ;;  %5433 = vmatpush.bf16.msrb.mxu1 %v7734_v59  ;;  %v4248_v35 = vmax.f32 %v4138_v19, 0.0  ;;  %v7786_v59 = vld [vmem:[%s9410_s23 + $0x3b0] sm:$0xff]  ;;  %v7777_v62 = vld [vmem:[%s9410_s23 + $0x368] sm:$0xff] }
0x1123   : > { %5475 = vmatpush.bf16.msra.mxu0 %v7758_v61  ;;  %5394 = vmatmul.bf16.vlgmr.msra.gmra.mxu2 %v4534_v5  ;;  %v4180_v6 = vadd.f32 %v4179_v7, %v3355_v15  ;;  %v7792_v61 = vld [vmem:[%s9410_s23 + $0x3e0] sm:$0xff]  ;;  %v7785_v1 = vld [vmem:[%s9410_s23 + $0x3a8] sm:$0xff]  ;;  %v7774_v19 = vld [vmem:[%s9410_s23 + $0x350] sm:$0xff] }
0x1124   : > { %5408 = vmatmul.bf16.vlgmr.msrb.gmra.mxu3 %v4535_v9  ;;  %5446 = vmatpush.bf16.msrb.mxu2 %v7743_v4  ;;  %v7791_v4 = vld [vmem:[%s9410_s23 + $0x3d8] sm:$0xff]  ;;  %v7776_v5 = vld [vmem:[%s9410_s23 + $0x360] sm:$0xff] }
0x1125   : > { %5460 = vmatpush.bf16.msra.mxu3 %v7751_v8  ;;  %v4151_v13 = vpop.f32.mrf.mxu2  ;;  %v4251_v53 = vmax.f32 %v4180_v6, 0.0  ;;  %v7784_v7 = vld [vmem:[%s9410_s23 + $0x3a0] sm:$0xff]  ;;  %v7766_v8 = vld [vmem:[%s9410_s23 + $0x310] sm:$0xff] }
0x1126   : > { %5434 = vmatpush.bf16.msrb.mxu1 %v7733_v10  ;;  %v4152_v40 = vadd.f32 %v4151_v13, %v3353_v25  ;;  %v7790_v10 = vld [vmem:[%s9410_s23 + $0x3d0] sm:$0xff]  ;;  %v3359_v13 = vperm.slane %v10197_v3, 7 }
0x1127   : > { %5476 = vmatpush.bf16.msra.mxu0 %v7757_v12  ;;  %v4139_v22 = vpop.f32.mrf.mxu1  ;;  %v7775_v12 = vld [vmem:[%s9410_s23 + $0x358] sm:$0xff] }
0x1128   : > { %v4165_v20 = vpop.f32.mrf.mxu3  ;;  %5447 = vmatpush.bf16.msrb.mxu2 %v7742_v16  ;;  %v4140_v14 = vadd.f32 %v4139_v22, %v3352_v11  ;;  %v4249_v45 = vmax.f32 %v4152_v40, 0.0  ;;  %v3356_v16 = vperm.slane %v10197_v3, 4  ;;  %v7764_v22 = vld [vmem:[%s9410_s23 + $0x300] sm:$0xff] }
0x1129   : > { %5461 = vmatpush.bf16.msra.mxu3 %v7750_v17  ;;  %v4166_v44 = vadd.f32 %v4165_v20, %v3354_v26  ;;  %v7765_v17 = vld [vmem:[%s9410_s23 + $0x308] sm:$0xff] }
0x112a   : > { %v4181_v27 = vpop.f32.mrf.mxu0  ;;  %5435 = vmatpush.bf16.msrb.mxu1 %v7732_v18  ;;  %v4264_v36 = vmax.f32 %v4140_v14, 0.0  ;;  %v7789_v18 = vld [vmem:[%s9410_s23 + $0x3c8] sm:$0xff]  ;;  %v3357_v14 = vperm.slane %v10197_v3, 5 }
0x112b   : > { %v4182_v32 = vadd.f32 %v4181_v27, %v3355_v15  ;;  %5477 = vmatpush.bf16.msra.mxu0 %v7756_v0  ;;  %v4250_v54 = vmax.f32 %v4166_v44, 0.0  ;;  %v7783_v15 = vld [vmem:[%s9410_s23 + $0x398] sm:$0xff]  ;;  %v7782_v0 = vld [vmem:[%s9410_s23 + $0x390] sm:$0xff] }
0x112c   : > { %5448 = vmatpush.bf16.msrb.mxu2 %v7741_v24  ;;  %v4537_v41 = vpack.c.bf16 %v4264_v36, %v4248_v35  ;;  %v7781_v36 = vld [vmem:[%s9410_s23 + $0x388] sm:$0xff] }
0x112d   : > { %v4267_v38 = vmax.f32 %v4182_v32, 0.0  ;;  %5462 = vmatpush.bf16.msra.mxu3 %v7749_v31  ;;  %v4153_v48 = vpop.f32.mrf.mxu2  ;;  %v3358_v32 = vperm.slane %v10197_v3, 6 }
0x112e   : > { %5484 = vmatpush.bf16.msra.mxu1 %v7771_v21  ;;  %v4154_v51 = vadd.f32 %v4153_v48, %v3353_v25  ;;  %v7788_v25 = vld [vmem:[%s9410_s23 + $0x3c0] sm:$0xff] }
0x112f   : > { %5526 = vmatpush.bf16.msrb.mxu0 %v7795_v23  ;;  %v4540_v63 = vpack.c.bf16 %v4267_v38, %v4251_v53  ;;  %5436 = vmatmul.bf16.vlgmr.msrb.gmra.mxu1 %v4537_v41 }
0x1130   : > { %v4167_v52 = vpop.f32.mrf.mxu3  ;;  %v4265_v55 = vmax.f32 %v4154_v51, 0.0  ;;  %5449 = vmatpush.bf16.msrb.mxu2 %v7740_v43  ;;  %v7772_v43 = vld [vmem:[%s9410_s23 + $0x340] sm:$0xff] }
0x1131   : > { %v4168_v47 = vadd.f32 %v4167_v52, %v3354_v26  ;;  %5478 = vmatmul.bf16.vlgmr.msra.gmra.mxu0 %v4540_v63  ;;  %5463 = vmatpush.bf16.msra.mxu3 %v7748_v2  ;;  %v7773_v26 = vld [vmem:[%s9410_s23 + $0x348] sm:$0xff]  ;;  %v7780_v2 = vld [vmem:[%s9410_s23 + $0x380] sm:$0xff]  ;;  %s10484_s23 = scalar_lea.vmem [#allocation32], %s9353_s27 }
0x1132   : > { %5485 = vmatpush.bf16.msra.mxu1 %v7770_v39  ;;  %v4538_v58 = vpack.c.bf16 %v4265_v55, %v4249_v45 }
0x1133   : > { %5527 = vmatpush.bf16.msrb.mxu0 %v7794_v42  ;;  %v4266_v57 = vmax.f32 %v4168_v47, 0.0 }
0x1134   : > { %5498 = vmatpush.bf16.msra.mxu2 %v7779_v50 }
0x1135   : > { %5512 = vmatpush.bf16.msrb.mxu3 %v7787_v28  ;;  %v4539_v60 = vpack.c.bf16 %v4266_v57, %v4250_v54  ;;  %5450 = vmatmul.bf16.vlgmr.msrb.gmra.mxu2 %v4538_v58 }
0x1136   : > { %5486 = vmatpush.bf16.msra.mxu1 %v7769_v37 }
0x1137   : > { %5528 = vmatpush.bf16.msrb.mxu0 %v7793_v56  ;;  %5464 = vmatmul.bf16.vlgmr.msra.gmra.mxu3 %v4539_v60 }
0x1138   : > { %5499 = vmatpush.bf16.msra.mxu2 %v7778_v30 }
0x1139   : > { %5513 = vmatpush.bf16.msrb.mxu3 %v7786_v59 }
0x113a   : > { %5487 = vmatpush.bf16.msra.mxu1 %v7768_v49 }
0x113b   : > { %5529 = vmatpush.bf16.msrb.mxu0 %v7792_v61  ;;  %v7940_v61 = vld [vmem:[%s10482_s26] ss:$0 sm:$0xff] }
0x113c   : > { %5500 = vmatpush.bf16.msra.mxu2 %v7777_v62 }
0x113d   : > { %5514 = vmatpush.bf16.msrb.mxu3 %v7785_v1 }
0x113e   : > { %5488 = vmatpush.bf16.msra.mxu1 %v7767_v29 }
0x113f   : > { %v4193_v9 = vpop.f32.mrf.mxu1  ;;  %5530 = vmatpush.bf16.msrb.mxu0 %v7791_v4 }
0x1140   : > { %5501 = vmatpush.bf16.msra.mxu2 %v7776_v5  ;;  %v4194_v21 = vadd.f32 %v4193_v9, %v3356_v16 }
0x1141   : > { %5515 = vmatpush.bf16.msrb.mxu3 %v7784_v7 }
0x1142   : > { %v4235_v11 = vpop.f32.mrf.mxu0  ;;  %5489 = vmatpush.bf16.msra.mxu1 %v7766_v8  ;;  %v4252_v53 = vmax.f32 %v4194_v21, 0.0 }
0x1143   : > { %5531 = vmatpush.bf16.msrb.mxu0 %v7790_v10  ;;  %v4236_v23 = vadd.f32 %v4235_v11, %v3359_v13 }
0x1144   : > { %5502 = vmatpush.bf16.msra.mxu2 %v7775_v12 }
0x1145   : > { %v4207_v20 = vpop.f32.mrf.mxu2  ;;  %5516 = vmatpush.bf16.msrb.mxu3 %v7783_v15  ;;  %v4255_v39 = vmax.f32 %v4236_v23, 0.0 }
0x1146   : > { %v4221_v6 = vpop.f32.mrf.mxu3  ;;  %5490 = vmatpush.bf16.msra.mxu1 %v7765_v17  ;;  %v4208_v41 = vadd.f32 %v4207_v20, %v3357_v14 }
0x1147   : > { %v4195_v24 = vpop.f32.mrf.mxu1  ;;  %5532 = vmatpush.bf16.msrb.mxu0 %v7789_v18  ;;  %v4222_v44 = vadd.f32 %v4221_v6, %v3358_v32 }
0x1148   : > { %v4196_v27 = vadd.f32 %v4195_v24, %v3356_v16  ;;  %5503 = vmatpush.bf16.msra.mxu2 %v7774_v19  ;;  %v4253_v52 = vmax.f32 %v4208_v41, 0.0 }
0x1149   : > { %5517 = vmatpush.bf16.msrb.mxu3 %v7782_v0  ;;  %v4254_v47 = vmax.f32 %v4222_v44, 0.0 }
0x114a   : > { %v4237_v31 = vpop.f32.mrf.mxu0  ;;  %v4268_v38 = vmax.f32 %v4196_v27, 0.0  ;;  %5491 = vmatpush.bf16.msra.mxu1 %v7764_v22 }
0x114b   : > { %v4238_v35 = vadd.f32 %v4237_v31, %v3359_v13  ;;  %5533 = vmatpush.bf16.msrb.mxu0 %v7788_v25 }
0x114c   : > { %v4541_v42 = vpack.c.bf16 %v4268_v38, %v4252_v53  ;;  %5504 = vmatpush.bf16.msra.mxu2 %v7773_v26 }
0x114d   : > { %v4271_v40 = vmax.f32 %v4238_v35, 0.0  ;;  %v4209_v48 = vpop.f32.mrf.mxu2  ;;  %5518 = vmatpush.bf16.msrb.mxu3 %v7781_v36 }
0x114e   : > { %v4210_v3 = vadd.f32 %v4209_v48, %v3357_v14  ;;  %v4223_v50 = vpop.f32.mrf.mxu3  ;;  %5492 = vmatmul.bf16.vlgmr.msra.gmra.mxu1 %v4541_v42 }
0x114f   : > { %v4544_v63 = vpack.c.bf16 %v4271_v40, %v4255_v39  ;;  %v4224_v51 = vadd.f32 %v4223_v50, %v3358_v32 }
0x1150   : > { %v4269_v28 = vmax.f32 %v4210_v3, 0.0  ;;  %5505 = vmatpush.bf16.msra.mxu2 %v7772_v43 }
0x1151   : > { %5534 = vmatmul.bf16.vlgmr.msrb.gmra.mxu0 %v4544_v63  ;;  %v4270_v37 = vmax.f32 %v4224_v51, 0.0  ;;  %5519 = vmatpush.bf16.msrb.mxu3 %v7780_v2 }
0x1152   : > { %v4542_v45 = vpack.c.bf16 %v4269_v28, %v4253_v52 }
0x1153   : > { %v4543_v55 = vpack.c.bf16 %v4270_v37, %v4254_v47 }
0x1154   : > { %5506 = vmatmul.bf16.vlgmr.msra.gmra.mxu2 %v4542_v45 }
0x1155   : > { %5520 = vmatmul.bf16.vlgmr.msrb.gmra.mxu3 %v4543_v55 }
0x118a   : > { %v5325_v56 = vpop.f32.mrf.mxu1 }
0x118b   : > { %v5367_v30 = vpop.f32.mrf.mxu0  ;;  %v5326_v1 = vadd.f32 %v7940_v61, %v5325_v56 }
0x1192   : > { %v5327_v58 = vpop.f32.mrf.mxu1 }
0x1193   : > { %v5369_v49 = vpop.f32.mrf.mxu0  ;;  %v5328_v10 = vadd.f32 %v7940_v61, %v5327_v58 }
0x1196   : > { %v5339_v54 = vpop.f32.mrf.mxu2 }
0x1197   : > { %v5353_v57 = vpop.f32.mrf.mxu3  ;;  %v5340_v29 = vadd.f32 %v5339_v54, %v5326_v1 }
0x1199   : > { %v5354_v8 = vadd.f32 %v5353_v57, %v5340_v29 }
0x119a   : > { %v5381_v62 = vpop.f32.mrf.mxu1 }
0x119b   : > { %v5423_v7 = vpop.f32.mrf.mxu0  ;;  %v5368_v11 = vadd.f32 %v5367_v30, %v5354_v8 }
0x119d   : > { %v5382_v16 = vadd.f32 %v5381_v62, %v5368_v11 }
0x119e   : > { %v5341_v59 = vpop.f32.mrf.mxu2 }
0x119f   : > { %v5355_v60 = vpop.f32.mrf.mxu3  ;;  %v5342_v12 = vadd.f32 %v5341_v59, %v5328_v10 }
0x11a1   : > { %v5356_v17 = vadd.f32 %v5355_v60, %v5342_v12 }
0x11a2   : > { %v5383_v9 = vpop.f32.mrf.mxu1 }
0x11a3   : > { %v5425_v18 = vpop.f32.mrf.mxu0  ;;  %v5370_v0 = vadd.f32 %v5369_v49, %v5356_v17 }
0x11a5   : > { %v5384_v6 = vadd.f32 %v5383_v9, %v5370_v0 }
0x11a6   : > { %v5395_v4 = vpop.f32.mrf.mxu2 }
0x11a7   : > { %v5409_v5 = vpop.f32.mrf.mxu3  ;;  %v5396_v19 = vadd.f32 %v5395_v4, %v5382_v16 }
0x11a9   : > { %v5410_v21 = vadd.f32 %v5409_v5, %v5396_v19 }
0x11ab   : > { %v5424_v23 = vadd.f32 %v5423_v7, %v5410_v21 }
0x11ac   : > { %v5437_v20 = vpop.f32.mrf.mxu1 }
0x11ad   : > { %v5438_v31 = vadd.f32 %v5437_v20, %v5424_v23  ;;  %v7941_v20 = vld [vmem:[%s10483_s17] ss:$0 sm:$0xff] }
0x11ae   : > { %v5397_v15 = vpop.f32.mrf.mxu2  ;;  %v5479_v14 = vpop.f32.mrf.mxu0 }
0x11af   : > { %v5411_v13 = vpop.f32.mrf.mxu3  ;;  %v5398_v24 = vadd.f32 %v5397_v15, %v5384_v6  ;;  %v7942_v6 = vld [vmem:[%s10484_s23] ss:$0 sm:$0xff] }
0x11b1   : > { %v5412_v26 = vadd.f32 %v5411_v13, %v5398_v24 }
0x11b3   : > { %v5426_v35 = vadd.f32 %v5425_v18, %v5412_v26 }
0x11b4   : > { %v5439_v27 = vpop.f32.mrf.mxu1 }
0x11b5   : > { %v5440_v41 = vadd.f32 %v5439_v27, %v5426_v35 }
0x11b6   : > { %v5481_v39 = vpop.f32.mrf.mxu0 }
0x11b8   : > { %v5451_v22 = vpop.f32.mrf.mxu2 }
0x11b9   : > { %v5452_v32 = vadd.f32 %v5451_v22, %v5438_v31 }
0x11ba   : > { %v5465_v25 = vpop.f32.mrf.mxu3 }
0x11bb   : > { %v5466_v53 = vadd.f32 %v5465_v25, %v5452_v32 }
0x11bd   : > { %v5480_v43 = vadd.f32 %v5479_v14, %v5466_v53 }
0x11c0   : > { %v5453_v36 = vpop.f32.mrf.mxu2 }
0x11c1   : > { %v5454_v42 = vadd.f32 %v5453_v36, %v5440_v41 }
0x11c2   : > { %v5467_v38 = vpop.f32.mrf.mxu3 }
0x11c3   : > { %v5468_v48 = vadd.f32 %v5467_v38, %v5454_v42 }
0x11c5   : > { %v5482_v28 = vadd.f32 %v5481_v39, %v5468_v48 }
0x11cb   : > { %v5493_v40 = vpop.f32.mrf.mxu1 }
0x11cc   : > { %v5494_v44 = vadd.f32 %v5493_v40, %v5480_v43 }
0x11ce   : > { %v5535_v50 = vpop.f32.mrf.mxu0 }
0x11d3   : > { %v5495_v52 = vpop.f32.mrf.mxu1 }
0x11d4   : > { %v5496_v37 = vadd.f32 %v5495_v52, %v5482_v28 }
0x11d6   : > { %v5537_v30 = vpop.f32.mrf.mxu0 }
0x11d7   : > { %v5507_v63 = vpop.f32.mrf.mxu2 }
0x11d8   : > { %v5508_v2 = vadd.f32 %v5507_v63, %v5494_v44  ;;  %v5521_v3 = vpop.f32.mrf.mxu3 }
0x11da   : > { %v5522_v51 = vadd.f32 %v5521_v3, %v5508_v2 }
0x11dc   : > { %v5536_v47 = vadd.f32 %v5535_v50, %v5522_v51 }
0x11de   : > { %v5540_v45 = vadd.f32 %v5536_v47, %v9954_v33 }
0x11df   : > { %v5509_v55 = vpop.f32.mrf.mxu2 }
0x11e0   : > { %v5510_v56 = vadd.f32 %v5509_v55, %v5496_v37  ;;  %5544 = vadd.xlane.f32.xlu1 %v5540_v45  ;;  %v5523_v54 = vpop.f32.mrf.mxu3 }
0x11e2   : > { %v5524_v57 = vadd.f32 %v5523_v54, %v5510_v56 }
0x11e4   : > { %v5538_v58 = vadd.f32 %v5537_v30, %v5524_v57 }
0x11e6   : > { %v5541_v59 = vadd.f32 %v5538_v58, %v9956_v34 }
0x11e8   : > { %5546 = vadd.xlane.f32.xlu1 %v5541_v59 }
0x1253   : > { %v5545_v60 = vpop.xlane.xlu1 %5544 }
0x1254   : > { %v5548_v49 = vmul.f32 %v5545_v60, %v9662_v46 }
0x1256   : > { %v5550_v61 = vsub.f32 %v5540_v45, %v5548_v49 }
0x1258   : > { %v5552_v62 = vmul.f32 %v5550_v61, %v5550_v61 }
0x125a   : > { %5554 = vadd.xlane.f32.xlu1 %v5552_v62 }
0x125b   : > { %v5547_v1 = vpop.xlane.xlu1 %5546 }
0x125c   : > { %v5549_v29 = vmul.f32 %v5547_v1, %v9662_v46 }
0x125e   : > { %v5551_v33 = vsub.f32 %v5541_v59, %v5549_v29 }
0x1260   : > { %v5553_v4 = vmul.f32 %v5551_v33, %v5551_v33 }
0x1262   : > { %5556 = vadd.xlane.f32.xlu2 %v5553_v4 }
0x12cd   : > { %v5555_v5 = vpop.xlane.xlu1 %5554 }
0x12ce   : > { %v5558_v7 = vmul.f32 %v5555_v5, %v9662_v46 }
0x12d0   : > { %v5560_v8 = vadd.f32 1e-05, %v5558_v7 }
0x12d2   : > { %8017 = vrsqrt.f32 %v5560_v8  ;;  %vm5568_vm3 = vweird.f32 %v5560_v8 }
0x12d5   : > { %v5557_v34 = vpop.xlane.xlu2 %5556 }
0x12d6   : > { %v5559_v9 = vmul.f32 %v5557_v34, %v9662_v46 }
0x12d8   : > { %v8018_v10 = vpop.eup %8017  ;;  %v5561_v11 = vadd.f32 1e-05, %v5559_v9 }
0x12d9   : > { %v5563_v12 = vmul.f32 %v8018_v10, %v5560_v8  ;;  %vm5569_vm2 = vweird.f32 %v8018_v10 }
0x12da   : > { %8019 = vrsqrt.f32 %v5561_v11  ;;  %vm5570_vm4 = vmor %vm5568_vm3, %vm5569_vm2  ;;  %vm5578_vm6 = vweird.f32 %v5561_v11 }
0x12db   : > { %v5564_v15 = vmul.f32 %v8018_v10, %v5563_v12 }
0x12dd   : > { %v5565_v16 = vmul.f32 0.5, %v5564_v15 }
0x12df   : > { %v5566_v17 = vsub.f32 1.5, %v5565_v16 }
0x12e0   : > { %v8020_v13 = vpop.eup %8019 }
0x12e1   : > { %v5567_v18 = vmul.f32 %v8018_v10, %v5566_v17  ;;  %v5573_v19 = vmul.f32 %v8020_v13, %v5561_v11  ;;  %vm5579_vm5 = vweird.f32 %v8020_v13 }
0x12e2   : > { %vm5580_vm7 = vmor %vm5578_vm6, %vm5579_vm5 }
0x12e3   : > { %v5571_v0 = vsel %vm5570_vm4, %v8018_v10, %v5567_v18  ;;  %v5574_v21 = vmul.f32 %v8020_v13, %v5573_v19 }
0x12e4   : > { %v5582_v22 = vmul.f32 %v5571_v0, %v5550_v61 }
0x12e5   : > { %v5575_v23 = vmul.f32 0.5, %v5574_v21 }
0x12e6   : > { %v5587_v24 = vmul.f32 %v7941_v20, %v5582_v22 }
0x12e7   : > { %v5576_v25 = vsub.f32 1.5, %v5575_v23 }
0x12e8   : > { %v5592_v14 = vadd.f32 %v7942_v6, %v5587_v24 }
0x12e9   : > { %v5577_v27 = vmul.f32 %v8020_v13, %v5576_v25 }
0x12ea   : > { %5594 = vst [vmem:[#allocation2] sm:$0xff] %v5592_v14 }
0x12eb   : > { %v5581_v31 = vsel %vm5580_vm7, %v8020_v13, %v5577_v27 }
0x12ec   : > { %v5583_v26 = vmul.f32 %v5581_v31, %v5551_v33 }
0x12ee   : > { %v5588_v32 = vmul.f32 %v7941_v20, %v5583_v26  ;;  %5599 = sbr.rel (%p7481_p5) target bundleno = 5269 (0x1495), region = 220 }
0x12f0   : > { %v5593_v35 = vadd.f32 %v7942_v6, %v5588_v32 }
0x12f2   : > { %5595 = vst [vmem:[#allocation2 + $0x8] sm:$0xff] %v5593_v35 }
0x12f3   : > { %5602 = vadd.xlane.f32.xlu0 %v5592_v14  ;;  %v5709_v44 = vld [vmem:[%s10486_s29 + $0x78] sm:$0xff]  ;;  %v5708_v63 = vld [vmem:[%s10486_s29 + $0x70] sm:$0xff]  ;;  %v5707_v48 = vld [vmem:[%s10486_s29 + $0x68] sm:$0xff]  ;;  %v8785_v34 = vmov 8.0   ;;  %vm5692_vm15 = vcmask 1040384   ;;  %vm5668_vm0 = vcmask 7168  }
0x12f4   : > { %5714 = vmatpush.msra.mxu0 %v5709_v44  ;;  %v5706_v2 = vld [vmem:[%s10486_s29 + $0x60] sm:$0xff]  ;;  %v5705_v3 = vld [vmem:[%s10486_s29 + $0x58] sm:$0xff]  ;;  %v5704_v50 = vld [vmem:[%s10486_s29 + $0x50] sm:$0xff]  ;;  %vm5734_vm1 = vcmask 41984  }
0x12f5   : > { %v5703_v51 = vld [vmem:[%s10486_s29 + $0x48] sm:$0xff]  ;;  %v5702_v28 = vld [vmem:[%s10486_s29 + $0x40] sm:$0xff]  ;;  %v5701_v37 = vld [vmem:[%s10486_s29 + $0x38] sm:$0xff] }
0x12f6   : > { %5715 = vmatpush.msra.mxu0 %v5708_v63  ;;  %v5700_v55 = vld [vmem:[%s10486_s29 + $0x30] sm:$0xff]  ;;  %v5699_v56 = vld [vmem:[%s10486_s29 + $0x28] sm:$0xff]  ;;  %v5698_v57 = vld [vmem:[%s10486_s29 + $0x20] sm:$0xff] }
0x12f7   : > { %v5697_v58 = vld [vmem:[%s10486_s29 + $0x18] sm:$0xff]  ;;  %v5696_v61 = vld [vmem:[%s10486_s29 + $0x10] sm:$0xff]  ;;  %v5694_v29 = vld [vmem:[%s10486_s29] sm:$0xff] }
0x12f8   : > { %5716 = vmatpush.msra.mxu0 %v5707_v48  ;;  %v8021_v8 = vld [vmem:[#allocation34] ss:$0 sm:$0xff]  ;;  %v8022_v12 = vld [vmem:[#allocation35] ss:$0 sm:$0xff]  ;;  %v8023_v17 = vld [vmem:[#allocation37] ss:$0 sm:$0xff] }
0x12fa   : > { %5717 = vmatpush.msra.mxu0 %v5706_v2 }
0x12fb   : > { %5604 = vadd.xlane.f32.xlu0 %v5593_v35 }
0x12fc   : > { %5718 = vmatpush.msra.mxu0 %v5705_v3 }
0x12fe   : > { %5719 = vmatpush.msra.mxu0 %v5704_v50  ;;  %v8024_v50 = vld [vmem:[#allocation4] ss:$0 sm:$0xff] }
0x1300   : > { %5720 = vmatpush.msra.mxu0 %v5703_v51 }
0x1302   : > { %5721 = vmatpush.msra.mxu0 %v5702_v28 }
0x1304   : > { %5722 = vmatpush.msra.mxu0 %v5701_v37  ;;  %v8025_v37 = vld [vmem:[#allocation38] ss:$0 sm:$0xff] }
0x1306   : > { %5723 = vmatpush.msra.mxu0 %v5700_v55 }
0x1308   : > { %5724 = vmatpush.msra.mxu0 %v5699_v56 }
0x130a   : > { %5725 = vmatpush.msra.mxu0 %v5698_v57 }
0x130c   : > { %5726 = vmatpush.msra.mxu0 %v5697_v58 }
0x130e   : > { %5727 = vmatpush.msra.mxu0 %v5696_v61 }
0x1366   : > { %v5603_v36 = vpop.xlane.xlu0 %5602 }
0x1367   : > { %v5606_v53 = vmul.f32 %v5603_v36, %v9662_v46 }
0x1369   : > { %v10265_v38 = vsub.f32 %v5592_v14, %v5606_v53 }
0x136b   : > { %v5610_v39 = vmul.f32 %v10265_v38, %v10265_v38 }
0x136d   : > { %5612 = vadd.xlane.f32.xlu1 %v5610_v39 }
0x136e   : > { %v5605_v40 = vpop.xlane.xlu0 %5604 }
0x136f   : > { %v5607_v41 = vmul.f32 %v5605_v40, %v9662_v46 }
0x1371   : > { %v10270_v42 = vsub.f32 %v5593_v35, %v5607_v41 }
0x1373   : > { %v5611_v43 = vmul.f32 %v10270_v42, %v10270_v42 }
0x1375   : > { %5614 = vadd.xlane.f32.xlu1 %v5611_v43 }
0x13e0   : > { %v5613_v52 = vpop.xlane.xlu1 %5612 }
0x13e1   : > { %v5616_v47 = vmul.f32 %v5613_v52, %v9662_v46 }
0x13e3   : > { %v5618_v45 = vadd.f32 1e-05, %v5616_v47 }
0x13e5   : > { %8026 = vrsqrt.f32 %v5618_v45  ;;  %vm5626_vm9 = vweird.f32 %v5618_v45 }
0x13e8   : > { %v5615_v54 = vpop.xlane.xlu1 %5614 }
0x13e9   : > { %v5617_v30 = vmul.f32 %v5615_v54, %v9662_v46  ;;  %v5695_v46 = vld [vmem:[%s10486_s29 + $0x8] sm:$0xff] }
0x13ea   : > { %5728 = vmatpush.msra.mxu0 %v5695_v46 }
0x13eb   : > { %v8027_v59 = vpop.eup %8026  ;;  %v5619_v60 = vadd.f32 1e-05, %v5617_v30 }
0x13ec   : > { %v5621_v49 = vmul.f32 %v8027_v59, %v5618_v45  ;;  %vm5627_vm8 = vweird.f32 %v8027_v59  ;;  %5729 = vmatpush.msra.mxu0 %v5694_v29 }
0x13ed   : > { %8028 = vrsqrt.f32 %v5619_v60  ;;  %vm5628_vm10 = vmor %vm5626_vm9, %vm5627_vm8  ;;  %vm5636_vm12 = vweird.f32 %v5619_v60 }
0x13ee   : > { %v5622_v62 = vmul.f32 %v8027_v59, %v5621_v49  ;;  %8030 = vrcp.f32 %v8785_v34 }
0x13f0   : > { %v5623_v1 = vmul.f32 0.5, %v5622_v62 }
0x13f2   : > { %v5624_v33 = vsub.f32 1.5, %v5623_v1 }
0x13f3   : > { %v8029_v4 = vpop.eup %8028 }
0x13f4   : > { %v5625_v5 = vmul.f32 %v8027_v59, %v5624_v33  ;;  %v5631_v7 = vmul.f32 %v8029_v4, %v5619_v60  ;;  %vm5637_vm11 = vweird.f32 %v8029_v4  ;;  %v8031_v18 = vpop.eup %8030 }
0x13f5   : > { %vm5638_vm13 = vmor %vm5636_vm12, %vm5637_vm11  ;;  %v5678_v22 = vmul.f32 8.0, %v8031_v18  ;;  %vm5682_vm14 = vweird.f32 %v8031_v18 }
0x13f6   : > { %v5629_v9 = vsel %vm5628_vm10, %v8027_v59, %v5625_v5  ;;  %v5632_v10 = vmul.f32 %v8029_v4, %v5631_v7 }
0x13f7   : > { %v5640_v11 = vmul.f32 %v5629_v9, %v10265_v38  ;;  %v5679_v27 = vsub.f32 1.0, %v5678_v22 }
0x13f8   : > { %v5633_v15 = vmul.f32 0.5, %v5632_v10 }
0x13f9   : > { %v5645_v16 = vmul.f32 %v8021_v8, %v5640_v11  ;;  %v5680_v36 = vmul.f32 %v8031_v18, %v5679_v27 }
0x13fa   : > { %v5634_v13 = vsub.f32 1.5, %v5633_v15 }
0x13fb   : > { %v5650_v19 = vadd.f32 %v8022_v12, %v5645_v16  ;;  %v5681_v40 = vadd.f32 %v8031_v18, %v5680_v36 }
0x13fc   : > { %v5635_v20 = vmul.f32 %v8029_v4, %v5634_v13 }
0x13fd   : > { %v5656_v0 = vmul.f32 %v8023_v17, %v5650_v19  ;;  %v5671_v21 = vrot.slane %v5650_v19, 4 }
0x13fe   : > { %v5639_v6 = vsel %vm5638_vm13, %v8029_v4, %v5635_v20 }
0x13ff   : > { %v5641_v23 = vmul.f32 %v5639_v6, %v10270_v42  ;;  %v5672_v24 = vadd.f32 %v5671_v21, %v5650_v19  ;;  %5658 = vadd.xlane.f32.xlu2 %v5656_v0  ;;  %v5683_v42 = vsel %vm5682_vm14, %v8031_v18, %v5681_v40 }
0x1401   : > { %v5646_v25 = vmul.f32 %v8021_v8, %v5641_v23  ;;  %v5673_v14 = vrot.slane %v5672_v24, 2 }
0x1403   : > { %v5651_v31 = vadd.f32 %v8022_v12, %v5646_v25  ;;  %v5674_v35 = vadd.f32 %v5673_v14, %v5672_v24 }
0x1405   : > { %v5657_v26 = vmul.f32 %v8023_v17, %v5651_v31  ;;  %v5685_v32 = vrot.slane %v5651_v31, 4  ;;  %v5675_v38 = vrot.slane %v5674_v35, 1 }
0x1407   : > { %v5686_v53 = vadd.f32 %v5685_v32, %v5651_v31  ;;  %5660 = vadd.xlane.f32.xlu2 %v5657_v26  ;;  %v5676_v43 = vadd.f32 %v5675_v38, %v5674_v35 }
0x1409   : > { %v5687_v39 = vrot.slane %v5686_v53, 2  ;;  %v5684_v48 = vmul.f32 %v5683_v42, %v5676_v43 }
0x140b   : > { %v5688_v41 = vadd.f32 %v5687_v39, %v5686_v53 }
0x140d   : > { %v5689_v44 = vrot.slane %v5688_v41, 1 }
0x140f   : > { %v5690_v63 = vadd.f32 %v5689_v44, %v5688_v41 }
0x1411   : > { %v5691_v2 = vmul.f32 %v5690_v63, %v5683_v42 }
0x1413   : > { %v5693_v3 = vsel %vm5692_vm15, %v5684_v48, %v5691_v2 }
0x1414   : > { %5730 = vmatmul.f32.vlgmr.msra.gmra.mxu0 %v5693_v3 }
0x1472   : > { %v5659_v51 = vpop.xlane.xlu2 %5658 }
0x1473   : > { %v5666_v52 = vadd.f32 %v8024_v50, %v5659_v51 }
0x1475   : > { %5669 = vst.msk [vmem:[%s10487_s13] sm:$0xff] %vm5668_vm0, %v5666_v52 }
0x147a   : > { %v5661_v28 = vpop.xlane.xlu2 %5660 }
0x147b   : > { %v5667_v47 = vadd.f32 %v8024_v50, %v5661_v28 }
0x147d   : > { %5670 = vst.msk [vmem:[%s10487_s13 + $0x8] sm:$0xff] %vm5668_vm0, %v5667_v47 }
0x1491   : > { %v5731_v45 = vpop.f32.mrf.mxu0 }
0x1492   : > { %v5732_v55 = vadd.f32 %v8025_v37, %v5731_v45 }
0x1494   : > { %5735 = vst.msk [vmem:[#allocation40] sm:$0x3] %vm5734_vm1, %v5732_v55 }
0x1495 PF: > { %s10488_s17 = sld [smem:[#allocation56_spill]]  ;;  %s8786_s23 = smov [#allocation40]  }
0x1496   : > { %s5745_s22 = sshll.u32 %s8786_s23, 4  ;;  %s10489_s9 = sld [smem:[#allocation81_spill]]  ;;  %s5746_s22 = int_to_ptr.vmem [resolvable:$true] %s5745_s22 }
0x149b   : > { %p7879_p8 = scmp.eq.s32.totalorder %s10488_s17, 5 }
0x149c   : > { %s5747_s11 = sshll.u32 %s10489_s9, 4  ;;  %s5748_s11 = int_to_ptr.hbm [resolvable:$true] %s5747_s11 }
0x149d   : > { %7855 = dma.vmem_to_hbm [thread:$0]  (%p7879_p8), %s5746_s22, 32, %s5748_s11, [#allocation7]  }
0x149e   : > { %8753 = dma.done.wait (%p7879_p8), [#allocation7], 32  }
0x149f   : > { %8755 = vsyncadd (%p7879_p8), [#allocation7], 4294967264 }
0x14a0 PF: > { %s10490_s9 = sld [smem:[#allocation57_spill]]  ;;  %s10493_s23 = smov %s8762_s8 }
0x14a1   : > { %s10491_s10 = sld [smem:[#allocation55_spill]] }
0x14a2   : > { %s10492_s30 = sld [smem:[#allocation58_spill]] }
0x14a6   : > { %p70_p9 = scmp.ge.s32.totalorder %s10490_s9, 8  }
0x14a7   : > { %s10494_s8 = smov %s10491_s10 }
0x14a8   :  { %72 = sbr.rel (!%p70_p9) target bundleno = 47 (0x2f), region = 401 }
0x14ad   :  { %5764 = vsyncpa [#allocation6], 1 }
0x14ae   :  { %5766 = vsyncpa [#allocation6 + $0x1], 1 }
0x14af   :  { %5767 = vsyncpa [#allocation9], 1 }
0x14b0   :  { %5769 = vsyncpa [#allocation9 + $0x1], 1 }
0x14b1   :  { %5770 = vsyncpa [#allocation12], 1 }
0x14b2   :  { %5772 = vsyncpa [#allocation12 + $0x1], 1 }
0x14b3   :  { %5773 = vsyncpa [#allocation15], 1 }
0x14b4   :  { %5775 = vsyncpa [#allocation15 + $0x1], 1 }
0x14b5   :  { %5776 = vsyncpa [#allocation18], 1 }
0x14b6   :  { %5778 = vsyncpa [#allocation18 + $0x1], 1 }
0x14b7   :  { %5779 = vsyncpa [#allocation21], 1 }
0x14b8   :  { %5781 = vsyncpa [#allocation21 + $0x1], 1 }
0x14b9   :  { %5782 = vsyncpa [#allocation24], 1 }
0x14ba   :  { %5784 = vsyncpa [#allocation24 + $0x1], 1 }
0x14bb   :  { %5785 = vsyncpa [#allocation27], 1 }
0x14bc   :  { %5787 = vsyncpa [#allocation27 + $0x1], 1 }
0x14bd   :  { %5788 = vsyncpa [#allocation30], 1 }
0x14be   :  { %5790 = vsyncpa [#allocation30 + $0x1], 1 }
0x14bf   :  { %5791 = vsyncpa [#allocation33], 1 }
0x14c0   :  { %5793 = vsyncpa [#allocation33 + $0x1], 1 }
0x14c1   :  { %5794 = vsyncpa [#allocation36], 1 }
0x14c2   :  { %5795 = vsyncpa [#allocation39], 1 }
0x14c3   :  { %5796 = vsyncpa [#allocation7], 1 }
0x14c4   :  { %5798 = vsyncpa [#allocation7 + $0x1], 1 }

// kernel: variable_input_nn_forward.2
= control target key start
LH: loop header
LB: loop body
LE: loop exit
PB: predicated region body
PF: predicated region fallthrough
CT: control target
= control target key end

     0   :  { %s10122_s0 = inlined_call_operand.hbm [shape: f32[2,64], index: 0, kind: input, shape index: {}]   ;;  %s10123_s1 = inlined_call_operand.hbm [shape: f32[16,48], index: 1, kind: input, shape index: {}]   ;;  %s10124_s2 = inlined_call_operand.hbm [shape: bf16[64,128], index: 2, kind: input, shape index: {}]   ;;  %s10125_s3 = inlined_call_operand.hbm [shape: f32[1,128], index: 3, kind: input, shape index: {}]   ;;  %s10126_s4 = inlined_call_operand.hbm [shape: bf16[48,128], index: 4, kind: input, shape index: {}]   ;;  %s10127_s5 = inlined_call_operand.hbm [shape: f32[1,128], index: 5, kind: input, shape index: {}]   ;;  %s10128_s6 = inlined_call_operand.hbm [shape: bf16[2,128,384], index: 6, kind: input, shape index: {}]   ;;  %s10129_s7 = inlined_call_operand.hbm [shape: f32[2,1,384], index: 7, kind: input, shape index: {}]   ;;  %s10130_s8 = inlined_call_operand.hbm [shape: bf16[2,128,128], index: 8, kind: input, shape index: {}]   ;;  %s10131_s9 = inlined_call_operand.hbm [shape: f32[2,1,128], index: 9, kind: input, shape index: {}]   ;;  %s10132_s10 = inlined_call_operand.hbm [shape: bf16[2,128,2048], index: 10, kind: input, shape index: {}]   ;;  %s10133_s11 = inlined_call_operand.hbm [shape: f32[2,1,2048], index: 11, kind: input, shape index: {}]   ;;  %s10134_s12 = inlined_call_operand.hbm [shape: bf16[2,2048,128], index: 12, kind: input, shape index: {}]   ;;  %s10135_s13 = inlined_call_operand.hbm [shape: f32[2,1,128], index: 13, kind: input, shape index: {}]   ;;  %s10136_s14 = inlined_call_operand.hbm [shape: f32[2,1,128], index: 14, kind: input, shape index: {}]   ;;  %s10137_s15 = inlined_call_operand.hbm [shape: f32[2,1,128], index: 15, kind: input, shape index: {}]   ;;  %s10138_s16 = inlined_call_operand.hbm [shape: f32[2,1,128], index: 16, kind: input, shape index: {}]   ;;  %s10139_s17 = inlined_call_operand.hbm [shape: f32[2,1,128], index: 17, kind: input, shape index: {}]   ;;  %s10140_s18 = inlined_call_operand.hbm [shape: f32[1,128], index: 18, kind: input, shape index: {}]   ;;  %s10141_s19 = inlined_call_operand.hbm [shape: f32[1,128], index: 19, kind: input, shape index: {}]   ;;  %s10142_s20 = inlined_call_operand.hbm [shape: bf16[6,128,256], index: 20, kind: input, shape index: {}]   ;;  %s10143_s21 = inlined_call_operand.hbm [shape: f32[6,1,256], index: 21, kind: input, shape index: {}]   ;;  %s10144_s22 = inlined_call_operand.vmem [shape: f32[16,128], index: 22, kind: output, shape index: {0}]   ;;  %s10145_s23 = inlined_call_operand.vmem [shape: bf16[6,16,256], index: 23, kind: output, shape index: {1}]  }
   0x1   :  { %10169 = sst [smem:[#allocation46_spill]] %s10122_s0 }
   0x2   :  { %10170 = sst [smem:[#allocation47_spill]] %s10123_s1 }
   0x3   :  { %10171 = sst [smem:[#allocation48_spill]] %s10124_s2 }
   0x4   :  { %10172 = sst [smem:[#allocation49_spill]] %s10125_s3 }
   0x5   :  { %10173 = sst [smem:[#allocation50_spill]] %s10126_s4 }
   0x6   :  { %10174 = sst [smem:[#allocation51_spill]] %s10127_s5 }
   0x7   :  { %10175 = sst [smem:[#allocation52_spill]] %s10128_s6 }
   0x8   :  { %10176 = sst [smem:[#allocation53_spill]] %s10129_s7 }
   0x9   :  { %10177 = sst [smem:[#allocation54_spill]] %s10136_s14 }
   0xa   :  { %10178 = sst [smem:[#allocation55_spill]] %s10137_s15 }
   0xb   :  { %10179 = sst [smem:[#allocation56_spill]] %s10138_s16 }
   0xc   :  { %10180 = sst [smem:[#allocation57_spill]] %s10139_s17 }
   0xd   :  { %10181 = sst [smem:[#allocation58_spill]] %s10140_s18 }
   0xe   :  { %10182 = sst [smem:[#allocation59_spill]] %s10141_s19 }
   0xf   :  { %10183 = sst [smem:[#allocation60_spill]] %s10144_s22 }
  0x10   :  { %10184 = sst [smem:[#allocation61_spill]] %s10145_s23 }
  0x11   :  { %29 = vsyncpa [#allocation5], 0 }
  0x12   :  { %30 = vsyncpa [#allocation7], 0 }
  0x13   :  { %31 = vsyncpa [#allocation10], 0 }
  0x14   :  { %32 = vsyncpa [#allocation13], 0 }
  0x15   :  { %33 = vsyncpa [#allocation30], 0  ;;  %s8994_s4 = smov 0   ;;  %s8996_s30 = smov 0  }
  0x16   :  { %s8998_s24 = smov 0   ;;  %s9000_s25 = smov 0  }
  0x17 LB: > { %10185 = sst [smem:[#allocation40_spill]] %s8839_s30  ;;  %s9013_s5 = sadd.s32 4294967295, %s8847_s25   ;;  %s8847_s25 = sphi %s9000_s25, %s10225_s25   ;;  %s8843_s24 = sphi %s8998_s24, %s10229_s24   ;;  %s8839_s30 = sphi %s8996_s30, %s10228_s30   ;;  %s8835_s4 = sphi %s8994_s4, %s10226_s4  }
  0x18   : > { %10186 = sst [smem:[#allocation41_spill]] %s9013_s5  ;;  %s9016_s1 = sadd.s32 1, %s8847_s25  }
  0x19   : > { %10187 = sst [smem:[#allocation42_spill]] %s9016_s1  ;;  %s169_s26 = ssub.s32 %s8847_s25, %s9016_s1 }
  0x1a   : > { %s172_s2 = sadd.s32 1, %s8843_s24  ;;  %p170_p0 = scmp.eq.s32.totalorder %s169_s26, 0 }
  0x1b   : > { %p179_p1 = scmp.ne.s32.totalorder %s8843_s24, %s8839_s30  ;;  %p180_p2 = scmp.eq.s32.totalorder %s8847_s25, 0 }
  0x1c   : > { %p185_p3 = scmp.ne.s32.totalorder %s8839_s30, %s8835_s4  ;;  %p186_p5 = scmp.eq.s32.totalorder %s9013_s5, 0 }
  0x1d   : > { %s9026_s6 = scalar_select %p170_p0, %s8843_s24, %s172_s2  }
  0x1e   : > { %p9028_p4 = por %p180_p2, %p179_p1  ;;  %p5874_p6 = scmp.ge.s32.totalorder %s8847_s25, 1 }
  0x1f   : > { %10188 = sst [smem:[#allocation43_spill]] %s9026_s6  ;;  %p608_p7 = scmp.lt.s32.totalorder %s8847_s25, 3 }
  0x20   : > { %p9037_p8 = por %p186_p5, %p185_p3  ;;  %p5875_p9 = scmp.ne.s32.totalorder %s9013_s5, 0 }
  0x21   : > { %p9042_p10 = pnand %p5874_p6, %p608_p7  ;;  %s10194_s0 = sld [smem:[#allocation47_spill]] }
  0x22   : > { %s10190_s7 = scalar_select %p9037_p8, 1, 0 }
  0x23   : > { %s10192_s28 = scalar_select %p9042_p10, 1, 0 }
  0x24   : > { %10191 = sst [smem:[#allocation44_spill]] %s10190_s7  ;;  %p7981_p11 = pneg %p9042_p10 }
  0x25   : > { %10193 = sst [smem:[#allocation45_spill]] %s10192_s28  ;;  %s8849_s26 = smov [#allocation6]  }
  0x26   : > { %s633_s2 = sshll.u32 %s8849_s26, 4  ;;  %p9053_p12 = pnand %p7981_p11, %p186_p5  ;;  %s634_s2 = int_to_ptr.vmem [resolvable:$true] %s633_s2 }
  0x27   : > { %s631_s4 = sshll.u32 %s10194_s0, 4  ;;  %s10196_s22 = sld [smem:[#allocation49_spill]]  ;;  %s632_s4 = int_to_ptr.hbm [resolvable:$true] %s631_s4 }
  0x28   : > { %s10162_s29 = smov 128   ;;  %s10163_s3 = smov 8  }
  0x29   : > { %7987 = dma.hbm_to_vmem [thread:$0]  (!%p9053_p12), %s632_s4, 256, %s634_s2, [#allocation7], %s10162_s29, %s10162_s29, %s10163_s3  }
  0x2a   : > { %s8852_s0 = smov [#allocation9]   ;;  %s10197_s28 = sld [smem:[#allocation48_spill]] }
  0x2b   : > { %s662_s26 = sshll.u32 %s8852_s0, 4  ;;  %s10198_s15 = sld [smem:[#allocation50_spill]]  ;;  %s663_s26 = int_to_ptr.vmem [resolvable:$true] %s662_s26 }
  0x2c   : > { %s8854_s4 = smov 64   ;;  %s8855_s2 = smov 4  }
  0x2d   : > { %s660_s7 = sshll.u32 %s10196_s22, 4  ;;  %s8853_s22 = smov [#allocation8]   ;;  %s661_s7 = int_to_ptr.hbm [resolvable:$true] %s660_s7 }
  0x2e   : > { %7993 = dma.hbm_to_vmem [thread:$0]  (!%p9053_p12), %s661_s7, 16, %s663_s26, [#allocation10]  }
  0x2f   : > { %s647_s23 = sshll.u32 %s8853_s22, 4  ;;  %s8856_s30 = smov [#allocation11]   ;;  %s648_s23 = int_to_ptr.vmem [resolvable:$true] %s647_s23 }
  0x30   : > { %s645_s17 = sshll.u32 %s10197_s28, 4  ;;  %s673_s5 = sshll.u32 %s8856_s30, 4  ;;  %s646_s17 = int_to_ptr.hbm [resolvable:$true] %s645_s17  ;;  %s674_s5 = int_to_ptr.vmem [resolvable:$true] %s673_s5 }
  0x31   : > { %s671_s14 = sshll.u32 %s10198_s15, 4  ;;  %s10199_s29 = sld [smem:[#allocation51_spill]]  ;;  %s672_s14 = int_to_ptr.hbm [resolvable:$true] %s671_s14 }
  0x32   : > { %7990 = dma.hbm_to_vmem [thread:$0]  (!%p9053_p12), %s646_s17, 512, %s648_s23, [#allocation7], %s8854_s4, %s8854_s4, %s8855_s2  }
  0x33   : > { %7996 = dma.hbm_to_vmem [thread:$0]  (!%p9053_p12), %s672_s14, 384, %s674_s5, [#allocation10], %s8854_s4, %s8854_s4, %s8855_s2  }
  0x34   : > { %s10200_s15 = sld [smem:[#allocation46_spill]]  ;;  %s8857_s1 = smov [#allocation12]  }
  0x35   : > { %s688_s3 = sshll.u32 %s8857_s1, 4  ;;  %s8858_s17 = smov [#allocation4]   ;;  %s689_s3 = int_to_ptr.vmem [resolvable:$true] %s688_s3 }
  0x36   : > { %s622_s23 = sshll.u32 %s8858_s17, 4  ;;  %s10201_s18 = sld [smem:[#allocation58_spill]]  ;;  %s623_s23 = int_to_ptr.vmem [resolvable:$true] %s622_s23 }
  0x37   : > { %s686_s7 = sshll.u32 %s10199_s29, 4  ;;  %s10202_s19 = sld [smem:[#allocation59_spill]]  ;;  %s687_s7 = int_to_ptr.hbm [resolvable:$true] %s686_s7 }
  0x38   : > { %7999 = dma.hbm_to_vmem [thread:$0]  (!%p9053_p12), %s687_s7, 16, %s689_s3, [#allocation13]  }
  0x39   : > { %s8859_s5 = smov [#allocation26]   ;;  %s8860_s3 = smov [#allocation27]  }
  0x3a   : > { %s620_s22 = sshll.u32 %s10200_s15, 4  ;;  %s700_s0 = sshll.u32 %s8859_s5, 4  ;;  %s621_s22 = int_to_ptr.hbm [resolvable:$true] %s620_s22  ;;  %s701_s0 = int_to_ptr.vmem [resolvable:$true] %s700_s0 }
  0x3b   : > { %7984 = dma.hbm_to_vmem [thread:$0]  (!%p9053_p12), %s621_s22, 32, %s623_s23, [#allocation5]  }
  0x3c   : > { %s698_s29 = sshll.u32 %s10201_s18, 4  ;;  %s712_s7 = sshll.u32 %s8860_s3, 4  ;;  %s699_s29 = int_to_ptr.hbm [resolvable:$true] %s698_s29  ;;  %s713_s7 = int_to_ptr.vmem [resolvable:$true] %s712_s7 }
  0x3d   : > { %s710_s2 = sshll.u32 %s10202_s19, 4  ;;  %s721_s15 = sshll.u32 %s10142_s20, 4  ;;  %s711_s2 = int_to_ptr.hbm [resolvable:$true] %s710_s2  ;;  %s722_s15 = int_to_ptr.hbm [resolvable:$true] %s721_s15 }
  0x3e   : > { %8002 = dma.hbm_to_vmem [thread:$0]  (!%p9053_p12), %s699_s29, 16, %s701_s0, [#allocation7]  }
  0x3f   : > { %8005 = dma.hbm_to_vmem [thread:$0]  (!%p9053_p12), %s711_s2, 16, %s713_s7, [#allocation10]  }
  0x40   : > { %s735_s17 = sshll.u32 %s10143_s21, 4  ;;  %s8861_s23 = smov [#allocation28]   ;;  %s736_s17 = int_to_ptr.hbm [resolvable:$true] %s735_s17 }
  0x41   : > { %s723_s30 = sshll.u32 %s8861_s23, 4  ;;  %s10203_s28 = smov 8   ;;  %s724_s30 = int_to_ptr.vmem [resolvable:$true] %s723_s30 }
  0x42   : > { %s10204_s29 = smov 128   ;;  %s8862_s14 = smov [#allocation29]  }
  0x43   : > { %8008 = dma.hbm_to_vmem [thread:$0]  (!%p9053_p12), %s722_s15, 12288, %s724_s30, [#allocation13], %s10204_s29, %s10204_s29, %s10203_s28  }
  0x44   : > { %s737_s4 = sshll.u32 %s8862_s14, 4  ;;  %s8863_s5 = smov 32   ;;  %s738_s4 = int_to_ptr.vmem [resolvable:$true] %s737_s4 }
  0x45   : > { %s8864_s0 = smov 2   ;;  %p5885_p13 = scmp.ge.s32.totalorder %s8847_s25, 2 }
  0x46   : > { %8011 = dma.hbm_to_vmem [thread:$0]  (!%p9053_p12), %s736_s17, 192, %s738_s4, [#allocation30], %s8863_s5, %s8863_s5, %s8864_s0  }
  0x47   : > { %747 = sbr.rel (%p5885_p13) target bundleno = 285 (0x11d), region = 56  ;;  %s751_s2 = sand.u32 (!%p5885_p13), 1, %s8847_s25  }
  0x48   : > { %s9113_s3 = sand.u32 (!%p5885_p13), 1, %s8843_s24   ;;  %s7912_s26 = smul.u32 (!%p5885_p13), 192, %s8847_s25 }
  0x49   : > { %s7911_s7 = smul.u32 (!%p5885_p13), 192, %s9113_s3  ;;  %s10205_s22 = sld [smem:[#allocation52_spill]] (!%p5885_p13) }
  0x4a   : > { %s7913_s30 = smul.u32 (!%p5885_p13), 3, %s9113_s3  ;;  %s9121_s28 = scalar_lea.sflag (!%p5885_p13), [#allocation5], %s751_s2 }
  0x4b   : > { %s755_s6 = scalar_lea.vmem (!%p5885_p13), [#allocation14], %s7911_s7 }
  0x4c   : > { %s763_s17 = sshll.u32 %s755_s6, 4  ;;  %s764_s17 = int_to_ptr.vmem [resolvable:$true] %s763_s17 }
  0x4f   : > { %s760_s1 = scalar_lea.hbm %s10205_s22, %s7912_s26  ;;  %s8451_s0 = scalar_lea.hbm %s10205_s22, 384 }
  0x50   : > { %s761_s23 = sshll.u32 %s760_s1, 4  ;;  %s762_s23 = int_to_ptr.hbm [resolvable:$true] %s761_s23 }
  0x51   : > { %s8445_s29 = sshra.s32 %s762_s23, 4  ;;  %s8446_s29 = int_to_ptr.hbm [resolvable:$true] %s8445_s29 }
  0x52   : > { %s8447_s14 = scalar_lea.hbm %s8446_s29, 192  ;;  %p8452_p3 = scmp.lt.s32.totalorder %s8446_s29, %s10205_s22 }
  0x53   : > { %p8448_p0 = scmp.ne.s32.totalorder %s8446_s29, %s8447_s14  ;;  %p8453_p6 = scmp.lt.s32.totalorder %s8451_s0, %s8447_s14 }
  0x55   : > { %p8449_p1 = pnand %p8448_p0, %p9028_p4  ;;  %p8454_p7 = por %p8453_p6, %p8452_p3 }
  0x57   : > { %p8450_p2 = pneg %p8449_p1 }
  0x59   : > { %p8455_p11 = pnand %p8454_p7, %p8450_p2 }
  0x5b   : > { %8458 = shalt.err (!%p8455_p11)
}
  0x5c   : > { %s8865_s2 = smov 192   ;;  %s8866_s16 = smov 12  }
  0x5d   : > { %7937 = dma.hbm_to_vmem [thread:$0]  (%p9028_p4), %s762_s23, 3072, %s764_s17, %s9121_s28, %s8865_s2, %s8865_s2, %s8866_s16  }
  0x5e   : > { %s7914_s15 = smul.u32 3, %s8847_s25  ;;  %s777_s1 = scalar_lea.vmem [#allocation15], %s7913_s30 }
  0x5f   : > { %s785_s6 = sshll.u32 %s777_s1, 4  ;;  %s5887_s4 = sshll.u32 %s9113_s3, 6  ;;  %s786_s6 = int_to_ptr.vmem [resolvable:$true] %s785_s6 }
  0x60   : > { %s10206_s14 = sld [smem:[#allocation53_spill]]  ;;  %s7517_s7 = sshll.u32 %s8847_s25, 6 }
  0x66   : > { %s781_s0 = scalar_lea.hbm %s10206_s14, %s7914_s15  ;;  %s8479_s30 = scalar_lea.hbm %s10206_s14, 6 }
  0x67   : > { %s783_s26 = sshll.u32 %s781_s0, 4  ;;  %s784_s26 = int_to_ptr.hbm [resolvable:$true] %s783_s26 }
  0x68   : > { %s8473_s18 = sshra.s32 %s784_s26, 4  ;;  %s8474_s18 = int_to_ptr.hbm [resolvable:$true] %s8473_s18 }
  0x69   : > { %s8475_s19 = scalar_lea.hbm %s8474_s18, 3  ;;  %p8480_p1 = scmp.lt.s32.totalorder %s8474_s18, %s10206_s14 }
  0x6a   : > { %p8476_p12 = scmp.ne.s32.totalorder %s8474_s18, %s8475_s19  ;;  %p8481_p2 = scmp.lt.s32.totalorder %s8479_s30, %s8475_s19 }
  0x6c   : > { %p8477_p13 = pnand %p8476_p12, %p9028_p4  ;;  %p8482_p3 = por %p8481_p2, %p8480_p1 }
  0x6e   : > { %p8478_p0 = pneg %p8477_p13 }
  0x70   : > { %p8483_p6 = pnand %p8482_p3, %p8478_p0 }
  0x72   : > { %8486 = shalt.err (!%p8483_p6)
}
  0x73   : > { %7938 = dma.hbm_to_vmem [thread:$0]  (%p9028_p4), %s784_s26, 48, %s786_s6, %s9121_s28  }
  0x74   : > { %s801_s5 = scalar_lea.hbm %s10130_s8, %s7517_s7  ;;  %s796_s29 = scalar_lea.vmem [#allocation16], %s5887_s4 }
  0x75   : > { %s804_s0 = sshll.u32 %s796_s29, 4  ;;  %s802_s17 = sshll.u32 %s801_s5, 4  ;;  %s805_s0 = int_to_ptr.vmem [resolvable:$true] %s804_s0  ;;  %s803_s17 = int_to_ptr.hbm [resolvable:$true] %s802_s17 }
  0x76   : > { %s8501_s23 = sshra.s32 %s803_s17, 4  ;;  %s8507_s6 = scalar_lea.hbm %s10130_s8, 128  ;;  %s8502_s23 = int_to_ptr.hbm [resolvable:$true] %s8501_s23 }
  0x77   : > { %s8503_s18 = scalar_lea.hbm %s8502_s23, 64  ;;  %p8508_p13 = scmp.lt.s32.totalorder %s8502_s23, %s10130_s8 }
  0x78   : > { %p8504_p7 = scmp.ne.s32.totalorder %s8502_s23, %s8503_s18  ;;  %p8509_p0 = scmp.lt.s32.totalorder %s8507_s6, %s8503_s18 }
  0x7a   : > { %p8505_p11 = pnand %p8504_p7, %p9028_p4  ;;  %p8510_p1 = por %p8509_p0, %p8508_p13 }
  0x7c   : > { %p8506_p12 = pneg %p8505_p11 }
  0x7e   : > { %p8511_p2 = pnand %p8510_p1, %p8506_p12 }
  0x80   : > { %8514 = shalt.err (!%p8511_p2)
}
  0x81   : > { %s10166_s4 = smov 64   ;;  %s10164_s7 = smov 4  }
  0x82   : > { %7939 = dma.hbm_to_vmem [thread:$0]  (%p9028_p4), %s803_s17, 1024, %s805_s0, %s9121_s28, %s10166_s4, %s10166_s4, %s10164_s7  }
  0x83   : > { %s820_s1 = scalar_lea.hbm %s10131_s9, %s8847_s25  ;;  %s817_s5 = scalar_lea.vmem [#allocation17], %s9113_s3 }
  0x84   : > { %s824_s29 = sshll.u32 %s817_s5, 4  ;;  %s822_s23 = sshll.u32 %s820_s1, 4  ;;  %s825_s29 = int_to_ptr.vmem [resolvable:$true] %s824_s29  ;;  %s823_s23 = int_to_ptr.hbm [resolvable:$true] %s822_s23 }
  0x85   : > { %s10165_s18 = sshll.u32 %s9113_s3, 10  ;;  %s8529_s19 = sshra.s32 %s823_s23, 4  ;;  %s8530_s19 = int_to_ptr.hbm [resolvable:$true] %s8529_s19 }
  0x86   : > { %s8531_s30 = scalar_lea.hbm %s8530_s19, 1  ;;  %s8535_s0 = scalar_lea.hbm %s10131_s9, 2 }
  0x87   : > { %p8532_p3 = scmp.ne.s32.totalorder %s8530_s19, %s8531_s30  ;;  %p8536_p11 = scmp.lt.s32.totalorder %s8530_s19, %s10131_s9 }
  0x88   : > { %p8537_p12 = scmp.lt.s32.totalorder %s8535_s0, %s8531_s30 }
  0x89   : > { %p8533_p6 = pnand %p8532_p3, %p9028_p4 }
  0x8a   : > { %p8538_p13 = por %p8537_p12, %p8536_p11 }
  0x8b   : > { %p8534_p7 = pneg %p8533_p6 }
  0x8d   : > { %p8539_p0 = pnand %p8538_p13, %p8534_p7 }
  0x8f   : > { %8542 = shalt.err (!%p8539_p0)
}
  0x90   : > { %7940 = dma.hbm_to_vmem [thread:$0]  (%p9028_p4), %s823_s23, 16, %s825_s29, %s9121_s28  }
  0x91   : > { %s7518_s16 = sshll.u32 %s8847_s25, 10  ;;  %s835_s19 = scalar_lea.vmem [#allocation18], %s10165_s18 }
  0x92   : > { %s840_s5 = scalar_lea.hbm %s10132_s10, %s7518_s16  ;;  %s843_s30 = sshll.u32 %s835_s19, 4  ;;  %s844_s30 = int_to_ptr.vmem [resolvable:$true] %s843_s30 }
  0x93   : > { %s841_s6 = sshll.u32 %s840_s5, 4  ;;  %s8563_s17 = scalar_lea.hbm %s10132_s10, 2048  ;;  %s842_s6 = int_to_ptr.hbm [resolvable:$true] %s841_s6 }
  0x94   : > { %s8557_s26 = sshra.s32 %s842_s6, 4  ;;  %s8558_s26 = int_to_ptr.hbm [resolvable:$true] %s8557_s26 }
  0x95   : > { %s8559_s0 = scalar_lea.hbm %s8558_s26, 1024  ;;  %p8564_p6 = scmp.lt.s32.totalorder %s8558_s26, %s10132_s10 }
  0x96   : > { %p8560_p1 = scmp.ne.s32.totalorder %s8558_s26, %s8559_s0  ;;  %p8565_p7 = scmp.lt.s32.totalorder %s8563_s17, %s8559_s0 }
  0x98   : > { %p8561_p2 = pnand %p8560_p1, %p9028_p4  ;;  %p8566_p11 = por %p8565_p7, %p8564_p6 }
  0x9a   : > { %p8562_p3 = pneg %p8561_p2 }
  0x9c   : > { %p8567_p12 = pnand %p8566_p11, %p8562_p3 }
  0x9e   : > { %8570 = shalt.err (!%p8567_p12)
}
  0x9f   : > { %s8869_s1 = smov 1024   ;;  %s5893_s5 = sshll.u32 %s9113_s3, 4 }
  0xa0   : > { %7941 = dma.hbm_to_vmem [thread:$0]  (%p9028_p4), %s842_s6, 16384, %s844_s30, %s9121_s28, %s8869_s1, %s8869_s1, %s10166_s4  }
  0xa1   : > { %s5894_s19 = sshll.u32 %s8847_s25, 4  ;;  %s857_s0 = scalar_lea.vmem [#allocation19], %s5893_s5 }
  0xa2   : > { %s861_s2 = scalar_lea.hbm %s10133_s11, %s5894_s19  ;;  %s865_s17 = sshll.u32 %s857_s0, 4  ;;  %s866_s17 = int_to_ptr.vmem [resolvable:$true] %s865_s17 }
  0xa3   : > { %s863_s26 = sshll.u32 %s861_s2, 4  ;;  %s8591_s6 = scalar_lea.hbm %s10133_s11, 32  ;;  %s864_s26 = int_to_ptr.hbm [resolvable:$true] %s863_s26 }
  0xa4   : > { %s8585_s15 = sshra.s32 %s864_s26, 4  ;;  %s8586_s15 = int_to_ptr.hbm [resolvable:$true] %s8585_s15 }
  0xa5   : > { %s8587_s7 = scalar_lea.hbm %s8586_s15, 16  ;;  %p8592_p2 = scmp.lt.s32.totalorder %s8586_s15, %s10133_s11 }
  0xa6   : > { %p8588_p13 = scmp.ne.s32.totalorder %s8586_s15, %s8587_s7  ;;  %p8593_p3 = scmp.lt.s32.totalorder %s8591_s6, %s8587_s7 }
  0xa8   : > { %p8589_p0 = pnand %p8588_p13, %p9028_p4  ;;  %p8594_p6 = por %p8593_p3, %p8592_p2 }
  0xaa   : > { %p8590_p1 = pneg %p8589_p0 }
  0xac   : > { %p8595_p7 = pnand %p8594_p6, %p8590_p1 }
  0xae   : > { %8598 = shalt.err (!%p8595_p7)
}
  0xaf   : > { %7942 = dma.hbm_to_vmem [thread:$0]  (%p9028_p4), %s864_s26, 256, %s866_s17, %s9121_s28  }
  0xb0   : > { %s881_s18 = scalar_lea.hbm %s10134_s12, %s7518_s16  ;;  %s10207_s23 = sshll.u32 %s9113_s3, 10 }
  0xb1   : > { %s882_s29 = sshll.u32 %s881_s18, 4  ;;  %s876_s4 = scalar_lea.vmem [#allocation20], %s10207_s23  ;;  %s883_s29 = int_to_ptr.hbm [resolvable:$true] %s882_s29 }
  0xb2   : > { %s884_s2 = sshll.u32 %s876_s4, 4  ;;  %s8613_s7 = sshra.s32 %s883_s29, 4  ;;  %s885_s2 = int_to_ptr.vmem [resolvable:$true] %s884_s2  ;;  %s8614_s7 = int_to_ptr.hbm [resolvable:$true] %s8613_s7 }
  0xb3   : > { %s8615_s0 = scalar_lea.hbm %s8614_s7, 1024  ;;  %s8619_s17 = scalar_lea.hbm %s10134_s12, 2048 }
  0xb4   : > { %p8616_p11 = scmp.ne.s32.totalorder %s8614_s7, %s8615_s0  ;;  %p8620_p0 = scmp.lt.s32.totalorder %s8614_s7, %s10134_s12 }
  0xb5   : > { %p8621_p1 = scmp.lt.s32.totalorder %s8619_s17, %s8615_s0 }
  0xb6   : > { %p8617_p12 = pnand %p8616_p11, %p9028_p4 }
  0xb7   : > { %p8622_p2 = por %p8621_p1, %p8620_p0 }
  0xb8   : > { %p8618_p13 = pneg %p8617_p12 }
  0xba   : > { %p8623_p3 = pnand %p8622_p2, %p8618_p13 }
  0xbc   : > { %8626 = shalt.err (!%p8623_p3)
}
  0xbd   : > { %s10208_s16 = smov 4   ;;  %s10209_s1 = smov 64  }
  0xbe   : > { %7943 = dma.hbm_to_vmem [thread:$0]  (%p9028_p4), %s883_s29, 16384, %s885_s2, %s9121_s28, %s10209_s1, %s10209_s1, %s10208_s16  }
  0xbf   : > { %s900_s18 = scalar_lea.hbm %s10135_s13, %s8847_s25  ;;  %s897_s4 = scalar_lea.vmem [#allocation21], %s9113_s3 }
  0xc0   : > { %s902_s23 = sshll.u32 %s900_s18, 4  ;;  %s904_s7 = sshll.u32 %s897_s4, 4  ;;  %s903_s23 = int_to_ptr.hbm [resolvable:$true] %s902_s23  ;;  %s905_s7 = int_to_ptr.vmem [resolvable:$true] %s904_s7 }
  0xc1   : > { %s8641_s0 = sshra.s32 %s903_s23, 4  ;;  %s8647_s29 = scalar_lea.hbm %s10135_s13, 2  ;;  %s8642_s0 = int_to_ptr.hbm [resolvable:$true] %s8641_s0 }
  0xc2   : > { %s8643_s15 = scalar_lea.hbm %s8642_s0, 1  ;;  %p8648_p12 = scmp.lt.s32.totalorder %s8642_s0, %s10135_s13 }
  0xc3   : > { %p8644_p6 = scmp.ne.s32.totalorder %s8642_s0, %s8643_s15  ;;  %p8649_p13 = scmp.lt.s32.totalorder %s8647_s29, %s8643_s15 }
  0xc5   : > { %p8645_p7 = pnand %p8644_p6, %p9028_p4  ;;  %p8650_p0 = por %p8649_p13, %p8648_p12 }
  0xc7   : > { %p8646_p11 = pneg %p8645_p7 }
  0xc9   : > { %p8651_p1 = pnand %p8650_p0, %p8646_p11 }
  0xcb   : > { %8654 = shalt.err (!%p8651_p1)
}
  0xcc   : > { %7944 = dma.hbm_to_vmem [thread:$0]  (%p9028_p4), %s903_s23, 16, %s905_s7, %s9121_s28  }
  0xcd   : > { %s10210_s1 = sld [smem:[#allocation54_spill]]  ;;  %s914_s18 = scalar_lea.vmem [#allocation22], %s9113_s3 }
  0xce   : > { %s921_s4 = sshll.u32 %s914_s18, 4  ;;  %s922_s4 = int_to_ptr.vmem [resolvable:$true] %s921_s4 }
  0xd3   : > { %s917_s5 = scalar_lea.hbm %s10210_s1, %s8847_s25  ;;  %s8675_s23 = scalar_lea.hbm %s10210_s1, 2 }
  0xd4   : > { %s919_s19 = sshll.u32 %s917_s5, 4  ;;  %s920_s19 = int_to_ptr.hbm [resolvable:$true] %s919_s19 }
  0xd5   : > { %s8669_s0 = sshra.s32 %s920_s19, 4  ;;  %s8670_s0 = int_to_ptr.hbm [resolvable:$true] %s8669_s0 }
  0xd6   : > { %s8671_s15 = scalar_lea.hbm %s8670_s0, 1  ;;  %p8676_p7 = scmp.lt.s32.totalorder %s8670_s0, %s10210_s1 }
  0xd7   : > { %p8672_p2 = scmp.ne.s32.totalorder %s8670_s0, %s8671_s15  ;;  %p8677_p11 = scmp.lt.s32.totalorder %s8675_s23, %s8671_s15 }
  0xd9   : > { %p8673_p3 = pnand %p8672_p2, %p9028_p4  ;;  %p8678_p12 = por %p8677_p11, %p8676_p7 }
  0xdb   : > { %p8674_p6 = pneg %p8673_p3 }
  0xdd   : > { %p8679_p13 = pnand %p8678_p12, %p8674_p6 }
  0xdf   : > { %8682 = shalt.err (!%p8679_p13)
}
  0xe0   : > { %7945 = dma.hbm_to_vmem [thread:$0]  (%p9028_p4), %s920_s19, 16, %s922_s4, %s9121_s28  }
  0xe1   : > { %s10211_s6 = sld [smem:[#allocation55_spill]]  ;;  %s931_s18 = scalar_lea.vmem [#allocation23], %s9113_s3 }
  0xe2   : > { %s938_s26 = sshll.u32 %s931_s18, 4  ;;  %s939_s26 = int_to_ptr.vmem [resolvable:$true] %s938_s26 }
  0xe7   : > { %s934_s16 = scalar_lea.hbm %s10211_s6, %s8847_s25  ;;  %s8703_s19 = scalar_lea.hbm %s10211_s6, 2 }
  0xe8   : > { %s936_s5 = sshll.u32 %s934_s16, 4  ;;  %s937_s5 = int_to_ptr.hbm [resolvable:$true] %s936_s5 }
  0xe9   : > { %s8697_s0 = sshra.s32 %s937_s5, 4  ;;  %s8698_s0 = int_to_ptr.hbm [resolvable:$true] %s8697_s0 }
  0xea   : > { %s8699_s15 = scalar_lea.hbm %s8698_s0, 1  ;;  %p8704_p3 = scmp.lt.s32.totalorder %s8698_s0, %s10211_s6 }
  0xeb   : > { %p8700_p0 = scmp.ne.s32.totalorder %s8698_s0, %s8699_s15  ;;  %p8705_p6 = scmp.lt.s32.totalorder %s8703_s19, %s8699_s15 }
  0xed   : > { %p8701_p1 = pnand %p8700_p0, %p9028_p4  ;;  %p8706_p7 = por %p8705_p6, %p8704_p3 }
  0xef   : > { %p8702_p2 = pneg %p8701_p1 }
  0xf1   : > { %p8707_p11 = pnand %p8706_p7, %p8702_p2 }
  0xf3   : > { %8710 = shalt.err (!%p8707_p11)
}
  0xf4   : > { %7946 = dma.hbm_to_vmem [thread:$0]  (%p9028_p4), %s937_s5, 16, %s939_s26, %s9121_s28  }
  0xf5   : > { %s10212_s30 = sld [smem:[#allocation56_spill]]  ;;  %s948_s23 = scalar_lea.vmem [#allocation24], %s9113_s3 }
  0xf6   : > { %s955_s1 = sshll.u32 %s948_s23, 4  ;;  %s956_s1 = int_to_ptr.vmem [resolvable:$true] %s955_s1 }
  0xfb   : > { %s10213_s16 = smov %s10212_s30  ;;  %s951_s18 = scalar_lea.hbm %s10212_s30, %s8847_s25 }
  0xfc   : > { %s953_s17 = sshll.u32 %s951_s18, 4  ;;  %s8731_s5 = scalar_lea.hbm %s10213_s16, 2  ;;  %s954_s17 = int_to_ptr.hbm [resolvable:$true] %s953_s17 }
  0xfd   : > { %s8725_s0 = sshra.s32 %s954_s17, 4  ;;  %s8726_s0 = int_to_ptr.hbm [resolvable:$true] %s8725_s0 }
  0xfe   : > { %s8727_s15 = scalar_lea.hbm %s8726_s0, 1  ;;  %p8732_p1 = scmp.lt.s32.totalorder %s8726_s0, %s10213_s16 }
  0xff   : > { %p8728_p12 = scmp.ne.s32.totalorder %s8726_s0, %s8727_s15  ;;  %p8733_p2 = scmp.lt.s32.totalorder %s8731_s5, %s8727_s15 }
 0x101   : > { %p8729_p13 = pnand %p8728_p12, %p9028_p4  ;;  %p8734_p3 = por %p8733_p2, %p8732_p1 }
 0x103   : > { %p8730_p0 = pneg %p8729_p13 }
 0x105   : > { %p8735_p6 = pnand %p8734_p3, %p8730_p0 }
 0x107   : > { %8738 = shalt.err (!%p8735_p6)
}
 0x108   : > { %7947 = dma.hbm_to_vmem [thread:$0]  (%p9028_p4), %s954_s17, 16, %s956_s1, %s9121_s28  }
 0x109   : > { %s10214_s30 = sld [smem:[#allocation57_spill]]  ;;  %s965_s4 = scalar_lea.vmem [#allocation25], %s9113_s3 }
 0x10a   : > { %s972_s6 = sshll.u32 %s965_s4, 4  ;;  %s973_s6 = int_to_ptr.vmem [resolvable:$true] %s972_s6 }
 0x10f   : > { %s10215_s18 = smov %s10214_s30  ;;  %s968_s23 = scalar_lea.hbm %s10214_s30, %s8847_s25 }
 0x110   : > { %s970_s19 = sshll.u32 %s968_s23, 4  ;;  %s8759_s1 = scalar_lea.hbm %s10215_s18, 2  ;;  %s971_s19 = int_to_ptr.hbm [resolvable:$true] %s970_s19 }
 0x111   : > { %s8753_s0 = sshra.s32 %s971_s19, 4  ;;  %s8754_s0 = int_to_ptr.hbm [resolvable:$true] %s8753_s0 }
 0x112   : > { %s8755_s15 = scalar_lea.hbm %s8754_s0, 1  ;;  %p8760_p13 = scmp.lt.s32.totalorder %s8754_s0, %s10215_s18 }
 0x113   : > { %p8756_p7 = scmp.ne.s32.totalorder %s8754_s0, %s8755_s15  ;;  %p8761_p0 = scmp.lt.s32.totalorder %s8759_s1, %s8755_s15 }
 0x115   : > { %p8757_p11 = pnand %p8756_p7, %p9028_p4  ;;  %p8762_p1 = por %p8761_p0, %p8760_p13 }
 0x117   : > { %p8758_p12 = pneg %p8757_p11 }
 0x119   : > { %p8763_p2 = pnand %p8762_p1, %p8758_p12 }
 0x11b   : > { %8766 = shalt.err (!%p8763_p2)
}
 0x11c   : > { %7948 = dma.hbm_to_vmem [thread:$0]  (%p9028_p4), %s971_s19, 16, %s973_s6, %s9121_s28  }
 0x11d PF: > { %981 = sbr.rel (%p9042_p10) target bundleno = 3988 (0xf94), region = 108  ;;  %s10217_s3 = sld [smem:[#allocation41_spill]] (!%p9042_p10) }
 0x122   : > { %8798 = dma.done.wait (%p186_p5), [#allocation5], 32  }
 0x123   : > { %8800 = vsyncadd (%p186_p5), [#allocation5], 4294967264 }
 0x124   : > { %8802 = dma.done.wait (%p186_p5), [#allocation7], 768  }
 0x125   : > { %8804 = vsyncadd (%p186_p5), [#allocation7], 4294966528 }
 0x126   : > { %8806 = dma.done.wait (%p186_p5), [#allocation10], 400  }
 0x127   : > { %8808 = vsyncadd (%p186_p5), [#allocation10], 4294966896 }
 0x128   : > { %8810 = dma.done.wait (%p186_p5), [#allocation13], 16  }
 0x129   : > { %8812 = vsyncadd (%p186_p5), [#allocation13], 4294967280  ;;  %s10218_s27 = sld [smem:[#allocation40_spill]]  ;;  %s1013_s6 = sand.u32 1, %s10217_s3  }
 0x12a   : > { %s1014_s30 = scalar_lea.sflag [#allocation5], %s1013_s6 }
 0x12f   : > { %s9342_s29 = sand.u32 1, %s10218_s27  }
 0x130   : > { %s7915_s2 = smul.u32 192, %s9342_s29 }
 0x132   : > { %s9345_s23 = scalar_lea.vmem [#allocation14], %s7915_s2 }
 0x133   : > { %8814 = dma.done.wait (%p9037_p8), %s1014_s30, 37264  }
 0x134   : > { %8816 = vsyncadd (%p9037_p8), %s1014_s30, 4294930032  ;;  %s7916_s19 = smul.u32 3, %s9342_s29  ;;  %s5905_s4 = sshll.u32 %s9342_s29, 6 }
 0x135   : > { %s5906_s0 = sshll.u32 %s9342_s29, 10  ;;  %s5907_s15 = sshll.u32 %s9342_s29, 4 }
 0x136   : > { %s9355_s5 = scalar_lea.vmem [#allocation15], %s7916_s19  ;;  %s9357_s26 = scalar_lea.vmem [#allocation16], %s5905_s4 }
 0x137   : > { %s1046_s1 = scalar_lea.vmem [#allocation17], %s9342_s29  ;;  %s9360_s17 = scalar_lea.vmem [#allocation18], %s5906_s0 }
 0x138   : > { %s9362_s7 = scalar_lea.vmem [#allocation19], %s5907_s15  ;;  %s9364_s25 = scalar_lea.vmem [#allocation20], %s5906_s0 }
 0x139   : > { %s1085_s27 = scalar_lea.vmem [#allocation21], %s9342_s29  ;;  %s1094_s28 = scalar_lea.vmem [#allocation22], %s9342_s29 }
 0x13a   : > { %s1103_s6 = scalar_lea.vmem [#allocation23], %s9342_s29  ;;  %s1112_s2 = scalar_lea.vmem [#allocation24], %s9342_s29 }
 0x13b   : > { %8818 = dma.done.wait (%p186_p5), [#allocation7], 16  }
 0x13c   : > { %8820 = vsyncadd (%p186_p5), [#allocation7], 4294967280 }
 0x13d   : > { %8822 = dma.done.wait (%p186_p5), [#allocation10], 16  }
 0x13e   : > { %8824 = vsyncadd (%p186_p5), [#allocation10], 4294967280 }
 0x13f   : > { %8826 = dma.done.wait (%p186_p5), [#allocation13], 12288  }
 0x140   : > { %8828 = vsyncadd (%p186_p5), [#allocation13], 4294955008 }
 0x141   : > { %8830 = dma.done.wait (%p186_p5), [#allocation30], 192  }
 0x142   : > { %8832 = vsyncadd (%p186_p5), [#allocation30], 4294967104  ;;  %1253 = sbr.rel (%p5875_p9) target bundleno = 479 (0x1df), region = 200  ;;  %s10220_s4 = sld [smem:[#allocation60_spill]] (!%p5875_p9) }
 0x147   : > { %v7522_v0 = vld [vmem:[#allocation11 + $0x10] sm:$0xff]  ;;  %v7521_v2 = vld [vmem:[#allocation11 + $0x8] sm:$0xff]  ;;  %v7520_v4 = vld [vmem:[#allocation11] sm:$0xff]  ;;  %vm1285_vm0 = vcmask 392192   ;;  %vm1345_vm1 = vcmask 523264  }
 0x148   : > { %v7526_v1 = vld [vmem:[#allocation8 + $0x18] sm:$0xff]  ;;  %1294 = vmatpush.bf16.msra.mxu0 %v7522_v0  ;;  %v7525_v3 = vld [vmem:[#allocation8 + $0x10] sm:$0xff]  ;;  %v7524_v5 = vld [vmem:[#allocation8 + $0x8] sm:$0xff]  ;;  %s10221_s0 = smov %s10220_s4 }
 0x149   : > { %1353 = vmatpush.bf16.msra.mxu1 %v7526_v1  ;;  %v1260_v6 = vld [vmem:[#allocation6] sm:$0xff]  ;;  %v1261_v7 = vld [vmem:[#allocation6 + $0x8] sm:$0xff]  ;;  %v7523_v9 = vld [vmem:[#allocation8] sm:$0xff] }
 0x14a   : > { %v1262_v8 = vpack.c.bf16 %v1261_v7, %v1260_v6  ;;  %v1315_v10 = vld [vmem:[#allocation4] sm:$0x3]  ;;  %v8089_v12 = vld [vmem:[#allocation12] ss:$0 sm:$0xff]  ;;  %v8090_v15 = vld [vmem:[#allocation9] ss:$0 sm:$0xff] }
 0x14b   : > { %v1316_v11 = vpack.c.bf16 %v1315_v10, %v1315_v10 }
 0x14c   : > { %1295 = vmatpush.bf16.msra.mxu0 %v7521_v2 }
 0x14d   : > { %1354 = vmatpush.bf16.msra.mxu1 %v7525_v3 }
 0x150   : > { %1296 = vmatpush.bf16.msra.mxu0 %v7520_v4 }
 0x151   : > { %1355 = vmatpush.bf16.msra.mxu1 %v7524_v5 }
 0x153   : > { %5926 = vmatmul.msk.bf16.vlgmr.msra.gmra.mxu0 %vm1285_vm0, %v1262_v8 }
 0x155   : > { %1356 = vmatpush.bf16.msra.mxu1 %v7523_v9 }
 0x158   : > { %5943 = vmatmul.msk.bf16.vlgmr.msra.gmra.mxu1 %vm1345_vm1, %v1316_v11 }
 0x1d0   : > { %v1298_v13 = vpop.f32.mrf.mxu0 }
 0x1d1   : > { %v1299_v14 = vadd.f32 %v8089_v12, %v1298_v13 }
 0x1d3   : > { %v1303_v16 = vmax.f32 %v1299_v14, 0.0 }
 0x1d5   : > { %v1358_v17 = vpop.f32.mrf.mxu1  ;;  %1305 = vst [vmem:[#allocation2] sm:$0xff] %v1303_v16 }
 0x1d6   : > { %v1359_v18 = vadd.f32 %v8090_v15, %v1358_v17 }
 0x1d8   : > { %v1362_v19 = vmax.f32 %v1359_v18, 0.0  ;;  %v1300_v20 = vpop.f32.mrf.mxu0 }
 0x1d9   : > { %v1301_v23 = vadd.f32 %v8089_v12, %v1300_v20 }
 0x1da   : > { %v1363_v21 = vperm.slane %v1362_v19, 0  ;;  %v1365_v22 = vperm.slane %v1362_v19, 1 }
 0x1db   : > { %v1304_v24 = vmax.f32 %v1301_v23, 0.0 }
 0x1dc   : > { %1364 = vst [vmem:[%s10220_s4] sm:$0xff] %v1363_v21 }
 0x1dd   : > { %1366 = vst [vmem:[%s10221_s0 + $0x8] sm:$0xff] %v1365_v22  ;;  %v1360_v25 = vpop.f32.mrf.mxu1 }
 0x1de   : > { %1306 = vst [vmem:[#allocation2 + $0x8] sm:$0xff] %v1304_v24 }
 0x1df PF: > { %v6030_v26 = vld [vmem:[%s9345_s23 + $0xa8] sm:$0xf]  ;;  %v7549_v27 = vld [vmem:[%s9345_s23 + $0xb0] sm:$0xf0]  ;;  %v7548_v28 = vld [vmem:[%s9345_s23 + $0xac] sm:$0xf] }
 0x1e0   : > { %v6031_v29 = vor.u32 %v7549_v27, %v6030_v26  ;;  %v6032_v30 = vld [vmem:[%s9345_s23 + $0xb4] sm:$0xf0]  ;;  %v6018_v31 = vld [vmem:[%s9345_s23 + $0x90] sm:$0xf]  ;;  %v7546_v32 = vld [vmem:[%s9345_s23 + $0x98] sm:$0xf0] }
 0x1e1   : > { %v6035_v33 = vor.u32 %v7548_v28, %v6032_v30  ;;  %v7545_v34 = vld [vmem:[%s9345_s23 + $0x94] sm:$0xf]  ;;  %v6020_v35 = vld [vmem:[%s9345_s23 + $0x9c] sm:$0xf0]  ;;  %v6019_v36 = vor.u32 %v7546_v32, %v6018_v31  ;;  %v6006_v38 = vld [vmem:[%s9345_s23 + $0x78] sm:$0xf] }
 0x1e2   : > { %1538 = vmatpush.bf16.msra.mxu0 %v6031_v29  ;;  %v6023_v37 = vor.u32 %v7545_v34, %v6020_v35  ;;  %v7543_v39 = vld [vmem:[%s9345_s23 + $0x80] sm:$0xf0]  ;;  %v7542_v40 = vld [vmem:[%s9345_s23 + $0x7c] sm:$0xf]  ;;  %v6008_v41 = vld [vmem:[%s9345_s23 + $0x84] sm:$0xf0] }
 0x1e3   : > { %1552 = vmatpush.bf16.msra.mxu1 %v6035_v33  ;;  %v6007_v42 = vor.u32 %v7543_v39, %v6006_v38  ;;  %v6011_v43 = vor.u32 %v7542_v40, %v6008_v41  ;;  %v5994_v44 = vld [vmem:[%s9345_s23 + $0x60] sm:$0xf]  ;;  %v7540_v45 = vld [vmem:[%s9345_s23 + $0x68] sm:$0xf0]  ;;  %v7539_v46 = vld [vmem:[%s9345_s23 + $0x64] sm:$0xf] }
 0x1e4   : > { %v5996_v47 = vld [vmem:[%s9345_s23 + $0x6c] sm:$0xf0]  ;;  %v5995_v48 = vor.u32 %v7540_v45, %v5994_v44  ;;  %v5982_v49 = vld [vmem:[%s9345_s23 + $0x48] sm:$0xf]  ;;  %v7550_v51 = vld [vmem:[%s9345_s23 + $0xb8] sm:$0xf0] }
 0x1e5   : > { %v6038_v50 = vld [vmem:[%s9345_s23 + $0xb0] sm:$0xf]  ;;  %v5999_v52 = vor.u32 %v7539_v46, %v5996_v47  ;;  %v7537_v53 = vld [vmem:[%s9345_s23 + $0x50] sm:$0xf0]  ;;  %v6026_v55 = vld [vmem:[%s9345_s23 + $0x98] sm:$0xf] }
 0x1e6   : > { %1539 = vmatpush.bf16.msra.mxu0 %v6019_v36  ;;  %v6039_v54 = vor.u32 %v7550_v51, %v6038_v50  ;;  %v7547_v56 = vld [vmem:[%s9345_s23 + $0xa0] sm:$0xf0]  ;;  %v7536_v57 = vld [vmem:[%s9345_s23 + $0x4c] sm:$0xf]  ;;  %v5984_v58 = vld [vmem:[%s9345_s23 + $0x54] sm:$0xf0]  ;;  %v5983_v60 = vor.u32 %v7537_v53, %v5982_v49 }
 0x1e7   : > { %1553 = vmatpush.bf16.msra.mxu1 %v6023_v37  ;;  %v6027_v59 = vor.u32 %v7547_v56, %v6026_v55  ;;  %v6014_v61 = vld [vmem:[%s9345_s23 + $0x80] sm:$0xf]  ;;  %v7544_v62 = vld [vmem:[%s9345_s23 + $0x88] sm:$0xf0]  ;;  %v5987_v63 = vor.u32 %v7536_v57, %v5984_v58  ;;  %v5970_v0 = vld [vmem:[%s9345_s23 + $0x30] sm:$0xf] }
 0x1e8   : > { %1566 = vmatpush.bf16.msra.mxu2 %v6039_v54  ;;  %v7534_v1 = vld [vmem:[%s9345_s23 + $0x38] sm:$0xf0]  ;;  %v7533_v2 = vld [vmem:[%s9345_s23 + $0x34] sm:$0xf]  ;;  %v5972_v3 = vld [vmem:[%s9345_s23 + $0x3c] sm:$0xf0]  ;;  %v6015_v4 = vor.u32 %v7544_v62, %v6014_v61 }
 0x1e9   : > { %v5971_v5 = vor.u32 %v7534_v1, %v5970_v0  ;;  %v6002_v6 = vld [vmem:[%s9345_s23 + $0x68] sm:$0xf]  ;;  %v7541_v7 = vld [vmem:[%s9345_s23 + $0x70] sm:$0xf0]  ;;  %v5975_v8 = vor.u32 %v7533_v2, %v5972_v3  ;;  %v5958_v9 = vld [vmem:[%s9345_s23 + $0x18] sm:$0xf] }
 0x1ea   : > { %1540 = vmatpush.bf16.msra.mxu0 %v6007_v42  ;;  %v7531_v10 = vld [vmem:[%s9345_s23 + $0x20] sm:$0xf0]  ;;  %v7530_v11 = vld [vmem:[%s9345_s23 + $0x1c] sm:$0xf]  ;;  %v5960_v12 = vld [vmem:[%s9345_s23 + $0x24] sm:$0xf0]  ;;  %v6003_v13 = vor.u32 %v7541_v7, %v6002_v6 }
 0x1eb   : > { %1554 = vmatpush.bf16.msra.mxu1 %v6011_v43  ;;  %v5959_v14 = vor.u32 %v7531_v10, %v5958_v9  ;;  %v5990_v15 = vld [vmem:[%s9345_s23 + $0x50] sm:$0xf]  ;;  %v7538_v16 = vld [vmem:[%s9345_s23 + $0x58] sm:$0xf0]  ;;  %v5963_v17 = vor.u32 %v7530_v11, %v5960_v12  ;;  %v5946_v18 = vld [vmem:[%s9345_s23] sm:$0xf] }
 0x1ec   : > { %1567 = vmatpush.bf16.msra.mxu2 %v6027_v59  ;;  %v7528_v19 = vld [vmem:[%s9345_s23 + $0x8] sm:$0xf0]  ;;  %v7527_v20 = vld [vmem:[%s9345_s23 + $0x4] sm:$0xf]  ;;  %v5948_v21 = vld [vmem:[%s9345_s23 + $0xc] sm:$0xf0]  ;;  %v5991_v23 = vor.u32 %v7538_v16, %v5990_v15 }
 0x1ed   : > { %v9437_v22 = vld [vmem:[#allocation2] sm:$0xff]  ;;  %v5947_v24 = vor.u32 %v7528_v19, %v5946_v18  ;;  %v9439_v25 = vld [vmem:[#allocation2 + $0x8] sm:$0xff]  ;;  %v7535_v27 = vld [vmem:[%s9345_s23 + $0x40] sm:$0xf0]  ;;  %v5951_v28 = vor.u32 %v7527_v20, %v5948_v21  ;;  %vm1581_vm2 = vcmask 261120   ;;  %s8870_s30 = smov 96  }
 0x1ee   : > { %1541 = vmatpush.bf16.msra.mxu0 %v5995_v48  ;;  %v5978_v26 = vld [vmem:[%s9345_s23 + $0x38] sm:$0xf]  ;;  %v1402_v29 = vpack.c.bf16 %v9439_v25, %v9437_v22  ;;  %v5966_v31 = vld [vmem:[%s9345_s23 + $0x20] sm:$0xf]  ;;  %v7532_v32 = vld [vmem:[%s9345_s23 + $0x28] sm:$0xf0] }
 0x1ef   : > { %1555 = vmatpush.bf16.msra.mxu1 %v5999_v52  ;;  %v5979_v30 = vor.u32 %v7535_v27, %v5978_v26  ;;  %v5967_v33 = vor.u32 %v7532_v32, %v5966_v31  ;;  %v5954_v34 = vld [vmem:[%s9345_s23 + $0x8] sm:$0xf]  ;;  %v7529_v35 = vld [vmem:[%s9345_s23 + $0x10] sm:$0xf0]  ;;  %v9450_v37 = vld [vmem:[%s9355_s5] sm:$0x7] }
 0x1f0   : > { %1568 = vmatpush.bf16.msra.mxu2 %v6015_v4  ;;  %v5955_v36 = vor.u32 %v7529_v35, %v5954_v34  ;;  %v1404_v38 = vperm.slane %v9450_v37, 0  ;;  %v1405_v39 = vperm.slane %v9450_v37, 1  ;;  %v1406_v45 = vperm.slane %v9450_v37, 2  ;;  %s8871_s23 = smov 64   ;;  %s8872_s5 = smov 32  }
 0x1f1   : > { %vm1608_vm3 = vcmask 64512   ;;  %vm1714_vm4 = vcmask 523520   ;;  %vm1785_vm5 = vcmask 785920   ;;  %vm1856_vm6 = vcmask 1048320  }
 0x1f2   : > { %1542 = vmatpush.bf16.msra.mxu0 %v5983_v60 }
 0x1f3   : > { %1556 = vmatpush.bf16.msra.mxu1 %v5987_v63 }
 0x1f4   : > { %1569 = vmatpush.bf16.msra.mxu2 %v6003_v13 }
 0x1f6   : > { %1543 = vmatpush.bf16.msra.mxu0 %v5971_v5 }
 0x1f7   : > { %1557 = vmatpush.bf16.msra.mxu1 %v5975_v8 }
 0x1f8   : > { %1570 = vmatpush.bf16.msra.mxu2 %v5991_v23 }
 0x1fa   : > { %1544 = vmatpush.bf16.msra.mxu0 %v5959_v14 }
 0x1fb   : > { %1558 = vmatpush.bf16.msra.mxu1 %v5963_v17 }
 0x1fc   : > { %1571 = vmatpush.bf16.msra.mxu2 %v5979_v30 }
 0x1fe   : > { %1545 = vmatpush.bf16.msra.mxu0 %v5947_v24 }
 0x1ff   : > { %1559 = vmatpush.bf16.msra.mxu1 %v5951_v28 }
 0x200   : > { %1572 = vmatpush.bf16.msra.mxu2 %v5967_v33 }
 0x201   : > { %1546 = vmatmul.bf16.vlgmr.msra.gmra.mxu0 %v1402_v29 }
 0x202   : > { %1560 = vmatmul.bf16.vlgmr.msra.gmra.mxu1 %v1402_v29 }
 0x204   : > { %1573 = vmatpush.bf16.msra.mxu2 %v5955_v36 }
 0x207   : > { %1574 = vmatmul.bf16.vlgmr.msra.gmra.mxu2 %v1402_v29 }
 0x27e   : > { %v1547_v40 = vpop.f32.mrf.mxu0 }
 0x27f   : > { %v1548_v41 = vadd.f32 %v1547_v40, %v1404_v38  ;;  %v1561_v42 = vpop.f32.mrf.mxu1 }
 0x280   : > { %v1562_v43 = vadd.f32 %v1561_v42, %v1405_v39 }
 0x281   : > { %v1580_v44 = vmul.f32 0.17677669, %v1548_v41 }
 0x282   : > { %1646 = vrot.lane.b32.xlu1 %v1562_v43, %s8870_s30  ;;  %6040 = vmatpush.xpose.msk.msra.mxu3 %vm1581_vm2, %v1562_v43 }
 0x285   : > { %6041 = vmatmul.msk.f32.vlgmr.msra.gmra.mxu3 %vm1581_vm2, %v1580_v44 }
 0x286   : > { %v1549_v8 = vpop.f32.mrf.mxu0 }
 0x287   : > { %v1563_v6 = vpop.f32.mrf.mxu1  ;;  %v1550_v9 = vadd.f32 %v1549_v8, %v1404_v38 }
 0x288   : > { %v1564_v7 = vadd.f32 %v1563_v6, %v1405_v39 }
 0x289   : > { %v1858_v10 = vmul.f32 0.17677669, %v1550_v9 }
 0x28a   : > { %1644 = vrot.lane.b32.xlu1 %v1580_v44, %s8870_s30  ;;  %v1575_v46 = vpop.f32.mrf.mxu2 }
 0x28b   : > { %v9463_v47 = vadd.f32 %v1575_v46, %v1406_v45 }
 0x28d   : > { %1638 = vmatpush.msrb.mxu3 %v9463_v47 }
 0x292   : > { %1718 = vrot.lane.b32.xlu1 %v1562_v43, %s8871_s23  ;;  %v1577_v35 = vpop.f32.mrf.mxu2 }
 0x293   : > { %v9505_v39 = vadd.f32 %v1577_v35, %v1406_v45 }
 0x2f4   : > { %v1647_v48 = vpop.permute.xlu1 %1646 }
 0x2f5   : > { %6043 = vmatpush.xpose.msk.msra.mxu3 %vm1581_vm2, %v1647_v48 }
 0x2fc   : > { %v1645_v59 = vpop.permute.xlu1 %1644 }
 0x304   : > { %v1719_v61 = vpop.permute.xlu1 %1718 }
 0x308   : > { %v1605_v49 = vpop.f32.mrf.mxu3 }
 0x309   : > { %v1609_v50 = vsel %vm1608_vm3, %v1605_v49, -inf }
 0x30a   : > { %1610 = vmax.xlane.f32.xlu0 %v1609_v50 }
 0x37d   : > { %v1611_v51 = vpop.xlane.xlu0 %1610 }
 0x37e   : > { %v1612_v52 = vsub.f32 %v1605_v49, %v1611_v51 }
 0x380   : > { %v1613_v53 = vmul.f32 1.442695, %v1612_v52 }
 0x382   : > { %8097 = vpow2.f32 %v1613_v53 }
 0x388   : > { %v8098_v54 = vpop.eup %8097 }
 0x389   : > { %v1615_v55 = vsel %vm1608_vm3, %v8098_v54, 0.0 }
 0x38a   : > { %1616 = vadd.xlane.f32.xlu0 %v1615_v55 }
 0x39e   : > { %1684 = vrot.lane.b32.xlu0 %v9463_v47, %s8870_s30 }
 0x3fd   : > { %v1617_v56 = vpop.xlane.xlu0 %1616 }
 0x3fe   : > { %8099 = vrcp.f32 %v1617_v56 }
 0x404   : > { %v8100_v57 = vpop.eup %8099 }
 0x405   : > { %v1619_v58 = vmul.f32 %v8100_v57, %v8098_v54 }
 0x407   : > { %6042 = vmatmul.msk.f32.vlgmr.msrb.gmra.mxu3 %vm1608_vm3, %v1619_v58 }
 0x40f   : > { %6044 = vmatmul.msk.f32.vlgmr.msra.gmra.mxu3 %vm1581_vm2, %v1645_v59 }
 0x410   : > { %v1685_v60 = vpop.permute.xlu0 %1684 }
 0x411   : > { %1705 = vmatpush.msrb.mxu3 %v1685_v60 }
 0x413   : > { %6046 = vmatpush.xpose.msk.msra.mxu3 %vm1581_vm2, %v1719_v61 }
 0x48a   : > { %v1640_v62 = vpop.f32.mrf.mxu3 }
 0x48b   : > { %1643 = vst.msk [vmem:[#allocation3] sm:$0xff] %vm1581_vm2, %v1640_v62 }
 0x492   : > { %v1669_v63 = vpop.f32.mrf.mxu3 }
 0x493   : > { %v1672_v0 = vsel %vm1608_vm3, %v1669_v63, -inf }
 0x494   : > { %1673 = vmax.xlane.f32.xlu2 %v1672_v0 }
 0x507   : > { %v1674_v1 = vpop.xlane.xlu2 %1673 }
 0x508   : > { %v1675_v2 = vsub.f32 %v1669_v63, %v1674_v1 }
 0x50a   : > { %v1676_v3 = vmul.f32 1.442695, %v1675_v2 }
 0x50c   : > { %8101 = vpow2.f32 %v1676_v3 }
 0x512   : > { %v8102_v4 = vpop.eup %8101 }
 0x513   : > { %v1678_v5 = vsel %vm1608_vm3, %v8102_v4, 0.0 }
 0x514   : > { %1679 = vadd.xlane.f32.xlu2 %v1678_v5 }
 0x52c   : > { %1716 = vrot.lane.b32.xlu2 %v1580_v44, %s8871_s23 }
 0x534   : > { %1755 = vrot.lane.b32.xlu2 %v9463_v47, %s8871_s23 }
 0x53c   : > { %1789 = vrot.lane.b32.xlu2 %v1562_v43, %s8872_s5 }
 0x544   : > { %1787 = vrot.lane.b32.xlu2 %v1580_v44, %s8872_s5 }
 0x54c   : > { %1922 = vrot.lane.b32.xlu2 %v1564_v7, %s8870_s30 }
 0x554   : > { %1993 = vrot.lane.b32.xlu2 %v1564_v7, %s8871_s23 }
 0x55c   : > { %2063 = vrot.lane.b32.xlu2 %v1564_v7, %s8872_s5 }
 0x564   : > { %2061 = vrot.lane.b32.xlu2 %v1858_v10, %s8872_s5 }
 0x587   : > { %v1680_v11 = vpop.xlane.xlu2 %1679 }
 0x588   : > { %8103 = vrcp.f32 %v1680_v11 }
 0x58e   : > { %v8104_v12 = vpop.eup %8103 }
 0x58f   : > { %v1682_v13 = vmul.f32 %v8104_v12, %v8102_v4  ;;  %v1717_v14 = vpop.permute.xlu2 %1716 }
 0x591   : > { %6045 = vmatmul.msk.f32.vlgmr.msrb.gmra.mxu3 %vm1608_vm3, %v1682_v13 }
 0x597   : > { %v1756_v15 = vpop.permute.xlu2 %1755 }
 0x598   : > { %1776 = vmatpush.msrb.mxu3 %v1756_v15 }
 0x599   : > { %6047 = vmatmul.msk.f32.vlgmr.msra.gmra.mxu3 %vm1581_vm2, %v1717_v14 }
 0x59a   : > { %6052 = vmatpush.xpose.msk.msra.mxu3 %vm1581_vm2, %v1564_v7 }
 0x59f   : > { %v1790_v16 = vpop.permute.xlu2 %1789 }
 0x5a0   : > { %6049 = vmatpush.xpose.msk.msrb.mxu0 %vm1581_vm2, %v1790_v16 }
 0x5a7   : > { %v1788_v17 = vpop.permute.xlu2 %1787 }
 0x5a8   : > { %6050 = vmatmul.msk.f32.vlgmr.msrb.gmra.mxu0 %vm1581_vm2, %v1788_v17 }
 0x5af   : > { %v1923_v18 = vpop.permute.xlu2 %1922 }
 0x5b0   : > { %6055 = vmatpush.xpose.msk.msra.mxu0 %vm1581_vm2, %v1923_v18 }
 0x5b7   : > { %v1994_v19 = vpop.permute.xlu2 %1993 }
 0x5b8   : > { %6058 = vmatpush.xpose.msk.msrb.mxu0 %vm1581_vm2, %v1994_v19 }
 0x5bf   : > { %v2064_v33 = vpop.permute.xlu2 %2063 }
 0x5c7   : > { %v2062_v37 = vpop.permute.xlu2 %2061 }
 0x614   : > { %v1707_v20 = vpop.f32.mrf.mxu3 }
 0x61c   : > { %v1741_v21 = vpop.f32.mrf.mxu3 }
 0x61d   : > { %v1744_v23 = vsel %vm1608_vm3, %v1741_v21, -inf }
 0x61e   : > { %1745 = vmax.xlane.f32.xlu1 %v1744_v23 }
 0x625   : > { %v1812_v24 = vpop.f32.mrf.mxu0 }
 0x626   : > { %v1815_v26 = vsel %vm1608_vm3, %v1812_v24, -inf }
 0x637   : > { %1920 = vrot.lane.b32.xlu1 %v1858_v10, %s8870_s30 }
 0x661   : > { %1816 = vmax.xlane.f32.xlu1 %v1815_v26 }
 0x691   : > { %v1746_v27 = vpop.xlane.xlu1 %1745 }
 0x692   : > { %v1747_v28 = vsub.f32 %v1741_v21, %v1746_v27 }
 0x694   : > { %v1748_v29 = vmul.f32 1.442695, %v1747_v28 }
 0x696   : > { %8105 = vpow2.f32 %v1748_v29 }
 0x69c   : > { %v8106_v30 = vpop.eup %8105 }
 0x69d   : > { %v1750_v31 = vsel %vm1608_vm3, %v8106_v30, 0.0 }
 0x69e   : > { %1751 = vadd.xlane.f32.xlu0 %v1750_v31 }
 0x6a9   : > { %v1921_v32 = vpop.permute.xlu1 %1920 }
 0x6aa   : > { %6056 = vmatmul.msk.f32.vlgmr.msra.gmra.mxu0 %vm1581_vm2, %v1921_v32 }
 0x6ab   : > { %6061 = vmatpush.xpose.msk.msra.mxu0 %vm1581_vm2, %v2064_v33 }
 0x6b2   : > { %1991 = vrot.lane.b32.xlu0 %v1858_v10, %s8871_s23 }
 0x6d4   : > { %v1817_v40 = vpop.xlane.xlu1 %1816 }
 0x6d5   : > { %v1818_v41 = vsub.f32 %v1812_v24, %v1817_v40  ;;  %v7558_v40 = vld [vmem:[%s9357_s26 + $0x38] sm:$0xff] }
 0x6d6   : > { %2202 = vmatpush.bf16.msrb.mxu2 %v7558_v40  ;;  %v7623_v40 = vld [vmem:[%s9360_s17 + $0x204] sm:$0xf] }
 0x6d7   : > { %v1819_v42 = vmul.f32 1.442695, %v1818_v41  ;;  %v7557_v41 = vld [vmem:[%s9357_s26 + $0x30] sm:$0xff] }
 0x6da   : > { %2203 = vmatpush.bf16.msrb.mxu2 %v7557_v41 }
 0x711   : > { %v1752_v34 = vpop.xlane.xlu0 %1751 }
 0x712   : > { %8107 = vrcp.f32 %v1752_v34 }
 0x713   : > { %8109 = vpow2.f32 %v1819_v42  ;;  %v7556_v42 = vld [vmem:[%s9357_s26 + $0x28] sm:$0xff] }
 0x714   : > { %2204 = vmatpush.bf16.msrb.mxu2 %v7556_v42  ;;  %v6356_v42 = vld [vmem:[%s9360_s17 + $0x240] sm:$0xf0] }
 0x718   : > { %v8108_v36 = vpop.eup %8107 }
 0x719   : > { %v1754_v38 = vmul.f32 %v8108_v36, %v8106_v30  ;;  %v8110_v45 = vpop.eup %8109 }
 0x71a   : > { %v1821_v48 = vsel %vm1608_vm3, %v8110_v45, 0.0 }
 0x71b   : > { %6048 = vmatmul.msk.f32.vlgmr.msrb.gmra.mxu3 %vm1608_vm3, %v1754_v38 }
 0x71c   : > { %1914 = vmatpush.msrb.mxu3 %v9505_v39 }
 0x723   : > { %6053 = vmatmul.msk.f32.vlgmr.msra.gmra.mxu3 %vm1581_vm2, %v1858_v10 }
 0x724   : > { %v1992_v43 = vpop.permute.xlu0 %1991 }
 0x725   : > { %6059 = vmatmul.msk.f32.vlgmr.msrb.gmra.mxu0 %vm1581_vm2, %v1992_v43  ;;  %v7555_v43 = vld [vmem:[%s9357_s26 + $0x20] sm:$0xff] }
 0x726   : > { %2205 = vmatpush.bf16.msrb.mxu2 %v7555_v43  ;;  %v6362_v43 = vld [vmem:[%s9360_s17 + $0x208] sm:$0xf] }
 0x727   : > { %v1945_v44 = vpop.f32.mrf.mxu0 }
 0x728   : > { %v1948_v46 = vsel %vm1608_vm3, %v1945_v44, -inf }
 0x729   : > { %1949 = vmax.xlane.f32.xlu0 %v1948_v46  ;;  %v7553_v46 = vld [vmem:[%s9357_s26 + $0x10] sm:$0xff] }
 0x72d   : > { %6062 = vmatmul.msk.f32.vlgmr.msra.gmra.mxu0 %vm1581_vm2, %v2062_v37  ;;  %v7552_v37 = vld [vmem:[%s9357_s26 + $0x8] sm:$0xff] }
 0x731   : > { %1822 = vadd.xlane.f32.xlu0 %v1821_v48 }
 0x745   : > { %1826 = vrot.lane.b32.xlu0 %v9463_v47, %s8872_s5 }
 0x74d   : > { %2100 = vrot.lane.b32.xlu0 %v9505_v39, %s8872_s5 }
 0x755   : > { %1711 = vrot.lane.b32.xlu0 %v1707_v20, %s8872_s5 }
 0x79c   : > { %v1950_v50 = vpop.xlane.xlu0 %1949 }
 0x79d   : > { %v1951_v53 = vsub.f32 %v1945_v44, %v1950_v50  ;;  %v7554_v44 = vld [vmem:[%s9357_s26 + $0x18] sm:$0xff] }
 0x79e   : > { %v1778_v49 = vpop.f32.mrf.mxu3  ;;  %2206 = vmatpush.bf16.msrb.mxu2 %v7554_v44  ;;  %v7632_v44 = vld [vmem:[%s9360_s17 + $0x244] sm:$0xf0] }
 0x79f   : > { %1782 = vrot.lane.b32.xlu0 %v1778_v49, %s8871_s23  ;;  %v1952_v56 = vmul.f32 1.442695, %v1951_v53 }
 0x7a1   : > { %8111 = vpow2.f32 %v1952_v56 }
 0x7a2   : > { %v2016_v51 = vpop.f32.mrf.mxu0  ;;  %2207 = vmatpush.bf16.msrb.mxu2 %v7553_v46  ;;  %v7624_v46 = vld [vmem:[%s9360_s17 + $0x20c] sm:$0xf] }
 0x7a3   : > { %v2019_v52 = vsel %vm1608_vm3, %v2016_v51, -inf }
 0x7a4   : > { %2020 = vmax.xlane.f32.xlu1 %v2019_v52  ;;  %v1823_v47 = vpop.xlane.xlu0 %1822 }
 0x7a5   : > { %8113 = vrcp.f32 %v1823_v47 }
 0x7a6   : > { %v1882_v54 = vpop.f32.mrf.mxu3  ;;  %2208 = vmatpush.bf16.msrb.mxu2 %v7552_v37  ;;  %v6364_v37 = vld [vmem:[%s9360_s17 + $0x248] sm:$0xf0] }
 0x7a7   : > { %v1885_v55 = vsel %vm1608_vm3, %v1882_v54, -inf  ;;  %v8112_v59 = vpop.eup %8111 }
 0x7a8   : > { %1886 = vmax.xlane.f32.xlu2 %v1885_v55  ;;  %v1954_v62 = vsel %vm1608_vm3, %v8112_v59, 0.0  ;;  %v8091_v55 = vld [vmem:[%s1046_s1] ss:$0 sm:$0xff] }
 0x7aa   : > { %v2086_v57 = vpop.f32.mrf.mxu0 }
 0x7ab   : > { %v2089_v58 = vsel %vm1608_vm3, %v2086_v57, -inf  ;;  %v8114_v60 = vpop.eup %8113 }
 0x7ac   : > { %v1825_v63 = vmul.f32 %v8114_v60, %v8110_v45  ;;  %v7551_v45 = vld [vmem:[%s9357_s26] sm:$0xff]  ;;  %s10222_s26 = scalar_lea.vmem [#allocation25], %s9342_s29  ;;  %s10223_s29 = sld [smem:[#allocation41_spill]] }
 0x7ad   : > { %2209 = vmatpush.bf16.msrb.mxu2 %v7551_v45 }
 0x7b0   : > { %2090 = vmax.xlane.f32.xlu2 %v2089_v58 }
 0x7b2   : > { %p7120_p4 = scmp.ne.s32.totalorder %s10223_s29, 1 }
 0x7b7   : > { %v1827_v61 = vpop.permute.xlu0 %1826 }
 0x7b8   : > { %1955 = vadd.xlane.f32.xlu2 %v1954_v62  ;;  %1847 = vmatpush.msrb.mxu1 %v1827_v61  ;;  %v8873_v61 = vmov 128.0  }
 0x7b9   : > { %6051 = vmatmul.msk.f32.vlgmr.msrb.gmra.mxu1 %vm1608_vm3, %v1825_v63 }
 0x7bf   : > { %v2101_v0 = vpop.permute.xlu0 %2100 }
 0x7c7   : > { %v1712_v1 = vpop.permute.xlu0 %1711 }
 0x7c8   : > { %1715 = vst.msk [vmem:[#allocation3] sm:$0xff] %vm1714_vm4, %v1712_v1  ;;  %v7679_v1 = vld [vmem:[%s9360_s17 + $0x3bc] sm:$0xf0] }
 0x811   : > { %v1783_v2 = vpop.permute.xlu0 %1782 }
 0x812   : > { %1786 = vst.msk [vmem:[#allocation3] sm:$0xff] %vm1785_vm5, %v1783_v2  ;;  %v7671_v2 = vld [vmem:[%s9360_s17 + $0x384] sm:$0xf] }
 0x817   : > { %v2021_v3 = vpop.xlane.xlu1 %2020 }
 0x818   : > { %v2022_v4 = vsub.f32 %v2016_v51, %v2021_v3  ;;  %v6548_v3 = vld [vmem:[%s9360_s17 + $0x3c0] sm:$0xf0] }
 0x81a   : > { %v2023_v5 = vmul.f32 1.442695, %v2022_v4  ;;  %v6554_v4 = vld [vmem:[%s9360_s17 + $0x388] sm:$0xf] }
 0x81b   : > { %v1887_v6 = vpop.xlane.xlu2 %1886 }
 0x81c   : > { %8115 = vpow2.f32 %v2023_v5  ;;  %v1888_v7 = vsub.f32 %v1882_v54, %v1887_v6  ;;  %v7680_v5 = vld [vmem:[%s9360_s17 + $0x3c4] sm:$0xf0]  ;;  %v6551_v6 = vor.u32 %v7671_v2, %v6548_v3 }
 0x81e   : > { %v1889_v8 = vmul.f32 1.442695, %v1888_v7  ;;  %v6555_v7 = vor.u32 %v7680_v5, %v6554_v4  ;;  %3096 = vmatpush.bf16.msrb.mxu0 %v6551_v6 }
 0x820   : > { %8117 = vpow2.f32 %v1889_v8  ;;  %v7672_v8 = vld [vmem:[%s9360_s17 + $0x38c] sm:$0xf] }
 0x822   : > { %v8116_v9 = vpop.eup %8115 }
 0x823   : > { %v2091_v10 = vpop.xlane.xlu2 %2090  ;;  %v2025_v11 = vsel %vm1608_vm3, %v8116_v9, 0.0 }
 0x824   : > { %v2092_v12 = vsub.f32 %v2086_v57, %v2091_v10  ;;  %2026 = vadd.xlane.f32.xlu1 %v2025_v11  ;;  %v6482_v10 = vld [vmem:[%s9360_s17 + $0x300] sm:$0xf] }
 0x826   : > { %v2093_v13 = vmul.f32 1.442695, %v2092_v12  ;;  %v8118_v14 = vpop.eup %8117  ;;  %v7663_v12 = vld [vmem:[%s9360_s17 + $0x33c] sm:$0xf0] }
 0x827   : > { %v1891_v15 = vsel %vm1608_vm3, %v8118_v14, 0.0 }
 0x828   : > { %8119 = vpow2.f32 %v2093_v13  ;;  %v7655_v13 = vld [vmem:[%s9360_s17 + $0x304] sm:$0xf] }
 0x82b   : > { %v1956_v19 = vpop.xlane.xlu2 %1955 }
 0x82c   : > { %1892 = vadd.xlane.f32.xlu1 %v1891_v15  ;;  %v6483_v15 = vor.u32 %v7663_v12, %v6482_v10  ;;  %v6234_v12 = vld [vmem:[%s9360_s17 + $0x108] sm:$0xf] }
 0x82e   : > { %v8120_v16 = vpop.eup %8119 }
 0x82f   : > { %v2095_v17 = vsel %vm1608_vm3, %v8120_v16, 0.0 }
 0x830   : > { %2096 = vadd.xlane.f32.xlu2 %v2095_v17  ;;  %v6490_v17 = vld [vmem:[%s9360_s17 + $0x308] sm:$0xf] }
 0x836   : > { %v1849_v35 = vpop.f32.mrf.mxu1 }
 0x845   : > { %1960 = vrot.lane.b32.xlu1 %v9505_v39, %s8870_s30 }
 0x848   : > { %2030 = vrot.lane.b32.xlu2 %v9505_v39, %s8871_s23 }
 0x897   : > { %v2027_v18 = vpop.xlane.xlu1 %2026 }
 0x89f   : > { %v1893_v20 = vpop.xlane.xlu1 %1892 }
 0x8a0   : > { %8121 = vrcp.f32 %v1893_v20 }
 0x8a1   : > { %8123 = vrcp.f32 %v2027_v18  ;;  %v7664_v18 = vld [vmem:[%s9360_s17 + $0x344] sm:$0xf0] }
 0x8a2   : > { %8125 = vrcp.f32 %v1956_v19  ;;  %v7656_v19 = vld [vmem:[%s9360_s17 + $0x30c] sm:$0xf]  ;;  %v6491_v20 = vor.u32 %v7664_v18, %v6490_v17  ;;  %v6162_v18 = vld [vmem:[%s9360_s17 + $0x80] sm:$0xf] }
 0x8a3   : > { %v2097_v21 = vpop.xlane.xlu2 %2096 }
 0x8a4   : > { %8127 = vrcp.f32 %v2097_v21  ;;  %v6492_v21 = vld [vmem:[%s9360_s17 + $0x348] sm:$0xf0] }
 0x8a5   : > { %8129 = vrcp.f32 %v8873_v61 }
 0x8a6   : > { %v8122_v23 = vpop.eup %8121 }
 0x8a7   : > { %v1895_v24 = vmul.f32 %v8122_v23, %v8118_v14  ;;  %v8124_v27 = vpop.eup %8123  ;;  %v6484_v14 = vld [vmem:[%s9360_s17 + $0x340] sm:$0xf0]  ;;  %v6418_v23 = vld [vmem:[%s9360_s17 + $0x280] sm:$0xf] }
 0x8a8   : > { %v2029_v28 = vmul.f32 %v8124_v27, %v8116_v9  ;;  %v8126_v29 = vpop.eup %8125  ;;  %v6556_v9 = vld [vmem:[%s9360_s17 + $0x3c8] sm:$0xf0]  ;;  %v7639_v27 = vld [vmem:[%s9360_s17 + $0x284] sm:$0xf] }
 0x8a9   : > { %6054 = vmatmul.msk.f32.vlgmr.msrb.gmra.mxu3 %vm1608_vm3, %v1895_v24  ;;  %v1958_v30 = vmul.f32 %v8126_v29, %v8112_v59  ;;  %v6559_v11 = vor.u32 %v7672_v8, %v6556_v9  ;;  %v7647_v24 = vld [vmem:[%s9360_s17 + $0x2bc] sm:$0xf0]  ;;  %v6426_v29 = vld [vmem:[%s9360_s17 + $0x288] sm:$0xf]  ;;  %v7591_v9 = vld [vmem:[%s9360_s17 + $0x104] sm:$0xf] }
 0x8aa   : > { %v8128_v32 = vpop.eup %8127  ;;  %v7599_v8 = vld [vmem:[%s9360_s17 + $0x13c] sm:$0xf0] }
 0x8ab   : > { %v2031_v26 = vpop.permute.xlu2 %2030  ;;  %v2099_v33 = vmul.f32 %v8128_v32, %v8120_v16  ;;  %v9563_v62 = vpop.eup %8129  ;;  %v6487_v16 = vor.u32 %v7655_v13, %v6484_v14  ;;  %3124 = vmatpush.bf16.msra.mxu2 %v6559_v11  ;;  %v7648_v32 = vld [vmem:[%s9360_s17 + $0x2c4] sm:$0xf0]  ;;  %v6228_v11 = vld [vmem:[%s9360_s17 + $0x140] sm:$0xf0] }
 0x8ac   : > { %2051 = vmatpush.msra.mxu3 %v2031_v26  ;;  %v6495_v26 = vor.u32 %v7656_v19, %v6492_v21  ;;  %vm2229_vm7 = vweird.f32 %v9563_v62  ;;  %v7600_v13 = vld [vmem:[%s9360_s17 + $0x144] sm:$0xf0]  ;;  %v6231_v14 = vor.u32 %v7591_v9, %v6228_v11  ;;  %v7583_v19 = vld [vmem:[%s9360_s17 + $0xbc] sm:$0xf0]  ;;  %v6442_v11 = vld [vmem:[%s9360_s17 + $0x298] sm:$0xf] }
 0x8ad   : > { %3097 = vmatpush.bf16.msrb.mxu0 %v6487_v16  ;;  %v6236_v16 = vld [vmem:[%s9360_s17 + $0x148] sm:$0xf0]  ;;  %v6163_v21 = vor.u32 %v7583_v19, %v6162_v18  ;;  %v7633_v18 = vld [vmem:[%s9360_s17 + $0x24c] sm:$0xf0]  ;;  %v7625_v19 = vld [vmem:[%s9360_s17 + $0x214] sm:$0xf] }
 0x8af   : > { %3125 = vmatpush.bf16.msra.mxu2 %v6495_v26  ;;  %v7584_v26 = vld [vmem:[%s9360_s17 + $0xc4] sm:$0xf0] }
 0x8b1   : > { %6060 = vmatmul.msk.f32.vlgmr.msra.gmra.mxu3 %vm1608_vm3, %v2029_v28  ;;  %v6420_v28 = vld [vmem:[%s9360_s17 + $0x2c0] sm:$0xf0] }
 0x8b7   : > { %v1961_v31 = vpop.permute.xlu1 %1960 }
 0x8b8   : > { %1981 = vmatpush.msra.mxu1 %v1961_v31  ;;  %v6419_v31 = vor.u32 %v7647_v24, %v6418_v23  ;;  %v6164_v23 = vld [vmem:[%s9360_s17 + $0xc0] sm:$0xf0]  ;;  %v6170_v24 = vld [vmem:[%s9360_s17 + $0x88] sm:$0xf] }
 0x8b9   : > { %6057 = vmatmul.msk.f32.vlgmr.msra.gmra.mxu1 %vm1608_vm3, %v1958_v30 }
 0x8ba   : > { %2121 = vmatpush.msrb.mxu1 %v2101_v0  ;;  %v6546_v0 = vld [vmem:[%s9360_s17 + $0x380] sm:$0xf] }
 0x8bc   : > { %3110 = vmatpush.bf16.msra.mxu1 %v6555_v7  ;;  %v6226_v7 = vld [vmem:[%s9360_s17 + $0x100] sm:$0xf] }
 0x8bd   : > { %v6227_v10 = vor.u32 %v7599_v8, %v6226_v7  ;;  %v7649_v7 = vld [vmem:[%s9360_s17 + $0x2cc] sm:$0xf0]  ;;  %v7641_v8 = vld [vmem:[%s9360_s17 + $0x294] sm:$0xf] }
 0x8c0   : > { %3111 = vmatpush.bf16.msra.mxu1 %v6491_v20  ;;  %v7575_v20 = vld [vmem:[%s9360_s17 + $0x84] sm:$0xf] }
 0x8c1   : > { %6063 = vmatmul.msk.f32.vlgmr.msrb.gmra.mxu1 %vm1608_vm3, %v2099_v33  ;;  %v7640_v33 = vld [vmem:[%s9360_s17 + $0x28c] sm:$0xf] }
 0x92c   : > { %v1916_v34 = vpop.f32.mrf.mxu3 }
 0x92d   : > { %1919 = vst.msk [vmem:[#allocation3 + $0x8] sm:$0xff] %vm1581_vm2, %v1916_v34  ;;  %v6428_v34 = vld [vmem:[%s9360_s17 + $0x2c8] sm:$0xf0] }
 0x92e   : > { %v6431_v41 = vor.u32 %v7640_v33, %v6428_v34  ;;  %v7567_v33 = vld [vmem:[%s9360_s17 + $0x3c] sm:$0xf0]  ;;  %v7559_v34 = vld [vmem:[%s9360_s17 + $0x4] sm:$0xf] }
 0x930   : > { %3126 = vmatpush.bf16.msra.mxu2 %v6431_v41 }
 0x934   : > { %v2053_v36 = vpop.f32.mrf.mxu3 }
 0x935   : > { %2057 = vrot.lane.b32.xlu2 %v2053_v36, %s8871_s23  ;;  %v6427_v36 = vor.u32 %v7648_v32, %v6426_v29  ;;  %v7576_v29 = vld [vmem:[%s9360_s17 + $0x8c] sm:$0xf]  ;;  %v6098_v32 = vld [vmem:[%s9360_s17] sm:$0xf] }
 0x936   : > { %v1983_v38 = vpop.f32.mrf.mxu1 }
 0x937   : > { %1987 = vrot.lane.b32.xlu1 %v1983_v38, %s8872_s5  ;;  %v6354_v38 = vld [vmem:[%s9360_s17 + $0x200] sm:$0xf]  ;;  %3112 = vmatpush.bf16.msra.mxu1 %v6427_v36  ;;  %v6100_v36 = vld [vmem:[%s9360_s17 + $0x40] sm:$0xf0] }
 0x93e   : > { %v2123_v39 = vpop.f32.mrf.mxu1 }
 0x93f   : > { %1853 = vrot.lane.b32.xlu1 %v1849_v35, %s8870_s30  ;;  %2127 = vrot.lane.b32.xlu0 %v2123_v39, %s8870_s30  ;;  %v6423_v35 = vor.u32 %v7639_v27, %v6420_v28  ;;  %v7631_v39 = vld [vmem:[%s9360_s17 + $0x23c] sm:$0xf0]  ;;  %v6167_v27 = vor.u32 %v7575_v20, %v6164_v23  ;;  %v6171_v28 = vor.u32 %v7584_v26, %v6170_v24  ;;  %v6378_v23 = vld [vmem:[%s9360_s17 + $0x218] sm:$0xf] }
 0x940   : > { %v7634_v24 = vld [vmem:[%s9360_s17 + $0x254] sm:$0xf0] }
 0x941   : > { %3098 = vmatpush.bf16.msrb.mxu0 %v6423_v35  ;;  %v6099_v35 = vor.u32 %v7567_v33, %v6098_v32  ;;  %v7617_v32 = vld [vmem:[%s9360_s17 + $0x1cc] sm:$0xf0]  ;;  %v7609_v33 = vld [vmem:[%s9360_s17 + $0x194] sm:$0xf] }
 0x98f   : > { %v2058_v49 = vpop.permute.xlu2 %2057 }
 0x9a9   : > { %v1988_v48 = vpop.permute.xlu1 %1987 }
 0x9aa   : > { %1990 = vst.msk [vmem:[#allocation3 + $0x8] sm:$0xff] %vm1714_vm4, %v1988_v48  ;;  %v6355_v48 = vor.u32 %v7631_v39, %v6354_v38  ;;  %v6106_v38 = vld [vmem:[%s9360_s17 + $0x8] sm:$0xf] }
 0x9ab   : > { %2060 = vst.msk [vmem:[#allocation3 + $0x8] sm:$0xff] %vm1785_vm5, %v2058_v49  ;;  %v6359_v49 = vor.u32 %v7623_v40, %v6356_v42  ;;  %v7568_v39 = vld [vmem:[%s9360_s17 + $0x44] sm:$0xf0]  ;;  %v6103_v40 = vor.u32 %v7559_v34, %v6100_v36  ;;  %v7560_v42 = vld [vmem:[%s9360_s17 + $0xc] sm:$0xf] }
 0x9ac   : > { %v6107_v41 = vor.u32 %v7568_v39, %v6106_v38  ;;  %v6314_v36 = vld [vmem:[%s9360_s17 + $0x198] sm:$0xf] }
 0x9ad   : > { %3099 = vmatpush.bf16.msrb.mxu0 %v6359_v49  ;;  %v7618_v38 = vld [vmem:[%s9360_s17 + $0x1d4] sm:$0xf0] }
 0x9b1   : > { %v1854_v50 = vpop.permute.xlu1 %1853  ;;  %v2128_v51 = vpop.permute.xlu0 %2127 }
 0x9b2   : > { %1857 = vst.msk [vmem:[#allocation3] sm:$0xff] %vm1856_vm6, %v1854_v50  ;;  %v6363_v50 = vor.u32 %v7632_v44, %v6362_v43  ;;  %v6108_v43 = vld [vmem:[%s9360_s17 + $0x48] sm:$0xf0]  ;;  %v6562_v44 = vld [vmem:[%s9360_s17 + $0x390] sm:$0xf] }
 0x9b3   : > { %2130 = vst.msk [vmem:[#allocation3 + $0x8] sm:$0xff] %vm1856_vm6, %v2128_v51  ;;  %v6290_v51 = vld [vmem:[%s9360_s17 + $0x180] sm:$0xf] }
 0x9b4   : > { %3113 = vmatpush.bf16.msra.mxu1 %v6363_v50 }
 0x9b9   : > { %v2131_v52 = vld [vmem:[#allocation3] sm:$0xff] }
 0x9ba   : > { %v2132_v53 = vld [vmem:[#allocation3 + $0x8] sm:$0xff] }
 0x9bb   : > { %v2150_v54 = vpack.c.bf16 %v2132_v53, %v2131_v52  ;;  %v7615_v52 = vld [vmem:[%s9360_s17 + $0x1bc] sm:$0xf0]  ;;  %v7607_v53 = vld [vmem:[%s9360_s17 + $0x184] sm:$0xf] }
 0x9bd   : > { %2210 = vmatmul.bf16.vlgmr.msrb.gmra.mxu2 %v2150_v54  ;;  %v6367_v54 = vor.u32 %v7624_v46, %v6364_v37  ;;  %v6111_v46 = vor.u32 %v7560_v42, %v6108_v43  ;;  %v7681_v37 = vld [vmem:[%s9360_s17 + $0x3cc] sm:$0xf0]  ;;  %v6316_v42 = vld [vmem:[%s9360_s17 + $0x1d8] sm:$0xf0] }
 0x9be   : > { %v6563_v49 = vor.u32 %v7681_v37, %v6562_v44  ;;  %v6242_v44 = vld [vmem:[%s9360_s17 + $0x110] sm:$0xf]  ;;  %v7593_v37 = vld [vmem:[%s9360_s17 + $0x114] sm:$0xf] }
 0x9bf   : > { %3127 = vmatpush.bf16.msra.mxu2 %v6367_v54 }
 0xa40   : > { %v2211_v56 = vpop.f32.mrf.mxu2 }
 0xa41   : > { %v2212_v47 = vadd.f32 %v8091_v55, %v2211_v56  ;;  %v6298_v56 = vld [vmem:[%s9360_s17 + $0x188] sm:$0xf] }
 0xa43   : > { %v9556_v57 = vadd.f32 %v2212_v47, %v9437_v22  ;;  %v2225_v22 = vmul.f32 128.0, %v9563_v62  ;;  %v7616_v47 = vld [vmem:[%s9360_s17 + $0x1c4] sm:$0xf0] }
 0xa45   : > { %2220 = vadd.xlane.f32.xlu2 %v9556_v57  ;;  %v2226_v63 = vsub.f32 1.0, %v2225_v22  ;;  %v6291_v22 = vor.u32 %v7615_v52, %v6290_v51  ;;  %v6570_v51 = vld [vmem:[%s9360_s17 + $0x398] sm:$0xf] }
 0xa46   : > { %v7682_v52 = vld [vmem:[%s9360_s17 + $0x3d4] sm:$0xf0] }
 0xa47   : > { %v2227_v30 = vmul.f32 %v9563_v62, %v2226_v63  ;;  %v6571_v54 = vor.u32 %v7682_v52, %v6570_v51 }
 0xa48   : > { %v2213_v58 = vpop.f32.mrf.mxu2 }
 0xa49   : > { %v2214_v59 = vadd.f32 %v8091_v55, %v2213_v58  ;;  %v2228_v45 = vadd.f32 %v9563_v62, %v2227_v30  ;;  %v6292_v55 = vld [vmem:[%s9360_s17 + $0x1c0] sm:$0xf0]  ;;  %v7608_v58 = vld [vmem:[%s9360_s17 + $0x18c] sm:$0xf] }
 0xa4a   : > { %v6295_v63 = vor.u32 %v7607_v53, %v6292_v55  ;;  %v6172_v30 = vld [vmem:[%s9360_s17 + $0xc8] sm:$0xf0]  ;;  %v7674_v53 = vld [vmem:[%s9360_s17 + $0x39c] sm:$0xf] }
 0xa4b   : > { %v9560_v60 = vadd.f32 %v2214_v59, %v9439_v25  ;;  %v6547_v25 = vor.u32 %v7679_v1, %v6546_v0  ;;  %v6300_v59 = vld [vmem:[%s9360_s17 + $0x1c8] sm:$0xf0]  ;;  %v9610_v61 = vsel %vm2229_vm7, %v9563_v62, %v2228_v45  ;;  %v6299_v0 = vor.u32 %v7616_v47, %v6298_v56  ;;  %v7673_v45 = vld [vmem:[%s9360_s17 + $0x394] sm:$0xf]  ;;  %v6572_v55 = vld [vmem:[%s9360_s17 + $0x3d8] sm:$0xf0] }
 0xa4c   : > { %v6303_v2 = vor.u32 %v7608_v58, %v6300_v59  ;;  %3100 = vmatpush.bf16.msrb.mxu0 %v6295_v63  ;;  %v6498_v56 = vld [vmem:[%s9360_s17 + $0x310] sm:$0xf]  ;;  %v6575_v58 = vor.u32 %v7674_v53, %v6572_v55  ;;  %v6500_v63 = vld [vmem:[%s9360_s17 + $0x350] sm:$0xf0]  ;;  %v7594_v53 = vld [vmem:[%s9360_s17 + $0x11c] sm:$0xf] }
 0xa4d   : > { %2222 = vadd.xlane.f32.xlu1 %v9560_v60  ;;  %3082 = vmatpush.bf16.msrb.mxu3 %v6547_v25  ;;  %v7665_v47 = vld [vmem:[%s9360_s17 + $0x34c] sm:$0xf0] }
 0xa4e   : > { %3114 = vmatpush.bf16.msra.mxu1 %v6299_v0  ;;  %3128 = vmatpush.bf16.msra.mxu2 %v6303_v2  ;;  %v6499_v59 = vor.u32 %v7665_v47, %v6498_v56  ;;  %v6506_v0 = vld [vmem:[%s9360_s17 + $0x318] sm:$0xf]  ;;  %v6178_v56 = vld [vmem:[%s9360_s17 + $0x90] sm:$0xf] }
 0xa4f   : > { %v7666_v2 = vld [vmem:[%s9360_s17 + $0x354] sm:$0xf0]  ;;  %v7585_v47 = vld [vmem:[%s9360_s17 + $0xcc] sm:$0xf0] }
 0xa50   : > { %3101 = vmatpush.bf16.msrb.mxu0 %v6231_v14 }
 0xa51   : > { %3083 = vmatpush.bf16.msrb.mxu3 %v6483_v15  ;;  %v7592_v15 = vld [vmem:[%s9360_s17 + $0x10c] sm:$0xf] }
 0xa52   : > { %v6239_v17 = vor.u32 %v7592_v15, %v6236_v16  ;;  %v6444_v15 = vld [vmem:[%s9360_s17 + $0x2d8] sm:$0xf0] }
 0xa54   : > { %3129 = vmatpush.bf16.msra.mxu2 %v6239_v17  ;;  %3102 = vmatpush.bf16.msrb.mxu0 %v6167_v27  ;;  %v6370_v17 = vld [vmem:[%s9360_s17 + $0x210] sm:$0xf]  ;;  %v6379_v27 = vor.u32 %v7634_v24, %v6378_v23 }
 0xa55   : > { %3084 = vmatpush.bf16.msrb.mxu3 %v6419_v31  ;;  %v6175_v31 = vor.u32 %v7576_v29, %v6172_v30  ;;  %v6371_v20 = vor.u32 %v7633_v18, %v6370_v17  ;;  %v6380_v29 = vld [vmem:[%s9360_s17 + $0x258] sm:$0xf0] }
 0xa58   : > { %3130 = vmatpush.bf16.msra.mxu2 %v6175_v31  ;;  %3103 = vmatpush.bf16.msrb.mxu0 %v6103_v40  ;;  %v6306_v31 = vld [vmem:[%s9360_s17 + $0x190] sm:$0xf]  ;;  %v6315_v40 = vor.u32 %v7618_v38, %v6314_v36  ;;  %v8092_v36 = vld [vmem:[%s1094_s28] ss:$0 sm:$0xff] }
 0xa59   : > { %3085 = vmatpush.bf16.msrb.mxu3 %v6355_v48  ;;  %v6564_v48 = vld [vmem:[%s9360_s17 + $0x3d0] sm:$0xf0]  ;;  %v6307_v34 = vor.u32 %v7617_v32, %v6306_v31 }
 0xa5a   : > { %v6567_v50 = vor.u32 %v7673_v45, %v6564_v48  ;;  %v6244_v48 = vld [vmem:[%s9360_s17 + $0x150] sm:$0xf0] }
 0xa5b   : > { %v6247_v51 = vor.u32 %v7593_v37, %v6244_v48  ;;  %v7683_v37 = vld [vmem:[%s9360_s17 + $0x3dc] sm:$0xf0]  ;;  %v6586_v48 = vld [vmem:[%s9360_s17 + $0x3a8] sm:$0xf] }
 0xa5c   : > { %3131 = vmatpush.bf16.msra.mxu2 %v6111_v46  ;;  %3152 = vmatpush.bf16.msra.mxu0 %v6567_v50  ;;  %v7601_v46 = vld [vmem:[%s9360_s17 + $0x14c] sm:$0xf0]  ;;  %v7602_v50 = vld [vmem:[%s9360_s17 + $0x154] sm:$0xf0] }
 0xa5d   : > { %3086 = vmatpush.bf16.msrb.mxu3 %v6291_v22  ;;  %v7657_v22 = vld [vmem:[%s9360_s17 + $0x314] sm:$0xf]  ;;  %v6243_v45 = vor.u32 %v7601_v46, %v6242_v44  ;;  %v6578_v46 = vld [vmem:[%s9360_s17 + $0x3a0] sm:$0xf] }
 0xa60   : > { %3180 = vmatpush.bf16.msrb.mxu2 %v6575_v58  ;;  %v7577_v58 = vld [vmem:[%s9360_s17 + $0x94] sm:$0xf] }
 0xa61   : > { %3087 = vmatpush.bf16.msrb.mxu3 %v6227_v10  ;;  %v6436_v10 = vld [vmem:[%s9360_s17 + $0x2d0] sm:$0xf0] }
 0xa65   : > { %3088 = vmatpush.bf16.msrb.mxu3 %v6163_v21  ;;  %v6372_v21 = vld [vmem:[%s9360_s17 + $0x250] sm:$0xf0] }
 0xa66   : > { %v6375_v26 = vor.u32 %v7625_v19, %v6372_v21 }
 0xa69   : > { %3089 = vmatpush.bf16.msrb.mxu3 %v6099_v35  ;;  %v6308_v35 = vld [vmem:[%s9360_s17 + $0x1d0] sm:$0xf0] }
 0xa6a   : > { %v6311_v39 = vor.u32 %v7609_v33, %v6308_v35 }
 0xa6d   : > { %3138 = vmatpush.bf16.msra.mxu3 %v6563_v49  ;;  %v6250_v49 = vld [vmem:[%s9360_s17 + $0x118] sm:$0xf] }
 0xa6e   : > { %v6251_v52 = vor.u32 %v7602_v50, %v6250_v49 }
 0xa71   : > { %3139 = vmatpush.bf16.msra.mxu3 %v6499_v59 }
 0xab8   : > { %v2221_v1 = vpop.xlane.xlu2 %2220 }
 0xab9   : > { %v2231_v25 = vmul.f32 %v9610_v61, %v2221_v1  ;;  %v6503_v1 = vor.u32 %v7657_v22, %v6500_v63  ;;  %v6179_v22 = vor.u32 %v7585_v47, %v6178_v56  ;;  %v6180_v63 = vld [vmem:[%s9360_s17 + $0xd0] sm:$0xf0]  ;;  %v6514_v56 = vld [vmem:[%s9360_s17 + $0x320] sm:$0xf] }
 0xaba   : > { %v7667_v47 = vld [vmem:[%s9360_s17 + $0x35c] sm:$0xf0] }
 0xabb   : > { %v9614_v3 = vsub.f32 %v9556_v57, %v2231_v25  ;;  %v7658_v25 = vld [vmem:[%s9360_s17 + $0x31c] sm:$0xf]  ;;  %3153 = vmatpush.bf16.msra.mxu0 %v6503_v1  ;;  %v7586_v1 = vld [vmem:[%s9360_s17 + $0xd4] sm:$0xf0] }
 0xabd   : > { %v2235_v62 = vmul.f32 %v9614_v3, %v9614_v3 }
 0xabf   : > { %2237 = vadd.xlane.f32.xlu0 %v2235_v62  ;;  %v6508_v62 = vld [vmem:[%s9360_s17 + $0x358] sm:$0xf0] }
 0xac0   : > { %v2223_v4 = vpop.xlane.xlu1 %2222 }
 0xac1   : > { %v2232_v5 = vmul.f32 %v9610_v61, %v2223_v4  ;;  %v6507_v4 = vor.u32 %v7666_v2, %v6506_v0  ;;  %v6186_v0 = vld [vmem:[%s9360_s17 + $0x98] sm:$0xf] }
 0xac3   : > { %v9620_v6 = vsub.f32 %v9560_v60, %v2232_v5  ;;  %v6235_v60 = vor.u32 %v7600_v13, %v6234_v12  ;;  %v6511_v5 = vor.u32 %v7658_v25, %v6508_v62  ;;  %v7650_v12 = vld [vmem:[%s9360_s17 + $0x2d4] sm:$0xf0]  ;;  %v6439_v13 = vor.u32 %v7641_v8, %v6436_v10  ;;  %v6114_v8 = vld [vmem:[%s9360_s17 + $0x10] sm:$0xf] }
 0xac4   : > { %v6443_v14 = vor.u32 %v7650_v12, %v6442_v11  ;;  %v6183_v25 = vor.u32 %v7577_v58, %v6180_v63  ;;  %v6187_v62 = vor.u32 %v7586_v1, %v6186_v0  ;;  %v7561_v11 = vld [vmem:[%s9360_s17 + $0x14] sm:$0xf]  ;;  %v6516_v63 = vld [vmem:[%s9360_s17 + $0x360] sm:$0xf0]  ;;  %v6522_v0 = vld [vmem:[%s9360_s17 + $0x328] sm:$0xf] }
 0xac5   : > { %v2236_v57 = vmul.f32 %v9620_v6, %v9620_v6  ;;  %3115 = vmatpush.bf16.msra.mxu1 %v6235_v60  ;;  %v7642_v60 = vld [vmem:[%s9360_s17 + $0x29c] sm:$0xf]  ;;  %3181 = vmatpush.bf16.msrb.mxu2 %v6511_v5  ;;  %v6116_v12 = vld [vmem:[%s9360_s17 + $0x50] sm:$0xf0]  ;;  %v7668_v1 = vld [vmem:[%s9360_s17 + $0x364] sm:$0xf0] }
 0xac6   : > { %v6447_v16 = vor.u32 %v7642_v60, %v6444_v15  ;;  %3154 = vmatpush.bf16.msra.mxu0 %v6439_v13  ;;  %v6188_v5 = vld [vmem:[%s9360_s17 + $0xd8] sm:$0xf0]  ;;  %v6122_v13 = vld [vmem:[%s9360_s17 + $0x18] sm:$0xf] }
 0xac7   : > { %2239 = vadd.xlane.f32.xlu2 %v2236_v57  ;;  %v6434_v57 = vld [vmem:[%s9360_s17 + $0x290] sm:$0xf]  ;;  %v7570_v60 = vld [vmem:[%s9360_s17 + $0x54] sm:$0xf0]  ;;  %v7562_v15 = vld [vmem:[%s9360_s17 + $0x1c] sm:$0xf] }
 0xac8   : > { %v6435_v9 = vor.u32 %v7649_v7, %v6434_v57  ;;  %v6123_v17 = vor.u32 %v7570_v60, %v6122_v13  ;;  %v7644_v13 = vld [vmem:[%s9360_s17 + $0x2ac] sm:$0xf] }
 0xac9   : > { %3116 = vmatpush.bf16.msra.mxu1 %v6171_v28  ;;  %v7626_v28 = vld [vmem:[%s9360_s17 + $0x21c] sm:$0xf]  ;;  %3182 = vmatpush.bf16.msrb.mxu2 %v6447_v16 }
 0xaca   : > { %3140 = vmatpush.bf16.msra.mxu3 %v6435_v9  ;;  %v6383_v30 = vor.u32 %v7626_v28, %v6380_v29  ;;  %3155 = vmatpush.bf16.msra.mxu0 %v6375_v26  ;;  %v7569_v9 = vld [vmem:[%s9360_s17 + $0x4c] sm:$0xf0]  ;;  %v6124_v16 = vld [vmem:[%s9360_s17 + $0x58] sm:$0xf0] }
 0xacb   : > { %v6115_v10 = vor.u32 %v7569_v9, %v6114_v8  ;;  %v6127_v18 = vor.u32 %v7562_v15, %v6124_v16  ;;  %v7643_v9 = vld [vmem:[%s9360_s17 + $0x2a4] sm:$0xf]  ;;  %v6386_v16 = vld [vmem:[%s9360_s17 + $0x220] sm:$0xf] }
 0xacd   : > { %3117 = vmatpush.bf16.msra.mxu1 %v6107_v41  ;;  %v7610_v41 = vld [vmem:[%s9360_s17 + $0x19c] sm:$0xf]  ;;  %3183 = vmatpush.bf16.msrb.mxu2 %v6383_v30 }
 0xace   : > { %3141 = vmatpush.bf16.msra.mxu3 %v6371_v20  ;;  %v6319_v43 = vor.u32 %v7610_v41, %v6316_v42  ;;  %3156 = vmatpush.bf16.msra.mxu0 %v6311_v39  ;;  %v8093_v41 = vld [vmem:[%s1103_s6] ss:$0 sm:$0xff] }
 0xad1   : > { %3166 = vmatpush.bf16.msrb.mxu1 %v6571_v54  ;;  %v6252_v54 = vld [vmem:[%s9360_s17 + $0x158] sm:$0xf0]  ;;  %3184 = vmatpush.bf16.msrb.mxu2 %v6319_v43 }
 0xad2   : > { %3142 = vmatpush.bf16.msra.mxu3 %v6307_v34  ;;  %v6255_v55 = vor.u32 %v7594_v53, %v6252_v54  ;;  %3157 = vmatpush.bf16.msra.mxu0 %v6247_v51  ;;  %v7684_v51 = vld [vmem:[%s9360_s17 + $0x3e4] sm:$0xf0]  ;;  %v6579_v54 = vor.u32 %v7683_v37, %v6578_v46 }
 0xad3   : > { %v6587_v58 = vor.u32 %v7684_v51, %v6586_v48  ;;  %v6266_v48 = vld [vmem:[%s9360_s17 + $0x128] sm:$0xf] }
 0xad4   : > { %v7604_v51 = vld [vmem:[%s9360_s17 + $0x164] sm:$0xf0] }
 0xad5   : > { %3167 = vmatpush.bf16.msrb.mxu1 %v6507_v4  ;;  %v7578_v4 = vld [vmem:[%s9360_s17 + $0x9c] sm:$0xf]  ;;  %3185 = vmatpush.bf16.msrb.mxu2 %v6255_v55 }
 0xad6   : > { %3143 = vmatpush.bf16.msra.mxu3 %v6243_v45  ;;  %v6191_v57 = vor.u32 %v7578_v4, %v6188_v5  ;;  %3158 = vmatpush.bf16.msra.mxu0 %v6183_v25  ;;  %v7675_v45 = vld [vmem:[%s9360_s17 + $0x3a4] sm:$0xf]  ;;  %v6524_v25 = vld [vmem:[%s9360_s17 + $0x368] sm:$0xf0]  ;;  %v6450_v5 = vld [vmem:[%s9360_s17 + $0x2a0] sm:$0xf] }
 0xad9   : > { %3168 = vmatpush.bf16.msrb.mxu1 %v6443_v14  ;;  %v6119_v14 = vor.u32 %v7561_v11, %v6116_v12  ;;  %3186 = vmatpush.bf16.msrb.mxu2 %v6191_v57  ;;  %v7651_v57 = vld [vmem:[%s9360_s17 + $0x2dc] sm:$0xf0]  ;;  %v6458_v11 = vld [vmem:[%s9360_s17 + $0x2a8] sm:$0xf] }
 0xada   : > { %3144 = vmatpush.bf16.msra.mxu3 %v6179_v22  ;;  %v7659_v22 = vld [vmem:[%s9360_s17 + $0x324] sm:$0xf]  ;;  %v7652_v12 = vld [vmem:[%s9360_s17 + $0x2e4] sm:$0xf0]  ;;  %v6451_v60 = vor.u32 %v7651_v57, %v6450_v5  ;;  %v7571_v57 = vld [vmem:[%s9360_s17 + $0x5c] sm:$0xf0] }
 0xadb   : > { %3159 = vmatpush.bf16.msra.mxu0 %v6119_v14  ;;  %v6519_v4 = vor.u32 %v7659_v22, %v6516_v63  ;;  %v6460_v14 = vld [vmem:[%s9360_s17 + $0x2e8] sm:$0xf0]  ;;  %v7579_v22 = vld [vmem:[%s9360_s17 + $0xa4] sm:$0xf] }
 0xadc   : > { %v6196_v63 = vld [vmem:[%s9360_s17 + $0xe0] sm:$0xf0] }
 0xadd   : > { %3169 = vmatpush.bf16.msrb.mxu1 %v6379_v27  ;;  %3187 = vmatpush.bf16.msrb.mxu2 %v6127_v18  ;;  %v6459_v18 = vor.u32 %v7652_v12, %v6458_v11  ;;  %v6199_v5 = vor.u32 %v7579_v22, %v6196_v63  ;;  %v6138_v11 = vld [vmem:[%s9360_s17 + $0x28] sm:$0xf]  ;;  %v7629_v22 = vld [vmem:[%s9360_s17 + $0x234] sm:$0xf] }
 0xade   : > { %3145 = vmatpush.bf16.msra.mxu3 %v6115_v10  ;;  %v6452_v10 = vld [vmem:[%s9360_s17 + $0x2e0] sm:$0xf0]  ;;  %v7572_v12 = vld [vmem:[%s9360_s17 + $0x64] sm:$0xf0]  ;;  %v6404_v63 = vld [vmem:[%s9360_s17 + $0x270] sm:$0xf0] }
 0xadf   : > { %v6455_v15 = vor.u32 %v7643_v9, %v6452_v10 }
 0xae1   : > { %3170 = vmatpush.bf16.msrb.mxu1 %v6315_v40 }
 0xae5   : > { %3171 = vmatpush.bf16.msrb.mxu1 %v6251_v52  ;;  %v7676_v52 = vld [vmem:[%s9360_s17 + $0x3ac] sm:$0xf] }
 0xae9   : > { %3172 = vmatpush.bf16.msrb.mxu1 %v6187_v62  ;;  %v6515_v62 = vor.u32 %v7667_v47, %v6514_v56  ;;  %v6194_v56 = vld [vmem:[%s9360_s17 + $0xa0] sm:$0xf] }
 0xaea   : > { %v7587_v47 = vld [vmem:[%s9360_s17 + $0xdc] sm:$0xf0] }
 0xaed   : > { %3173 = vmatpush.bf16.msrb.mxu1 %v6123_v17  ;;  %v7635_v17 = vld [vmem:[%s9360_s17 + $0x25c] sm:$0xf0] }
 0xb32   : > { %v2238_v59 = vpop.xlane.xlu0 %2237 }
 0xb33   : > { %v2241_v2 = vmul.f32 %v2238_v59, %v9610_v61 }
 0xb35   : > { %v2243_v7 = vadd.f32 1e-05, %v2241_v2  ;;  %v7660_v2 = vld [vmem:[%s9360_s17 + $0x32c] sm:$0xf] }
 0xb36   : > { %v6527_v8 = vor.u32 %v7660_v2, %v6524_v25  ;;  %v7580_v2 = vld [vmem:[%s9360_s17 + $0xac] sm:$0xf] }
 0xb37   : > { %8131 = vrsqrt.f32 %v2243_v7  ;;  %vm2251_vm9 = vweird.f32 %v2243_v7  ;;  %v6204_v25 = vld [vmem:[%s9360_s17 + $0xe8] sm:$0xf0] }
 0xb38   : > { %v6207_v10 = vor.u32 %v7580_v2, %v6204_v25  ;;  %v7630_v2 = vld [vmem:[%s9360_s17 + $0x23c] sm:$0xf] }
 0xb39   : > { %v6412_v25 = vld [vmem:[%s9360_s17 + $0x278] sm:$0xf0] }
 0xb3a   : > { %v2240_v19 = vpop.xlane.xlu2 %2239 }
 0xb3b   : > { %v2242_v20 = vmul.f32 %v2240_v19, %v9610_v61  ;;  %v6463_v19 = vor.u32 %v7644_v13, %v6460_v14  ;;  %v7564_v13 = vld [vmem:[%s9360_s17 + $0x2c] sm:$0xf] }
 0xb3c   : > { %v6140_v14 = vld [vmem:[%s9360_s17 + $0x68] sm:$0xf0] }
 0xb3d   : > { %v8132_v21 = vpop.eup %8131  ;;  %v2244_v23 = vadd.f32 1e-05, %v2242_v20  ;;  %v7627_v20 = vld [vmem:[%s9360_s17 + $0x224] sm:$0xf] }
 0xb3e   : > { %v2246_v24 = vmul.f32 %v8132_v21, %v2243_v7  ;;  %vm2252_vm8 = vweird.f32 %v8132_v21  ;;  %v6523_v7 = vor.u32 %v7668_v1, %v6522_v0  ;;  %v6202_v0 = vld [vmem:[%s9360_s17 + $0xa8] sm:$0xf] }
 0xb3f   : > { %8133 = vrsqrt.f32 %v2244_v23  ;;  %vm2253_vm10 = vmor %vm2251_vm9, %vm2252_vm8  ;;  %vm2261_vm12 = vweird.f32 %v2244_v23  ;;  %v7588_v1 = vld [vmem:[%s9360_s17 + $0xe4] sm:$0xf0] }
 0xb40   : > { %v2247_v26 = vmul.f32 %v8132_v21, %v2246_v24  ;;  %v7636_v24 = vld [vmem:[%s9360_s17 + $0x264] sm:$0xf0]  ;;  %v6203_v9 = vor.u32 %v7588_v1, %v6202_v0  ;;  %v6410_v0 = vld [vmem:[%s9360_s17 + $0x238] sm:$0xf] }
 0xb41   : > { %v7638_v1 = vld [vmem:[%s9360_s17 + $0x274] sm:$0xf0] }
 0xb42   : > { %v2248_v27 = vmul.f32 0.5, %v2247_v26  ;;  %v7628_v26 = vld [vmem:[%s9360_s17 + $0x22c] sm:$0xf] }
 0xb44   : > { %v2249_v28 = vsub.f32 1.5, %v2248_v27  ;;  %v6396_v27 = vld [vmem:[%s9360_s17 + $0x268] sm:$0xf0] }
 0xb45   : > { %v8134_v29 = vpop.eup %8133 }
 0xb46   : > { %v2250_v30 = vmul.f32 %v8132_v21, %v2249_v28  ;;  %v2256_v31 = vmul.f32 %v8134_v29, %v2244_v23  ;;  %vm2262_vm11 = vweird.f32 %v8134_v29  ;;  %v6394_v23 = vld [vmem:[%s9360_s17 + $0x228] sm:$0xf]  ;;  %v6387_v28 = vor.u32 %v7635_v17, %v6386_v16  ;;  %v7677_v16 = vld [vmem:[%s9360_s17 + $0x3b4] sm:$0xf] }
 0xb47   : > { %vm2263_vm13 = vmor %vm2261_vm12, %vm2262_vm11  ;;  %v6596_v17 = vld [vmem:[%s9360_s17 + $0x3f0] sm:$0xf0] }
 0xb48   : > { %v2257_v32 = vmul.f32 %v8134_v29, %v2256_v31  ;;  %v2254_v33 = vsel %vm2253_vm10, %v8132_v21, %v2250_v30  ;;  %v6388_v21 = vld [vmem:[%s9360_s17 + $0x260] sm:$0xf0]  ;;  %v6322_v30 = vld [vmem:[%s9360_s17 + $0x1a0] sm:$0xf] }
 0xb49   : > { %v2265_v38 = vmul.f32 %v2254_v33, %v9614_v3  ;;  %v6580_v3 = vld [vmem:[%s9360_s17 + $0x3e0] sm:$0xf0]  ;;  %v7619_v31 = vld [vmem:[%s9360_s17 + $0x1dc] sm:$0xf0]  ;;  %v6399_v33 = vor.u32 %v7628_v26, %v6396_v27  ;;  %v6139_v26 = vor.u32 %v7572_v12, %v6138_v11  ;;  %v6143_v27 = vor.u32 %v7564_v13, %v6140_v14  ;;  %v6346_v11 = vld [vmem:[%s9360_s17 + $0x1b8] sm:$0xf] }
 0xb4a   : > { %v2258_v34 = vmul.f32 0.5, %v2257_v32  ;;  %v6583_v55 = vor.u32 %v7675_v45, %v6580_v3  ;;  %v6395_v32 = vor.u32 %v7636_v24, %v6394_v23  ;;  %v7595_v45 = vld [vmem:[%s9360_s17 + $0x124] sm:$0xf]  ;;  %v7678_v23 = vld [vmem:[%s9360_s17 + $0x3bc] sm:$0xf] }
 0xb4b   : > { %v2270_v42 = vmul.f32 %v8092_v36, %v2265_v38  ;;  %v7620_v38 = vld [vmem:[%s9360_s17 + $0x1e4] sm:$0xf0]  ;;  %v6260_v3 = vld [vmem:[%s9360_s17 + $0x160] sm:$0xf0]  ;;  %v6604_v24 = vld [vmem:[%s9360_s17 + $0x3f8] sm:$0xf0] }
 0xb4c   : > { %v2259_v35 = vsub.f32 1.5, %v2258_v34  ;;  %v7611_v34 = vld [vmem:[%s9360_s17 + $0x1a4] sm:$0xf]  ;;  %v7622_v12 = vld [vmem:[%s9360_s17 + $0x1f4] sm:$0xf0] }
 0xb4d   : > { %v9725_v49 = vadd.f32 %v8093_v41, %v2270_v42  ;;  %v7614_v13 = vld [vmem:[%s9360_s17 + $0x1bc] sm:$0xf] }
 0xb4e   : > { %v2260_v39 = vmul.f32 %v8134_v29, %v2259_v35  ;;  %v6324_v35 = vld [vmem:[%s9360_s17 + $0x1e0] sm:$0xf0]  ;;  %v6348_v14 = vld [vmem:[%s9360_s17 + $0x1f8] sm:$0xf0] }
 0xb4f   : > { %v6327_v42 = vor.u32 %v7611_v34, %v6324_v35  ;;  %v7661_v34 = vld [vmem:[%s9360_s17 + $0x334] sm:$0xf] }
 0xb50   : > { %v2264_v40 = vsel %vm2263_vm13, %v8134_v29, %v2260_v39  ;;  %v6391_v29 = vor.u32 %v7627_v20, %v6388_v21  ;;  %v7612_v39 = vld [vmem:[%s9360_s17 + $0x1ac] sm:$0xf]  ;;  %v7686_v21 = vld [vmem:[%s9360_s17 + $0x3f4] sm:$0xf0]  ;;  %v6532_v35 = vld [vmem:[%s9360_s17 + $0x370] sm:$0xf0] }
 0xb51   : > { %v2266_v43 = vmul.f32 %v2264_v40, %v9620_v6  ;;  %v6588_v6 = vld [vmem:[%s9360_s17 + $0x3e8] sm:$0xf0] }
 0xb52   : > { %v6591_v59 = vor.u32 %v7676_v52, %v6588_v6  ;;  %v6332_v40 = vld [vmem:[%s9360_s17 + $0x1e8] sm:$0xf0] }
 0xb53   : > { %v2271_v44 = vmul.f32 %v8092_v36, %v2266_v43  ;;  %v6330_v36 = vld [vmem:[%s9360_s17 + $0x1a8] sm:$0xf]  ;;  %v6258_v43 = vld [vmem:[%s9360_s17 + $0x120] sm:$0xf]  ;;  %v6335_v37 = vor.u32 %v7612_v39, %v6332_v40  ;;  %v7596_v52 = vld [vmem:[%s9360_s17 + $0x12c] sm:$0xf] }
 0xb54   : > { %v6331_v46 = vor.u32 %v7620_v38, %v6330_v36  ;;  %v6268_v6 = vld [vmem:[%s9360_s17 + $0x168] sm:$0xf0]  ;;  %v6538_v36 = vld [vmem:[%s9360_s17 + $0x338] sm:$0xf]  ;;  %v7662_v39 = vld [vmem:[%s9360_s17 + $0x33c] sm:$0xf] }
 0xb55   : > { %v9727_v50 = vadd.f32 %v8093_v41, %v2271_v44  ;;  %v6323_v41 = vor.u32 %v7619_v31, %v6322_v30  ;;  %v7603_v44 = vld [vmem:[%s9360_s17 + $0x15c] sm:$0xf0]  ;;  %v6530_v30 = vld [vmem:[%s9360_s17 + $0x330] sm:$0xf]  ;;  %v7670_v38 = vld [vmem:[%s9360_s17 + $0x374] sm:$0xf0] }
 0xb56   : > { %v7669_v31 = vld [vmem:[%s9360_s17 + $0x36c] sm:$0xf0]  ;;  %v6540_v40 = vld [vmem:[%s9360_s17 + $0x378] sm:$0xf0] }
 0xb57   : > { %v9734_v53 = vpack.c.bf16 %v9727_v50, %v9725_v49 }
 0xb59   : > { %3090 = vmatmul.bf16.vlgmr.msrb.gmra.mxu3 %v9734_v53  ;;  %3104 = vmatmul.bf16.vlgmr.msrb.gmra.mxu0 %v9734_v53 }
 0xb5a   : > { %3118 = vmatmul.bf16.vlgmr.msra.gmra.mxu1 %v9734_v53  ;;  %3132 = vmatmul.bf16.vlgmr.msra.gmra.mxu2 %v9734_v53 }
 0xb5b   : > { %3194 = vmatpush.bf16.msrb.mxu3 %v6579_v54  ;;  %3208 = vmatpush.bf16.msrb.mxu0 %v6583_v55  ;;  %v6259_v54 = vor.u32 %v7603_v44, %v6258_v43  ;;  %v6263_v55 = vor.u32 %v7595_v45, %v6260_v3  ;;  %v6466_v43 = vld [vmem:[%s9360_s17 + $0x2b0] sm:$0xf]  ;;  %v7645_v45 = vld [vmem:[%s9360_s17 + $0x2b4] sm:$0xf] }
 0xb5c   : > { %3222 = vmatpush.bf16.msra.mxu1 %v6587_v58  ;;  %3236 = vmatpush.bf16.msra.mxu2 %v6591_v59  ;;  %v6267_v58 = vor.u32 %v7604_v51, %v6266_v48  ;;  %v6271_v59 = vor.u32 %v7596_v52, %v6268_v6  ;;  %v7653_v44 = vld [vmem:[%s9360_s17 + $0x2ec] sm:$0xf0]  ;;  %v6468_v3 = vld [vmem:[%s9360_s17 + $0x2f0] sm:$0xf0]  ;;  %v6474_v48 = vld [vmem:[%s9360_s17 + $0x2b8] sm:$0xf] }
 0xb5d   : > { %v7654_v51 = vld [vmem:[%s9360_s17 + $0x2f4] sm:$0xf0]  ;;  %v7646_v52 = vld [vmem:[%s9360_s17 + $0x2bc] sm:$0xf] }
 0xb5e   : > { %v6476_v6 = vld [vmem:[%s9360_s17 + $0x2f8] sm:$0xf0] }
 0xb5f   : > { %3195 = vmatpush.bf16.msrb.mxu3 %v6515_v62  ;;  %3209 = vmatpush.bf16.msrb.mxu0 %v6519_v4  ;;  %v6130_v62 = vld [vmem:[%s9360_s17 + $0x20] sm:$0xf]  ;;  %v6195_v4 = vor.u32 %v7587_v47, %v6194_v56  ;;  %v6402_v56 = vld [vmem:[%s9360_s17 + $0x230] sm:$0xf] }
 0xb60   : > { %3223 = vmatpush.bf16.msra.mxu1 %v6523_v7  ;;  %3237 = vmatpush.bf16.msra.mxu2 %v6527_v8  ;;  %v7563_v7 = vld [vmem:[%s9360_s17 + $0x24] sm:$0xf]  ;;  %v7637_v47 = vld [vmem:[%s9360_s17 + $0x26c] sm:$0xf0] }
 0xb61   : > { %v6132_v8 = vld [vmem:[%s9360_s17 + $0x60] sm:$0xf0] }
 0xb62   : > { %v6135_v20 = vor.u32 %v7563_v7, %v6132_v8  ;;  %v6411_v7 = vor.u32 %v7638_v1, %v6410_v0  ;;  %v6415_v8 = vor.u32 %v7630_v2, %v6412_v25  ;;  %v7701_v0 = vld [vmem:[%s9364_s25 + $0x70] sm:$0xff] }
 0xb63   : > { %3196 = vmatpush.bf16.msrb.mxu3 %v6451_v60  ;;  %3210 = vmatpush.bf16.msrb.mxu0 %v6455_v15  ;;  %v6594_v60 = vld [vmem:[%s9360_s17 + $0x3b0] sm:$0xf] }
 0xb64   : > { %3224 = vmatpush.bf16.msra.mxu1 %v6459_v18  ;;  %3238 = vmatpush.bf16.msra.mxu2 %v6463_v19  ;;  %v7685_v15 = vld [vmem:[%s9360_s17 + $0x3ec] sm:$0xf0]  ;;  %v6602_v18 = vld [vmem:[%s9360_s17 + $0x3b8] sm:$0xf]  ;;  %v6131_v19 = vor.u32 %v7571_v57, %v6130_v62  ;;  %v6403_v62 = vor.u32 %v7637_v47, %v6402_v56 }
 0xb65   : > { %v7621_v57 = vld [vmem:[%s9360_s17 + $0x1ec] sm:$0xf0] }
 0xb66   : > { %v7709_v1 = vld [vmem:[%s9364_s25 + $0xb0] sm:$0xff] }
 0xb67   : > { %3197 = vmatpush.bf16.msrb.mxu3 %v6387_v28  ;;  %3211 = vmatpush.bf16.msrb.mxu0 %v6391_v29  ;;  %v6595_v28 = vor.u32 %v7685_v15, %v6594_v60  ;;  %v6599_v29 = vor.u32 %v7677_v16, %v6596_v17  ;;  %v6274_v16 = vld [vmem:[%s9360_s17 + $0x130] sm:$0xf] }
 0xb68   : > { %3225 = vmatpush.bf16.msra.mxu1 %v6395_v32  ;;  %3239 = vmatpush.bf16.msra.mxu2 %v6399_v33  ;;  %v6603_v32 = vor.u32 %v7686_v21, %v6602_v18  ;;  %v6607_v33 = vor.u32 %v7678_v23, %v6604_v24  ;;  %v7605_v17 = vld [vmem:[%s9360_s17 + $0x16c] sm:$0xf0]  ;;  %v6347_v18 = vor.u32 %v7622_v12, %v6346_v11  ;;  %v6276_v21 = vld [vmem:[%s9360_s17 + $0x170] sm:$0xf0]  ;;  %v6282_v23 = vld [vmem:[%s9360_s17 + $0x138] sm:$0xf] }
 0xb69   : > { %3146 = vmatmul.bf16.vlgmr.msra.gmra.mxu3 %v9734_v53  ;;  %3160 = vmatmul.bf16.vlgmr.msra.gmra.mxu0 %v9734_v53  ;;  %v7606_v24 = vld [vmem:[%s9360_s17 + $0x174] sm:$0xf0]  ;;  %v7693_v2 = vld [vmem:[%s9364_s25 + $0x30] sm:$0xff] }
 0xb6a   : > { %3174 = vmatmul.bf16.vlgmr.msrb.gmra.mxu1 %v9734_v53  ;;  %3188 = vmatmul.bf16.vlgmr.msrb.gmra.mxu2 %v9734_v53  ;;  %v7717_v25 = vld [vmem:[%s9364_s25 + $0xf0] sm:$0xff]  ;;  %v7706_v11 = vld [vmem:[%s9364_s25 + $0x98] sm:$0xff] }
 0xb6b   : > { %3198 = vmatpush.bf16.msrb.mxu3 %v6323_v41  ;;  %3212 = vmatpush.bf16.msrb.mxu0 %v6327_v42  ;;  %v6531_v41 = vor.u32 %v7669_v31, %v6530_v30  ;;  %v6535_v42 = vor.u32 %v7661_v34, %v6532_v35  ;;  %v6210_v30 = vld [vmem:[%s9360_s17 + $0xb0] sm:$0xf]  ;;  %v7581_v34 = vld [vmem:[%s9360_s17 + $0xb4] sm:$0xf]  ;;  %v7690_v12 = vld [vmem:[%s9364_s25 + $0x18] sm:$0xff] }
 0xb6c   : > { %3226 = vmatpush.bf16.msra.mxu1 %v6331_v46  ;;  %3240 = vmatpush.bf16.msra.mxu2 %v6335_v37  ;;  %v6539_v46 = vor.u32 %v7670_v38, %v6538_v36  ;;  %v6543_v37 = vor.u32 %v7662_v39, %v6540_v40  ;;  %v7589_v31 = vld [vmem:[%s9360_s17 + $0xec] sm:$0xf0]  ;;  %v6212_v35 = vld [vmem:[%s9360_s17 + $0xf0] sm:$0xf0]  ;;  %v6218_v36 = vld [vmem:[%s9360_s17 + $0xb8] sm:$0xf] }
 0xb6d   : > { %v7590_v38 = vld [vmem:[%s9360_s17 + $0xf4] sm:$0xf0]  ;;  %v7582_v39 = vld [vmem:[%s9360_s17 + $0xbc] sm:$0xf] }
 0xb6e   : > { %v6220_v40 = vld [vmem:[%s9360_s17 + $0xf8] sm:$0xf0] }
 0xb6f   : > { %3199 = vmatpush.bf16.msrb.mxu3 %v6259_v54  ;;  %3213 = vmatpush.bf16.msrb.mxu0 %v6263_v55  ;;  %v6467_v54 = vor.u32 %v7653_v44, %v6466_v43  ;;  %v6471_v55 = vor.u32 %v7645_v45, %v6468_v3  ;;  %v6146_v43 = vld [vmem:[%s9360_s17 + $0x30] sm:$0xf]  ;;  %v7565_v45 = vld [vmem:[%s9360_s17 + $0x34] sm:$0xf] }
 0xb70   : > { %3227 = vmatpush.bf16.msra.mxu1 %v6267_v58  ;;  %3241 = vmatpush.bf16.msra.mxu2 %v6271_v59  ;;  %v6475_v58 = vor.u32 %v7654_v51, %v6474_v48  ;;  %v6479_v59 = vor.u32 %v7646_v52, %v6476_v6  ;;  %v7573_v44 = vld [vmem:[%s9360_s17 + $0x6c] sm:$0xf0]  ;;  %v6148_v3 = vld [vmem:[%s9360_s17 + $0x70] sm:$0xf0]  ;;  %v6154_v48 = vld [vmem:[%s9360_s17 + $0x38] sm:$0xf] }
 0xb71   : > { %v7574_v51 = vld [vmem:[%s9360_s17 + $0x74] sm:$0xf0]  ;;  %v7566_v52 = vld [vmem:[%s9360_s17 + $0x3c] sm:$0xf] }
 0xb72   : > { %v6156_v6 = vld [vmem:[%s9360_s17 + $0x78] sm:$0xf0]  ;;  %v6155_v56 = vor.u32 %v7574_v51, %v6154_v48  ;;  %v7737_v48 = vld [vmem:[%s9364_s25 + $0x190] sm:$0xff] }
 0xb73   : > { %3200 = vmatpush.bf16.msrb.mxu3 %v6195_v4  ;;  %3214 = vmatpush.bf16.msrb.mxu0 %v6199_v5  ;;  %v6407_v4 = vor.u32 %v7629_v22, %v6404_v63  ;;  %v6338_v5 = vld [vmem:[%s9360_s17 + $0x1b0] sm:$0xf]  ;;  %v6159_v47 = vor.u32 %v7566_v52, %v6156_v6  ;;  %v7694_v22 = vld [vmem:[%s9364_s25 + $0x38] sm:$0xff]  ;;  %v7728_v6 = vld [vmem:[%s9364_s25 + $0x148] sm:$0xff] }
 0xb74   : > { %3228 = vmatpush.bf16.msra.mxu1 %v6203_v9  ;;  %3242 = vmatpush.bf16.msra.mxu2 %v6207_v10  ;;  %v7613_v9 = vld [vmem:[%s9360_s17 + $0x1b4] sm:$0xf]  ;;  %v6339_v60 = vor.u32 %v7621_v57, %v6338_v5  ;;  %v7718_v63 = vld [vmem:[%s9364_s25 + $0xf8] sm:$0xff]  ;;  %v7692_v5 = vld [vmem:[%s9364_s25 + $0x28] sm:$0xff] }
 0xb75   : > { %v6340_v10 = vld [vmem:[%s9360_s17 + $0x1f0] sm:$0xf0]  ;;  %v7716_v57 = vld [vmem:[%s9364_s25 + $0xe8] sm:$0xff] }
 0xb76   : > { %v6343_v15 = vor.u32 %v7613_v9, %v6340_v10  ;;  %v7715_v9 = vld [vmem:[%s9364_s25 + $0xe0] sm:$0xff]  ;;  %v7698_v10 = vld [vmem:[%s9364_s25 + $0x58] sm:$0xff]  ;;  %v7721_v51 = vld [vmem:[%s9364_s25 + $0x110] sm:$0xff] }
 0xb77   : > { %3201 = vmatpush.bf16.msrb.mxu3 %v6131_v19  ;;  %3215 = vmatpush.bf16.msrb.mxu0 %v6135_v20  ;;  %v6351_v19 = vor.u32 %v7614_v13, %v6348_v14  ;;  %v7597_v20 = vld [vmem:[%s9360_s17 + $0x134] sm:$0xf]  ;;  %v7714_v13 = vld [vmem:[%s9364_s25 + $0xd8] sm:$0xff] }
 0xb78   : > { %3229 = vmatpush.bf16.msra.mxu1 %v6139_v26  ;;  %3243 = vmatpush.bf16.msra.mxu2 %v6143_v27  ;;  %v7598_v26 = vld [vmem:[%s9360_s17 + $0x13c] sm:$0xf]  ;;  %v7697_v14 = vld [vmem:[%s9364_s25 + $0x50] sm:$0xff] }
 0xb79   : > { %v6284_v27 = vld [vmem:[%s9360_s17 + $0x178] sm:$0xf0]  ;;  %v7745_v52 = vld [vmem:[%s9364_s25 + $0x1d0] sm:$0xff] }
 0xb7a   : > { %3202 = vmatmul.bf16.vlgmr.msrb.gmra.mxu3 %v9734_v53  ;;  %3216 = vmatmul.bf16.vlgmr.msrb.gmra.mxu0 %v9734_v53 }
 0xb7b   : > { %3250 = vmatpush.bf16.msra.mxu3 %v6595_v28  ;;  %3264 = vmatpush.bf16.msra.mxu0 %v6599_v29  ;;  %v6275_v28 = vor.u32 %v7605_v17, %v6274_v16  ;;  %v6279_v29 = vor.u32 %v7597_v20, %v6276_v21  ;;  %v7713_v16 = vld [vmem:[%s9364_s25 + $0xd0] sm:$0xff]  ;;  %v7696_v17 = vld [vmem:[%s9364_s25 + $0x48] sm:$0xff]  ;;  %v7695_v21 = vld [vmem:[%s9364_s25 + $0x40] sm:$0xff] }
 0xb7c   : > { %3278 = vmatpush.bf16.msrb.mxu1 %v6603_v32  ;;  %3292 = vmatpush.bf16.msrb.mxu2 %v6607_v33  ;;  %v6283_v32 = vor.u32 %v7606_v24, %v6282_v23  ;;  %v6287_v33 = vor.u32 %v7598_v26, %v6284_v27  ;;  %v7712_v20 = vld [vmem:[%s9364_s25 + $0xc8] sm:$0xff]  ;;  %v7703_v23 = vld [vmem:[%s9364_s25 + $0x80] sm:$0xff]  ;;  %v7734_v24 = vld [vmem:[%s9364_s25 + $0x178] sm:$0xff] }
 0xb7d   : > { %3230 = vmatmul.bf16.vlgmr.msra.gmra.mxu1 %v9734_v53  ;;  %3244 = vmatmul.bf16.vlgmr.msra.gmra.mxu2 %v9734_v53  ;;  %v7742_v26 = vld [vmem:[%s9364_s25 + $0x1b8] sm:$0xff]  ;;  %v7687_v27 = vld [vmem:[%s9364_s25] sm:$0xff] }
 0xb7f   : > { %3251 = vmatpush.bf16.msra.mxu3 %v6531_v41  ;;  %3265 = vmatpush.bf16.msra.mxu0 %v6535_v42  ;;  %v6211_v41 = vor.u32 %v7589_v31, %v6210_v30  ;;  %v6215_v42 = vor.u32 %v7581_v34, %v6212_v35  ;;  %v7750_v30 = vld [vmem:[%s9364_s25 + $0x1f8] sm:$0xff]  ;;  %v7733_v31 = vld [vmem:[%s9364_s25 + $0x170] sm:$0xff]  ;;  %v7732_v35 = vld [vmem:[%s9364_s25 + $0x168] sm:$0xff] }
 0xb80   : > { %3279 = vmatpush.bf16.msrb.mxu1 %v6539_v46  ;;  %3293 = vmatpush.bf16.msrb.mxu2 %v6543_v37  ;;  %v6219_v46 = vor.u32 %v7590_v38, %v6218_v36  ;;  %v6223_v37 = vor.u32 %v7582_v39, %v6220_v40  ;;  %v7749_v34 = vld [vmem:[%s9364_s25 + $0x1f0] sm:$0xff]  ;;  %v7740_v36 = vld [vmem:[%s9364_s25 + $0x1a8] sm:$0xff]  ;;  %v7731_v40 = vld [vmem:[%s9364_s25 + $0x160] sm:$0xff] }
 0xb81   : > { %v7724_v38 = vld [vmem:[%s9364_s25 + $0x128] sm:$0xff] }
 0xb82   : > { %v7748_v39 = vld [vmem:[%s9364_s25 + $0x1e8] sm:$0xff] }
 0xb83   : > { %3252 = vmatpush.bf16.msra.mxu3 %v6467_v54  ;;  %3266 = vmatpush.bf16.msra.mxu0 %v6471_v55  ;;  %v6147_v54 = vor.u32 %v7573_v44, %v6146_v43  ;;  %v6151_v55 = vor.u32 %v7565_v45, %v6148_v3  ;;  %v7747_v43 = vld [vmem:[%s9364_s25 + $0x1e0] sm:$0xff]  ;;  %v7730_v44 = vld [vmem:[%s9364_s25 + $0x158] sm:$0xff]  ;;  %v7729_v3 = vld [vmem:[%s9364_s25 + $0x150] sm:$0xff] }
 0xb84   : > { %3280 = vmatpush.bf16.msrb.mxu1 %v6475_v58  ;;  %3294 = vmatpush.bf16.msrb.mxu2 %v6479_v59  ;;  %v7702_v58 = vld [vmem:[%s9364_s25 + $0x78] sm:$0xff] }
 0xb85   : > { %v7710_v59 = vld [vmem:[%s9364_s25 + $0xb8] sm:$0xff] }
 0xb86   : > { %v7746_v45 = vld [vmem:[%s9364_s25 + $0x1d8] sm:$0xff] }
 0xb87   : > { %3253 = vmatpush.bf16.msra.mxu3 %v6403_v62  ;;  %3267 = vmatpush.bf16.msra.mxu0 %v6407_v4  ;;  %v7700_v62 = vld [vmem:[%s9364_s25 + $0x68] sm:$0xff] }
 0xb88   : > { %3281 = vmatpush.bf16.msrb.mxu1 %v6411_v7  ;;  %3295 = vmatpush.bf16.msrb.mxu2 %v6415_v8  ;;  %v7708_v4 = vld [vmem:[%s9364_s25 + $0xa8] sm:$0xff]  ;;  %v7707_v7 = vld [vmem:[%s9364_s25 + $0xa0] sm:$0xff] }
 0xb89   : > { %v7691_v8 = vld [vmem:[%s9364_s25 + $0x20] sm:$0xff] }
 0xb8b   : > { %3254 = vmatpush.bf16.msra.mxu3 %v6339_v60  ;;  %3268 = vmatpush.bf16.msra.mxu0 %v6343_v15  ;;  %v7705_v60 = vld [vmem:[%s9364_s25 + $0x90] sm:$0xff] }
 0xb8c   : > { %3282 = vmatpush.bf16.msrb.mxu1 %v6347_v18  ;;  %3296 = vmatpush.bf16.msrb.mxu2 %v6351_v19  ;;  %v7689_v15 = vld [vmem:[%s9364_s25 + $0x10] sm:$0xff]  ;;  %v7704_v18 = vld [vmem:[%s9364_s25 + $0x88] sm:$0xff] }
 0xb8d   : > { %v7688_v19 = vld [vmem:[%s9364_s25 + $0x8] sm:$0xff] }
 0xb8f   : > { %3255 = vmatpush.bf16.msra.mxu3 %v6275_v28  ;;  %3269 = vmatpush.bf16.msra.mxu0 %v6279_v29  ;;  %v7711_v28 = vld [vmem:[%s9364_s25 + $0xc0] sm:$0xff]  ;;  %v7726_v29 = vld [vmem:[%s9364_s25 + $0x138] sm:$0xff] }
 0xb90   : > { %3283 = vmatpush.bf16.msrb.mxu1 %v6283_v32  ;;  %3297 = vmatpush.bf16.msrb.mxu2 %v6287_v33  ;;  %v7741_v32 = vld [vmem:[%s9364_s25 + $0x1b0] sm:$0xff] }
 0xb91   : > { %v7725_v33 = vld [vmem:[%s9364_s25 + $0x130] sm:$0xff] }
 0xb93   : > { %3256 = vmatpush.bf16.msra.mxu3 %v6211_v41  ;;  %3270 = vmatpush.bf16.msra.mxu0 %v6215_v42  ;;  %v7739_v41 = vld [vmem:[%s9364_s25 + $0x1a0] sm:$0xff] }
 0xb94   : > { %3284 = vmatpush.bf16.msrb.mxu1 %v6219_v46  ;;  %3298 = vmatpush.bf16.msrb.mxu2 %v6223_v37  ;;  %v7723_v42 = vld [vmem:[%s9364_s25 + $0x120] sm:$0xff]  ;;  %v7738_v46 = vld [vmem:[%s9364_s25 + $0x198] sm:$0xff] }
 0xb95   : > { %v7722_v37 = vld [vmem:[%s9364_s25 + $0x118] sm:$0xff] }
 0xb97   : > { %3257 = vmatpush.bf16.msra.mxu3 %v6147_v54  ;;  %3271 = vmatpush.bf16.msra.mxu0 %v6151_v55  ;;  %v7736_v54 = vld [vmem:[%s9364_s25 + $0x188] sm:$0xff] }
 0xb98   : > { %3285 = vmatpush.bf16.msrb.mxu1 %v6155_v56  ;;  %3299 = vmatpush.bf16.msrb.mxu2 %v6159_v47  ;;  %v7720_v55 = vld [vmem:[%s9364_s25 + $0x108] sm:$0xff]  ;;  %v7727_v47 = vld [vmem:[%s9364_s25 + $0x140] sm:$0xff] }
 0xb99   : > { %v7744_v56 = vld [vmem:[%s9364_s25 + $0x1c8] sm:$0xff] }
 0xb9a   : > { %3258 = vmatmul.bf16.vlgmr.msra.gmra.mxu3 %v9734_v53  ;;  %3272 = vmatmul.bf16.vlgmr.msra.gmra.mxu0 %v9734_v53 }
 0xb9b   : > { %4396 = vmatpush.bf16.msrb.mxu0 %v7702_v58  ;;  %3286 = vmatmul.bf16.vlgmr.msrb.gmra.mxu1 %v9734_v53  ;;  %v7735_v58 = vld [vmem:[%s9364_s25 + $0x180] sm:$0xff] }
 0xb9c   : > { %4410 = vmatpush.bf16.msra.mxu1 %v7710_v59  ;;  %3300 = vmatmul.bf16.vlgmr.msrb.gmra.mxu2 %v9734_v53  ;;  %v7699_v53 = vld [vmem:[%s9364_s25 + $0x60] sm:$0xff] }
 0xb9d   : > { %4382 = vmatpush.bf16.msrb.mxu3 %v7694_v22  ;;  %4424 = vmatpush.bf16.msra.mxu2 %v7718_v63  ;;  %v7719_v59 = vld [vmem:[%s9364_s25 + $0x100] sm:$0xff] }
 0xb9e   : > { %v7743_v22 = vld [vmem:[%s9364_s25 + $0x1c0] sm:$0xff] }
 0xb9f   : > { %4397 = vmatpush.bf16.msrb.mxu0 %v7701_v0  ;;  %v9937_v63 = vld [vmem:[%s9362_s7] sm:$0xff] }
 0xba0   : > { %4411 = vmatpush.bf16.msra.mxu1 %v7709_v1 }
 0xba1   : > { %4383 = vmatpush.bf16.msrb.mxu3 %v7693_v2  ;;  %4425 = vmatpush.bf16.msra.mxu2 %v7717_v25  ;;  %v2411_v2 = vperm.slane %v9937_v63, 1  ;;  %v2412_v25 = vperm.slane %v9937_v63, 2 }
 0xba3   : > { %4398 = vmatpush.bf16.msrb.mxu0 %v7700_v62 }
 0xba4   : > { %4412 = vmatpush.bf16.msra.mxu1 %v7708_v4 }
 0xba5   : > { %4384 = vmatpush.bf16.msrb.mxu3 %v7692_v5  ;;  %4426 = vmatpush.bf16.msra.mxu2 %v7716_v57 }
 0xba7   : > { %4399 = vmatpush.bf16.msrb.mxu0 %v7699_v53 }
 0xba8   : > { %4413 = vmatpush.bf16.msra.mxu1 %v7707_v7  ;;  %v2410_v7 = vperm.slane %v9937_v63, 0 }
 0xba9   : > { %4385 = vmatpush.bf16.msrb.mxu3 %v7691_v8  ;;  %4427 = vmatpush.bf16.msra.mxu2 %v7715_v9 }
 0xbab   : > { %4400 = vmatpush.bf16.msrb.mxu0 %v7698_v10  ;;  %v2413_v10 = vperm.slane %v9937_v63, 3 }
 0xbac   : > { %4414 = vmatpush.bf16.msra.mxu1 %v7706_v11 }
 0xbad   : > { %4386 = vmatpush.bf16.msrb.mxu3 %v7690_v12  ;;  %4428 = vmatpush.bf16.msra.mxu2 %v7714_v13 }
 0xbaf   : > { %4401 = vmatpush.bf16.msrb.mxu0 %v7697_v14 }
 0xbb0   : > { %4415 = vmatpush.bf16.msra.mxu1 %v7705_v60 }
 0xbb1   : > { %4387 = vmatpush.bf16.msrb.mxu3 %v7689_v15  ;;  %4429 = vmatpush.bf16.msra.mxu2 %v7713_v16  ;;  %v7766_v15 = vld [vmem:[%s9364_s25 + $0x278] sm:$0xff] }
 0xbb3   : > { %4402 = vmatpush.bf16.msrb.mxu0 %v7696_v17 }
 0xbb4   : > { %4416 = vmatpush.bf16.msra.mxu1 %v7704_v18  ;;  %v7774_v18 = vld [vmem:[%s9364_s25 + $0x2b8] sm:$0xff] }
 0xbb5   : > { %4388 = vmatpush.bf16.msrb.mxu3 %v7688_v19  ;;  %4430 = vmatpush.bf16.msra.mxu2 %v7712_v20 }
 0xbb7   : > { %4403 = vmatpush.bf16.msrb.mxu0 %v7695_v21 }
 0xbb8   : > { %4417 = vmatpush.bf16.msra.mxu1 %v7703_v23 }
 0xbb9   : > { %4389 = vmatpush.bf16.msrb.mxu3 %v7687_v27  ;;  %4431 = vmatpush.bf16.msra.mxu2 %v7711_v28  ;;  %v7765_v28 = vld [vmem:[%s9364_s25 + $0x270] sm:$0xff] }
 0xbbb   : > { %4452 = vmatpush.bf16.msra.mxu0 %v7734_v24 }
 0xbbc   : > { %4466 = vmatpush.bf16.msrb.mxu1 %v7742_v26 }
 0xbbd   : > { %4438 = vmatpush.bf16.msra.mxu3 %v7726_v29  ;;  %4480 = vmatpush.bf16.msrb.mxu2 %v7750_v30 }
 0xbbf   : > { %4453 = vmatpush.bf16.msra.mxu0 %v7733_v31 }
 0xbc0   : > { %4467 = vmatpush.bf16.msrb.mxu1 %v7741_v32  ;;  %v7773_v32 = vld [vmem:[%s9364_s25 + $0x2b0] sm:$0xff] }
 0xbc1   : > { %4439 = vmatpush.bf16.msra.mxu3 %v7725_v33  ;;  %4481 = vmatpush.bf16.msrb.mxu2 %v7749_v34 }
 0xbc3   : > { %4454 = vmatpush.bf16.msra.mxu0 %v7732_v35  ;;  %v7758_v35 = vld [vmem:[%s9364_s25 + $0x238] sm:$0xff] }
 0xbc4   : > { %4468 = vmatpush.bf16.msrb.mxu1 %v7740_v36 }
 0xbc5   : > { %4440 = vmatpush.bf16.msra.mxu3 %v7724_v38  ;;  %4482 = vmatpush.bf16.msrb.mxu2 %v7748_v39  ;;  %v2415_v38 = vperm.slane %v9937_v63, 5  ;;  %v7782_v39 = vld [vmem:[%s9364_s25 + $0x2f8] sm:$0xff] }
 0xbc7   : > { %4455 = vmatpush.bf16.msra.mxu0 %v7731_v40 }
 0xbc8   : > { %4469 = vmatpush.bf16.msrb.mxu1 %v7739_v41  ;;  %v2416_v41 = vperm.slane %v9937_v63, 6 }
 0xbc9   : > { %4441 = vmatpush.bf16.msra.mxu3 %v7723_v42  ;;  %4483 = vmatpush.bf16.msrb.mxu2 %v7747_v43  ;;  %v7764_v42 = vld [vmem:[%s9364_s25 + $0x268] sm:$0xff] }
 0xbca   : > { %v7772_v43 = vld [vmem:[%s9364_s25 + $0x2a8] sm:$0xff] }
 0xbcb   : > { %4456 = vmatpush.bf16.msra.mxu0 %v7730_v44 }
 0xbcc   : > { %4470 = vmatpush.bf16.msrb.mxu1 %v7738_v46  ;;  %v7757_v46 = vld [vmem:[%s9364_s25 + $0x230] sm:$0xff] }
 0xbcd   : > { %4442 = vmatpush.bf16.msra.mxu3 %v7722_v37  ;;  %4484 = vmatpush.bf16.msrb.mxu2 %v7746_v45 }
 0xbcf   : > { %4457 = vmatpush.bf16.msra.mxu0 %v7729_v3  ;;  %v7781_v3 = vld [vmem:[%s9364_s25 + $0x2f0] sm:$0xff] }
 0xbd0   : > { %4471 = vmatpush.bf16.msrb.mxu1 %v7737_v48 }
 0xbd1   : > { %4443 = vmatpush.bf16.msra.mxu3 %v7721_v51  ;;  %4485 = vmatpush.bf16.msrb.mxu2 %v7745_v52  ;;  %v7763_v52 = vld [vmem:[%s9364_s25 + $0x260] sm:$0xff] }
 0xbd3   : > { %4458 = vmatpush.bf16.msra.mxu0 %v7728_v6  ;;  %v2414_v6 = vperm.slane %v9937_v63, 4 }
 0xbd4   : > { %4472 = vmatpush.bf16.msrb.mxu1 %v7736_v54 }
 0xbd5   : > { %4444 = vmatpush.bf16.msra.mxu3 %v7720_v55  ;;  %4486 = vmatpush.bf16.msrb.mxu2 %v7744_v56  ;;  %v7771_v56 = vld [vmem:[%s9364_s25 + $0x2a0] sm:$0xff] }
 0xbd6   : > { %v3105_v0 = vpop.f32.mrf.mxu0 }
 0xbd7   : > { %4459 = vmatpush.bf16.msra.mxu0 %v7727_v47  ;;  %v3119_v1 = vpop.f32.mrf.mxu1  ;;  %v3106_v4 = vadd.f32 %v3105_v0, %v2411_v2  ;;  %v2417_v47 = vperm.slane %v9937_v63, 7 }
 0xbd8   : > { %4473 = vmatpush.bf16.msrb.mxu1 %v7735_v58  ;;  %v3120_v57 = vadd.f32 %v3119_v1, %v2412_v25  ;;  %v7780_v1 = vld [vmem:[%s9364_s25 + $0x2e8] sm:$0xff] }
 0xbd9   : > { %4445 = vmatpush.bf16.msra.mxu3 %v7719_v59  ;;  %4487 = vmatpush.bf16.msrb.mxu2 %v7743_v22  ;;  %v3307_v12 = vmax.f32 %v3106_v4, 0.0  ;;  %v7756_v59 = vld [vmem:[%s9364_s25 + $0x228] sm:$0xff] }
 0xbda   : > { %v3308_v14 = vmax.f32 %v3120_v57, 0.0  ;;  %v7770_v57 = vld [vmem:[%s9364_s25 + $0x298] sm:$0xff] }
 0xbdc   : > { %v3091_v62 = vpop.f32.mrf.mxu3 }
 0xbdd   : > { %v3133_v5 = vpop.f32.mrf.mxu2  ;;  %v3092_v16 = vadd.f32 %v3091_v62, %v2410_v7  ;;  %v7762_v62 = vld [vmem:[%s9364_s25 + $0x258] sm:$0xff] }
 0xbde   : > { %v3107_v53 = vpop.f32.mrf.mxu0  ;;  %v3134_v19 = vadd.f32 %v3133_v5, %v2413_v10 }
 0xbdf   : > { %v3108_v8 = vadd.f32 %v3107_v53, %v2411_v2  ;;  %v3121_v9 = vpop.f32.mrf.mxu1  ;;  %v3306_v29 = vmax.f32 %v3092_v16, 0.0 }
 0xbe0   : > { %v3122_v11 = vadd.f32 %v3121_v9, %v2412_v25  ;;  %v3309_v33 = vmax.f32 %v3134_v19, 0.0 }
 0xbe1   : > { %v3323_v13 = vmax.f32 %v3108_v8, 0.0  ;;  %v7755_v8 = vld [vmem:[%s9364_s25 + $0x220] sm:$0xff] }
 0xbe2   : > { %v3324_v60 = vmax.f32 %v3122_v11, 0.0  ;;  %v7779_v11 = vld [vmem:[%s9364_s25 + $0x2e0] sm:$0xff] }
 0xbe3   : > { %v3596_v17 = vpack.c.bf16 %v3323_v13, %v3307_v12  ;;  %v7761_v13 = vld [vmem:[%s9364_s25 + $0x250] sm:$0xff] }
 0xbe4   : > { %v3597_v20 = vpack.c.bf16 %v3324_v60, %v3308_v14  ;;  %v3093_v21 = vpop.f32.mrf.mxu3 }
 0xbe5   : > { %v3094_v23 = vadd.f32 %v3093_v21, %v2410_v7  ;;  %v3135_v24 = vpop.f32.mrf.mxu2  ;;  %4404 = vmatmul.bf16.vlgmr.msrb.gmra.mxu0 %v3596_v17 }
 0xbe6   : > { %v3136_v26 = vadd.f32 %v3135_v24, %v2413_v10  ;;  %4418 = vmatmul.bf16.vlgmr.msra.gmra.mxu1 %v3597_v20  ;;  %4508 = vmatpush.bf16.msrb.mxu0 %v7766_v15  ;;  %v3161_v27 = vpop.f32.mrf.mxu0  ;;  %v7769_v15 = vld [vmem:[%s9364_s25 + $0x290] sm:$0xff]  ;;  %v7754_v20 = vld [vmem:[%s9364_s25 + $0x218] sm:$0xff] }
 0xbe7   : > { %v3322_v30 = vmax.f32 %v3094_v23, 0.0  ;;  %4522 = vmatpush.bf16.msra.mxu1 %v7774_v18  ;;  %v3175_v31 = vpop.f32.mrf.mxu1  ;;  %v3162_v37 = vadd.f32 %v3161_v27, %v2415_v38  ;;  %v9968_v18 = vld [vmem:[%s9362_s7 + $0x8] sm:$0xff]  ;;  %s10224_s7 = sld [smem:[#allocation61_spill]] (!%p7120_p4) }
 0xbe8   : > { %v3325_v34 = vmax.f32 %v3136_v26, 0.0  ;;  %v3176_v48 = vadd.f32 %v3175_v31, %v2416_v41  ;;  %v7778_v24 = vld [vmem:[%s9364_s25 + $0x2d8] sm:$0xff]  ;;  %v7760_v27 = vld [vmem:[%s9364_s25 + $0x248] sm:$0xff]  ;;  %v7753_v31 = vld [vmem:[%s9364_s25 + $0x210] sm:$0xff] }
 0xbe9   : > { %v3595_v36 = vpack.c.bf16 %v3322_v30, %v3306_v29  ;;  %v3311_v22 = vmax.f32 %v3162_v37, 0.0  ;;  %v7768_v29 = vld [vmem:[%s9364_s25 + $0x288] sm:$0xff]  ;;  %v2420_v30 = vperm.slane %v9968_v18, 2 }
 0xbea   : > { %v3598_v40 = vpack.c.bf16 %v3325_v34, %v3309_v33  ;;  %4509 = vmatpush.bf16.msrb.mxu0 %v7765_v28  ;;  %v3312_v2 = vmax.f32 %v3176_v48, 0.0  ;;  %v2419_v28 = vperm.slane %v9968_v18, 1  ;;  %v7759_v34 = vld [vmem:[%s9364_s25 + $0x240] sm:$0xff] }
 0xbeb   : > { %4523 = vmatpush.bf16.msra.mxu1 %v7773_v32  ;;  %4390 = vmatmul.bf16.vlgmr.msrb.gmra.mxu3 %v3595_v36  ;;  %v7777_v32 = vld [vmem:[%s9364_s25 + $0x2d0] sm:$0xff] }
 0xbec   : > { %4432 = vmatmul.bf16.vlgmr.msra.gmra.mxu2 %v3598_v40  ;;  %4494 = vmatpush.bf16.msrb.mxu3 %v7758_v35  ;;  %v3147_v44 = vpop.f32.mrf.mxu3 }
 0xbed   : > { %4536 = vmatpush.bf16.msra.mxu2 %v7782_v39  ;;  %v3189_v45 = vpop.f32.mrf.mxu2  ;;  %v3148_v4 = vadd.f32 %v3147_v44, %v2414_v6  ;;  %v7798_v39 = vld [vmem:[%s9364_s25 + $0x378] sm:$0xff]  ;;  %v2418_v44 = vperm.slane %v9968_v18, 0 }
 0xbee   : > { %4510 = vmatpush.bf16.msrb.mxu0 %v7764_v42  ;;  %v3163_v51 = vpop.f32.mrf.mxu0  ;;  %v3190_v53 = vadd.f32 %v3189_v45, %v2417_v47  ;;  %v7806_v42 = vld [vmem:[%s9364_s25 + $0x3b8] sm:$0xff]  ;;  %v7776_v45 = vld [vmem:[%s9364_s25 + $0x2c8] sm:$0xff] }
 0xbef   : > { %4524 = vmatpush.bf16.msra.mxu1 %v7772_v43  ;;  %v3164_v54 = vadd.f32 %v3163_v51, %v2415_v38  ;;  %v3177_v55 = vpop.f32.mrf.mxu1  ;;  %v3310_v14 = vmax.f32 %v3148_v4, 0.0  ;;  %v7767_v38 = vld [vmem:[%s9364_s25 + $0x280] sm:$0xff]  ;;  %v7752_v43 = vld [vmem:[%s9364_s25 + $0x208] sm:$0xff] }
 0xbf0   : > { %v3178_v58 = vadd.f32 %v3177_v55, %v2416_v41  ;;  %4495 = vmatpush.bf16.msrb.mxu3 %v7757_v46  ;;  %v3313_v16 = vmax.f32 %v3190_v53, 0.0  ;;  %v7797_v55 = vld [vmem:[%s9364_s25 + $0x370] sm:$0xff]  ;;  %v7796_v53 = vld [vmem:[%s9364_s25 + $0x368] sm:$0xff] }
 0xbf1   : > { %v3327_v0 = vmax.f32 %v3164_v54, 0.0  ;;  %4537 = vmatpush.bf16.msra.mxu2 %v7781_v3  ;;  %v2421_v3 = vperm.slane %v9968_v18, 3 }
 0xbf2   : > { %v3328_v25 = vmax.f32 %v3178_v58, 0.0  ;;  %4511 = vmatpush.bf16.msrb.mxu0 %v7763_v52  ;;  %v7805_v58 = vld [vmem:[%s9364_s25 + $0x3b0] sm:$0xff] }
 0xbf3   : > { %v3600_v5 = vpack.c.bf16 %v3327_v0, %v3311_v22  ;;  %4525 = vmatpush.bf16.msra.mxu1 %v7771_v56 }
 0xbf4   : > { %v3601_v63 = vpack.c.bf16 %v3328_v25, %v3312_v2  ;;  %4496 = vmatpush.bf16.msrb.mxu3 %v7756_v59  ;;  %v3149_v7 = vpop.f32.mrf.mxu3  ;;  %v7751_v59 = vld [vmem:[%s9364_s25 + $0x200] sm:$0xff]  ;;  %v7790_v25 = vld [vmem:[%s9364_s25 + $0x338] sm:$0xff] }
 0xbf5   : > { %4538 = vmatpush.bf16.msra.mxu2 %v7780_v1  ;;  %v3150_v9 = vadd.f32 %v3149_v7, %v2414_v6  ;;  %v3191_v10 = vpop.f32.mrf.mxu2  ;;  %4460 = vmatmul.bf16.vlgmr.msra.gmra.mxu0 %v3600_v5  ;;  %v7775_v2 = vld [vmem:[%s9364_s25 + $0x2c0] sm:$0xff]  ;;  %v7814_v5 = vld [vmem:[%s9364_s25 + $0x3f8] sm:$0xff] }
 0xbf6   : > { %v3192_v12 = vadd.f32 %v3191_v10, %v2417_v47  ;;  %4474 = vmatmul.bf16.vlgmr.msrb.gmra.mxu1 %v3601_v63  ;;  %4512 = vmatpush.bf16.msrb.mxu0 %v7762_v62 }
 0xbf7   : > { %v3326_v60 = vmax.f32 %v3150_v9, 0.0  ;;  %4526 = vmatpush.bf16.msra.mxu1 %v7770_v57  ;;  %v3217_v19 = vpop.f32.mrf.mxu0 }
 0xbf8   : > { %v3329_v17 = vmax.f32 %v3192_v12, 0.0  ;;  %4497 = vmatpush.bf16.msrb.mxu3 %v7755_v8  ;;  %v3218_v35 = vadd.f32 %v3217_v19, %v2419_v28  ;;  %v7804_v8 = vld [vmem:[%s9364_s25 + $0x3a8] sm:$0xff]  ;;  %v7794_v19 = vld [vmem:[%s9364_s25 + $0x358] sm:$0xff] }
 0xbf9   : > { %v3599_v21 = vpack.c.bf16 %v3326_v60, %v3310_v14  ;;  %4539 = vmatpush.bf16.msra.mxu2 %v7779_v11  ;;  %v7789_v11 = vld [vmem:[%s9364_s25 + $0x330] sm:$0xff]  ;;  %v7795_v60 = vld [vmem:[%s9364_s25 + $0x360] sm:$0xff] }
 0xbfa   : > { %v3231_v23 = vpop.f32.mrf.mxu1  ;;  %v3602_v26 = vpack.c.bf16 %v3329_v17, %v3313_v16  ;;  %4513 = vmatpush.bf16.msrb.mxu0 %v7761_v13  ;;  %v3315_v51 = vmax.f32 %v3218_v35, 0.0  ;;  %v7813_v13 = vld [vmem:[%s9364_s25 + $0x3f0] sm:$0xff]  ;;  %v7788_v16 = vld [vmem:[%s9364_s25 + $0x328] sm:$0xff] }
 0xbfb   : > { %4527 = vmatpush.bf16.msra.mxu1 %v7769_v15  ;;  %4446 = vmatmul.bf16.vlgmr.msra.gmra.mxu3 %v3599_v21  ;;  %v3232_v40 = vadd.f32 %v3231_v23, %v2420_v30  ;;  %v7803_v15 = vld [vmem:[%s9364_s25 + $0x3a0] sm:$0xff]  ;;  %v7812_v17 = vld [vmem:[%s9364_s25 + $0x3e8] sm:$0xff]  ;;  %v7785_v35 = vld [vmem:[%s9364_s25 + $0x310] sm:$0xff] }
 0xbfc   : > { %4488 = vmatmul.bf16.vlgmr.msrb.gmra.mxu2 %v3602_v26  ;;  %4498 = vmatpush.bf16.msrb.mxu3 %v7754_v20  ;;  %v7802_v20 = vld [vmem:[%s9364_s25 + $0x398] sm:$0xff]  ;;  %v7787_v21 = vld [vmem:[%s9364_s25 + $0x320] sm:$0xff] }
 0xbfd   : > { %4540 = vmatpush.bf16.msra.mxu2 %v7778_v24  ;;  %v3203_v33 = vpop.f32.mrf.mxu3  ;;  %v3316_v6 = vmax.f32 %v3232_v40, 0.0  ;;  %v7811_v23 = vld [vmem:[%s9364_s25 + $0x3e0] sm:$0xff]  ;;  %v7793_v24 = vld [vmem:[%s9364_s25 + $0x350] sm:$0xff] }
 0xbfe   : > { %4514 = vmatpush.bf16.msrb.mxu0 %v7760_v27  ;;  %v3204_v56 = vadd.f32 %v3203_v33, %v2418_v44  ;;  %v7801_v27 = vld [vmem:[%s9364_s25 + $0x390] sm:$0xff]  ;;  %v2424_v33 = vperm.slane %v9968_v18, 6 }
 0xbff   : > { %4528 = vmatpush.bf16.msra.mxu1 %v7768_v29  ;;  %v3219_v41 = vpop.f32.mrf.mxu0  ;;  %v7786_v29 = vld [vmem:[%s9364_s25 + $0x318] sm:$0xff] }
 0xc00   : > { %v3245_v36 = vpop.f32.mrf.mxu2  ;;  %4499 = vmatpush.bf16.msrb.mxu3 %v7753_v31  ;;  %v3220_v46 = vadd.f32 %v3219_v41, %v2419_v28  ;;  %v3314_v63 = vmax.f32 %v3204_v56, 0.0  ;;  %v2423_v31 = vperm.slane %v9968_v18, 5  ;;  %v7791_v41 = vld [vmem:[%s9364_s25 + $0x340] sm:$0xff] }
 0xc01   : > { %4541 = vmatpush.bf16.msra.mxu2 %v7777_v32  ;;  %v3246_v22 = vadd.f32 %v3245_v36, %v2421_v3  ;;  %v7792_v32 = vld [vmem:[%s9364_s25 + $0x348] sm:$0xff] }
 0xc02   : > { %v3233_v37 = vpop.f32.mrf.mxu1  ;;  %4515 = vmatpush.bf16.msrb.mxu0 %v7759_v34  ;;  %v3331_v52 = vmax.f32 %v3220_v46, 0.0  ;;  %v7800_v34 = vld [vmem:[%s9364_s25 + $0x388] sm:$0xff]  ;;  %v2422_v46 = vperm.slane %v9968_v18, 4 }
 0xc03   : > { %v3234_v48 = vadd.f32 %v3233_v37, %v2420_v30  ;;  %4529 = vmatpush.bf16.msra.mxu1 %v7767_v38  ;;  %v3317_v9 = vmax.f32 %v3246_v22, 0.0  ;;  %v7810_v30 = vld [vmem:[%s9364_s25 + $0x3d8] sm:$0xff]  ;;  %v7809_v38 = vld [vmem:[%s9364_s25 + $0x3d0] sm:$0xff] }
 0xc04   : > { %4500 = vmatpush.bf16.msrb.mxu3 %v7752_v43  ;;  %v3604_v47 = vpack.c.bf16 %v3331_v52, %v3315_v51  ;;  %v7808_v52 = vld [vmem:[%s9364_s25 + $0x3c8] sm:$0xff] }
 0xc05   : > { %v3332_v54 = vmax.f32 %v3234_v48, 0.0  ;;  %4542 = vmatpush.bf16.msra.mxu2 %v7776_v45  ;;  %v3205_v1 = vpop.f32.mrf.mxu3  ;;  %v2425_v48 = vperm.slane %v9968_v18, 7 }
 0xc06   : > { %4564 = vmatpush.bf16.msra.mxu0 %v7798_v39  ;;  %v3206_v62 = vadd.f32 %v3205_v1, %v2418_v44  ;;  %v7799_v44 = vld [vmem:[%s9364_s25 + $0x380] sm:$0xff] }
 0xc07   : > { %4578 = vmatpush.bf16.msrb.mxu1 %v7806_v42  ;;  %v3605_v0 = vpack.c.bf16 %v3332_v54, %v3316_v6  ;;  %4516 = vmatmul.bf16.vlgmr.msrb.gmra.mxu0 %v3604_v47 }
 0xc08   : > { %v3247_v4 = vpop.f32.mrf.mxu2  ;;  %v3330_v7 = vmax.f32 %v3206_v62, 0.0  ;;  %4501 = vmatpush.bf16.msrb.mxu3 %v7751_v59  ;;  %v7783_v59 = vld [vmem:[%s9364_s25 + $0x300] sm:$0xff] }
 0xc09   : > { %v3248_v57 = vadd.f32 %v3247_v4, %v2421_v3  ;;  %4530 = vmatmul.bf16.vlgmr.msra.gmra.mxu1 %v3605_v0  ;;  %4543 = vmatpush.bf16.msra.mxu2 %v7775_v2  ;;  %v7784_v3 = vld [vmem:[%s9364_s25 + $0x308] sm:$0xff]  ;;  %v7807_v2 = vld [vmem:[%s9364_s25 + $0x3c0] sm:$0xff] }
 0xc0a   : > { %4565 = vmatpush.bf16.msra.mxu0 %v7797_v55  ;;  %v3603_v12 = vpack.c.bf16 %v3330_v7, %v3314_v63 }
 0xc0b   : > { %4579 = vmatpush.bf16.msrb.mxu1 %v7805_v58  ;;  %v3333_v10 = vmax.f32 %v3248_v57, 0.0 }
 0xc0c   : > { %4550 = vmatpush.bf16.msra.mxu3 %v7790_v25 }
 0xc0d   : > { %4592 = vmatpush.bf16.msrb.mxu2 %v7814_v5  ;;  %v3606_v14 = vpack.c.bf16 %v3333_v10, %v3317_v9  ;;  %4502 = vmatmul.bf16.vlgmr.msrb.gmra.mxu3 %v3603_v12 }
 0xc0e   : > { %4566 = vmatpush.bf16.msra.mxu0 %v7796_v53 }
 0xc0f   : > { %4580 = vmatpush.bf16.msrb.mxu1 %v7804_v8  ;;  %4544 = vmatmul.bf16.vlgmr.msra.gmra.mxu2 %v3606_v14 }
 0xc10   : > { %4551 = vmatpush.bf16.msra.mxu3 %v7789_v11 }
 0xc11   : > { %4593 = vmatpush.bf16.msrb.mxu2 %v7813_v13 }
 0xc12   : > { %4567 = vmatpush.bf16.msra.mxu0 %v7795_v60  ;;  %v8094_v60 = vld [vmem:[%s1085_s27] ss:$0 sm:$0xff] }
 0xc13   : > { %4581 = vmatpush.bf16.msrb.mxu1 %v7803_v15 }
 0xc14   : > { %4552 = vmatpush.bf16.msra.mxu3 %v7788_v16 }
 0xc15   : > { %4594 = vmatpush.bf16.msrb.mxu2 %v7812_v17 }
 0xc16   : > { %4568 = vmatpush.bf16.msra.mxu0 %v7794_v19 }
 0xc17   : > { %v3273_v26 = vpop.f32.mrf.mxu0  ;;  %4582 = vmatpush.bf16.msrb.mxu1 %v7802_v20 }
 0xc18   : > { %v3287_v28 = vpop.f32.mrf.mxu1  ;;  %4553 = vmatpush.bf16.msra.mxu3 %v7787_v21  ;;  %v3274_v39 = vadd.f32 %v3273_v26, %v2423_v31 }
 0xc19   : > { %4595 = vmatpush.bf16.msrb.mxu2 %v7811_v23  ;;  %v3288_v42 = vadd.f32 %v3287_v28, %v2424_v33 }
 0xc1a   : > { %4569 = vmatpush.bf16.msra.mxu0 %v7793_v24  ;;  %v3319_v6 = vmax.f32 %v3274_v39, 0.0 }
 0xc1b   : > { %4583 = vmatpush.bf16.msrb.mxu1 %v7801_v27  ;;  %v3320_v55 = vmax.f32 %v3288_v42, 0.0 }
 0xc1c   : > { %4554 = vmatpush.bf16.msra.mxu3 %v7786_v29 }
 0xc1d   : > { %v3259_v36 = vpop.f32.mrf.mxu3  ;;  %4596 = vmatpush.bf16.msrb.mxu2 %v7810_v30 }
 0xc1e   : > { %4570 = vmatpush.bf16.msra.mxu0 %v7792_v32  ;;  %v3260_v47 = vadd.f32 %v3259_v36, %v2422_v46 }
 0xc1f   : > { %v3301_v40 = vpop.f32.mrf.mxu2  ;;  %v3275_v43 = vpop.f32.mrf.mxu0  ;;  %4584 = vmatpush.bf16.msrb.mxu1 %v7800_v34 }
 0xc20   : > { %v3276_v37 = vadd.f32 %v3275_v43, %v2423_v31  ;;  %v3289_v45 = vpop.f32.mrf.mxu1  ;;  %4555 = vmatpush.bf16.msra.mxu3 %v7785_v35  ;;  %v3302_v22 = vadd.f32 %v3301_v40, %v2425_v48  ;;  %v3318_v4 = vmax.f32 %v3260_v47, 0.0 }
 0xc21   : > { %v3290_v51 = vadd.f32 %v3289_v45, %v2424_v33  ;;  %4597 = vmatpush.bf16.msrb.mxu2 %v7809_v38 }
 0xc22   : > { %v3335_v54 = vmax.f32 %v3276_v37, 0.0  ;;  %4571 = vmatpush.bf16.msra.mxu0 %v7791_v41  ;;  %v3321_v57 = vmax.f32 %v3302_v22, 0.0 }
 0xc23   : > { %v3336_v56 = vmax.f32 %v3290_v51, 0.0  ;;  %4585 = vmatpush.bf16.msrb.mxu1 %v7799_v44 }
 0xc24   : > { %v3608_v58 = vpack.c.bf16 %v3335_v54, %v3319_v6  ;;  %4556 = vmatpush.bf16.msra.mxu3 %v7784_v3 }
 0xc25   : > { %v3609_v0 = vpack.c.bf16 %v3336_v56, %v3320_v55  ;;  %v3261_v1 = vpop.f32.mrf.mxu3  ;;  %4598 = vmatpush.bf16.msrb.mxu2 %v7808_v52 }
 0xc26   : > { %v3262_v18 = vadd.f32 %v3261_v1, %v2422_v46  ;;  %4572 = vmatmul.bf16.vlgmr.msra.gmra.mxu0 %v3608_v58 }
 0xc27   : > { %v3303_v25 = vpop.f32.mrf.mxu2  ;;  %4586 = vmatmul.bf16.vlgmr.msrb.gmra.mxu1 %v3609_v0 }
 0xc28   : > { %v3304_v62 = vadd.f32 %v3303_v25, %v2425_v48  ;;  %v3334_v5 = vmax.f32 %v3262_v18, 0.0  ;;  %4557 = vmatpush.bf16.msra.mxu3 %v7783_v59 }
 0xc29   : > { %4599 = vmatpush.bf16.msrb.mxu2 %v7807_v2 }
 0xc2a   : > { %v3337_v53 = vmax.f32 %v3304_v62, 0.0  ;;  %v3607_v63 = vpack.c.bf16 %v3334_v5, %v3318_v4 }
 0xc2c   : > { %v3610_v7 = vpack.c.bf16 %v3337_v53, %v3321_v57  ;;  %4558 = vmatmul.bf16.vlgmr.msra.gmra.mxu3 %v3607_v63 }
 0xc2e   : > { %4600 = vmatmul.bf16.vlgmr.msrb.gmra.mxu2 %v3610_v7 }
 0xc62   : > { %v4405_v8 = vpop.f32.mrf.mxu0 }
 0xc63   : > { %v4419_v10 = vpop.f32.mrf.mxu1 }
 0xc6a   : > { %v4407_v12 = vpop.f32.mrf.mxu0 }
 0xc6b   : > { %v4421_v14 = vpop.f32.mrf.mxu1 }
 0xc6e   : > { %v4391_v9 = vpop.f32.mrf.mxu3 }
 0xc6f   : > { %v4433_v11 = vpop.f32.mrf.mxu2  ;;  %v4392_v16 = vadd.f32 %v8094_v60, %v4391_v9 }
 0xc71   : > { %v4406_v20 = vadd.f32 %v4405_v8, %v4392_v16 }
 0xc72   : > { %v4461_v17 = vpop.f32.mrf.mxu0 }
 0xc73   : > { %v4475_v21 = vpop.f32.mrf.mxu1  ;;  %v4420_v24 = vadd.f32 %v4419_v10, %v4406_v20 }
 0xc75   : > { %v4434_v27 = vadd.f32 %v4433_v11, %v4420_v24 }
 0xc76   : > { %v4393_v13 = vpop.f32.mrf.mxu3 }
 0xc77   : > { %v4435_v15 = vpop.f32.mrf.mxu2  ;;  %v4394_v26 = vadd.f32 %v8094_v60, %v4393_v13 }
 0xc79   : > { %v4408_v28 = vadd.f32 %v4407_v12, %v4394_v26 }
 0xc7a   : > { %v4463_v29 = vpop.f32.mrf.mxu0 }
 0xc7b   : > { %v4477_v32 = vpop.f32.mrf.mxu1  ;;  %v4422_v33 = vadd.f32 %v4421_v14, %v4408_v28 }
 0xc7d   : > { %v4436_v36 = vadd.f32 %v4435_v15, %v4422_v33 }
 0xc7e   : > { %v4447_v19 = vpop.f32.mrf.mxu3 }
 0xc7f   : > { %v4489_v23 = vpop.f32.mrf.mxu2  ;;  %v4448_v31 = vadd.f32 %v4447_v19, %v4434_v27 }
 0xc81   : > { %v4462_v35 = vadd.f32 %v4461_v17, %v4448_v31 }
 0xc83   : > { %v4476_v38 = vadd.f32 %v4475_v21, %v4462_v35 }
 0xc84   : > { %v4517_v40 = vpop.f32.mrf.mxu0 }
 0xc85   : > { %v4490_v43 = vadd.f32 %v4489_v23, %v4476_v38 }
 0xc86   : > { %v4449_v30 = vpop.f32.mrf.mxu3  ;;  %v4531_v42 = vpop.f32.mrf.mxu1 }
 0xc87   : > { %v4491_v34 = vpop.f32.mrf.mxu2  ;;  %v4450_v39 = vadd.f32 %v4449_v30, %v4436_v36  ;;  %v8095_v36 = vld [vmem:[%s1112_s2] ss:$0 sm:$0xff] }
 0xc89   : > { %v4464_v44 = vadd.f32 %v4463_v29, %v4450_v39 }
 0xc8b   : > { %v4478_v45 = vadd.f32 %v4477_v32, %v4464_v44 }
 0xc8c   : > { %v4519_v48 = vpop.f32.mrf.mxu0 }
 0xc8d   : > { %v4492_v52 = vadd.f32 %v4491_v34, %v4478_v45 }
 0xc8e   : > { %v4533_v6 = vpop.f32.mrf.mxu1 }
 0xc90   : > { %v4503_v41 = vpop.f32.mrf.mxu3 }
 0xc91   : > { %v4504_v37 = vadd.f32 %v4503_v41, %v4490_v43 }
 0xc92   : > { %v4545_v46 = vpop.f32.mrf.mxu2 }
 0xc93   : > { %v4518_v3 = vadd.f32 %v4517_v40, %v4504_v37  ;;  %v8096_v40 = vld [vmem:[%s10222_s26] ss:$0 sm:$0xff] }
 0xc95   : > { %v4532_v54 = vadd.f32 %v4531_v42, %v4518_v3 }
 0xc97   : > { %v4546_v47 = vadd.f32 %v4545_v46, %v4532_v54 }
 0xc98   : > { %v4505_v51 = vpop.f32.mrf.mxu3 }
 0xc99   : > { %v4506_v55 = vadd.f32 %v4505_v51, %v4492_v52 }
 0xc9a   : > { %v4547_v56 = vpop.f32.mrf.mxu2 }
 0xc9b   : > { %v4520_v58 = vadd.f32 %v4519_v48, %v4506_v55 }
 0xc9d   : > { %v4534_v2 = vadd.f32 %v4533_v6, %v4520_v58 }
 0xc9f   : > { %v4548_v4 = vadd.f32 %v4547_v56, %v4534_v2 }
 0xca3   : > { %v4573_v59 = vpop.f32.mrf.mxu0 }
 0xca4   : > { %v4587_v1 = vpop.f32.mrf.mxu1 }
 0xcab   : > { %v4575_v7 = vpop.f32.mrf.mxu0 }
 0xcac   : > { %v4589_v9 = vpop.f32.mrf.mxu1 }
 0xcaf   : > { %v4559_v22 = vpop.f32.mrf.mxu3 }
 0xcb0   : > { %v4560_v0 = vadd.f32 %v4559_v22, %v4546_v47 }
 0xcb1   : > { %v4601_v25 = vpop.f32.mrf.mxu2 }
 0xcb2   : > { %v4574_v18 = vadd.f32 %v4573_v59, %v4560_v0 }
 0xcb4   : > { %v4588_v62 = vadd.f32 %v4587_v1, %v4574_v18 }
 0xcb6   : > { %v4602_v5 = vadd.f32 %v4601_v25, %v4588_v62 }
 0xcb7   : > { %v4561_v57 = vpop.f32.mrf.mxu3 }
 0xcb8   : > { %v4562_v53 = vadd.f32 %v4561_v57, %v4548_v4  ;;  %v4606_v63 = vadd.f32 %v4602_v5, %v9725_v49 }
 0xcb9   : > { %v4603_v11 = vpop.f32.mrf.mxu2 }
 0xcba   : > { %v4576_v8 = vadd.f32 %v4575_v7, %v4562_v53  ;;  %4610 = vadd.xlane.f32.xlu1 %v4606_v63 }
 0xcbc   : > { %v4590_v10 = vadd.f32 %v4589_v9, %v4576_v8 }
 0xcbe   : > { %v4604_v12 = vadd.f32 %v4603_v11, %v4590_v10 }
 0xcc0   : > { %v4607_v13 = vadd.f32 %v4604_v12, %v9727_v50 }
 0xcc2   : > { %4612 = vadd.xlane.f32.xlu0 %v4607_v13 }
 0xd2d   : > { %v4611_v14 = vpop.xlane.xlu1 %4610 }
 0xd2e   : > { %v4614_v60 = vmul.f32 %v4611_v14, %v9610_v61 }
 0xd30   : > { %v4616_v15 = vsub.f32 %v4606_v63, %v4614_v60 }
 0xd32   : > { %v4618_v16 = vmul.f32 %v4616_v15, %v4616_v15 }
 0xd34   : > { %4620 = vadd.xlane.f32.xlu2 %v4618_v16 }
 0xd35   : > { %v4613_v17 = vpop.xlane.xlu0 %4612 }
 0xd36   : > { %v4615_v19 = vmul.f32 %v4613_v17, %v9610_v61 }
 0xd38   : > { %v4617_v49 = vsub.f32 %v4607_v13, %v4615_v19 }
 0xd3a   : > { %v4619_v20 = vmul.f32 %v4617_v49, %v4617_v49 }
 0xd3c   : > { %4622 = vadd.xlane.f32.xlu1 %v4619_v20 }
 0xda7   : > { %v4621_v21 = vpop.xlane.xlu2 %4620 }
 0xda8   : > { %v4624_v23 = vmul.f32 %v4621_v21, %v9610_v61 }
 0xdaa   : > { %v4626_v24 = vadd.f32 1e-05, %v4624_v23 }
 0xdac   : > { %8135 = vrsqrt.f32 %v4626_v24  ;;  %vm4634_vm15 = vweird.f32 %v4626_v24 }
 0xdaf   : > { %v4623_v50 = vpop.xlane.xlu1 %4622 }
 0xdb0   : > { %v4625_v26 = vmul.f32 %v4623_v50, %v9610_v61 }
 0xdb2   : > { %v8136_v27 = vpop.eup %8135  ;;  %v4627_v28 = vadd.f32 1e-05, %v4625_v26 }
 0xdb3   : > { %v4629_v29 = vmul.f32 %v8136_v27, %v4626_v24  ;;  %vm4635_vm14 = vweird.f32 %v8136_v27 }
 0xdb4   : > { %8137 = vrsqrt.f32 %v4627_v28  ;;  %vm4636_vm0 = vmor %vm4634_vm15, %vm4635_vm14  ;;  %vm4644_vm2 = vweird.f32 %v4627_v28 }
 0xdb5   : > { %v4630_v30 = vmul.f32 %v8136_v27, %v4629_v29 }
 0xdb7   : > { %v4631_v31 = vmul.f32 0.5, %v4630_v30 }
 0xdb9   : > { %v4632_v32 = vsub.f32 1.5, %v4631_v31 }
 0xdba   : > { %v8138_v33 = vpop.eup %8137 }
 0xdbb   : > { %v4633_v34 = vmul.f32 %v8136_v27, %v4632_v32  ;;  %v4639_v35 = vmul.f32 %v8138_v33, %v4627_v28  ;;  %vm4645_vm1 = vweird.f32 %v8138_v33 }
 0xdbc   : > { %vm4646_vm3 = vmor %vm4644_vm2, %vm4645_vm1 }
 0xdbd   : > { %v4637_v38 = vsel %vm4636_vm0, %v8136_v27, %v4633_v34  ;;  %v4640_v39 = vmul.f32 %v8138_v33, %v4639_v35 }
 0xdbe   : > { %v4648_v41 = vmul.f32 %v4637_v38, %v4616_v15 }
 0xdbf   : > { %v4641_v42 = vmul.f32 0.5, %v4640_v39 }
 0xdc0   : > { %v4653_v43 = vmul.f32 %v8095_v36, %v4648_v41 }
 0xdc1   : > { %v4642_v44 = vsub.f32 1.5, %v4641_v42 }
 0xdc2   : > { %v10034_v46 = vadd.f32 %v8096_v40, %v4653_v43 }
 0xdc3   : > { %v4643_v37 = vmul.f32 %v8138_v33, %v4642_v44 }
 0xdc4   : > { %4660 = vst [vmem:[#allocation2] sm:$0xff] %v10034_v46 }
 0xdc5   : > { %v4647_v45 = vsel %vm4646_vm3, %v8138_v33, %v4643_v37 }
 0xdc6   : > { %v4649_v3 = vmul.f32 %v4647_v45, %v4617_v49 }
 0xdc8   : > { %v4654_v48 = vmul.f32 %v8095_v36, %v4649_v3  ;;  %4665 = sbr.rel (%p7120_p4) target bundleno = 3988 (0xf94), region = 204 }
 0xdca   : > { %v10037_v51 = vadd.f32 %v8096_v40, %v4654_v48 }
 0xdcc   : > { %4661 = vst [vmem:[#allocation2 + $0x8] sm:$0xff] %v10037_v51 }
 0xdcd   : > { %4668 = vadd.xlane.f32.xlu0 %v10034_v46  ;;  %v7179_v52 = vld [vmem:[#allocation28 + $0x70] sm:$0xf]  ;;  %v7830_v6 = vld [vmem:[#allocation28 + $0x74] sm:$0xf0]  ;;  %v7829_v54 = vld [vmem:[#allocation28 + $0x74] sm:$0xf] }
 0xdce   : > { %v7180_v55 = vor.u32 %v7830_v6, %v7179_v52  ;;  %v7181_v56 = vld [vmem:[#allocation28 + $0x78] sm:$0xf0]  ;;  %v7243_v47 = vld [vmem:[#allocation28 + $0xf0] sm:$0xf]  ;;  %v7846_v58 = vld [vmem:[#allocation28 + $0xf4] sm:$0xf0] }
 0xdcf   : > { %v7184_v59 = vor.u32 %v7829_v54, %v7181_v56  ;;  %v7244_v22 = vor.u32 %v7846_v58, %v7243_v47  ;;  %v7845_v0 = vld [vmem:[#allocation28 + $0xf4] sm:$0xf]  ;;  %v7245_v1 = vld [vmem:[#allocation28 + $0xf8] sm:$0xf0]  ;;  %v7171_v2 = vld [vmem:[#allocation28 + $0x60] sm:$0xf] }
 0xdd0   : > { %4821 = vmatpush.bf16.msra.mxu0 %v7180_v55  ;;  %v7248_v18 = vor.u32 %v7845_v0, %v7245_v1  ;;  %v7828_v25 = vld [vmem:[#allocation28 + $0x64] sm:$0xf0]  ;;  %v7827_v62 = vld [vmem:[#allocation28 + $0x64] sm:$0xf]  ;;  %v7173_v4 = vld [vmem:[#allocation28 + $0x68] sm:$0xf0] }
 0xdd1   : > { %4835 = vmatpush.bf16.msra.mxu1 %v7184_v59  ;;  %4957 = vmatpush.bf16.msra.mxu2 %v7244_v22  ;;  %v7172_v5 = vor.u32 %v7828_v25, %v7171_v2  ;;  %v7176_v57 = vor.u32 %v7827_v62, %v7173_v4  ;;  %v7235_v53 = vld [vmem:[#allocation28 + $0xe0] sm:$0xf]  ;;  %v7844_v63 = vld [vmem:[#allocation28 + $0xe4] sm:$0xf0]  ;;  %v7843_v7 = vld [vmem:[#allocation28 + $0xe4] sm:$0xf] }
 0xdd2   : > { %4971 = vmatpush.bf16.msra.mxu3 %v7248_v18  ;;  %v7236_v8 = vor.u32 %v7844_v63, %v7235_v53  ;;  %v7237_v9 = vld [vmem:[#allocation28 + $0xe8] sm:$0xf0]  ;;  %v7163_v10 = vld [vmem:[#allocation28 + $0x50] sm:$0xf]  ;;  %v7826_v11 = vld [vmem:[#allocation28 + $0x54] sm:$0xf0] }
 0xdd3   : > { %v7240_v12 = vor.u32 %v7843_v7, %v7237_v9  ;;  %v7825_v13 = vld [vmem:[#allocation28 + $0x54] sm:$0xf]  ;;  %v7165_v14 = vld [vmem:[#allocation28 + $0x58] sm:$0xf0]  ;;  %v7227_v60 = vld [vmem:[#allocation28 + $0xd0] sm:$0xf]  ;;  %v7164_v15 = vor.u32 %v7826_v11, %v7163_v10 }
 0xdd4   : > { %4822 = vmatpush.bf16.msra.mxu0 %v7172_v5  ;;  %v7842_v16 = vld [vmem:[#allocation28 + $0xd4] sm:$0xf0]  ;;  %v7841_v17 = vld [vmem:[#allocation28 + $0xd4] sm:$0xf]  ;;  %v7229_v19 = vld [vmem:[#allocation28 + $0xd8] sm:$0xf0]  ;;  %v7168_v49 = vor.u32 %v7825_v13, %v7165_v14 }
 0xdd5   : > { %4670 = vadd.xlane.f32.xlu0 %v10037_v51  ;;  %4836 = vmatpush.bf16.msra.mxu1 %v7176_v57  ;;  %v7228_v20 = vor.u32 %v7842_v16, %v7227_v60  ;;  %v7155_v21 = vld [vmem:[#allocation28 + $0x40] sm:$0xf]  ;;  %v7824_v23 = vld [vmem:[#allocation28 + $0x44] sm:$0xf0]  ;;  %v7823_v24 = vld [vmem:[#allocation28 + $0x44] sm:$0xf]  ;;  %v7232_v50 = vor.u32 %v7841_v17, %v7229_v19 }
 0xdd6   : > { %4958 = vmatpush.bf16.msra.mxu2 %v7236_v8  ;;  %4972 = vmatpush.bf16.msra.mxu3 %v7240_v12  ;;  %v7157_v26 = vld [vmem:[#allocation28 + $0x48] sm:$0xf0]  ;;  %v7219_v27 = vld [vmem:[#allocation28 + $0xc0] sm:$0xf]  ;;  %v7840_v28 = vld [vmem:[#allocation28 + $0xc4] sm:$0xf0]  ;;  %v7156_v31 = vor.u32 %v7824_v23, %v7155_v21 }
 0xdd7   : > { %v7839_v29 = vld [vmem:[#allocation28 + $0xc4] sm:$0xf]  ;;  %v7221_v30 = vld [vmem:[#allocation28 + $0xc8] sm:$0xf0]  ;;  %v7160_v32 = vor.u32 %v7823_v24, %v7157_v26  ;;  %v7220_v33 = vor.u32 %v7840_v28, %v7219_v27  ;;  %v7147_v34 = vld [vmem:[#allocation28 + $0x30] sm:$0xf] }
 0xdd8   : > { %4823 = vmatpush.bf16.msra.mxu0 %v7164_v15  ;;  %v7822_v35 = vld [vmem:[#allocation28 + $0x34] sm:$0xf0]  ;;  %v7821_v36 = vld [vmem:[#allocation28 + $0x34] sm:$0xf]  ;;  %v7224_v38 = vor.u32 %v7839_v29, %v7221_v30  ;;  %v7149_v39 = vld [vmem:[#allocation28 + $0x38] sm:$0xf0] }
 0xdd9   : > { %4837 = vmatpush.bf16.msra.mxu1 %v7168_v49  ;;  %v7211_v40 = vld [vmem:[#allocation28 + $0xb0] sm:$0xf]  ;;  %v7838_v41 = vld [vmem:[#allocation28 + $0xb4] sm:$0xf0]  ;;  %v7837_v42 = vld [vmem:[#allocation28 + $0xb4] sm:$0xf]  ;;  %v7148_v44 = vor.u32 %v7822_v35, %v7147_v34  ;;  %v7152_v37 = vor.u32 %v7821_v36, %v7149_v39 }
 0xdda   : > { %4959 = vmatpush.bf16.msra.mxu2 %v7228_v20  ;;  %4973 = vmatpush.bf16.msra.mxu3 %v7232_v50  ;;  %v7213_v43 = vld [vmem:[#allocation28 + $0xb8] sm:$0xf0]  ;;  %v7212_v45 = vor.u32 %v7838_v41, %v7211_v40  ;;  %v7139_v59 = vld [vmem:[#allocation28 + $0x20] sm:$0xf]  ;;  %v7819_v22 = vld [vmem:[#allocation28 + $0x24] sm:$0xf] }
 0xddb   : > { %v7216_v48 = vor.u32 %v7837_v42, %v7213_v43  ;;  %v7141_v1 = vld [vmem:[#allocation28 + $0x28] sm:$0xf0]  ;;  %v7203_v2 = vld [vmem:[#allocation28 + $0xa0] sm:$0xf]  ;;  %v7836_v18 = vld [vmem:[#allocation28 + $0xa4] sm:$0xf0] }
 0xddc   : > { %4824 = vmatpush.bf16.msra.mxu0 %v7156_v31  ;;  %v7144_v25 = vor.u32 %v7819_v22, %v7141_v1  ;;  %v7204_v62 = vor.u32 %v7836_v18, %v7203_v2  ;;  %v7835_v4 = vld [vmem:[#allocation28 + $0xa4] sm:$0xf]  ;;  %v7205_v5 = vld [vmem:[#allocation28 + $0xa8] sm:$0xf0]  ;;  %v7818_v53 = vld [vmem:[#allocation28 + $0x14] sm:$0xf0] }
 0xddd   : > { %4838 = vmatpush.bf16.msra.mxu1 %v7160_v32  ;;  %v7208_v57 = vor.u32 %v7835_v4, %v7205_v5  ;;  %v7817_v63 = vld [vmem:[#allocation28 + $0x14] sm:$0xf]  ;;  %v7133_v8 = vld [vmem:[#allocation28 + $0x18] sm:$0xf0]  ;;  %v7195_v9 = vld [vmem:[#allocation28 + $0x90] sm:$0xf] }
 0xdde   : > { %4960 = vmatpush.bf16.msra.mxu2 %v7220_v33  ;;  %4974 = vmatpush.bf16.msra.mxu3 %v7224_v38  ;;  %v7834_v10 = vld [vmem:[#allocation28 + $0x94] sm:$0xf0]  ;;  %v7136_v11 = vor.u32 %v7817_v63, %v7133_v8  ;;  %v7833_v13 = vld [vmem:[#allocation28 + $0x94] sm:$0xf]  ;;  %v7197_v14 = vld [vmem:[#allocation28 + $0x98] sm:$0xf0] }
 0xddf   : > { %v7196_v12 = vor.u32 %v7834_v10, %v7195_v9  ;;  %v7200_v60 = vor.u32 %v7833_v13, %v7197_v14  ;;  %v7123_v15 = vld [vmem:[#allocation28] sm:$0xf]  ;;  %v7816_v16 = vld [vmem:[#allocation28 + $0x4] sm:$0xf0]  ;;  %v7815_v17 = vld [vmem:[#allocation28 + $0x4] sm:$0xf] }
 0xde0   : > { %4825 = vmatpush.bf16.msra.mxu0 %v7148_v44  ;;  %v7124_v19 = vor.u32 %v7816_v16, %v7123_v15  ;;  %v7125_v49 = vld [vmem:[#allocation28 + $0x8] sm:$0xf0]  ;;  %v7187_v20 = vld [vmem:[#allocation28 + $0x80] sm:$0xf]  ;;  %v7832_v21 = vld [vmem:[#allocation28 + $0x84] sm:$0xf0] }
 0xde1   : > { %4839 = vmatpush.bf16.msra.mxu1 %v7152_v37  ;;  %v7128_v23 = vor.u32 %v7815_v17, %v7125_v49  ;;  %v7188_v24 = vor.u32 %v7832_v21, %v7187_v20  ;;  %v7831_v50 = vld [vmem:[#allocation28 + $0x84] sm:$0xf]  ;;  %v7189_v26 = vld [vmem:[#allocation28 + $0x88] sm:$0xf0]  ;;  %v7309_v27 = vld [vmem:[#allocation28 + $0x170] sm:$0xf] }
 0xde2   : > { %4961 = vmatpush.bf16.msra.mxu2 %v7212_v45  ;;  %4975 = vmatpush.bf16.msra.mxu3 %v7216_v48  ;;  %v7192_v28 = vor.u32 %v7831_v50, %v7189_v26  ;;  %v7862_v29 = vld [vmem:[#allocation28 + $0x174] sm:$0xf0]  ;;  %v7861_v30 = vld [vmem:[#allocation28 + $0x174] sm:$0xf]  ;;  %v7311_v31 = vld [vmem:[#allocation28 + $0x178] sm:$0xf0] }
 0xde3   : > { %v7310_v32 = vor.u32 %v7862_v29, %v7309_v27  ;;  %v7314_v33 = vor.u32 %v7861_v30, %v7311_v31  ;;  %v7375_v34 = vld [vmem:[#allocation28 + $0x1f0] sm:$0xf]  ;;  %v7878_v35 = vld [vmem:[#allocation28 + $0x1f4] sm:$0xf0]  ;;  %v7877_v36 = vld [vmem:[#allocation28 + $0x1f4] sm:$0xf] }
 0xde4   : > { %v7376_v38 = vor.u32 %v7878_v35, %v7375_v34  ;;  %v7377_v39 = vld [vmem:[#allocation28 + $0x1f8] sm:$0xf0]  ;;  %v7301_v40 = vld [vmem:[#allocation28 + $0x160] sm:$0xf]  ;;  %v7860_v41 = vld [vmem:[#allocation28 + $0x164] sm:$0xf0] }
 0xde5   : > { %4840 = vmatpush.bf16.msra.mxu1 %v7144_v25  ;;  %v7380_v42 = vor.u32 %v7877_v36, %v7377_v39  ;;  %v7302_v43 = vor.u32 %v7860_v41, %v7301_v40  ;;  %v7859_v44 = vld [vmem:[#allocation28 + $0x164] sm:$0xf]  ;;  %v7303_v37 = vld [vmem:[#allocation28 + $0x168] sm:$0xf0]  ;;  %v7367_v45 = vld [vmem:[#allocation28 + $0x1e0] sm:$0xf] }
 0xde6   : > { %4962 = vmatpush.bf16.msra.mxu2 %v7204_v62  ;;  %4976 = vmatpush.bf16.msra.mxu3 %v7208_v57  ;;  %v7876_v48 = vld [vmem:[#allocation28 + $0x1e4] sm:$0xf0]  ;;  %v7359_v1 = vld [vmem:[#allocation28 + $0x1d0] sm:$0xf]  ;;  %v7874_v2 = vld [vmem:[#allocation28 + $0x1d4] sm:$0xf0] }
 0xde7   : > { %v7360_v25 = vor.u32 %v7874_v2, %v7359_v1  ;;  %v7873_v62 = vld [vmem:[#allocation28 + $0x1d4] sm:$0xf]  ;;  %v7361_v4 = vld [vmem:[#allocation28 + $0x1d8] sm:$0xf0]  ;;  %v7285_v57 = vld [vmem:[#allocation28 + $0x140] sm:$0xf] }
 0xde8   : > { %v7364_v5 = vor.u32 %v7873_v62, %v7361_v4  ;;  %v7351_v8 = vld [vmem:[#allocation28 + $0x1c0] sm:$0xf]  ;;  %v7872_v9 = vld [vmem:[#allocation28 + $0x1c4] sm:$0xf0]  ;;  %v7353_v13 = vld [vmem:[#allocation28 + $0x1c8] sm:$0xf0] }
 0xde9   : > { %4841 = vmatpush.bf16.msra.mxu1 %v7136_v11  ;;  %v7352_v11 = vor.u32 %v7872_v9, %v7351_v8  ;;  %v7854_v15 = vld [vmem:[#allocation28 + $0x134] sm:$0xf0]  ;;  %v7853_v16 = vld [vmem:[#allocation28 + $0x134] sm:$0xf]  ;;  %v7343_v49 = vld [vmem:[#allocation28 + $0x1b0] sm:$0xf] }
 0xdea   : > { %4963 = vmatpush.bf16.msra.mxu2 %v7196_v12  ;;  %4977 = vmatpush.bf16.msra.mxu3 %v7200_v60  ;;  %v7871_v12 = vld [vmem:[#allocation28 + $0x1c4] sm:$0xf]  ;;  %v7277_v60 = vld [vmem:[#allocation28 + $0x130] sm:$0xf]  ;;  %v7870_v21 = vld [vmem:[#allocation28 + $0x1b4] sm:$0xf0] }
 0xdeb   : > { %v7356_v14 = vor.u32 %v7871_v12, %v7353_v13  ;;  %v7278_v17 = vor.u32 %v7854_v15, %v7277_v60  ;;  %v7344_v50 = vor.u32 %v7870_v21, %v7343_v49  ;;  %v7269_v27 = vld [vmem:[#allocation28 + $0x120] sm:$0xf]  ;;  %v7851_v29 = vld [vmem:[#allocation28 + $0x124] sm:$0xf]  ;;  %v7271_v31 = vld [vmem:[#allocation28 + $0x128] sm:$0xf0] }
 0xdec   : > { %v7274_v34 = vor.u32 %v7851_v29, %v7271_v31  ;;  %v7867_v36 = vld [vmem:[#allocation28 + $0x1a4] sm:$0xf]  ;;  %v7261_v41 = vld [vmem:[#allocation28 + $0x110] sm:$0xf]  ;;  %v7255_v2 = vld [vmem:[#allocation28 + $0x108] sm:$0xf0] }
 0xded   : > { %4842 = vmatpush.bf16.msra.mxu1 %v7128_v23  ;;  %v7869_v23 = vld [vmem:[#allocation28 + $0x1b4] sm:$0xf]  ;;  %v8139_v49 = vld [vmem:[#allocation26] ss:$0 sm:$0xff]  ;;  %v7507_v31 = vld [vmem:[#allocation28 + $0x2f0] sm:$0xf] }
 0xdee   : > { %4964 = vmatpush.bf16.msra.mxu2 %v7188_v24  ;;  %4978 = vmatpush.bf16.msra.mxu3 %v7192_v28  ;;  %v7345_v24 = vld [vmem:[#allocation28 + $0x1b8] sm:$0xf0]  ;;  %v7852_v28 = vld [vmem:[#allocation28 + $0x124] sm:$0xf0]  ;;  %v7893_v29 = vld [vmem:[#allocation28 + $0x274] sm:$0xf] }
 0xdef   : > { %v7348_v26 = vor.u32 %v7869_v23, %v7345_v24  ;;  %v7270_v30 = vor.u32 %v7852_v28, %v7269_v27  ;;  %v8140_v24 = vld [vmem:[#allocation27] ss:$0 sm:$0xff]  ;;  %v7441_v27 = vld [vmem:[#allocation28 + $0x270] sm:$0xf]  ;;  %v7894_v28 = vld [vmem:[#allocation28 + $0x274] sm:$0xf0] }
 0xdf1   : > { %5108 = vmatpush.bf16.msrb.mxu1 %v7314_v33  ;;  %v7868_v33 = vld [vmem:[#allocation28 + $0x1a4] sm:$0xf0] }
 0xdf2   : > { %5231 = vmatpush.bf16.msrb.mxu2 %v7376_v38  ;;  %5245 = vmatpush.bf16.msrb.mxu3 %v7380_v42  ;;  %v7337_v38 = vld [vmem:[#allocation28 + $0x1a8] sm:$0xf0]  ;;  %v7850_v42 = vld [vmem:[#allocation28 + $0x114] sm:$0xf0] }
 0xdf3   : > { %v7340_v39 = vor.u32 %v7867_v36, %v7337_v38  ;;  %v7442_v38 = vor.u32 %v7894_v28, %v7441_v27  ;;  %v7883_v28 = vld [vmem:[#allocation28 + $0x224] sm:$0xf] }
 0xe40   : > { %v4669_v3 = vpop.xlane.xlu0 %4668 }
 0xe41   : > { %v4672_v52 = vmul.f32 %v4669_v3, %v9610_v61  ;;  %v7306_v3 = vor.u32 %v7859_v44, %v7303_v37  ;;  %v7262_v37 = vor.u32 %v7850_v42, %v7261_v41  ;;  %v7892_v41 = vld [vmem:[#allocation28 + $0x264] sm:$0xf0] }
 0xe43   : > { %v10045_v6 = vsub.f32 %v10034_v46, %v4672_v52  ;;  %v7820_v46 = vld [vmem:[#allocation28 + $0x24] sm:$0xf0]  ;;  %v7875_v52 = vld [vmem:[#allocation28 + $0x1e4] sm:$0xf]  ;;  %5109 = vmatpush.bf16.msrb.mxu1 %v7306_v3  ;;  %v7327_v3 = vld [vmem:[#allocation28 + $0x190] sm:$0xf] }
 0xe44   : > { %v7140_v0 = vor.u32 %v7820_v46, %v7139_v59  ;;  %v7858_v59 = vld [vmem:[#allocation28 + $0x154] sm:$0xf0]  ;;  %v7857_v46 = vld [vmem:[#allocation28 + $0x154] sm:$0xf] }
 0xe45   : > { %v4676_v54 = vmul.f32 %v10045_v6, %v10045_v6 }
 0xe46   : > { %4826 = vmatpush.bf16.msra.mxu0 %v7140_v0  ;;  %v7295_v0 = vld [vmem:[#allocation28 + $0x158] sm:$0xf0] }
 0xe47   : > { %4678 = vadd.xlane.f32.xlu1 %v4676_v54  ;;  %v7369_v54 = vld [vmem:[#allocation28 + $0x1e8] sm:$0xf0]  ;;  %v7298_v18 = vor.u32 %v7857_v46, %v7295_v0  ;;  %v7253_v46 = vld [vmem:[#allocation28 + $0x100] sm:$0xf]  ;;  %v7847_v0 = vld [vmem:[#allocation28 + $0x104] sm:$0xf] }
 0xe48   : > { %v4671_v55 = vpop.xlane.xlu0 %4670  ;;  %v7258_v62 = vor.u32 %v7847_v0, %v7255_v2  ;;  %v7491_v0 = vld [vmem:[#allocation28 + $0x2d0] sm:$0xf]  ;;  %v7905_v2 = vld [vmem:[#allocation28 + $0x2d4] sm:$0xf] }
 0xe49   : > { %v4673_v56 = vmul.f32 %v4671_v55, %v9610_v61  ;;  %v7368_v55 = vor.u32 %v7876_v48, %v7367_v45  ;;  %5110 = vmatpush.bf16.msrb.mxu1 %v7298_v18  ;;  %v7263_v45 = vld [vmem:[#allocation28 + $0x118] sm:$0xf0]  ;;  %v7866_v48 = vld [vmem:[#allocation28 + $0x194] sm:$0xf0]  ;;  %v7319_v18 = vld [vmem:[#allocation28 + $0x180] sm:$0xf] }
 0xe4b   : > { %v10051_v47 = vsub.f32 %v10037_v51, %v4673_v56  ;;  %v7131_v51 = vld [vmem:[#allocation28 + $0x10] sm:$0xf]  ;;  %v7372_v56 = vor.u32 %v7875_v52, %v7369_v54  ;;  %5232 = vmatpush.bf16.msrb.mxu2 %v7368_v55  ;;  %v7328_v54 = vor.u32 %v7866_v48, %v7327_v3  ;;  %v7865_v55 = vld [vmem:[#allocation28 + $0x194] sm:$0xf]  ;;  %v7907_v3 = vld [vmem:[#allocation28 + $0x2e4] sm:$0xf] }
 0xe4c   : > { %v7132_v7 = vor.u32 %v7818_v53, %v7131_v51  ;;  %v7856_v51 = vld [vmem:[#allocation28 + $0x144] sm:$0xf0]  ;;  %v7855_v53 = vld [vmem:[#allocation28 + $0x144] sm:$0xf]  ;;  %v7501_v48 = vld [vmem:[#allocation28 + $0x2e8] sm:$0xf0] }
 0xe4d   : > { %v4677_v58 = vmul.f32 %v10051_v47, %v10051_v47  ;;  %5246 = vmatpush.bf16.msrb.mxu3 %v7372_v56  ;;  %v7286_v63 = vor.u32 %v7856_v51, %v7285_v57  ;;  %v7329_v56 = vld [vmem:[#allocation28 + $0x198] sm:$0xf0]  ;;  %v7321_v57 = vld [vmem:[#allocation28 + $0x188] sm:$0xf0] }
 0xe4e   : > { %4827 = vmatpush.bf16.msra.mxu0 %v7132_v7  ;;  %v7287_v7 = vld [vmem:[#allocation28 + $0x148] sm:$0xf0] }
 0xe4f   : > { %4680 = vadd.xlane.f32.xlu1 %v4677_v58  ;;  %v7293_v58 = vld [vmem:[#allocation28 + $0x150] sm:$0xf]  ;;  %5233 = vmatpush.bf16.msrb.mxu2 %v7360_v25  ;;  %v7290_v10 = vor.u32 %v7855_v53, %v7287_v7  ;;  %v7864_v25 = vld [vmem:[#allocation28 + $0x184] sm:$0xf0] }
 0xe50   : > { %v7294_v22 = vor.u32 %v7858_v59, %v7293_v58  ;;  %v7332_v59 = vor.u32 %v7865_v55, %v7329_v56  ;;  %v7320_v4 = vor.u32 %v7864_v25, %v7319_v18  ;;  %v7425_v55 = vld [vmem:[#allocation28 + $0x250] sm:$0xf]  ;;  %v7890_v56 = vld [vmem:[#allocation28 + $0x254] sm:$0xf0]  ;;  %v7493_v18 = vld [vmem:[#allocation28 + $0x2d8] sm:$0xf0] }
 0xe51   : > { %5247 = vmatpush.bf16.msrb.mxu3 %v7364_v5  ;;  %5111 = vmatpush.bf16.msrb.mxu1 %v7290_v10  ;;  %v7863_v5 = vld [vmem:[#allocation28 + $0x184] sm:$0xf]  ;;  %v7426_v25 = vor.u32 %v7890_v56, %v7425_v55 }
 0xe52   : > { %4828 = vmatpush.bf16.msra.mxu0 %v7124_v19  ;;  %v7279_v19 = vld [vmem:[#allocation28 + $0x138] sm:$0xf0]  ;;  %v7324_v53 = vor.u32 %v7863_v5, %v7321_v57  ;;  %v7888_v5 = vld [vmem:[#allocation28 + $0x244] sm:$0xf0]  ;;  %v7879_v56 = vld [vmem:[#allocation28 + $0x204] sm:$0xf] }
 0xe53   : > { %5234 = vmatpush.bf16.msrb.mxu2 %v7352_v11  ;;  %v7282_v20 = vor.u32 %v7853_v16, %v7279_v19 }
 0xe55   : > { %5248 = vmatpush.bf16.msrb.mxu3 %v7356_v14  ;;  %5112 = vmatpush.bf16.msrb.mxu1 %v7282_v20 }
 0xe56   : > { %5094 = vmatpush.bf16.msrb.mxu0 %v7310_v32  ;;  %v7335_v32 = vld [vmem:[#allocation28 + $0x1a0] sm:$0xf] }
 0xe57   : > { %5235 = vmatpush.bf16.msrb.mxu2 %v7344_v50  ;;  %v7336_v35 = vor.u32 %v7868_v33, %v7335_v32 }
 0xe59   : > { %5249 = vmatpush.bf16.msrb.mxu3 %v7348_v26  ;;  %5113 = vmatpush.bf16.msrb.mxu1 %v7274_v34  ;;  %v7910_v34 = vld [vmem:[#allocation28 + $0x2f4] sm:$0xf0] }
 0xe5a   : > { %5095 = vmatpush.bf16.msrb.mxu0 %v7302_v43  ;;  %v7849_v43 = vld [vmem:[#allocation28 + $0x114] sm:$0xf]  ;;  %v7508_v42 = vor.u32 %v7910_v34, %v7507_v31  ;;  %v7900_v31 = vld [vmem:[#allocation28 + $0x2a4] sm:$0xf0] }
 0xe5b   : > { %5236 = vmatpush.bf16.msrb.mxu2 %v7336_v35  ;;  %v7266_v52 = vor.u32 %v7849_v43, %v7263_v45  ;;  %v7909_v35 = vld [vmem:[#allocation28 + $0x2f4] sm:$0xf]  ;;  %v7908_v45 = vld [vmem:[#allocation28 + $0x2e4] sm:$0xf0] }
 0xe5d   : > { %5250 = vmatpush.bf16.msrb.mxu3 %v7340_v39  ;;  %5114 = vmatpush.bf16.msrb.mxu1 %v7266_v52 }
 0xe5e   : > { %5096 = vmatpush.bf16.msrb.mxu0 %v7294_v22  ;;  %v7848_v22 = vld [vmem:[#allocation28 + $0x104] sm:$0xf0] }
 0xe5f   : > { %5237 = vmatpush.bf16.msrb.mxu2 %v7328_v54  ;;  %v7254_v1 = vor.u32 %v7848_v22, %v7253_v46  ;;  %v7889_v46 = vld [vmem:[#allocation28 + $0x254] sm:$0xf]  ;;  %v7427_v22 = vld [vmem:[#allocation28 + $0x258] sm:$0xf0] }
 0xe61   : > { %5251 = vmatpush.bf16.msrb.mxu3 %v7332_v59  ;;  %5115 = vmatpush.bf16.msrb.mxu1 %v7258_v62  ;;  %v7504_v59 = vor.u32 %v7907_v3, %v7501_v48  ;;  %v7430_v62 = vor.u32 %v7889_v46, %v7427_v22  ;;  %v7385_v48 = vld [vmem:[#allocation28 + $0x200] sm:$0xf]  ;;  %v7896_v46 = vld [vmem:[#allocation28 + $0x284] sm:$0xf0]  ;;  %v7895_v22 = vld [vmem:[#allocation28 + $0x284] sm:$0xf] }
 0xe62   : > { %5097 = vmatpush.bf16.msrb.mxu0 %v7286_v63 }
 0xe63   : > { %5238 = vmatpush.bf16.msrb.mxu2 %v7320_v4  ;;  %v7417_v4 = vld [vmem:[#allocation28 + $0x240] sm:$0xf] }
 0xe65   : > { %5252 = vmatpush.bf16.msrb.mxu3 %v7324_v53  ;;  %v7887_v53 = vld [vmem:[#allocation28 + $0x244] sm:$0xf] }
 0xe66   : > { %5098 = vmatpush.bf16.msrb.mxu0 %v7278_v17 }
 0xe6a   : > { %5099 = vmatpush.bf16.msrb.mxu0 %v7270_v30  ;;  %v7443_v30 = vld [vmem:[#allocation28 + $0x278] sm:$0xf0] }
 0xe6b   : > { %v7446_v39 = vor.u32 %v7893_v29, %v7443_v30  ;;  %v7403_v29 = vld [vmem:[#allocation28 + $0x228] sm:$0xf0]  ;;  %v7467_v30 = vld [vmem:[#allocation28 + $0x2a0] sm:$0xf] }
 0xe6e   : > { %5100 = vmatpush.bf16.msrb.mxu0 %v7262_v37  ;;  %v7499_v37 = vld [vmem:[#allocation28 + $0x2e0] sm:$0xf] }
 0xe72   : > { %5101 = vmatpush.bf16.msrb.mxu0 %v7254_v1  ;;  %v7906_v1 = vld [vmem:[#allocation28 + $0x2d4] sm:$0xf0] }
 0xe73   : > { %v7492_v57 = vor.u32 %v7906_v1, %v7491_v0  ;;  %v7453_v0 = vld [vmem:[#allocation28 + $0x288] sm:$0xf0] }
 0xeba   : > { %v4679_v40 = vpop.xlane.xlu1 %4678 }
 0xebb   : > { %v4682_v44 = vmul.f32 %v4679_v40, %v9610_v61  ;;  %v7433_v40 = vld [vmem:[#allocation28 + $0x260] sm:$0xf] }
 0xebc   : > { %v7434_v52 = vor.u32 %v7892_v41, %v7433_v40  ;;  %v7881_v41 = vld [vmem:[#allocation28 + $0x214] sm:$0xf] }
 0xebd   : > { %v4684_v58 = vadd.f32 1e-05, %v4682_v44  ;;  %v7435_v44 = vld [vmem:[#allocation28 + $0x268] sm:$0xf0] }
 0xebf   : > { %8141 = vrsqrt.f32 %v4684_v58  ;;  %vm4692_vm5 = vweird.f32 %v4684_v58 }
 0xec2   : > { %v4681_v51 = vpop.xlane.xlu1 %4680 }
 0xec3   : > { %v4683_v63 = vmul.f32 %v4681_v51, %v9610_v61  ;;  %v7496_v51 = vor.u32 %v7905_v2, %v7493_v18 }
 0xec5   : > { %v8142_v7 = vpop.eup %8141  ;;  %v4685_v8 = vadd.f32 1e-05, %v4683_v63  ;;  %v7419_v63 = vld [vmem:[#allocation28 + $0x248] sm:$0xf0] }
 0xec6   : > { %v4687_v9 = vmul.f32 %v8142_v7, %v4684_v58  ;;  %vm4693_vm4 = vweird.f32 %v8142_v7  ;;  %v7500_v58 = vor.u32 %v7908_v45, %v7499_v37  ;;  %v7461_v37 = vld [vmem:[#allocation28 + $0x298] sm:$0xf0] }
 0xec7   : > { %8143 = vrsqrt.f32 %v4685_v8  ;;  %vm4694_vm6 = vmor %vm4692_vm5, %vm4693_vm4  ;;  %vm4702_vm8 = vweird.f32 %v4685_v8 }
 0xec8   : > { %v4688_v10 = vmul.f32 %v8142_v7, %v4687_v9  ;;  %v7903_v9 = vld [vmem:[#allocation28 + $0x2c4] sm:$0xf] }
 0xeca   : > { %v4689_v11 = vmul.f32 0.5, %v4688_v10  ;;  %v7485_v10 = vld [vmem:[#allocation28 + $0x2c8] sm:$0xf0] }
 0xecc   : > { %v4690_v12 = vsub.f32 1.5, %v4689_v11  ;;  %v7418_v11 = vor.u32 %v7888_v5, %v7417_v4 }
 0xecd   : > { %v8144_v13 = vpop.eup %8143 }
 0xece   : > { %v4691_v14 = vmul.f32 %v8142_v7, %v4690_v12  ;;  %v4697_v60 = vmul.f32 %v8144_v13, %v4685_v8  ;;  %vm4703_vm7 = vweird.f32 %v8144_v13  ;;  %v7904_v8 = vld [vmem:[#allocation28 + $0x2c4] sm:$0xf0]  ;;  %v7422_v12 = vor.u32 %v7887_v53, %v7419_v63 }
 0xecf   : > { %vm4704_vm9 = vmor %vm4702_vm8, %vm4703_vm7 }
 0xed0   : > { %v4698_v15 = vmul.f32 %v8144_v13, %v4697_v60  ;;  %v4695_v16 = vsel %vm4694_vm6, %v8142_v7, %v4691_v14  ;;  %v7483_v7 = vld [vmem:[#allocation28 + $0x2c0] sm:$0xf]  ;;  %v7886_v14 = vld [vmem:[#allocation28 + $0x234] sm:$0xf0] }
 0xed1   : > { %v4706_v19 = vmul.f32 %v4695_v16, %v10045_v6  ;;  %v7509_v6 = vld [vmem:[#allocation28 + $0x2f8] sm:$0xf0]  ;;  %v7484_v60 = vor.u32 %v7904_v8, %v7483_v7  ;;  %v7885_v16 = vld [vmem:[#allocation28 + $0x234] sm:$0xf]  ;;  %v4871_v7 = vld [vmem:[#allocation29 + $0x2] sm:$0x3] }
 0xed2   : > { %v4699_v61 = vmul.f32 0.5, %v4698_v15  ;;  %v7512_v43 = vor.u32 %v7909_v35, %v7509_v6  ;;  %v7488_v15 = vor.u32 %v7903_v9, %v7485_v10  ;;  %v7406_v35 = vor.u32 %v7883_v28, %v7403_v29  ;;  %v7393_v6 = vld [vmem:[#allocation28 + $0x210] sm:$0xf] }
 0xed3   : > { %v4711_v23 = vmul.f32 %v8139_v49, %v4706_v19  ;;  %v7902_v19 = vld [vmem:[#allocation28 + $0x2b4] sm:$0xf0]  ;;  %v4873_v9 = vperm.slane %v4871_v7, 0  ;;  %v4874_v10 = vperm.slane %v4871_v7, 1 }
 0xed4   : > { %v4700_v17 = vsub.f32 1.5, %v4699_v61  ;;  %v7411_v61 = vld [vmem:[#allocation28 + $0x238] sm:$0xf0] }
 0xed5   : > { %v4716_v32 = vadd.f32 %v8140_v24, %v4711_v23  ;;  %v7414_v23 = vor.u32 %v7885_v16, %v7411_v61 }
 0xed6   : > { %v4701_v20 = vmul.f32 %v8144_v13, %v4700_v17  ;;  %v7475_v17 = vld [vmem:[#allocation28 + $0x2b0] sm:$0xf] }
 0xed8   : > { %v4705_v21 = vsel %vm4704_vm9, %v8144_v13, %v4701_v20  ;;  %v7409_v13 = vld [vmem:[#allocation28 + $0x230] sm:$0xf]  ;;  %v7477_v20 = vld [vmem:[#allocation28 + $0x2b8] sm:$0xf0] }
 0xed9   : > { %v4707_v50 = vmul.f32 %v4705_v21, %v10051_v47  ;;  %v7891_v47 = vld [vmem:[#allocation28 + $0x264] sm:$0xf]  ;;  %v7410_v21 = vor.u32 %v7886_v14, %v7409_v13 }
 0xeda   : > { %v7438_v54 = vor.u32 %v7891_v47, %v7435_v44  ;;  %v7898_v47 = vld [vmem:[#allocation28 + $0x294] sm:$0xf0]  ;;  %v7897_v44 = vld [vmem:[#allocation28 + $0x294] sm:$0xf] }
 0xedb   : > { %v4712_v26 = vmul.f32 %v8139_v49, %v4707_v50  ;;  %v7901_v49 = vld [vmem:[#allocation28 + $0x2b4] sm:$0xf]  ;;  %v7884_v50 = vld [vmem:[#allocation28 + $0x224] sm:$0xf0]  ;;  %v7464_v55 = vor.u32 %v7897_v44, %v7461_v37 }
 0xedc   : > { %v7480_v27 = vor.u32 %v7901_v49, %v7477_v20  ;;  %v5282_v37 = vld [vmem:[#allocation29 + $0x8] sm:$0x3] }
 0xedd   : > { %v4717_v33 = vadd.f32 %v8140_v24, %v4712_v26  ;;  %v7401_v24 = vld [vmem:[#allocation28 + $0x220] sm:$0xf]  ;;  %v7476_v26 = vor.u32 %v7902_v19, %v7475_v17  ;;  %v5008_v17 = vld [vmem:[#allocation29 + $0x4] sm:$0x3] }
 0xede   : > { %v7402_v34 = vor.u32 %v7884_v50, %v7401_v24  ;;  %v5010_v49 = vperm.slane %v5008_v17, 0  ;;  %v5011_v20 = vperm.slane %v5008_v17, 1 }
 0xedf   : > { %v10059_v36 = vpack.c.bf16 %v4717_v33, %v4716_v32  ;;  %v7899_v32 = vld [vmem:[#allocation28 + $0x2a4] sm:$0xf]  ;;  %v7469_v33 = vld [vmem:[#allocation28 + $0x2a8] sm:$0xf0] }
 0xee0   : > { %v7472_v40 = vor.u32 %v7899_v32, %v7469_v33 }
 0xee1   : > { %4829 = vmatmul.bf16.vlgmr.msra.gmra.mxu0 %v10059_v36  ;;  %4843 = vmatmul.bf16.vlgmr.msra.gmra.mxu1 %v10059_v36 }
 0xee2   : > { %4965 = vmatmul.bf16.vlgmr.msra.gmra.mxu2 %v10059_v36  ;;  %4979 = vmatmul.bf16.vlgmr.msra.gmra.mxu3 %v10059_v36 }
 0xee3   : > { %5368 = vmatpush.bf16.msra.mxu0 %v7442_v38  ;;  %5382 = vmatpush.bf16.msra.mxu1 %v7446_v39  ;;  %v7882_v38 = vld [vmem:[#allocation28 + $0x214] sm:$0xf0]  ;;  %v7468_v39 = vor.u32 %v7900_v31, %v7467_v30  ;;  %v5145_v30 = vld [vmem:[#allocation29 + $0x6] sm:$0x3] }
 0xee4   : > { %5505 = vmatpush.bf16.msra.mxu2 %v7508_v42  ;;  %5519 = vmatpush.bf16.msra.mxu3 %v7512_v43  ;;  %v7395_v42 = vld [vmem:[#allocation28 + $0x218] sm:$0xf0]  ;;  %v7459_v43 = vld [vmem:[#allocation28 + $0x290] sm:$0xf]  ;;  %v7394_v45 = vor.u32 %v7882_v38, %v7393_v6  ;;  %v5147_v33 = vperm.slane %v5145_v30, 0 }
 0xee5   : > { %v7398_v3 = vor.u32 %v7881_v41, %v7395_v42 }
 0xee7   : > { %5369 = vmatpush.bf16.msra.mxu0 %v7434_v52  ;;  %5383 = vmatpush.bf16.msra.mxu1 %v7438_v54  ;;  %v7880_v52 = vld [vmem:[#allocation28 + $0x204] sm:$0xf0]  ;;  %v7460_v54 = vor.u32 %v7898_v47, %v7459_v43 }
 0xee8   : > { %5506 = vmatpush.bf16.msra.mxu2 %v7500_v58  ;;  %5520 = vmatpush.bf16.msra.mxu3 %v7504_v59  ;;  %v7387_v58 = vld [vmem:[#allocation28 + $0x208] sm:$0xf0]  ;;  %v7451_v59 = vld [vmem:[#allocation28 + $0x280] sm:$0xf]  ;;  %v7386_v1 = vor.u32 %v7880_v52, %v7385_v48 }
 0xee9   : > { %v7390_v2 = vor.u32 %v7879_v56, %v7387_v58  ;;  %v7452_v18 = vor.u32 %v7896_v46, %v7451_v59 }
 0xeeb   : > { %5370 = vmatpush.bf16.msra.mxu0 %v7426_v25  ;;  %5384 = vmatpush.bf16.msra.mxu1 %v7430_v62  ;;  %v7456_v25 = vor.u32 %v7895_v22, %v7453_v0  ;;  %v4734_v62 = vld [vmem:[#allocation29] sm:$0x3]  ;;  %v5419_v0 = vld [vmem:[#allocation29 + $0xa] sm:$0x3] }
 0xeec   : > { %5507 = vmatpush.bf16.msra.mxu2 %v7492_v57  ;;  %5521 = vmatpush.bf16.msra.mxu3 %v7496_v51  ;;  %v4737_v4 = vperm.slane %v4734_v62, 0  ;;  %v4738_v5 = vperm.slane %v4734_v62, 1 }
 0xeef   : > { %5371 = vmatpush.bf16.msra.mxu0 %v7418_v11  ;;  %5385 = vmatpush.bf16.msra.mxu1 %v7422_v12 }
 0xef0   : > { %5508 = vmatpush.bf16.msra.mxu2 %v7484_v60  ;;  %5522 = vmatpush.bf16.msra.mxu3 %v7488_v15 }
 0xef1   : > { %5102 = vmatmul.bf16.vlgmr.msrb.gmra.mxu0 %v10059_v36  ;;  %5116 = vmatmul.bf16.vlgmr.msrb.gmra.mxu1 %v10059_v36 }
 0xef2   : > { %5239 = vmatmul.bf16.vlgmr.msrb.gmra.mxu2 %v10059_v36  ;;  %5253 = vmatmul.bf16.vlgmr.msrb.gmra.mxu3 %v10059_v36 }
 0xef3   : > { %5372 = vmatpush.bf16.msra.mxu0 %v7410_v21  ;;  %5386 = vmatpush.bf16.msra.mxu1 %v7414_v23 }
 0xef4   : > { %5509 = vmatpush.bf16.msra.mxu2 %v7476_v26  ;;  %5523 = vmatpush.bf16.msra.mxu3 %v7480_v27 }
 0xef7   : > { %5373 = vmatpush.bf16.msra.mxu0 %v7402_v34  ;;  %5387 = vmatpush.bf16.msra.mxu1 %v7406_v35  ;;  %v5148_v34 = vperm.slane %v5145_v30, 1 }
 0xef8   : > { %5510 = vmatpush.bf16.msra.mxu2 %v7468_v39  ;;  %5524 = vmatpush.bf16.msra.mxu3 %v7472_v40 }
 0xefb   : > { %5374 = vmatpush.bf16.msra.mxu0 %v7394_v45  ;;  %5388 = vmatpush.bf16.msra.mxu1 %v7398_v3  ;;  %v5284_v45 = vperm.slane %v5282_v37, 0  ;;  %v5285_v3 = vperm.slane %v5282_v37, 1 }
 0xefc   : > { %5511 = vmatpush.bf16.msra.mxu2 %v7460_v54  ;;  %5525 = vmatpush.bf16.msra.mxu3 %v7464_v55 }
 0xeff   : > { %5375 = vmatpush.bf16.msra.mxu0 %v7386_v1  ;;  %5389 = vmatpush.bf16.msra.mxu1 %v7390_v2  ;;  %v5421_v2 = vperm.slane %v5419_v0, 0 }
 0xf00   : > { %5512 = vmatpush.bf16.msra.mxu2 %v7452_v18  ;;  %5526 = vmatpush.bf16.msra.mxu3 %v7456_v25  ;;  %v5422_v18 = vperm.slane %v5419_v0, 1 }
 0xf02   : > { %5376 = vmatmul.bf16.vlgmr.msra.gmra.mxu0 %v10059_v36  ;;  %5390 = vmatmul.bf16.vlgmr.msra.gmra.mxu1 %v10059_v36 }
 0xf03   : > { %5513 = vmatmul.bf16.vlgmr.msra.gmra.mxu2 %v10059_v36  ;;  %5527 = vmatmul.bf16.vlgmr.msra.gmra.mxu3 %v10059_v36 }
 0xf5e   : > { %v4830_v57 = vpop.f32.mrf.mxu0  ;;  %v4844_v51 = vpop.f32.mrf.mxu1 }
 0xf5f   : > { %v4831_v53 = vadd.f32 %v4830_v57, %v4737_v4  ;;  %v4845_v63 = vadd.f32 %v4844_v51, %v4738_v5 }
 0xf61   : > { %v4849_v8 = vpack.c.bf16 %v4845_v63, %v4831_v53 }
 0xf63   : > { %4851 = vst [vmem:[%s10224_s7] sm:$0xff] %v4849_v8 }
 0xf65   : > { %v4966_v11 = vpop.f32.mrf.mxu2  ;;  %v4980_v12 = vpop.f32.mrf.mxu3 }
 0xf66   : > { %v4967_v13 = vadd.f32 %v4966_v11, %v4873_v9  ;;  %v4981_v14 = vadd.f32 %v4980_v12, %v4874_v10  ;;  %v4832_v36 = vpop.f32.mrf.mxu0  ;;  %v4846_v60 = vpop.f32.mrf.mxu1 }
 0xf67   : > { %v4833_v15 = vadd.f32 %v4832_v36, %v4737_v4  ;;  %v4847_v16 = vadd.f32 %v4846_v60, %v4738_v5 }
 0xf68   : > { %v4985_v61 = vpack.c.bf16 %v4981_v14, %v4967_v13 }
 0xf69   : > { %v4850_v19 = vpack.c.bf16 %v4847_v16, %v4833_v15 }
 0xf6a   : > { %7249 = vst [vmem:[%s10224_s7 + $0x10] sm:$0xff] %v4985_v61 }
 0xf6b   : > { %4852 = vst [vmem:[%s10224_s7 + $0x8] sm:$0xff] %v4850_v19 }
 0xf6d   : > { %v4968_v21 = vpop.f32.mrf.mxu2  ;;  %v4982_v23 = vpop.f32.mrf.mxu3 }
 0xf6e   : > { %v4969_v24 = vadd.f32 %v4968_v21, %v4873_v9  ;;  %v4983_v50 = vadd.f32 %v4982_v23, %v4874_v10  ;;  %v5103_v26 = vpop.f32.mrf.mxu0  ;;  %v5117_v27 = vpop.f32.mrf.mxu1 }
 0xf6f   : > { %v5104_v28 = vadd.f32 %v5103_v26, %v5010_v49  ;;  %v5118_v29 = vadd.f32 %v5117_v27, %v5011_v20 }
 0xf70   : > { %v4986_v31 = vpack.c.bf16 %v4983_v50, %v4969_v24 }
 0xf71   : > { %v5122_v32 = vpack.c.bf16 %v5118_v29, %v5104_v28 }
 0xf72   : > { %7250 = vst [vmem:[%s10224_s7 + $0x18] sm:$0xff] %v4986_v31 }
 0xf73   : > { %7315 = vst [vmem:[%s10224_s7 + $0x20] sm:$0xff] %v5122_v32 }
 0xf75   : > { %v5240_v35 = vpop.f32.mrf.mxu2  ;;  %v5254_v6 = vpop.f32.mrf.mxu3 }
 0xf76   : > { %v5241_v38 = vadd.f32 %v5240_v35, %v5147_v33  ;;  %v5255_v39 = vadd.f32 %v5254_v6, %v5148_v34  ;;  %v5105_v40 = vpop.f32.mrf.mxu0  ;;  %v5119_v41 = vpop.f32.mrf.mxu1 }
 0xf77   : > { %v5106_v42 = vadd.f32 %v5105_v40, %v5010_v49  ;;  %v5120_v43 = vadd.f32 %v5119_v41, %v5011_v20 }
 0xf78   : > { %v5259_v47 = vpack.c.bf16 %v5255_v39, %v5241_v38 }
 0xf79   : > { %v5123_v44 = vpack.c.bf16 %v5120_v43, %v5106_v42 }
 0xf7a   : > { %7381 = vst [vmem:[%s10224_s7 + $0x30] sm:$0xff] %v5259_v47 }
 0xf7b   : > { %7316 = vst [vmem:[%s10224_s7 + $0x28] sm:$0xff] %v5123_v44 }
 0xf7d   : > { %v5242_v48 = vpop.f32.mrf.mxu2  ;;  %v5256_v52 = vpop.f32.mrf.mxu3 }
 0xf7e   : > { %v5243_v54 = vadd.f32 %v5242_v48, %v5147_v33  ;;  %v5257_v55 = vadd.f32 %v5256_v52, %v5148_v34 }
 0xf7f   : > { %v5377_v56 = vpop.f32.mrf.mxu0  ;;  %v5391_v58 = vpop.f32.mrf.mxu1 }
 0xf80   : > { %v5260_v59 = vpack.c.bf16 %v5257_v55, %v5243_v54  ;;  %v5378_v46 = vadd.f32 %v5377_v56, %v5284_v45  ;;  %v5392_v22 = vadd.f32 %v5391_v58, %v5285_v3 }
 0xf82   : > { %7382 = vst [vmem:[%s10224_s7 + $0x38] sm:$0xff] %v5260_v59  ;;  %v5396_v1 = vpack.c.bf16 %v5392_v22, %v5378_v46 }
 0xf84   : > { %7447 = vst [vmem:[%s10224_s7 + $0x40] sm:$0xff] %v5396_v1 }
 0xf86   : > { %v5514_v25 = vpop.f32.mrf.mxu2  ;;  %v5528_v62 = vpop.f32.mrf.mxu3 }
 0xf87   : > { %v5515_v4 = vadd.f32 %v5514_v25, %v5421_v2  ;;  %v5529_v5 = vadd.f32 %v5528_v62, %v5422_v18  ;;  %v5379_v57 = vpop.f32.mrf.mxu0  ;;  %v5393_v51 = vpop.f32.mrf.mxu1 }
 0xf88   : > { %v5380_v53 = vadd.f32 %v5379_v57, %v5284_v45  ;;  %v5394_v63 = vadd.f32 %v5393_v51, %v5285_v3 }
 0xf89   : > { %v5533_v7 = vpack.c.bf16 %v5529_v5, %v5515_v4 }
 0xf8a   : > { %v5397_v8 = vpack.c.bf16 %v5394_v63, %v5380_v53 }
 0xf8b   : > { %7513 = vst [vmem:[%s10224_s7 + $0x50] sm:$0xff] %v5533_v7 }
 0xf8c   : > { %7448 = vst [vmem:[%s10224_s7 + $0x48] sm:$0xff] %v5397_v8 }
 0xf8e   : > { %v5516_v9 = vpop.f32.mrf.mxu2  ;;  %v5530_v10 = vpop.f32.mrf.mxu3 }
 0xf8f   : > { %v5517_v11 = vadd.f32 %v5516_v9, %v5421_v2  ;;  %v5531_v12 = vadd.f32 %v5530_v10, %v5422_v18 }
 0xf91   : > { %v5534_v13 = vpack.c.bf16 %v5531_v12, %v5517_v11 }
 0xf93   : > { %7514 = vst [vmem:[%s10224_s7 + $0x58] sm:$0xff] %v5534_v13 }
 0xf94 PF: > { %s10225_s25 = sld [smem:[#allocation42_spill]]  ;;  %s10228_s30 = smov %s8843_s24 }
 0xf95   : > { %s10226_s4 = sld [smem:[#allocation40_spill]] }
 0xf96   : > { %s10227_s19 = sld [smem:[#allocation43_spill]] }
 0xf9a   : > { %p36_p5 = scmp.ge.s32.totalorder %s10225_s25, 4  }
 0xf9c   : > { %s10229_s24 = smov %s10227_s19  ;;  %38 = sbr.rel (!%p36_p5) target bundleno = 23 (0x17), region = 335 }
 0xfa1   :  { %5555 = vsyncpa [#allocation5], 1 }
 0xfa2   :  { %5557 = vsyncpa [#allocation5 + $0x1], 1 }
 0xfa3   :  { %5558 = vsyncpa [#allocation7], 1 }
 0xfa4   :  { %5559 = vsyncpa [#allocation10], 1 }
 0xfa5   :  { %5560 = vsyncpa [#allocation13], 1 }
 0xfa6   :  { %5561 = vsyncpa [#allocation30], 1 }

</bundles_post_ra>
